<compile_context>
chip_gen: v6e
topology: v6e:2x2x1
jax: 0.10.0
libtpu: 0.0.40
codegen_flags: <defaults>
</compile_context>

<pallas_src>
import math
from functools import partial

import jax
import jax.numpy as jnp
from jax import lax
from jax.experimental import pallas as pl
from jax.experimental.pallas import tpu as pltpu

_VMEM = pl.BlockSpec(memory_space=pltpu.MemorySpace.VMEM)
_LN_EPS = 1e-5
_E_PAD = 128        # lane-padded model dim (true d_model = 32)
_F_PAD = 128        # lane-padded FFN hidden dim (true nhid = 64)
# float32 = exact parity with the PyTorch reference (required on v5e VPU/EUP).
# Set to jnp.bfloat16 on v6e/v7x for full-rate MXU; accumulation stays f32.
_MATMUL_DTYPE = jnp.float32


# ----------------------------- fused kernel ---------------------------------

def _transformer_kernel(src_ref, tgt_ref, encm_ref, selfm_ref, crossm_ref,
                        wqkv_ref, bqkv_ref, wo_ref, bo_ref,
                        w1_ref, b1_ref, w2_ref, b2_ref,
                        lng_ref, lnb_ref, out_ref, *,
                        nlayers, nhead, d_model, d_head, eps, mm_dtype):
    """Entire transformer forward on VMEM-resident slabs.

    src_ref/tgt_ref : (M, E_PAD) PE-added, zero-padded activations
    *m_ref          : additive 0/-inf masks over flattened (L*B) rows/cols
    wqkv_ref        : (A, E_PAD, 3*d_model) packed per-attention-block QKV
    wo_ref          : (A, d_model, E_PAD); bo/b*/ln* are (N, 1, width) stacks
    Traversal order of the stacked blocks matches init_params().
    """
    scale = 1.0 / math.sqrt(d_head)
    inv_e = 1.0 / d_model
    col = lax.broadcasted_iota(jnp.int32, (1, _E_PAD), 1)
    colmask = (col < d_model).astype(jnp.float32)        # 1 on real cols, 0 on pad

    def mm(a, b):
        return jnp.dot(a.astype(mm_dtype), b.astype(mm_dtype),
                       preferred_element_type=jnp.float32)

    def mm_t(a, b):  # a @ b.T (rhs-transposed MXU form, no explicit transpose)
        return lax.dot_general(a.astype(mm_dtype), b.astype(mm_dtype),
                               (((1,), (1,)), ((), ())),
                               preferred_element_type=jnp.float32)

    def layer_norm(y, li):
        # Exact LayerNorm over the true d_model columns (pad cols masked out);
        # padded gamma/beta are zero so pad columns stay exactly zero.
        mu = jnp.sum(y, axis=-1, keepdims=True) * inv_e
        yc = (y - mu) * colmask
        var = jnp.sum(yc * yc, axis=-1, keepdims=True) * inv_e
        return yc * lax.rsqrt(var + eps) * lng_ref[li] + lnb_ref[li]

    def attention(xq, xkv, mask, ai):
        w = wqkv_ref[ai]          # (E_PAD, 3*d_model)  cols = [Q | K | V]
        b = bqkv_ref[ai]          # (1, 3*d_model)
        if xq is xkv:             # self-attention: one packed QKV dot
            qkv = mm(xq, w) + b
            q = qkv[:, :d_model]
            kv = qkv[:, d_model:]
        else:                     # cross-attention: Q from xq, K/V from xkv
            q = mm(xq, w[:, :d_model]) + b[:, :d_model]
            kv = mm(xkv, w[:, d_model:]) + b[:, d_model:]
        woi = wo_ref[ai]          # (d_model, E_PAD)
        acc = xq + bo_ref[ai]     # residual + output-projection bias
        for h in range(nhead):    # static unroll (nhead small)
            lo, hi = h * d_head, (h + 1) * d_head
            qh = q[:, lo:hi]
            kh = kv[:, lo:hi]
            vh = kv[:, d_model + lo:d_model + hi]
            s = mm_t(qh, kh) * scale + mask
            s = s - jnp.max(s, axis=-1, keepdims=True)
            p = jnp.exp(s)
            p = p / jnp.sum(p, axis=-1, keepdims=True)   # exact softmax divide
            acc = acc + mm(mm(p, vh), woi[lo:hi, :])
        return acc

    def ffn(x, fi):
        h = jnp.maximum(mm(x, w1_ref[fi]) + b1_ref[fi], 0.0)
        return x + mm(h, w2_ref[fi]) + b2_ref[fi]

    enc_m = encm_ref[...]
    self_m = selfm_ref[...]
    cross_m = crossm_ref[...]

    ai = fi = li = 0
    # ---------------- encoder ----------------
    mem = src_ref[...]
    for _ in range(nlayers):
        mem = layer_norm(attention(mem, mem, enc_m, ai), li); ai += 1; li += 1
        mem = layer_norm(ffn(mem, fi), li); fi += 1; li += 1
    # ---------------- decoder ----------------
    out = tgt_ref[...]
    for _ in range(nlayers):
        out = layer_norm(attention(out, out, self_m, ai), li); ai += 1; li += 1
        out = layer_norm(attention(out, mem, cross_m, ai), li); ai += 1; li += 1
        out = layer_norm(ffn(out, fi), li); fi += 1; li += 1

    out_ref[...] = out


# ----------------------------- masks & PE -----------------------------------

def _attn_mask(Lq, Lk, B, causal):
    """Additive 0/-inf mask over flattened (L*B) rows/cols (row index l*B+b).

    Blocks cross-batch attention (required by the flattened score layout) and
    optionally enforces PyTorch's square-subsequent (causal) structure.
    """
    iq = jnp.arange(Lq * B, dtype=jnp.int32)
    jk = jnp.arange(Lk * B, dtype=jnp.int32)
    ok = (iq[:, None] % B) == (jk[None, :] % B)
    if causal:
        ok = ok & ((jk[None, :] // B) <= (iq[:, None] // B))
    return jnp.where(ok, 0.0, -jnp.inf).astype(jnp.float32)


def positional_encoding_table(d_model, max_len=100):
    position = jnp.arange(max_len, dtype=jnp.float32)[:, None]
    div_term = jnp.exp(jnp.arange(0, d_model, 2, dtype=jnp.float32)
                       * (-math.log(10000.0) / d_model))
    pe = jnp.zeros((max_len, d_model), jnp.float32)
    pe = pe.at[:, 0::2].set(jnp.sin(position * div_term))
    pe = pe.at[:, 1::2].set(jnp.cos(position * div_term))   # d_model even
    return pe[:, None, :]                                    # (max_len, 1, d)


# ----------------------------- forward pass ---------------------------------

def transformer_forward(params, src, tar, *, d_model, nhead, nlayers):
    S_src, B, _ = src.shape
    S_tgt = tar.shape[0]
    M_src, M_tgt = S_src * B, S_tgt * B
    pe = params["pe"]

    def prep(x, S):
        # PE add in plain jnp (XLA fuses with the pad/reshape); zero-pad lanes.
        x = x + pe[:S]
        x2 = x.reshape(S * B, d_model)
        return jnp.pad(x2, ((0, 0), (0, _E_PAD - d_model)))

    src2 = prep(src, S_src)
    tgt2 = prep(tar, S_tgt)

    enc_mask = _attn_mask(S_src, S_src, B, causal=False)
    self_mask = _attn_mask(S_tgt, S_tgt, B, causal=True)
    cross_mask = _attn_mask(S_tgt, S_src, B, causal=False)

    kernel = partial(_transformer_kernel, nlayers=nlayers, nhead=nhead,
                     d_model=d_model, d_head=d_model // nhead,
                     eps=_LN_EPS, mm_dtype=_MATMUL_DTYPE)
    out = pl.pallas_call(
        kernel,
        out_shape=jax.ShapeDtypeStruct((M_tgt, _E_PAD), jnp.float32),
        in_specs=[_VMEM] * 15,
        out_specs=_VMEM,
    )(src2, tgt2, enc_mask, self_mask, cross_mask,
      params["attn_wqkv"], params["attn_bqkv"], params["attn_wo"],
      params["attn_bo"], params["ffn_w1"], params["ffn_b1"],
      params["ffn_w2"], params["ffn_b2"], params["ln_g"], params["ln_b"])

    return out[:, :d_model].reshape(S_tgt, B, d_model)


# ----------------------------- parameter init -------------------------------
# PyTorch layouts are converted ONCE here to padded, packed kernel layout.

def _init_attn(key, E, nhead):
    k1, k2 = jax.random.split(key)
    w_in = 0.05 * jax.random.normal(k1, (3 * E, E), jnp.float32)   # (3E, E)
    b_in = jnp.zeros((3 * E,), jnp.float32)
    w_out = 0.05 * jax.random.normal(k2, (E, E), jnp.float32)       # (E, E)
    b_out = jnp.zeros((E,), jnp.float32)
    wqkv = jnp.pad(w_in.T, ((0, _E_PAD - E), (0, 0)))      # (E_PAD, 3E)
    bqkv = b_in.reshape(1, 3 * E)
    wo = jnp.pad(w_out.T, ((0, 0), (0, _E_PAD - E)))        # (E, E_PAD)
    bo = jnp.pad(b_out.reshape(1, E), ((0, 0), (0, _E_PAD - E)))
    return dict(wqkv=wqkv, bqkv=bqkv, wo=wo, bo=bo)


def _init_ffn(key, E, F):
    k1, k2 = jax.random.split(key)
    w1 = 0.05 * jax.random.normal(k1, (F, E), jnp.float32)          # (out, in)
    w2 = 0.05 * jax.random.normal(k2, (E, F), jnp.float32)
    return dict(
        w1=jnp.pad(w1.T, ((0, _E_PAD - E), (0, _F_PAD - F))),       # (E_PAD, F_PAD)
        b1=jnp.zeros((1, _F_PAD), jnp.float32),
        w2=jnp.pad(w2.T, ((0, _F_PAD - F), (0, _E_PAD - E))),       # (F_PAD, E_PAD)
        b2=jnp.zeros((1, _E_PAD), jnp.float32))


def _ln_pair(E):
    g = jnp.pad(jnp.ones((1, E), jnp.float32), ((0, 0), (0, _E_PAD - E)))
    b = jnp.zeros((1, _E_PAD), jnp.float32)
    return g, b


def init_params(key, ninp, nhead, nhid, nlayers):
    E, F = ninp, nhid
    keys = iter(jax.random.split(key, 8 * nlayers + 4))

    enc_attn = [_init_attn(next(keys), E, nhead) for _ in range(nlayers)]
    enc_ffn = [_init_ffn(next(keys), E, F) for _ in range(nlayers)]
    dec_self, dec_cross, dec_ffn = [], [], []
    for _ in range(nlayers):
        dec_self.append(_init_attn(next(keys), E, nhead))
        dec_cross.append(_init_attn(next(keys), E, nhead))
        dec_ffn.append(_init_ffn(next(keys), E, F))

    # Stacking order MUST match the kernel's traversal order.
    attn_list = enc_attn + [a for pair in zip(dec_self, dec_cross) for a in pair]
    ffn_list = enc_ffn + dec_ffn
    n_ln = 2 * nlayers + 3 * nlayers
    ln = [_ln_pair(E) for _ in range(n_ln)]

    return dict(
        pe=positional_encoding_table(E, max_len=100),
        attn_wqkv=jnp.stack([a["wqkv"] for a in attn_list]),
        attn_bqkv=jnp.stack([a["bqkv"] for a in attn_list]),
        attn_wo=jnp.stack([a["wo"] for a in attn_list]),
        attn_bo=jnp.stack([a["bo"] for a in attn_list]),
        ffn_w1=jnp.stack([f["w1"] for f in ffn_list]),
        ffn_b1=jnp.stack([f["b1"] for f in ffn_list]),
        ffn_w2=jnp.stack([f["w2"] for f in ffn_list]),
        ffn_b2=jnp.stack([f["b2"] for f in ffn_list]),
        ln_g=jnp.stack([g for g, _ in ln]),
        ln_b=jnp.stack([b for _, b in ln]),
    )


# ----------------------------- pure-JAX reference ---------------------------
# Per-batch / per-head reference (no flatten-mask trick, no padding tricks)
# used only to sanity-check the fused kernel.

def _reference_forward(params, src, tar, *, d_model, nhead, nlayers):
    E = d_model
    Dh = E // nhead
    pe = params["pe"]

    def ln(y, li):
        g = params["ln_g"][li, 0, :E]
        b = params["ln_b"][li, 0, :E]
        mu = y.mean(-1, keepdims=True)
        var = ((y - mu) ** 2).mean(-1, keepdims=True)
        return (y - mu) / jnp.sqrt(var + _LN_EPS) * g + b

    def attn(xq, xkv, ai, causal):
        w = params["attn_wqkv"][ai][:E]          # (E, 3E)
        bqkv = params["attn_bqkv"][ai][0]        # (3E,)
        wo = params["attn_wo"][ai][:, :E]        # (E, E)
        bo = params["attn_bo"][ai][0, :E]
        q = jnp.einsum('lbe,ef->lbf', xq, w[:, :E]) + bqkv[:E]
        k = jnp.einsum('lbe,ef->lbf', xkv, w[:, E:2 * E]) + bqkv[E:2 * E]
        v = jnp.einsum('lbe,ef->lbf', xkv, w[:, 2 * E:]) + bqkv[2 * E:]
        Lq, B = q.shape[0], q.shape[1]
        Lk = k.shape[0]
        qh = q.reshape(Lq, B, nhead, Dh)
        kh = k.reshape(Lk, B, nhead, Dh)
        vh = v.reshape(Lk, B, nhead, Dh)
        s = jnp.einsum('qbhd,kbhd->bhqk', qh, kh) / math.sqrt(Dh)
        if causal:
            cm = jnp.where(jnp.tril(jnp.ones((Lq, Lk), bool)), 0.0, -jnp.inf)
            s = s + cm
        p = jax.nn.softmax(s, axis=-1)
        o = jnp.einsum('bhqk,kbhd->qbhd', p, vh).reshape(Lq, B, E)
        return xq + jnp.einsum('qbe,ef->qbf', o, wo) + bo

    def ffn(x, fi):
        w1 = params["ffn_w1"][fi][:E]            # (E, F_PAD)
        b1 = params["ffn_b1"][fi][0]
        w2 = params["ffn_w2"][fi][:, :E]         # (F_PAD, E)
        b2 = params["ffn_b2"][fi][0, :E]
        h = jax.nn.relu(jnp.einsum('lbe,ef->lbf', x, w1) + b1)
        return x + jnp.einsum('lbf,fe->lbe', h, w2) + b2

    S_src, S_tgt = src.shape[0], tar.shape[0]
    mem = src + pe[:S_src]
    out = tar + pe[:S_tgt]
    ai = fi = li = 0
    for _ in range(nlayers):
        mem = ln(attn(mem, mem, ai, False), li); ai += 1; li += 1
        mem = ln(ffn(mem, fi), li); fi += 1; li += 1
    for _ in range(nlayers):
        out = ln(attn(out, out, ai, True), li); ai += 1; li += 1
        out = ln(attn(out, mem, ai, False), li); ai += 1; li += 1
        out = ln(ffn(out, fi), li); fi += 1; li += 1
    return out


# ----------------------------- main ------------------------------------------

if __name__ == "__main__":
    ninp, nhead, nhid, nlayers = 32, 4, 64, 2
    S_src, S_tgt, B = 10, 8, 2

    key = jax.random.PRNGKey(0)
    k_src, k_tgt, k_par = jax.random.split(key, 3)

    src = jax.random.normal(k_src, (S_src, B, ninp), jnp.float32)
    tar = jax.random.normal(k_tgt, (S_tgt, B, ninp), jnp.float32)
    params = init_params(k_par, ninp, nhead, nhid, nlayers)

    fwd = jax.jit(partial(transformer_forward,
                          d_model=ninp, nhead=nhead, nlayers=nlayers))
    out = jax.block_until_ready(fwd(params, src, tar))

    assert out.shape == (S_tgt, B, ninp)
    assert bool(jnp.all(jnp.isfinite(out)))

    ref = _reference_forward(params, src, tar,
                             d_model=ninp, nhead=nhead, nlayers=nlayers)
    assert bool(jnp.allclose(out, ref, rtol=1e-3, atol=1e-3))

    print("KERNEL_OK")
</pallas_src>

<mosaic_0001>
module attributes {stable_mosaic.version = 11 : i64} {
  func.func @_transformer_kernel(%arg0: memref<20x128xf32, #tpu.memory_space<vmem>>, %arg1: memref<16x128xf32, #tpu.memory_space<vmem>>, %arg2: memref<20x20xf32, #tpu.memory_space<vmem>>, %arg3: memref<16x16xf32, #tpu.memory_space<vmem>>, %arg4: memref<16x20xf32, #tpu.memory_space<vmem>>, %arg5: memref<6x128x96xf32, #tpu.memory_space<vmem>>, %arg6: memref<6x1x96xf32, #tpu.memory_space<vmem>>, %arg7: memref<6x32x128xf32, #tpu.memory_space<vmem>>, %arg8: memref<6x1x128xf32, #tpu.memory_space<vmem>>, %arg9: memref<4x128x128xf32, #tpu.memory_space<vmem>>, %arg10: memref<4x1x128xf32, #tpu.memory_space<vmem>>, %arg11: memref<4x128x128xf32, #tpu.memory_space<vmem>>, %arg12: memref<4x1x128xf32, #tpu.memory_space<vmem>>, %arg13: memref<10x1x128xf32, #tpu.memory_space<vmem>>, %arg14: memref<10x1x128xf32, #tpu.memory_space<vmem>>, %arg15: memref<16x128xf32, #tpu.memory_space<vmem>>) attributes {dimension_semantics = [], scalar_prefetch = 0 : i64, scratch_operands = 0 : i64, tpu.core_type = #tpu.core_type<tc>} {
    %0 = tpu.iota {dimensions = array<i32: 1>} : vector<1x128xi32>
    %c32_i32 = arith.constant 32 : i32
    %1 = vector.broadcast %c32_i32 : i32 to vector<1x128xi32>
    %2 = arith.cmpi slt, %0, %1 : vector<1x128xi32>
    %3 = arith.extui %2 : vector<1x128xi1> to vector<1x128xi32>
    %4 = arith.sitofp %3 : vector<1x128xi32> to vector<1x128xf32>
    %c0 = arith.constant 0 : index
    %c0_0 = arith.constant 0 : index
    %5 = vector.load %arg2[%c0, %c0_0] : memref<20x20xf32, #tpu.memory_space<vmem>>, vector<20x20xf32>
    %c0_1 = arith.constant 0 : index
    %c0_2 = arith.constant 0 : index
    %6 = vector.load %arg3[%c0_1, %c0_2] : memref<16x16xf32, #tpu.memory_space<vmem>>, vector<16x16xf32>
    %c0_3 = arith.constant 0 : index
    %c0_4 = arith.constant 0 : index
    %7 = vector.load %arg4[%c0_3, %c0_4] : memref<16x20xf32, #tpu.memory_space<vmem>>, vector<16x20xf32>
    %c0_5 = arith.constant 0 : index
    %c0_6 = arith.constant 0 : index
    %8 = vector.load %arg0[%c0_5, %c0_6] : memref<20x128xf32, #tpu.memory_space<vmem>>, vector<20x128xf32>
    %c0_7 = arith.constant 0 : index
    %c0_8 = arith.constant 0 : index
    %c0_9 = arith.constant 0 : index
    %9 = vector.load %arg5[%c0_7, %c0_8, %c0_9] : memref<6x128x96xf32, #tpu.memory_space<vmem>>, vector<1x128x96xf32>
    %10 = vector.shape_cast %9 : vector<1x128x96xf32> to vector<128x96xf32>
    %c0_10 = arith.constant 0 : index
    %c0_11 = arith.constant 0 : index
    %c0_12 = arith.constant 0 : index
    %11 = vector.load %arg6[%c0_10, %c0_11, %c0_12] : memref<6x1x96xf32, #tpu.memory_space<vmem>>, vector<1x1x96xf32>
    %12 = vector.shape_cast %11 : vector<1x1x96xf32> to vector<1x96xf32>
    %cst = arith.constant dense<0.000000e+00> : vector<20x96xf32>
    %13 = tpu.matmul %8, %10, %cst {dimension_numbers = #tpu.dot_dimension_numbers<[1], [0], [0], [1], [0, 0, 1, 1], [], []>} : vector<20x128xf32>, vector<128x96xf32>, vector<20x96xf32> -> vector<20x96xf32>
    %14 = vector.broadcast %12 : vector<1x96xf32> to vector<20x96xf32>
    %15 = arith.addf %13, %14 : vector<20x96xf32>
    %16 = vector.extract_strided_slice %15 {offsets = [0, 0], sizes = [20, 32], strides = [1, 1]} : vector<20x96xf32> to vector<20x32xf32>
    %17 = vector.extract_strided_slice %15 {offsets = [0, 32], sizes = [20, 64], strides = [1, 1]} : vector<20x96xf32> to vector<20x64xf32>
    %c0_13 = arith.constant 0 : index
    %c0_14 = arith.constant 0 : index
    %c0_15 = arith.constant 0 : index
    %18 = vector.load %arg7[%c0_13, %c0_14, %c0_15] : memref<6x32x128xf32, #tpu.memory_space<vmem>>, vector<1x32x128xf32>
    %19 = vector.shape_cast %18 : vector<1x32x128xf32> to vector<32x128xf32>
    %c0_16 = arith.constant 0 : index
    %c0_17 = arith.constant 0 : index
    %c0_18 = arith.constant 0 : index
    %20 = vector.load %arg8[%c0_16, %c0_17, %c0_18] : memref<6x1x128xf32, #tpu.memory_space<vmem>>, vector<1x1x128xf32>
    %21 = vector.shape_cast %20 : vector<1x1x128xf32> to vector<1x128xf32>
    %22 = vector.broadcast %21 : vector<1x128xf32> to vector<20x128xf32>
    %23 = arith.addf %8, %22 : vector<20x128xf32>
    %24 = vector.extract_strided_slice %16 {offsets = [0, 0], sizes = [20, 8], strides = [1, 1]} : vector<20x32xf32> to vector<20x8xf32>
    %25 = vector.extract_strided_slice %17 {offsets = [0, 0], sizes = [20, 8], strides = [1, 1]} : vector<20x64xf32> to vector<20x8xf32>
    %26 = vector.extract_strided_slice %17 {offsets = [0, 32], sizes = [20, 8], strides = [1, 1]} : vector<20x64xf32> to vector<20x8xf32>
    %cst_19 = arith.constant dense<0.000000e+00> : vector<20x20xf32>
    %27 = tpu.matmul %24, %25, %cst_19 {dimension_numbers = #tpu.dot_dimension_numbers<[1], [1], [0], [0], [0, 0, 1, 0], [], []>} : vector<20x8xf32>, vector<20x8xf32>, vector<20x20xf32> -> vector<20x20xf32>
    %cst_20 = arith.constant 0.353553385 : f32
    %28 = vector.broadcast %cst_20 : f32 to vector<20x20xf32>
    %29 = arith.mulf %27, %28 : vector<20x20xf32>
    %30 = arith.addf %29, %5 : vector<20x20xf32>
    %cst_21 = arith.constant dense<0xFF800000> : vector<20xf32>
    %31 = vector.multi_reduction <maximumf>, %30, %cst_21 [1] : vector<20x20xf32> to vector<20xf32>
    %32 = vector.shape_cast %31 : vector<20xf32> to vector<20x1xf32>
    %33 = vector.broadcast %32 : vector<20x1xf32> to vector<20x20xf32>
    %34 = arith.subf %30, %33 : vector<20x20xf32>
    %35 = math.exp %34 : vector<20x20xf32>
    %cst_22 = arith.constant dense<0.000000e+00> : vector<20xf32>
    %36 = vector.multi_reduction <add>, %35, %cst_22 [1] : vector<20x20xf32> to vector<20xf32>
    %37 = vector.shape_cast %36 : vector<20xf32> to vector<20x1xf32>
    %38 = vector.broadcast %37 : vector<20x1xf32> to vector<20x20xf32>
    %39 = arith.divf %35, %38 : vector<20x20xf32>
    %cst_23 = arith.constant dense<0.000000e+00> : vector<20x8xf32>
    %40 = tpu.matmul %39, %26, %cst_23 {dimension_numbers = #tpu.dot_dimension_numbers<[1], [0], [0], [1], [0, 0, 1, 1], [], []>} : vector<20x20xf32>, vector<20x8xf32>, vector<20x8xf32> -> vector<20x8xf32>
    %41 = vector.extract_strided_slice %19 {offsets = [0, 0], sizes = [8, 128], strides = [1, 1]} : vector<32x128xf32> to vector<8x128xf32>
    %cst_24 = arith.constant dense<0.000000e+00> : vector<20x128xf32>
    %42 = tpu.matmul %40, %41, %cst_24 {dimension_numbers = #tpu.dot_dimension_numbers<[1], [0], [0], [1], [0, 0, 1, 1], [], []>} : vector<20x8xf32>, vector<8x128xf32>, vector<20x128xf32> -> vector<20x128xf32>
    %43 = arith.addf %23, %42 : vector<20x128xf32>
    %44 = vector.extract_strided_slice %16 {offsets = [0, 8], sizes = [20, 8], strides = [1, 1]} : vector<20x32xf32> to vector<20x8xf32>
    %45 = vector.extract_strided_slice %17 {offsets = [0, 8], sizes = [20, 8], strides = [1, 1]} : vector<20x64xf32> to vector<20x8xf32>
    %46 = vector.extract_strided_slice %17 {offsets = [0, 40], sizes = [20, 8], strides = [1, 1]} : vector<20x64xf32> to vector<20x8xf32>
    %cst_25 = arith.constant dense<0.000000e+00> : vector<20x20xf32>
    %47 = tpu.matmul %44, %45, %cst_25 {dimension_numbers = #tpu.dot_dimension_numbers<[1], [1], [0], [0], [0, 0, 1, 0], [], []>} : vector<20x8xf32>, vector<20x8xf32>, vector<20x20xf32> -> vector<20x20xf32>
    %cst_26 = arith.constant 0.353553385 : f32
    %48 = vector.broadcast %cst_26 : f32 to vector<20x20xf32>
    %49 = arith.mulf %47, %48 : vector<20x20xf32>
    %50 = arith.addf %49, %5 : vector<20x20xf32>
    %cst_27 = arith.constant dense<0xFF800000> : vector<20xf32>
    %51 = vector.multi_reduction <maximumf>, %50, %cst_27 [1] : vector<20x20xf32> to vector<20xf32>
    %52 = vector.shape_cast %51 : vector<20xf32> to vector<20x1xf32>
    %53 = vector.broadcast %52 : vector<20x1xf32> to vector<20x20xf32>
    %54 = arith.subf %50, %53 : vector<20x20xf32>
    %55 = math.exp %54 : vector<20x20xf32>
    %cst_28 = arith.constant dense<0.000000e+00> : vector<20xf32>
    %56 = vector.multi_reduction <add>, %55, %cst_28 [1] : vector<20x20xf32> to vector<20xf32>
    %57 = vector.shape_cast %56 : vector<20xf32> to vector<20x1xf32>
    %58 = vector.broadcast %57 : vector<20x1xf32> to vector<20x20xf32>
    %59 = arith.divf %55, %58 : vector<20x20xf32>
    %cst_29 = arith.constant dense<0.000000e+00> : vector<20x8xf32>
    %60 = tpu.matmul %59, %46, %cst_29 {dimension_numbers = #tpu.dot_dimension_numbers<[1], [0], [0], [1], [0, 0, 1, 1], [], []>} : vector<20x20xf32>, vector<20x8xf32>, vector<20x8xf32> -> vector<20x8xf32>
    %61 = vector.extract_strided_slice %19 {offsets = [8, 0], sizes = [8, 128], strides = [1, 1]} : vector<32x128xf32> to vector<8x128xf32>
    %cst_30 = arith.constant dense<0.000000e+00> : vector<20x128xf32>
    %62 = tpu.matmul %60, %61, %cst_30 {dimension_numbers = #tpu.dot_dimension_numbers<[1], [0], [0], [1], [0, 0, 1, 1], [], []>} : vector<20x8xf32>, vector<8x128xf32>, vector<20x128xf32> -> vector<20x128xf32>
    %63 = arith.addf %43, %62 : vector<20x128xf32>
    %64 = vector.extract_strided_slice %16 {offsets = [0, 16], sizes = [20, 8], strides = [1, 1]} : vector<20x32xf32> to vector<20x8xf32>
    %65 = vector.extract_strided_slice %17 {offsets = [0, 16], sizes = [20, 8], strides = [1, 1]} : vector<20x64xf32> to vector<20x8xf32>
    %66 = vector.extract_strided_slice %17 {offsets = [0, 48], sizes = [20, 8], strides = [1, 1]} : vector<20x64xf32> to vector<20x8xf32>
    %cst_31 = arith.constant dense<0.000000e+00> : vector<20x20xf32>
    %67 = tpu.matmul %64, %65, %cst_31 {dimension_numbers = #tpu.dot_dimension_numbers<[1], [1], [0], [0], [0, 0, 1, 0], [], []>} : vector<20x8xf32>, vector<20x8xf32>, vector<20x20xf32> -> vector<20x20xf32>
    %cst_32 = arith.constant 0.353553385 : f32
    %68 = vector.broadcast %cst_32 : f32 to vector<20x20xf32>
    %69 = arith.mulf %67, %68 : vector<20x20xf32>
    %70 = arith.addf %69, %5 : vector<20x20xf32>
    %cst_33 = arith.constant dense<0xFF800000> : vector<20xf32>
    %71 = vector.multi_reduction <maximumf>, %70, %cst_33 [1] : vector<20x20xf32> to vector<20xf32>
    %72 = vector.shape_cast %71 : vector<20xf32> to vector<20x1xf32>
    %73 = vector.broadcast %72 : vector<20x1xf32> to vector<20x20xf32>
    %74 = arith.subf %70, %73 : vector<20x20xf32>
    %75 = math.exp %74 : vector<20x20xf32>
    %cst_34 = arith.constant dense<0.000000e+00> : vector<20xf32>
    %76 = vector.multi_reduction <add>, %75, %cst_34 [1] : vector<20x20xf32> to vector<20xf32>
    %77 = vector.shape_cast %76 : vector<20xf32> to vector<20x1xf32>
    %78 = vector.broadcast %77 : vector<20x1xf32> to vector<20x20xf32>
    %79 = arith.divf %75, %78 : vector<20x20xf32>
    %cst_35 = arith.constant dense<0.000000e+00> : vector<20x8xf32>
    %80 = tpu.matmul %79, %66, %cst_35 {dimension_numbers = #tpu.dot_dimension_numbers<[1], [0], [0], [1], [0, 0, 1, 1], [], []>} : vector<20x20xf32>, vector<20x8xf32>, vector<20x8xf32> -> vector<20x8xf32>
    %81 = vector.extract_strided_slice %19 {offsets = [16, 0], sizes = [8, 128], strides = [1, 1]} : vector<32x128xf32> to vector<8x128xf32>
    %cst_36 = arith.constant dense<0.000000e+00> : vector<20x128xf32>
    %82 = tpu.matmul %80, %81, %cst_36 {dimension_numbers = #tpu.dot_dimension_numbers<[1], [0], [0], [1], [0, 0, 1, 1], [], []>} : vector<20x8xf32>, vector<8x128xf32>, vector<20x128xf32> -> vector<20x128xf32>
    %83 = arith.addf %63, %82 : vector<20x128xf32>
    %84 = vector.extract_strided_slice %16 {offsets = [0, 24], sizes = [20, 8], strides = [1, 1]} : vector<20x32xf32> to vector<20x8xf32>
    %85 = vector.extract_strided_slice %17 {offsets = [0, 24], sizes = [20, 8], strides = [1, 1]} : vector<20x64xf32> to vector<20x8xf32>
    %86 = vector.extract_strided_slice %17 {offsets = [0, 56], sizes = [20, 8], strides = [1, 1]} : vector<20x64xf32> to vector<20x8xf32>
    %cst_37 = arith.constant dense<0.000000e+00> : vector<20x20xf32>
    %87 = tpu.matmul %84, %85, %cst_37 {dimension_numbers = #tpu.dot_dimension_numbers<[1], [1], [0], [0], [0, 0, 1, 0], [], []>} : vector<20x8xf32>, vector<20x8xf32>, vector<20x20xf32> -> vector<20x20xf32>
    %cst_38 = arith.constant 0.353553385 : f32
    %88 = vector.broadcast %cst_38 : f32 to vector<20x20xf32>
    %89 = arith.mulf %87, %88 : vector<20x20xf32>
    %90 = arith.addf %89, %5 : vector<20x20xf32>
    %cst_39 = arith.constant dense<0xFF800000> : vector<20xf32>
    %91 = vector.multi_reduction <maximumf>, %90, %cst_39 [1] : vector<20x20xf32> to vector<20xf32>
    %92 = vector.shape_cast %91 : vector<20xf32> to vector<20x1xf32>
    %93 = vector.broadcast %92 : vector<20x1xf32> to vector<20x20xf32>
    %94 = arith.subf %90, %93 : vector<20x20xf32>
    %95 = math.exp %94 : vector<20x20xf32>
    %cst_40 = arith.constant dense<0.000000e+00> : vector<20xf32>
    %96 = vector.multi_reduction <add>, %95, %cst_40 [1] : vector<20x20xf32> to vector<20xf32>
    %97 = vector.shape_cast %96 : vector<20xf32> to vector<20x1xf32>
    %98 = vector.broadcast %97 : vector<20x1xf32> to vector<20x20xf32>
    %99 = arith.divf %95, %98 : vector<20x20xf32>
    %cst_41 = arith.constant dense<0.000000e+00> : vector<20x8xf32>
    %100 = tpu.matmul %99, %86, %cst_41 {dimension_numbers = #tpu.dot_dimension_numbers<[1], [0], [0], [1], [0, 0, 1, 1], [], []>} : vector<20x20xf32>, vector<20x8xf32>, vector<20x8xf32> -> vector<20x8xf32>
    %101 = vector.extract_strided_slice %19 {offsets = [24, 0], sizes = [8, 128], strides = [1, 1]} : vector<32x128xf32> to vector<8x128xf32>
    %cst_42 = arith.constant dense<0.000000e+00> : vector<20x128xf32>
    %102 = tpu.matmul %100, %101, %cst_42 {dimension_numbers = #tpu.dot_dimension_numbers<[1], [0], [0], [1], [0, 0, 1, 1], [], []>} : vector<20x8xf32>, vector<8x128xf32>, vector<20x128xf32> -> vector<20x128xf32>
    %103 = arith.addf %83, %102 : vector<20x128xf32>
    %cst_43 = arith.constant dense<0.000000e+00> : vector<20xf32>
    %104 = vector.multi_reduction <add>, %103, %cst_43 [1] : vector<20x128xf32> to vector<20xf32>
    %105 = vector.shape_cast %104 : vector<20xf32> to vector<20x1xf32>
    %cst_44 = arith.constant 3.125000e-02 : f32
    %106 = vector.broadcast %cst_44 : f32 to vector<20x1xf32>
    %107 = arith.mulf %105, %106 : vector<20x1xf32>
    %108 = vector.broadcast %107 : vector<20x1xf32> to vector<20x128xf32>
    %109 = arith.subf %103, %108 : vector<20x128xf32>
    %110 = vector.broadcast %4 : vector<1x128xf32> to vector<20x128xf32>
    %111 = arith.mulf %109, %110 : vector<20x128xf32>
    %112 = arith.mulf %111, %111 : vector<20x128xf32>
    %cst_45 = arith.constant dense<0.000000e+00> : vector<20xf32>
    %113 = vector.multi_reduction <add>, %112, %cst_45 [1] : vector<20x128xf32> to vector<20xf32>
    %114 = vector.shape_cast %113 : vector<20xf32> to vector<20x1xf32>
    %cst_46 = arith.constant 3.125000e-02 : f32
    %115 = vector.broadcast %cst_46 : f32 to vector<20x1xf32>
    %116 = arith.mulf %114, %115 : vector<20x1xf32>
    %cst_47 = arith.constant 9.99999974E-6 : f32
    %117 = vector.broadcast %cst_47 : f32 to vector<20x1xf32>
    %118 = arith.addf %116, %117 : vector<20x1xf32>
    %119 = math.rsqrt %118 : vector<20x1xf32>
    %120 = vector.broadcast %119 : vector<20x1xf32> to vector<20x128xf32>
    %121 = arith.mulf %111, %120 : vector<20x128xf32>
    %c0_48 = arith.constant 0 : index
    %c0_49 = arith.constant 0 : index
    %c0_50 = arith.constant 0 : index
    %122 = vector.load %arg13[%c0_48, %c0_49, %c0_50] : memref<10x1x128xf32, #tpu.memory_space<vmem>>, vector<1x1x128xf32>
    %123 = vector.shape_cast %122 : vector<1x1x128xf32> to vector<1x128xf32>
    %124 = vector.broadcast %123 : vector<1x128xf32> to vector<20x128xf32>
    %125 = arith.mulf %121, %124 : vector<20x128xf32>
    %c0_51 = arith.constant 0 : index
    %c0_52 = arith.constant 0 : index
    %c0_53 = arith.constant 0 : index
    %126 = vector.load %arg14[%c0_51, %c0_52, %c0_53] : memref<10x1x128xf32, #tpu.memory_space<vmem>>, vector<1x1x128xf32>
    %127 = vector.shape_cast %126 : vector<1x1x128xf32> to vector<1x128xf32>
    %128 = vector.broadcast %127 : vector<1x128xf32> to vector<20x128xf32>
    %129 = arith.addf %125, %128 : vector<20x128xf32>
    %c0_54 = arith.constant 0 : index
    %c0_55 = arith.constant 0 : index
    %c0_56 = arith.constant 0 : index
    %130 = vector.load %arg9[%c0_54, %c0_55, %c0_56] : memref<4x128x128xf32, #tpu.memory_space<vmem>>, vector<1x128x128xf32>
    %131 = vector.shape_cast %130 : vector<1x128x128xf32> to vector<128x128xf32>
    %cst_57 = arith.constant dense<0.000000e+00> : vector<20x128xf32>
    %132 = tpu.matmul %129, %131, %cst_57 {dimension_numbers = #tpu.dot_dimension_numbers<[1], [0], [0], [1], [0, 0, 1, 1], [], []>} : vector<20x128xf32>, vector<128x128xf32>, vector<20x128xf32> -> vector<20x128xf32>
    %c0_58 = arith.constant 0 : index
    %c0_59 = arith.constant 0 : index
    %c0_60 = arith.constant 0 : index
    %133 = vector.load %arg10[%c0_58, %c0_59, %c0_60] : memref<4x1x128xf32, #tpu.memory_space<vmem>>, vector<1x1x128xf32>
    %134 = vector.shape_cast %133 : vector<1x1x128xf32> to vector<1x128xf32>
    %135 = vector.broadcast %134 : vector<1x128xf32> to vector<20x128xf32>
    %136 = arith.addf %132, %135 : vector<20x128xf32>
    %cst_61 = arith.constant 0.000000e+00 : f32
    %137 = vector.broadcast %cst_61 : f32 to vector<20x128xf32>
    %138 = arith.maximumf %136, %137 : vector<20x128xf32>
    %c0_62 = arith.constant 0 : index
    %c0_63 = arith.constant 0 : index
    %c0_64 = arith.constant 0 : index
    %139 = vector.load %arg11[%c0_62, %c0_63, %c0_64] : memref<4x128x128xf32, #tpu.memory_space<vmem>>, vector<1x128x128xf32>
    %140 = vector.shape_cast %139 : vector<1x128x128xf32> to vector<128x128xf32>
    %cst_65 = arith.constant dense<0.000000e+00> : vector<20x128xf32>
    %141 = tpu.matmul %138, %140, %cst_65 {dimension_numbers = #tpu.dot_dimension_numbers<[1], [0], [0], [1], [0, 0, 1, 1], [], []>} : vector<20x128xf32>, vector<128x128xf32>, vector<20x128xf32> -> vector<20x128xf32>
    %142 = arith.addf %129, %141 : vector<20x128xf32>
    %c0_66 = arith.constant 0 : index
    %c0_67 = arith.constant 0 : index
    %c0_68 = arith.constant 0 : index
    %143 = vector.load %arg12[%c0_66, %c0_67, %c0_68] : memref<4x1x128xf32, #tpu.memory_space<vmem>>, vector<1x1x128xf32>
    %144 = vector.shape_cast %143 : vector<1x1x128xf32> to vector<1x128xf32>
    %145 = vector.broadcast %144 : vector<1x128xf32> to vector<20x128xf32>
    %146 = arith.addf %142, %145 : vector<20x128xf32>
    %cst_69 = arith.constant dense<0.000000e+00> : vector<20xf32>
    %147 = vector.multi_reduction <add>, %146, %cst_69 [1] : vector<20x128xf32> to vector<20xf32>
    %148 = vector.shape_cast %147 : vector<20xf32> to vector<20x1xf32>
    %cst_70 = arith.constant 3.125000e-02 : f32
    %149 = vector.broadcast %cst_70 : f32 to vector<20x1xf32>
    %150 = arith.mulf %148, %149 : vector<20x1xf32>
    %151 = vector.broadcast %150 : vector<20x1xf32> to vector<20x128xf32>
    %152 = arith.subf %146, %151 : vector<20x128xf32>
    %153 = vector.broadcast %4 : vector<1x128xf32> to vector<20x128xf32>
    %154 = arith.mulf %152, %153 : vector<20x128xf32>
    %155 = arith.mulf %154, %154 : vector<20x128xf32>
    %cst_71 = arith.constant dense<0.000000e+00> : vector<20xf32>
    %156 = vector.multi_reduction <add>, %155, %cst_71 [1] : vector<20x128xf32> to vector<20xf32>
    %157 = vector.shape_cast %156 : vector<20xf32> to vector<20x1xf32>
    %cst_72 = arith.constant 3.125000e-02 : f32
    %158 = vector.broadcast %cst_72 : f32 to vector<20x1xf32>
    %159 = arith.mulf %157, %158 : vector<20x1xf32>
    %cst_73 = arith.constant 9.99999974E-6 : f32
    %160 = vector.broadcast %cst_73 : f32 to vector<20x1xf32>
    %161 = arith.addf %159, %160 : vector<20x1xf32>
    %162 = math.rsqrt %161 : vector<20x1xf32>
    %163 = vector.broadcast %162 : vector<20x1xf32> to vector<20x128xf32>
    %164 = arith.mulf %154, %163 : vector<20x128xf32>
    %c1 = arith.constant 1 : index
    %c0_74 = arith.constant 0 : index
    %c0_75 = arith.constant 0 : index
    %165 = vector.load %arg13[%c1, %c0_74, %c0_75] : memref<10x1x128xf32, #tpu.memory_space<vmem>>, vector<1x1x128xf32>
    %166 = vector.shape_cast %165 : vector<1x1x128xf32> to vector<1x128xf32>
    %167 = vector.broadcast %166 : vector<1x128xf32> to vector<20x128xf32>
    %168 = arith.mulf %164, %167 : vector<20x128xf32>
    %c1_76 = arith.constant 1 : index
    %c0_77 = arith.constant 0 : index
    %c0_78 = arith.constant 0 : index
    %169 = vector.load %arg14[%c1_76, %c0_77, %c0_78] : memref<10x1x128xf32, #tpu.memory_space<vmem>>, vector<1x1x128xf32>
    %170 = vector.shape_cast %169 : vector<1x1x128xf32> to vector<1x128xf32>
    %171 = vector.broadcast %170 : vector<1x128xf32> to vector<20x128xf32>
    %172 = arith.addf %168, %171 : vector<20x128xf32>
    %c1_79 = arith.constant 1 : index
    %c0_80 = arith.constant 0 : index
    %c0_81 = arith.constant 0 : index
    %173 = vector.load %arg5[%c1_79, %c0_80, %c0_81] : memref<6x128x96xf32, #tpu.memory_space<vmem>>, vector<1x128x96xf32>
    %174 = vector.shape_cast %173 : vector<1x128x96xf32> to vector<128x96xf32>
    %c1_82 = arith.constant 1 : index
    %c0_83 = arith.constant 0 : index
    %c0_84 = arith.constant 0 : index
    %175 = vector.load %arg6[%c1_82, %c0_83, %c0_84] : memref<6x1x96xf32, #tpu.memory_space<vmem>>, vector<1x1x96xf32>
    %176 = vector.shape_cast %175 : vector<1x1x96xf32> to vector<1x96xf32>
    %cst_85 = arith.constant dense<0.000000e+00> : vector<20x96xf32>
    %177 = tpu.matmul %172, %174, %cst_85 {dimension_numbers = #tpu.dot_dimension_numbers<[1], [0], [0], [1], [0, 0, 1, 1], [], []>} : vector<20x128xf32>, vector<128x96xf32>, vector<20x96xf32> -> vector<20x96xf32>
    %178 = vector.broadcast %176 : vector<1x96xf32> to vector<20x96xf32>
    %179 = arith.addf %177, %178 : vector<20x96xf32>
    %180 = vector.extract_strided_slice %179 {offsets = [0, 0], sizes = [20, 32], strides = [1, 1]} : vector<20x96xf32> to vector<20x32xf32>
    %181 = vector.extract_strided_slice %179 {offsets = [0, 32], sizes = [20, 64], strides = [1, 1]} : vector<20x96xf32> to vector<20x64xf32>
    %c1_86 = arith.constant 1 : index
    %c0_87 = arith.constant 0 : index
    %c0_88 = arith.constant 0 : index
    %182 = vector.load %arg7[%c1_86, %c0_87, %c0_88] : memref<6x32x128xf32, #tpu.memory_space<vmem>>, vector<1x32x128xf32>
    %183 = vector.shape_cast %182 : vector<1x32x128xf32> to vector<32x128xf32>
    %c1_89 = arith.constant 1 : index
    %c0_90 = arith.constant 0 : index
    %c0_91 = arith.constant 0 : index
    %184 = vector.load %arg8[%c1_89, %c0_90, %c0_91] : memref<6x1x128xf32, #tpu.memory_space<vmem>>, vector<1x1x128xf32>
    %185 = vector.shape_cast %184 : vector<1x1x128xf32> to vector<1x128xf32>
    %186 = vector.broadcast %185 : vector<1x128xf32> to vector<20x128xf32>
    %187 = arith.addf %172, %186 : vector<20x128xf32>
    %188 = vector.extract_strided_slice %180 {offsets = [0, 0], sizes = [20, 8], strides = [1, 1]} : vector<20x32xf32> to vector<20x8xf32>
    %189 = vector.extract_strided_slice %181 {offsets = [0, 0], sizes = [20, 8], strides = [1, 1]} : vector<20x64xf32> to vector<20x8xf32>
    %190 = vector.extract_strided_slice %181 {offsets = [0, 32], sizes = [20, 8], strides = [1, 1]} : vector<20x64xf32> to vector<20x8xf32>
    %cst_92 = arith.constant dense<0.000000e+00> : vector<20x20xf32>
    %191 = tpu.matmul %188, %189, %cst_92 {dimension_numbers = #tpu.dot_dimension_numbers<[1], [1], [0], [0], [0, 0, 1, 0], [], []>} : vector<20x8xf32>, vector<20x8xf32>, vector<20x20xf32> -> vector<20x20xf32>
    %cst_93 = arith.constant 0.353553385 : f32
    %192 = vector.broadcast %cst_93 : f32 to vector<20x20xf32>
    %193 = arith.mulf %191, %192 : vector<20x20xf32>
    %194 = arith.addf %193, %5 : vector<20x20xf32>
    %cst_94 = arith.constant dense<0xFF800000> : vector<20xf32>
    %195 = vector.multi_reduction <maximumf>, %194, %cst_94 [1] : vector<20x20xf32> to vector<20xf32>
    %196 = vector.shape_cast %195 : vector<20xf32> to vector<20x1xf32>
    %197 = vector.broadcast %196 : vector<20x1xf32> to vector<20x20xf32>
    %198 = arith.subf %194, %197 : vector<20x20xf32>
    %199 = math.exp %198 : vector<20x20xf32>
    %cst_95 = arith.constant dense<0.000000e+00> : vector<20xf32>
    %200 = vector.multi_reduction <add>, %199, %cst_95 [1] : vector<20x20xf32> to vector<20xf32>
    %201 = vector.shape_cast %200 : vector<20xf32> to vector<20x1xf32>
    %202 = vector.broadcast %201 : vector<20x1xf32> to vector<20x20xf32>
    %203 = arith.divf %199, %202 : vector<20x20xf32>
    %cst_96 = arith.constant dense<0.000000e+00> : vector<20x8xf32>
    %204 = tpu.matmul %203, %190, %cst_96 {dimension_numbers = #tpu.dot_dimension_numbers<[1], [0], [0], [1], [0, 0, 1, 1], [], []>} : vector<20x20xf32>, vector<20x8xf32>, vector<20x8xf32> -> vector<20x8xf32>
    %205 = vector.extract_strided_slice %183 {offsets = [0, 0], sizes = [8, 128], strides = [1, 1]} : vector<32x128xf32> to vector<8x128xf32>
    %cst_97 = arith.constant dense<0.000000e+00> : vector<20x128xf32>
    %206 = tpu.matmul %204, %205, %cst_97 {dimension_numbers = #tpu.dot_dimension_numbers<[1], [0], [0], [1], [0, 0, 1, 1], [], []>} : vector<20x8xf32>, vector<8x128xf32>, vector<20x128xf32> -> vector<20x128xf32>
    %207 = arith.addf %187, %206 : vector<20x128xf32>
    %208 = vector.extract_strided_slice %180 {offsets = [0, 8], sizes = [20, 8], strides = [1, 1]} : vector<20x32xf32> to vector<20x8xf32>
    %209 = vector.extract_strided_slice %181 {offsets = [0, 8], sizes = [20, 8], strides = [1, 1]} : vector<20x64xf32> to vector<20x8xf32>
    %210 = vector.extract_strided_slice %181 {offsets = [0, 40], sizes = [20, 8], strides = [1, 1]} : vector<20x64xf32> to vector<20x8xf32>
    %cst_98 = arith.constant dense<0.000000e+00> : vector<20x20xf32>
    %211 = tpu.matmul %208, %209, %cst_98 {dimension_numbers = #tpu.dot_dimension_numbers<[1], [1], [0], [0], [0, 0, 1, 0], [], []>} : vector<20x8xf32>, vector<20x8xf32>, vector<20x20xf32> -> vector<20x20xf32>
    %cst_99 = arith.constant 0.353553385 : f32
    %212 = vector.broadcast %cst_99 : f32 to vector<20x20xf32>
    %213 = arith.mulf %211, %212 : vector<20x20xf32>
    %214 = arith.addf %213, %5 : vector<20x20xf32>
    %cst_100 = arith.constant dense<0xFF800000> : vector<20xf32>
    %215 = vector.multi_reduction <maximumf>, %214, %cst_100 [1] : vector<20x20xf32> to vector<20xf32>
    %216 = vector.shape_cast %215 : vector<20xf32> to vector<20x1xf32>
    %217 = vector.broadcast %216 : vector<20x1xf32> to vector<20x20xf32>
    %218 = arith.subf %214, %217 : vector<20x20xf32>
    %219 = math.exp %218 : vector<20x20xf32>
    %cst_101 = arith.constant dense<0.000000e+00> : vector<20xf32>
    %220 = vector.multi_reduction <add>, %219, %cst_101 [1] : vector<20x20xf32> to vector<20xf32>
    %221 = vector.shape_cast %220 : vector<20xf32> to vector<20x1xf32>
    %222 = vector.broadcast %221 : vector<20x1xf32> to vector<20x20xf32>
    %223 = arith.divf %219, %222 : vector<20x20xf32>
    %cst_102 = arith.constant dense<0.000000e+00> : vector<20x8xf32>
    %224 = tpu.matmul %223, %210, %cst_102 {dimension_numbers = #tpu.dot_dimension_numbers<[1], [0], [0], [1], [0, 0, 1, 1], [], []>} : vector<20x20xf32>, vector<20x8xf32>, vector<20x8xf32> -> vector<20x8xf32>
    %225 = vector.extract_strided_slice %183 {offsets = [8, 0], sizes = [8, 128], strides = [1, 1]} : vector<32x128xf32> to vector<8x128xf32>
    %cst_103 = arith.constant dense<0.000000e+00> : vector<20x128xf32>
    %226 = tpu.matmul %224, %225, %cst_103 {dimension_numbers = #tpu.dot_dimension_numbers<[1], [0], [0], [1], [0, 0, 1, 1], [], []>} : vector<20x8xf32>, vector<8x128xf32>, vector<20x128xf32> -> vector<20x128xf32>
    %227 = arith.addf %207, %226 : vector<20x128xf32>
    %228 = vector.extract_strided_slice %180 {offsets = [0, 16], sizes = [20, 8], strides = [1, 1]} : vector<20x32xf32> to vector<20x8xf32>
    %229 = vector.extract_strided_slice %181 {offsets = [0, 16], sizes = [20, 8], strides = [1, 1]} : vector<20x64xf32> to vector<20x8xf32>
    %230 = vector.extract_strided_slice %181 {offsets = [0, 48], sizes = [20, 8], strides = [1, 1]} : vector<20x64xf32> to vector<20x8xf32>
    %cst_104 = arith.constant dense<0.000000e+00> : vector<20x20xf32>
    %231 = tpu.matmul %228, %229, %cst_104 {dimension_numbers = #tpu.dot_dimension_numbers<[1], [1], [0], [0], [0, 0, 1, 0], [], []>} : vector<20x8xf32>, vector<20x8xf32>, vector<20x20xf32> -> vector<20x20xf32>
    %cst_105 = arith.constant 0.353553385 : f32
    %232 = vector.broadcast %cst_105 : f32 to vector<20x20xf32>
    %233 = arith.mulf %231, %232 : vector<20x20xf32>
    %234 = arith.addf %233, %5 : vector<20x20xf32>
    %cst_106 = arith.constant dense<0xFF800000> : vector<20xf32>
    %235 = vector.multi_reduction <maximumf>, %234, %cst_106 [1] : vector<20x20xf32> to vector<20xf32>
    %236 = vector.shape_cast %235 : vector<20xf32> to vector<20x1xf32>
    %237 = vector.broadcast %236 : vector<20x1xf32> to vector<20x20xf32>
    %238 = arith.subf %234, %237 : vector<20x20xf32>
    %239 = math.exp %238 : vector<20x20xf32>
    %cst_107 = arith.constant dense<0.000000e+00> : vector<20xf32>
    %240 = vector.multi_reduction <add>, %239, %cst_107 [1] : vector<20x20xf32> to vector<20xf32>
    %241 = vector.shape_cast %240 : vector<20xf32> to vector<20x1xf32>
    %242 = vector.broadcast %241 : vector<20x1xf32> to vector<20x20xf32>
    %243 = arith.divf %239, %242 : vector<20x20xf32>
    %cst_108 = arith.constant dense<0.000000e+00> : vector<20x8xf32>
    %244 = tpu.matmul %243, %230, %cst_108 {dimension_numbers = #tpu.dot_dimension_numbers<[1], [0], [0], [1], [0, 0, 1, 1], [], []>} : vector<20x20xf32>, vector<20x8xf32>, vector<20x8xf32> -> vector<20x8xf32>
    %245 = vector.extract_strided_slice %183 {offsets = [16, 0], sizes = [8, 128], strides = [1, 1]} : vector<32x128xf32> to vector<8x128xf32>
    %cst_109 = arith.constant dense<0.000000e+00> : vector<20x128xf32>
    %246 = tpu.matmul %244, %245, %cst_109 {dimension_numbers = #tpu.dot_dimension_numbers<[1], [0], [0], [1], [0, 0, 1, 1], [], []>} : vector<20x8xf32>, vector<8x128xf32>, vector<20x128xf32> -> vector<20x128xf32>
    %247 = arith.addf %227, %246 : vector<20x128xf32>
    %248 = vector.extract_strided_slice %180 {offsets = [0, 24], sizes = [20, 8], strides = [1, 1]} : vector<20x32xf32> to vector<20x8xf32>
    %249 = vector.extract_strided_slice %181 {offsets = [0, 24], sizes = [20, 8], strides = [1, 1]} : vector<20x64xf32> to vector<20x8xf32>
    %250 = vector.extract_strided_slice %181 {offsets = [0, 56], sizes = [20, 8], strides = [1, 1]} : vector<20x64xf32> to vector<20x8xf32>
    %cst_110 = arith.constant dense<0.000000e+00> : vector<20x20xf32>
    %251 = tpu.matmul %248, %249, %cst_110 {dimension_numbers = #tpu.dot_dimension_numbers<[1], [1], [0], [0], [0, 0, 1, 0], [], []>} : vector<20x8xf32>, vector<20x8xf32>, vector<20x20xf32> -> vector<20x20xf32>
    %cst_111 = arith.constant 0.353553385 : f32
    %252 = vector.broadcast %cst_111 : f32 to vector<20x20xf32>
    %253 = arith.mulf %251, %252 : vector<20x20xf32>
    %254 = arith.addf %253, %5 : vector<20x20xf32>
    %cst_112 = arith.constant dense<0xFF800000> : vector<20xf32>
    %255 = vector.multi_reduction <maximumf>, %254, %cst_112 [1] : vector<20x20xf32> to vector<20xf32>
    %256 = vector.shape_cast %255 : vector<20xf32> to vector<20x1xf32>
    %257 = vector.broadcast %256 : vector<20x1xf32> to vector<20x20xf32>
    %258 = arith.subf %254, %257 : vector<20x20xf32>
    %259 = math.exp %258 : vector<20x20xf32>
    %cst_113 = arith.constant dense<0.000000e+00> : vector<20xf32>
    %260 = vector.multi_reduction <add>, %259, %cst_113 [1] : vector<20x20xf32> to vector<20xf32>
    %261 = vector.shape_cast %260 : vector<20xf32> to vector<20x1xf32>
    %262 = vector.broadcast %261 : vector<20x1xf32> to vector<20x20xf32>
    %263 = arith.divf %259, %262 : vector<20x20xf32>
    %cst_114 = arith.constant dense<0.000000e+00> : vector<20x8xf32>
    %264 = tpu.matmul %263, %250, %cst_114 {dimension_numbers = #tpu.dot_dimension_numbers<[1], [0], [0], [1], [0, 0, 1, 1], [], []>} : vector<20x20xf32>, vector<20x8xf32>, vector<20x8xf32> -> vector<20x8xf32>
    %265 = vector.extract_strided_slice %183 {offsets = [24, 0], sizes = [8, 128], strides = [1, 1]} : vector<32x128xf32> to vector<8x128xf32>
    %cst_115 = arith.constant dense<0.000000e+00> : vector<20x128xf32>
    %266 = tpu.matmul %264, %265, %cst_115 {dimension_numbers = #tpu.dot_dimension_numbers<[1], [0], [0], [1], [0, 0, 1, 1], [], []>} : vector<20x8xf32>, vector<8x128xf32>, vector<20x128xf32> -> vector<20x128xf32>
    %267 = arith.addf %247, %266 : vector<20x128xf32>
    %cst_116 = arith.constant dense<0.000000e+00> : vector<20xf32>
    %268 = vector.multi_reduction <add>, %267, %cst_116 [1] : vector<20x128xf32> to vector<20xf32>
    %269 = vector.shape_cast %268 : vector<20xf32> to vector<20x1xf32>
    %cst_117 = arith.constant 3.125000e-02 : f32
    %270 = vector.broadcast %cst_117 : f32 to vector<20x1xf32>
    %271 = arith.mulf %269, %270 : vector<20x1xf32>
    %272 = vector.broadcast %271 : vector<20x1xf32> to vector<20x128xf32>
    %273 = arith.subf %267, %272 : vector<20x128xf32>
    %274 = vector.broadcast %4 : vector<1x128xf32> to vector<20x128xf32>
    %275 = arith.mulf %273, %274 : vector<20x128xf32>
    %276 = arith.mulf %275, %275 : vector<20x128xf32>
    %cst_118 = arith.constant dense<0.000000e+00> : vector<20xf32>
    %277 = vector.multi_reduction <add>, %276, %cst_118 [1] : vector<20x128xf32> to vector<20xf32>
    %278 = vector.shape_cast %277 : vector<20xf32> to vector<20x1xf32>
    %cst_119 = arith.constant 3.125000e-02 : f32
    %279 = vector.broadcast %cst_119 : f32 to vector<20x1xf32>
    %280 = arith.mulf %278, %279 : vector<20x1xf32>
    %cst_120 = arith.constant 9.99999974E-6 : f32
    %281 = vector.broadcast %cst_120 : f32 to vector<20x1xf32>
    %282 = arith.addf %280, %281 : vector<20x1xf32>
    %283 = math.rsqrt %282 : vector<20x1xf32>
    %284 = vector.broadcast %283 : vector<20x1xf32> to vector<20x128xf32>
    %285 = arith.mulf %275, %284 : vector<20x128xf32>
    %c2 = arith.constant 2 : index
    %c0_121 = arith.constant 0 : index
    %c0_122 = arith.constant 0 : index
    %286 = vector.load %arg13[%c2, %c0_121, %c0_122] : memref<10x1x128xf32, #tpu.memory_space<vmem>>, vector<1x1x128xf32>
    %287 = vector.shape_cast %286 : vector<1x1x128xf32> to vector<1x128xf32>
    %288 = vector.broadcast %287 : vector<1x128xf32> to vector<20x128xf32>
    %289 = arith.mulf %285, %288 : vector<20x128xf32>
    %c2_123 = arith.constant 2 : index
    %c0_124 = arith.constant 0 : index
    %c0_125 = arith.constant 0 : index
    %290 = vector.load %arg14[%c2_123, %c0_124, %c0_125] : memref<10x1x128xf32, #tpu.memory_space<vmem>>, vector<1x1x128xf32>
    %291 = vector.shape_cast %290 : vector<1x1x128xf32> to vector<1x128xf32>
    %292 = vector.broadcast %291 : vector<1x128xf32> to vector<20x128xf32>
    %293 = arith.addf %289, %292 : vector<20x128xf32>
    %c1_126 = arith.constant 1 : index
    %c0_127 = arith.constant 0 : index
    %c0_128 = arith.constant 0 : index
    %294 = vector.load %arg9[%c1_126, %c0_127, %c0_128] : memref<4x128x128xf32, #tpu.memory_space<vmem>>, vector<1x128x128xf32>
    %295 = vector.shape_cast %294 : vector<1x128x128xf32> to vector<128x128xf32>
    %cst_129 = arith.constant dense<0.000000e+00> : vector<20x128xf32>
    %296 = tpu.matmul %293, %295, %cst_129 {dimension_numbers = #tpu.dot_dimension_numbers<[1], [0], [0], [1], [0, 0, 1, 1], [], []>} : vector<20x128xf32>, vector<128x128xf32>, vector<20x128xf32> -> vector<20x128xf32>
    %c1_130 = arith.constant 1 : index
    %c0_131 = arith.constant 0 : index
    %c0_132 = arith.constant 0 : index
    %297 = vector.load %arg10[%c1_130, %c0_131, %c0_132] : memref<4x1x128xf32, #tpu.memory_space<vmem>>, vector<1x1x128xf32>
    %298 = vector.shape_cast %297 : vector<1x1x128xf32> to vector<1x128xf32>
    %299 = vector.broadcast %298 : vector<1x128xf32> to vector<20x128xf32>
    %300 = arith.addf %296, %299 : vector<20x128xf32>
    %cst_133 = arith.constant 0.000000e+00 : f32
    %301 = vector.broadcast %cst_133 : f32 to vector<20x128xf32>
    %302 = arith.maximumf %300, %301 : vector<20x128xf32>
    %c1_134 = arith.constant 1 : index
    %c0_135 = arith.constant 0 : index
    %c0_136 = arith.constant 0 : index
    %303 = vector.load %arg11[%c1_134, %c0_135, %c0_136] : memref<4x128x128xf32, #tpu.memory_space<vmem>>, vector<1x128x128xf32>
    %304 = vector.shape_cast %303 : vector<1x128x128xf32> to vector<128x128xf32>
    %cst_137 = arith.constant dense<0.000000e+00> : vector<20x128xf32>
    %305 = tpu.matmul %302, %304, %cst_137 {dimension_numbers = #tpu.dot_dimension_numbers<[1], [0], [0], [1], [0, 0, 1, 1], [], []>} : vector<20x128xf32>, vector<128x128xf32>, vector<20x128xf32> -> vector<20x128xf32>
    %306 = arith.addf %293, %305 : vector<20x128xf32>
    %c1_138 = arith.constant 1 : index
    %c0_139 = arith.constant 0 : index
    %c0_140 = arith.constant 0 : index
    %307 = vector.load %arg12[%c1_138, %c0_139, %c0_140] : memref<4x1x128xf32, #tpu.memory_space<vmem>>, vector<1x1x128xf32>
    %308 = vector.shape_cast %307 : vector<1x1x128xf32> to vector<1x128xf32>
    %309 = vector.broadcast %308 : vector<1x128xf32> to vector<20x128xf32>
    %310 = arith.addf %306, %309 : vector<20x128xf32>
    %cst_141 = arith.constant dense<0.000000e+00> : vector<20xf32>
    %311 = vector.multi_reduction <add>, %310, %cst_141 [1] : vector<20x128xf32> to vector<20xf32>
    %312 = vector.shape_cast %311 : vector<20xf32> to vector<20x1xf32>
    %cst_142 = arith.constant 3.125000e-02 : f32
    %313 = vector.broadcast %cst_142 : f32 to vector<20x1xf32>
    %314 = arith.mulf %312, %313 : vector<20x1xf32>
    %315 = vector.broadcast %314 : vector<20x1xf32> to vector<20x128xf32>
    %316 = arith.subf %310, %315 : vector<20x128xf32>
    %317 = vector.broadcast %4 : vector<1x128xf32> to vector<20x128xf32>
    %318 = arith.mulf %316, %317 : vector<20x128xf32>
    %319 = arith.mulf %318, %318 : vector<20x128xf32>
    %cst_143 = arith.constant dense<0.000000e+00> : vector<20xf32>
    %320 = vector.multi_reduction <add>, %319, %cst_143 [1] : vector<20x128xf32> to vector<20xf32>
    %321 = vector.shape_cast %320 : vector<20xf32> to vector<20x1xf32>
    %cst_144 = arith.constant 3.125000e-02 : f32
    %322 = vector.broadcast %cst_144 : f32 to vector<20x1xf32>
    %323 = arith.mulf %321, %322 : vector<20x1xf32>
    %cst_145 = arith.constant 9.99999974E-6 : f32
    %324 = vector.broadcast %cst_145 : f32 to vector<20x1xf32>
    %325 = arith.addf %323, %324 : vector<20x1xf32>
    %326 = math.rsqrt %325 : vector<20x1xf32>
    %327 = vector.broadcast %326 : vector<20x1xf32> to vector<20x128xf32>
    %328 = arith.mulf %318, %327 : vector<20x128xf32>
    %c3 = arith.constant 3 : index
    %c0_146 = arith.constant 0 : index
    %c0_147 = arith.constant 0 : index
    %329 = vector.load %arg13[%c3, %c0_146, %c0_147] : memref<10x1x128xf32, #tpu.memory_space<vmem>>, vector<1x1x128xf32>
    %330 = vector.shape_cast %329 : vector<1x1x128xf32> to vector<1x128xf32>
    %331 = vector.broadcast %330 : vector<1x128xf32> to vector<20x128xf32>
    %332 = arith.mulf %328, %331 : vector<20x128xf32>
    %c3_148 = arith.constant 3 : index
    %c0_149 = arith.constant 0 : index
    %c0_150 = arith.constant 0 : index
    %333 = vector.load %arg14[%c3_148, %c0_149, %c0_150] : memref<10x1x128xf32, #tpu.memory_space<vmem>>, vector<1x1x128xf32>
    %334 = vector.shape_cast %333 : vector<1x1x128xf32> to vector<1x128xf32>
    %335 = vector.broadcast %334 : vector<1x128xf32> to vector<20x128xf32>
    %336 = arith.addf %332, %335 : vector<20x128xf32>
    %c0_151 = arith.constant 0 : index
    %c0_152 = arith.constant 0 : index
    %337 = vector.load %arg1[%c0_151, %c0_152] : memref<16x128xf32, #tpu.memory_space<vmem>>, vector<16x128xf32>
    %c2_153 = arith.constant 2 : index
    %c0_154 = arith.constant 0 : index
    %c0_155 = arith.constant 0 : index
    %338 = vector.load %arg5[%c2_153, %c0_154, %c0_155] : memref<6x128x96xf32, #tpu.memory_space<vmem>>, vector<1x128x96xf32>
    %339 = vector.shape_cast %338 : vector<1x128x96xf32> to vector<128x96xf32>
    %c2_156 = arith.constant 2 : index
    %c0_157 = arith.constant 0 : index
    %c0_158 = arith.constant 0 : index
    %340 = vector.load %arg6[%c2_156, %c0_157, %c0_158] : memref<6x1x96xf32, #tpu.memory_space<vmem>>, vector<1x1x96xf32>
    %341 = vector.shape_cast %340 : vector<1x1x96xf32> to vector<1x96xf32>
    %cst_159 = arith.constant dense<0.000000e+00> : vector<16x96xf32>
    %342 = tpu.matmul %337, %339, %cst_159 {dimension_numbers = #tpu.dot_dimension_numbers<[1], [0], [0], [1], [0, 0, 1, 1], [], []>} : vector<16x128xf32>, vector<128x96xf32>, vector<16x96xf32> -> vector<16x96xf32>
    %343 = vector.broadcast %341 : vector<1x96xf32> to vector<16x96xf32>
    %344 = arith.addf %342, %343 : vector<16x96xf32>
    %345 = vector.extract_strided_slice %344 {offsets = [0, 0], sizes = [16, 32], strides = [1, 1]} : vector<16x96xf32> to vector<16x32xf32>
    %346 = vector.extract_strided_slice %344 {offsets = [0, 32], sizes = [16, 64], strides = [1, 1]} : vector<16x96xf32> to vector<16x64xf32>
    %c2_160 = arith.constant 2 : index
    %c0_161 = arith.constant 0 : index
    %c0_162 = arith.constant 0 : index
    %347 = vector.load %arg7[%c2_160, %c0_161, %c0_162] : memref<6x32x128xf32, #tpu.memory_space<vmem>>, vector<1x32x128xf32>
    %348 = vector.shape_cast %347 : vector<1x32x128xf32> to vector<32x128xf32>
    %c2_163 = arith.constant 2 : index
    %c0_164 = arith.constant 0 : index
    %c0_165 = arith.constant 0 : index
    %349 = vector.load %arg8[%c2_163, %c0_164, %c0_165] : memref<6x1x128xf32, #tpu.memory_space<vmem>>, vector<1x1x128xf32>
    %350 = vector.shape_cast %349 : vector<1x1x128xf32> to vector<1x128xf32>
    %351 = vector.broadcast %350 : vector<1x128xf32> to vector<16x128xf32>
    %352 = arith.addf %337, %351 : vector<16x128xf32>
    %353 = vector.extract_strided_slice %345 {offsets = [0, 0], sizes = [16, 8], strides = [1, 1]} : vector<16x32xf32> to vector<16x8xf32>
    %354 = vector.extract_strided_slice %346 {offsets = [0, 0], sizes = [16, 8], strides = [1, 1]} : vector<16x64xf32> to vector<16x8xf32>
    %355 = vector.extract_strided_slice %346 {offsets = [0, 32], sizes = [16, 8], strides = [1, 1]} : vector<16x64xf32> to vector<16x8xf32>
    %cst_166 = arith.constant dense<0.000000e+00> : vector<16x16xf32>
    %356 = tpu.matmul %353, %354, %cst_166 {dimension_numbers = #tpu.dot_dimension_numbers<[1], [1], [0], [0], [0, 0, 1, 0], [], []>} : vector<16x8xf32>, vector<16x8xf32>, vector<16x16xf32> -> vector<16x16xf32>
    %cst_167 = arith.constant 0.353553385 : f32
    %357 = vector.broadcast %cst_167 : f32 to vector<16x16xf32>
    %358 = arith.mulf %356, %357 : vector<16x16xf32>
    %359 = arith.addf %358, %6 : vector<16x16xf32>
    %cst_168 = arith.constant dense<0xFF800000> : vector<16xf32>
    %360 = vector.multi_reduction <maximumf>, %359, %cst_168 [1] : vector<16x16xf32> to vector<16xf32>
    %361 = vector.shape_cast %360 : vector<16xf32> to vector<16x1xf32>
    %362 = vector.broadcast %361 : vector<16x1xf32> to vector<16x16xf32>
    %363 = arith.subf %359, %362 : vector<16x16xf32>
    %364 = math.exp %363 : vector<16x16xf32>
    %cst_169 = arith.constant dense<0.000000e+00> : vector<16xf32>
    %365 = vector.multi_reduction <add>, %364, %cst_169 [1] : vector<16x16xf32> to vector<16xf32>
    %366 = vector.shape_cast %365 : vector<16xf32> to vector<16x1xf32>
    %367 = vector.broadcast %366 : vector<16x1xf32> to vector<16x16xf32>
    %368 = arith.divf %364, %367 : vector<16x16xf32>
    %cst_170 = arith.constant dense<0.000000e+00> : vector<16x8xf32>
    %369 = tpu.matmul %368, %355, %cst_170 {dimension_numbers = #tpu.dot_dimension_numbers<[1], [0], [0], [1], [0, 0, 1, 1], [], []>} : vector<16x16xf32>, vector<16x8xf32>, vector<16x8xf32> -> vector<16x8xf32>
    %370 = vector.extract_strided_slice %348 {offsets = [0, 0], sizes = [8, 128], strides = [1, 1]} : vector<32x128xf32> to vector<8x128xf32>
    %cst_171 = arith.constant dense<0.000000e+00> : vector<16x128xf32>
    %371 = tpu.matmul %369, %370, %cst_171 {dimension_numbers = #tpu.dot_dimension_numbers<[1], [0], [0], [1], [0, 0, 1, 1], [], []>} : vector<16x8xf32>, vector<8x128xf32>, vector<16x128xf32> -> vector<16x128xf32>
    %372 = arith.addf %352, %371 : vector<16x128xf32>
    %373 = vector.extract_strided_slice %345 {offsets = [0, 8], sizes = [16, 8], strides = [1, 1]} : vector<16x32xf32> to vector<16x8xf32>
    %374 = vector.extract_strided_slice %346 {offsets = [0, 8], sizes = [16, 8], strides = [1, 1]} : vector<16x64xf32> to vector<16x8xf32>
    %375 = vector.extract_strided_slice %346 {offsets = [0, 40], sizes = [16, 8], strides = [1, 1]} : vector<16x64xf32> to vector<16x8xf32>
    %cst_172 = arith.constant dense<0.000000e+00> : vector<16x16xf32>
    %376 = tpu.matmul %373, %374, %cst_172 {dimension_numbers = #tpu.dot_dimension_numbers<[1], [1], [0], [0], [0, 0, 1, 0], [], []>} : vector<16x8xf32>, vector<16x8xf32>, vector<16x16xf32> -> vector<16x16xf32>
    %cst_173 = arith.constant 0.353553385 : f32
    %377 = vector.broadcast %cst_173 : f32 to vector<16x16xf32>
    %378 = arith.mulf %376, %377 : vector<16x16xf32>
    %379 = arith.addf %378, %6 : vector<16x16xf32>
    %cst_174 = arith.constant dense<0xFF800000> : vector<16xf32>
    %380 = vector.multi_reduction <maximumf>, %379, %cst_174 [1] : vector<16x16xf32> to vector<16xf32>
    %381 = vector.shape_cast %380 : vector<16xf32> to vector<16x1xf32>
    %382 = vector.broadcast %381 : vector<16x1xf32> to vector<16x16xf32>
    %383 = arith.subf %379, %382 : vector<16x16xf32>
    %384 = math.exp %383 : vector<16x16xf32>
    %cst_175 = arith.constant dense<0.000000e+00> : vector<16xf32>
    %385 = vector.multi_reduction <add>, %384, %cst_175 [1] : vector<16x16xf32> to vector<16xf32>
    %386 = vector.shape_cast %385 : vector<16xf32> to vector<16x1xf32>
    %387 = vector.broadcast %386 : vector<16x1xf32> to vector<16x16xf32>
    %388 = arith.divf %384, %387 : vector<16x16xf32>
    %cst_176 = arith.constant dense<0.000000e+00> : vector<16x8xf32>
    %389 = tpu.matmul %388, %375, %cst_176 {dimension_numbers = #tpu.dot_dimension_numbers<[1], [0], [0], [1], [0, 0, 1, 1], [], []>} : vector<16x16xf32>, vector<16x8xf32>, vector<16x8xf32> -> vector<16x8xf32>
    %390 = vector.extract_strided_slice %348 {offsets = [8, 0], sizes = [8, 128], strides = [1, 1]} : vector<32x128xf32> to vector<8x128xf32>
    %cst_177 = arith.constant dense<0.000000e+00> : vector<16x128xf32>
    %391 = tpu.matmul %389, %390, %cst_177 {dimension_numbers = #tpu.dot_dimension_numbers<[1], [0], [0], [1], [0, 0, 1, 1], [], []>} : vector<16x8xf32>, vector<8x128xf32>, vector<16x128xf32> -> vector<16x128xf32>
    %392 = arith.addf %372, %391 : vector<16x128xf32>
    %393 = vector.extract_strided_slice %345 {offsets = [0, 16], sizes = [16, 8], strides = [1, 1]} : vector<16x32xf32> to vector<16x8xf32>
    %394 = vector.extract_strided_slice %346 {offsets = [0, 16], sizes = [16, 8], strides = [1, 1]} : vector<16x64xf32> to vector<16x8xf32>
    %395 = vector.extract_strided_slice %346 {offsets = [0, 48], sizes = [16, 8], strides = [1, 1]} : vector<16x64xf32> to vector<16x8xf32>
    %cst_178 = arith.constant dense<0.000000e+00> : vector<16x16xf32>
    %396 = tpu.matmul %393, %394, %cst_178 {dimension_numbers = #tpu.dot_dimension_numbers<[1], [1], [0], [0], [0, 0, 1, 0], [], []>} : vector<16x8xf32>, vector<16x8xf32>, vector<16x16xf32> -> vector<16x16xf32>
    %cst_179 = arith.constant 0.353553385 : f32
    %397 = vector.broadcast %cst_179 : f32 to vector<16x16xf32>
    %398 = arith.mulf %396, %397 : vector<16x16xf32>
    %399 = arith.addf %398, %6 : vector<16x16xf32>
    %cst_180 = arith.constant dense<0xFF800000> : vector<16xf32>
    %400 = vector.multi_reduction <maximumf>, %399, %cst_180 [1] : vector<16x16xf32> to vector<16xf32>
    %401 = vector.shape_cast %400 : vector<16xf32> to vector<16x1xf32>
    %402 = vector.broadcast %401 : vector<16x1xf32> to vector<16x16xf32>
    %403 = arith.subf %399, %402 : vector<16x16xf32>
    %404 = math.exp %403 : vector<16x16xf32>
    %cst_181 = arith.constant dense<0.000000e+00> : vector<16xf32>
    %405 = vector.multi_reduction <add>, %404, %cst_181 [1] : vector<16x16xf32> to vector<16xf32>
    %406 = vector.shape_cast %405 : vector<16xf32> to vector<16x1xf32>
    %407 = vector.broadcast %406 : vector<16x1xf32> to vector<16x16xf32>
    %408 = arith.divf %404, %407 : vector<16x16xf32>
    %cst_182 = arith.constant dense<0.000000e+00> : vector<16x8xf32>
    %409 = tpu.matmul %408, %395, %cst_182 {dimension_numbers = #tpu.dot_dimension_numbers<[1], [0], [0], [1], [0, 0, 1, 1], [], []>} : vector<16x16xf32>, vector<16x8xf32>, vector<16x8xf32> -> vector<16x8xf32>
    %410 = vector.extract_strided_slice %348 {offsets = [16, 0], sizes = [8, 128], strides = [1, 1]} : vector<32x128xf32> to vector<8x128xf32>
    %cst_183 = arith.constant dense<0.000000e+00> : vector<16x128xf32>
    %411 = tpu.matmul %409, %410, %cst_183 {dimension_numbers = #tpu.dot_dimension_numbers<[1], [0], [0], [1], [0, 0, 1, 1], [], []>} : vector<16x8xf32>, vector<8x128xf32>, vector<16x128xf32> -> vector<16x128xf32>
    %412 = arith.addf %392, %411 : vector<16x128xf32>
    %413 = vector.extract_strided_slice %345 {offsets = [0, 24], sizes = [16, 8], strides = [1, 1]} : vector<16x32xf32> to vector<16x8xf32>
    %414 = vector.extract_strided_slice %346 {offsets = [0, 24], sizes = [16, 8], strides = [1, 1]} : vector<16x64xf32> to vector<16x8xf32>
    %415 = vector.extract_strided_slice %346 {offsets = [0, 56], sizes = [16, 8], strides = [1, 1]} : vector<16x64xf32> to vector<16x8xf32>
    %cst_184 = arith.constant dense<0.000000e+00> : vector<16x16xf32>
    %416 = tpu.matmul %413, %414, %cst_184 {dimension_numbers = #tpu.dot_dimension_numbers<[1], [1], [0], [0], [0, 0, 1, 0], [], []>} : vector<16x8xf32>, vector<16x8xf32>, vector<16x16xf32> -> vector<16x16xf32>
    %cst_185 = arith.constant 0.353553385 : f32
    %417 = vector.broadcast %cst_185 : f32 to vector<16x16xf32>
    %418 = arith.mulf %416, %417 : vector<16x16xf32>
    %419 = arith.addf %418, %6 : vector<16x16xf32>
    %cst_186 = arith.constant dense<0xFF800000> : vector<16xf32>
    %420 = vector.multi_reduction <maximumf>, %419, %cst_186 [1] : vector<16x16xf32> to vector<16xf32>
    %421 = vector.shape_cast %420 : vector<16xf32> to vector<16x1xf32>
    %422 = vector.broadcast %421 : vector<16x1xf32> to vector<16x16xf32>
    %423 = arith.subf %419, %422 : vector<16x16xf32>
    %424 = math.exp %423 : vector<16x16xf32>
    %cst_187 = arith.constant dense<0.000000e+00> : vector<16xf32>
    %425 = vector.multi_reduction <add>, %424, %cst_187 [1] : vector<16x16xf32> to vector<16xf32>
    %426 = vector.shape_cast %425 : vector<16xf32> to vector<16x1xf32>
    %427 = vector.broadcast %426 : vector<16x1xf32> to vector<16x16xf32>
    %428 = arith.divf %424, %427 : vector<16x16xf32>
    %cst_188 = arith.constant dense<0.000000e+00> : vector<16x8xf32>
    %429 = tpu.matmul %428, %415, %cst_188 {dimension_numbers = #tpu.dot_dimension_numbers<[1], [0], [0], [1], [0, 0, 1, 1], [], []>} : vector<16x16xf32>, vector<16x8xf32>, vector<16x8xf32> -> vector<16x8xf32>
    %430 = vector.extract_strided_slice %348 {offsets = [24, 0], sizes = [8, 128], strides = [1, 1]} : vector<32x128xf32> to vector<8x128xf32>
    %cst_189 = arith.constant dense<0.000000e+00> : vector<16x128xf32>
    %431 = tpu.matmul %429, %430, %cst_189 {dimension_numbers = #tpu.dot_dimension_numbers<[1], [0], [0], [1], [0, 0, 1, 1], [], []>} : vector<16x8xf32>, vector<8x128xf32>, vector<16x128xf32> -> vector<16x128xf32>
    %432 = arith.addf %412, %431 : vector<16x128xf32>
    %cst_190 = arith.constant dense<0.000000e+00> : vector<16xf32>
    %433 = vector.multi_reduction <add>, %432, %cst_190 [1] : vector<16x128xf32> to vector<16xf32>
    %434 = vector.shape_cast %433 : vector<16xf32> to vector<16x1xf32>
    %cst_191 = arith.constant 3.125000e-02 : f32
    %435 = vector.broadcast %cst_191 : f32 to vector<16x1xf32>
    %436 = arith.mulf %434, %435 : vector<16x1xf32>
    %437 = vector.broadcast %436 : vector<16x1xf32> to vector<16x128xf32>
    %438 = arith.subf %432, %437 : vector<16x128xf32>
    %439 = vector.broadcast %4 : vector<1x128xf32> to vector<16x128xf32>
    %440 = arith.mulf %438, %439 : vector<16x128xf32>
    %441 = arith.mulf %440, %440 : vector<16x128xf32>
    %cst_192 = arith.constant dense<0.000000e+00> : vector<16xf32>
    %442 = vector.multi_reduction <add>, %441, %cst_192 [1] : vector<16x128xf32> to vector<16xf32>
    %443 = vector.shape_cast %442 : vector<16xf32> to vector<16x1xf32>
    %cst_193 = arith.constant 3.125000e-02 : f32
    %444 = vector.broadcast %cst_193 : f32 to vector<16x1xf32>
    %445 = arith.mulf %443, %444 : vector<16x1xf32>
    %cst_194 = arith.constant 9.99999974E-6 : f32
    %446 = vector.broadcast %cst_194 : f32 to vector<16x1xf32>
    %447 = arith.addf %445, %446 : vector<16x1xf32>
    %448 = math.rsqrt %447 : vector<16x1xf32>
    %449 = vector.broadcast %448 : vector<16x1xf32> to vector<16x128xf32>
    %450 = arith.mulf %440, %449 : vector<16x128xf32>
    %c4 = arith.constant 4 : index
    %c0_195 = arith.constant 0 : index
    %c0_196 = arith.constant 0 : index
    %451 = vector.load %arg13[%c4, %c0_195, %c0_196] : memref<10x1x128xf32, #tpu.memory_space<vmem>>, vector<1x1x128xf32>
    %452 = vector.shape_cast %451 : vector<1x1x128xf32> to vector<1x128xf32>
    %453 = vector.broadcast %452 : vector<1x128xf32> to vector<16x128xf32>
    %454 = arith.mulf %450, %453 : vector<16x128xf32>
    %c4_197 = arith.constant 4 : index
    %c0_198 = arith.constant 0 : index
    %c0_199 = arith.constant 0 : index
    %455 = vector.load %arg14[%c4_197, %c0_198, %c0_199] : memref<10x1x128xf32, #tpu.memory_space<vmem>>, vector<1x1x128xf32>
    %456 = vector.shape_cast %455 : vector<1x1x128xf32> to vector<1x128xf32>
    %457 = vector.broadcast %456 : vector<1x128xf32> to vector<16x128xf32>
    %458 = arith.addf %454, %457 : vector<16x128xf32>
    %c3_200 = arith.constant 3 : index
    %c0_201 = arith.constant 0 : index
    %c0_202 = arith.constant 0 : index
    %459 = vector.load %arg5[%c3_200, %c0_201, %c0_202] : memref<6x128x96xf32, #tpu.memory_space<vmem>>, vector<1x128x96xf32>
    %460 = vector.shape_cast %459 : vector<1x128x96xf32> to vector<128x96xf32>
    %c3_203 = arith.constant 3 : index
    %c0_204 = arith.constant 0 : index
    %c0_205 = arith.constant 0 : index
    %461 = vector.load %arg6[%c3_203, %c0_204, %c0_205] : memref<6x1x96xf32, #tpu.memory_space<vmem>>, vector<1x1x96xf32>
    %462 = vector.shape_cast %461 : vector<1x1x96xf32> to vector<1x96xf32>
    %463 = vector.extract_strided_slice %460 {offsets = [0, 0], sizes = [128, 32], strides = [1, 1]} : vector<128x96xf32> to vector<128x32xf32>
    %cst_206 = arith.constant dense<0.000000e+00> : vector<16x32xf32>
    %464 = tpu.matmul %458, %463, %cst_206 {dimension_numbers = #tpu.dot_dimension_numbers<[1], [0], [0], [1], [0, 0, 1, 1], [], []>} : vector<16x128xf32>, vector<128x32xf32>, vector<16x32xf32> -> vector<16x32xf32>
    %465 = vector.extract_strided_slice %462 {offsets = [0, 0], sizes = [1, 32], strides = [1, 1]} : vector<1x96xf32> to vector<1x32xf32>
    %466 = vector.broadcast %465 : vector<1x32xf32> to vector<16x32xf32>
    %467 = arith.addf %464, %466 : vector<16x32xf32>
    %468 = vector.extract_strided_slice %460 {offsets = [0, 32], sizes = [128, 64], strides = [1, 1]} : vector<128x96xf32> to vector<128x64xf32>
    %cst_207 = arith.constant dense<0.000000e+00> : vector<20x64xf32>
    %469 = tpu.matmul %336, %468, %cst_207 {dimension_numbers = #tpu.dot_dimension_numbers<[1], [0], [0], [1], [0, 0, 1, 1], [], []>} : vector<20x128xf32>, vector<128x64xf32>, vector<20x64xf32> -> vector<20x64xf32>
    %470 = vector.extract_strided_slice %462 {offsets = [0, 32], sizes = [1, 64], strides = [1, 1]} : vector<1x96xf32> to vector<1x64xf32>
    %471 = vector.broadcast %470 : vector<1x64xf32> to vector<20x64xf32>
    %472 = arith.addf %469, %471 : vector<20x64xf32>
    %c3_208 = arith.constant 3 : index
    %c0_209 = arith.constant 0 : index
    %c0_210 = arith.constant 0 : index
    %473 = vector.load %arg7[%c3_208, %c0_209, %c0_210] : memref<6x32x128xf32, #tpu.memory_space<vmem>>, vector<1x32x128xf32>
    %474 = vector.shape_cast %473 : vector<1x32x128xf32> to vector<32x128xf32>
    %c3_211 = arith.constant 3 : index
    %c0_212 = arith.constant 0 : index
    %c0_213 = arith.constant 0 : index
    %475 = vector.load %arg8[%c3_211, %c0_212, %c0_213] : memref<6x1x128xf32, #tpu.memory_space<vmem>>, vector<1x1x128xf32>
    %476 = vector.shape_cast %475 : vector<1x1x128xf32> to vector<1x128xf32>
    %477 = vector.broadcast %476 : vector<1x128xf32> to vector<16x128xf32>
    %478 = arith.addf %458, %477 : vector<16x128xf32>
    %479 = vector.extract_strided_slice %467 {offsets = [0, 0], sizes = [16, 8], strides = [1, 1]} : vector<16x32xf32> to vector<16x8xf32>
    %480 = vector.extract_strided_slice %472 {offsets = [0, 0], sizes = [20, 8], strides = [1, 1]} : vector<20x64xf32> to vector<20x8xf32>
    %481 = vector.extract_strided_slice %472 {offsets = [0, 32], sizes = [20, 8], strides = [1, 1]} : vector<20x64xf32> to vector<20x8xf32>
    %cst_214 = arith.constant dense<0.000000e+00> : vector<16x20xf32>
    %482 = tpu.matmul %479, %480, %cst_214 {dimension_numbers = #tpu.dot_dimension_numbers<[1], [1], [0], [0], [0, 0, 1, 0], [], []>} : vector<16x8xf32>, vector<20x8xf32>, vector<16x20xf32> -> vector<16x20xf32>
    %cst_215 = arith.constant 0.353553385 : f32
    %483 = vector.broadcast %cst_215 : f32 to vector<16x20xf32>
    %484 = arith.mulf %482, %483 : vector<16x20xf32>
    %485 = arith.addf %484, %7 : vector<16x20xf32>
    %cst_216 = arith.constant dense<0xFF800000> : vector<16xf32>
    %486 = vector.multi_reduction <maximumf>, %485, %cst_216 [1] : vector<16x20xf32> to vector<16xf32>
    %487 = vector.shape_cast %486 : vector<16xf32> to vector<16x1xf32>
    %488 = vector.broadcast %487 : vector<16x1xf32> to vector<16x20xf32>
    %489 = arith.subf %485, %488 : vector<16x20xf32>
    %490 = math.exp %489 : vector<16x20xf32>
    %cst_217 = arith.constant dense<0.000000e+00> : vector<16xf32>
    %491 = vector.multi_reduction <add>, %490, %cst_217 [1] : vector<16x20xf32> to vector<16xf32>
    %492 = vector.shape_cast %491 : vector<16xf32> to vector<16x1xf32>
    %493 = vector.broadcast %492 : vector<16x1xf32> to vector<16x20xf32>
    %494 = arith.divf %490, %493 : vector<16x20xf32>
    %cst_218 = arith.constant dense<0.000000e+00> : vector<16x8xf32>
    %495 = tpu.matmul %494, %481, %cst_218 {dimension_numbers = #tpu.dot_dimension_numbers<[1], [0], [0], [1], [0, 0, 1, 1], [], []>} : vector<16x20xf32>, vector<20x8xf32>, vector<16x8xf32> -> vector<16x8xf32>
    %496 = vector.extract_strided_slice %474 {offsets = [0, 0], sizes = [8, 128], strides = [1, 1]} : vector<32x128xf32> to vector<8x128xf32>
    %cst_219 = arith.constant dense<0.000000e+00> : vector<16x128xf32>
    %497 = tpu.matmul %495, %496, %cst_219 {dimension_numbers = #tpu.dot_dimension_numbers<[1], [0], [0], [1], [0, 0, 1, 1], [], []>} : vector<16x8xf32>, vector<8x128xf32>, vector<16x128xf32> -> vector<16x128xf32>
    %498 = arith.addf %478, %497 : vector<16x128xf32>
    %499 = vector.extract_strided_slice %467 {offsets = [0, 8], sizes = [16, 8], strides = [1, 1]} : vector<16x32xf32> to vector<16x8xf32>
    %500 = vector.extract_strided_slice %472 {offsets = [0, 8], sizes = [20, 8], strides = [1, 1]} : vector<20x64xf32> to vector<20x8xf32>
    %501 = vector.extract_strided_slice %472 {offsets = [0, 40], sizes = [20, 8], strides = [1, 1]} : vector<20x64xf32> to vector<20x8xf32>
    %cst_220 = arith.constant dense<0.000000e+00> : vector<16x20xf32>
    %502 = tpu.matmul %499, %500, %cst_220 {dimension_numbers = #tpu.dot_dimension_numbers<[1], [1], [0], [0], [0, 0, 1, 0], [], []>} : vector<16x8xf32>, vector<20x8xf32>, vector<16x20xf32> -> vector<16x20xf32>
    %cst_221 = arith.constant 0.353553385 : f32
    %503 = vector.broadcast %cst_221 : f32 to vector<16x20xf32>
    %504 = arith.mulf %502, %503 : vector<16x20xf32>
    %505 = arith.addf %504, %7 : vector<16x20xf32>
    %cst_222 = arith.constant dense<0xFF800000> : vector<16xf32>
    %506 = vector.multi_reduction <maximumf>, %505, %cst_222 [1] : vector<16x20xf32> to vector<16xf32>
    %507 = vector.shape_cast %506 : vector<16xf32> to vector<16x1xf32>
    %508 = vector.broadcast %507 : vector<16x1xf32> to vector<16x20xf32>
    %509 = arith.subf %505, %508 : vector<16x20xf32>
    %510 = math.exp %509 : vector<16x20xf32>
    %cst_223 = arith.constant dense<0.000000e+00> : vector<16xf32>
    %511 = vector.multi_reduction <add>, %510, %cst_223 [1] : vector<16x20xf32> to vector<16xf32>
    %512 = vector.shape_cast %511 : vector<16xf32> to vector<16x1xf32>
    %513 = vector.broadcast %512 : vector<16x1xf32> to vector<16x20xf32>
    %514 = arith.divf %510, %513 : vector<16x20xf32>
    %cst_224 = arith.constant dense<0.000000e+00> : vector<16x8xf32>
    %515 = tpu.matmul %514, %501, %cst_224 {dimension_numbers = #tpu.dot_dimension_numbers<[1], [0], [0], [1], [0, 0, 1, 1], [], []>} : vector<16x20xf32>, vector<20x8xf32>, vector<16x8xf32> -> vector<16x8xf32>
    %516 = vector.extract_strided_slice %474 {offsets = [8, 0], sizes = [8, 128], strides = [1, 1]} : vector<32x128xf32> to vector<8x128xf32>
    %cst_225 = arith.constant dense<0.000000e+00> : vector<16x128xf32>
    %517 = tpu.matmul %515, %516, %cst_225 {dimension_numbers = #tpu.dot_dimension_numbers<[1], [0], [0], [1], [0, 0, 1, 1], [], []>} : vector<16x8xf32>, vector<8x128xf32>, vector<16x128xf32> -> vector<16x128xf32>
    %518 = arith.addf %498, %517 : vector<16x128xf32>
    %519 = vector.extract_strided_slice %467 {offsets = [0, 16], sizes = [16, 8], strides = [1, 1]} : vector<16x32xf32> to vector<16x8xf32>
    %520 = vector.extract_strided_slice %472 {offsets = [0, 16], sizes = [20, 8], strides = [1, 1]} : vector<20x64xf32> to vector<20x8xf32>
    %521 = vector.extract_strided_slice %472 {offsets = [0, 48], sizes = [20, 8], strides = [1, 1]} : vector<20x64xf32> to vector<20x8xf32>
    %cst_226 = arith.constant dense<0.000000e+00> : vector<16x20xf32>
    %522 = tpu.matmul %519, %520, %cst_226 {dimension_numbers = #tpu.dot_dimension_numbers<[1], [1], [0], [0], [0, 0, 1, 0], [], []>} : vector<16x8xf32>, vector<20x8xf32>, vector<16x20xf32> -> vector<16x20xf32>
    %cst_227 = arith.constant 0.353553385 : f32
    %523 = vector.broadcast %cst_227 : f32 to vector<16x20xf32>
    %524 = arith.mulf %522, %523 : vector<16x20xf32>
    %525 = arith.addf %524, %7 : vector<16x20xf32>
    %cst_228 = arith.constant dense<0xFF800000> : vector<16xf32>
    %526 = vector.multi_reduction <maximumf>, %525, %cst_228 [1] : vector<16x20xf32> to vector<16xf32>
    %527 = vector.shape_cast %526 : vector<16xf32> to vector<16x1xf32>
    %528 = vector.broadcast %527 : vector<16x1xf32> to vector<16x20xf32>
    %529 = arith.subf %525, %528 : vector<16x20xf32>
    %530 = math.exp %529 : vector<16x20xf32>
    %cst_229 = arith.constant dense<0.000000e+00> : vector<16xf32>
    %531 = vector.multi_reduction <add>, %530, %cst_229 [1] : vector<16x20xf32> to vector<16xf32>
    %532 = vector.shape_cast %531 : vector<16xf32> to vector<16x1xf32>
    %533 = vector.broadcast %532 : vector<16x1xf32> to vector<16x20xf32>
    %534 = arith.divf %530, %533 : vector<16x20xf32>
    %cst_230 = arith.constant dense<0.000000e+00> : vector<16x8xf32>
    %535 = tpu.matmul %534, %521, %cst_230 {dimension_numbers = #tpu.dot_dimension_numbers<[1], [0], [0], [1], [0, 0, 1, 1], [], []>} : vector<16x20xf32>, vector<20x8xf32>, vector<16x8xf32> -> vector<16x8xf32>
    %536 = vector.extract_strided_slice %474 {offsets = [16, 0], sizes = [8, 128], strides = [1, 1]} : vector<32x128xf32> to vector<8x128xf32>
    %cst_231 = arith.constant dense<0.000000e+00> : vector<16x128xf32>
    %537 = tpu.matmul %535, %536, %cst_231 {dimension_numbers = #tpu.dot_dimension_numbers<[1], [0], [0], [1], [0, 0, 1, 1], [], []>} : vector<16x8xf32>, vector<8x128xf32>, vector<16x128xf32> -> vector<16x128xf32>
    %538 = arith.addf %518, %537 : vector<16x128xf32>
    %539 = vector.extract_strided_slice %467 {offsets = [0, 24], sizes = [16, 8], strides = [1, 1]} : vector<16x32xf32> to vector<16x8xf32>
    %540 = vector.extract_strided_slice %472 {offsets = [0, 24], sizes = [20, 8], strides = [1, 1]} : vector<20x64xf32> to vector<20x8xf32>
    %541 = vector.extract_strided_slice %472 {offsets = [0, 56], sizes = [20, 8], strides = [1, 1]} : vector<20x64xf32> to vector<20x8xf32>
    %cst_232 = arith.constant dense<0.000000e+00> : vector<16x20xf32>
    %542 = tpu.matmul %539, %540, %cst_232 {dimension_numbers = #tpu.dot_dimension_numbers<[1], [1], [0], [0], [0, 0, 1, 0], [], []>} : vector<16x8xf32>, vector<20x8xf32>, vector<16x20xf32> -> vector<16x20xf32>
    %cst_233 = arith.constant 0.353553385 : f32
    %543 = vector.broadcast %cst_233 : f32 to vector<16x20xf32>
    %544 = arith.mulf %542, %543 : vector<16x20xf32>
    %545 = arith.addf %544, %7 : vector<16x20xf32>
    %cst_234 = arith.constant dense<0xFF800000> : vector<16xf32>
    %546 = vector.multi_reduction <maximumf>, %545, %cst_234 [1] : vector<16x20xf32> to vector<16xf32>
    %547 = vector.shape_cast %546 : vector<16xf32> to vector<16x1xf32>
    %548 = vector.broadcast %547 : vector<16x1xf32> to vector<16x20xf32>
    %549 = arith.subf %545, %548 : vector<16x20xf32>
    %550 = math.exp %549 : vector<16x20xf32>
    %cst_235 = arith.constant dense<0.000000e+00> : vector<16xf32>
    %551 = vector.multi_reduction <add>, %550, %cst_235 [1] : vector<16x20xf32> to vector<16xf32>
    %552 = vector.shape_cast %551 : vector<16xf32> to vector<16x1xf32>
    %553 = vector.broadcast %552 : vector<16x1xf32> to vector<16x20xf32>
    %554 = arith.divf %550, %553 : vector<16x20xf32>
    %cst_236 = arith.constant dense<0.000000e+00> : vector<16x8xf32>
    %555 = tpu.matmul %554, %541, %cst_236 {dimension_numbers = #tpu.dot_dimension_numbers<[1], [0], [0], [1], [0, 0, 1, 1], [], []>} : vector<16x20xf32>, vector<20x8xf32>, vector<16x8xf32> -> vector<16x8xf32>
    %556 = vector.extract_strided_slice %474 {offsets = [24, 0], sizes = [8, 128], strides = [1, 1]} : vector<32x128xf32> to vector<8x128xf32>
    %cst_237 = arith.constant dense<0.000000e+00> : vector<16x128xf32>
    %557 = tpu.matmul %555, %556, %cst_237 {dimension_numbers = #tpu.dot_dimension_numbers<[1], [0], [0], [1], [0, 0, 1, 1], [], []>} : vector<16x8xf32>, vector<8x128xf32>, vector<16x128xf32> -> vector<16x128xf32>
    %558 = arith.addf %538, %557 : vector<16x128xf32>
    %cst_238 = arith.constant dense<0.000000e+00> : vector<16xf32>
    %559 = vector.multi_reduction <add>, %558, %cst_238 [1] : vector<16x128xf32> to vector<16xf32>
    %560 = vector.shape_cast %559 : vector<16xf32> to vector<16x1xf32>
    %cst_239 = arith.constant 3.125000e-02 : f32
    %561 = vector.broadcast %cst_239 : f32 to vector<16x1xf32>
    %562 = arith.mulf %560, %561 : vector<16x1xf32>
    %563 = vector.broadcast %562 : vector<16x1xf32> to vector<16x128xf32>
    %564 = arith.subf %558, %563 : vector<16x128xf32>
    %565 = vector.broadcast %4 : vector<1x128xf32> to vector<16x128xf32>
    %566 = arith.mulf %564, %565 : vector<16x128xf32>
    %567 = arith.mulf %566, %566 : vector<16x128xf32>
    %cst_240 = arith.constant dense<0.000000e+00> : vector<16xf32>
    %568 = vector.multi_reduction <add>, %567, %cst_240 [1] : vector<16x128xf32> to vector<16xf32>
    %569 = vector.shape_cast %568 : vector<16xf32> to vector<16x1xf32>
    %cst_241 = arith.constant 3.125000e-02 : f32
    %570 = vector.broadcast %cst_241 : f32 to vector<16x1xf32>
    %571 = arith.mulf %569, %570 : vector<16x1xf32>
    %cst_242 = arith.constant 9.99999974E-6 : f32
    %572 = vector.broadcast %cst_242 : f32 to vector<16x1xf32>
    %573 = arith.addf %571, %572 : vector<16x1xf32>
    %574 = math.rsqrt %573 : vector<16x1xf32>
    %575 = vector.broadcast %574 : vector<16x1xf32> to vector<16x128xf32>
    %576 = arith.mulf %566, %575 : vector<16x128xf32>
    %c5 = arith.constant 5 : index
    %c0_243 = arith.constant 0 : index
    %c0_244 = arith.constant 0 : index
    %577 = vector.load %arg13[%c5, %c0_243, %c0_244] : memref<10x1x128xf32, #tpu.memory_space<vmem>>, vector<1x1x128xf32>
    %578 = vector.shape_cast %577 : vector<1x1x128xf32> to vector<1x128xf32>
    %579 = vector.broadcast %578 : vector<1x128xf32> to vector<16x128xf32>
    %580 = arith.mulf %576, %579 : vector<16x128xf32>
    %c5_245 = arith.constant 5 : index
    %c0_246 = arith.constant 0 : index
    %c0_247 = arith.constant 0 : index
    %581 = vector.load %arg14[%c5_245, %c0_246, %c0_247] : memref<10x1x128xf32, #tpu.memory_space<vmem>>, vector<1x1x128xf32>
    %582 = vector.shape_cast %581 : vector<1x1x128xf32> to vector<1x128xf32>
    %583 = vector.broadcast %582 : vector<1x128xf32> to vector<16x128xf32>
    %584 = arith.addf %580, %583 : vector<16x128xf32>
    %c2_248 = arith.constant 2 : index
    %c0_249 = arith.constant 0 : index
    %c0_250 = arith.constant 0 : index
    %585 = vector.load %arg9[%c2_248, %c0_249, %c0_250] : memref<4x128x128xf32, #tpu.memory_space<vmem>>, vector<1x128x128xf32>
    %586 = vector.shape_cast %585 : vector<1x128x128xf32> to vector<128x128xf32>
    %cst_251 = arith.constant dense<0.000000e+00> : vector<16x128xf32>
    %587 = tpu.matmul %584, %586, %cst_251 {dimension_numbers = #tpu.dot_dimension_numbers<[1], [0], [0], [1], [0, 0, 1, 1], [], []>} : vector<16x128xf32>, vector<128x128xf32>, vector<16x128xf32> -> vector<16x128xf32>
    %c2_252 = arith.constant 2 : index
    %c0_253 = arith.constant 0 : index
    %c0_254 = arith.constant 0 : index
    %588 = vector.load %arg10[%c2_252, %c0_253, %c0_254] : memref<4x1x128xf32, #tpu.memory_space<vmem>>, vector<1x1x128xf32>
    %589 = vector.shape_cast %588 : vector<1x1x128xf32> to vector<1x128xf32>
    %590 = vector.broadcast %589 : vector<1x128xf32> to vector<16x128xf32>
    %591 = arith.addf %587, %590 : vector<16x128xf32>
    %cst_255 = arith.constant 0.000000e+00 : f32
    %592 = vector.broadcast %cst_255 : f32 to vector<16x128xf32>
    %593 = arith.maximumf %591, %592 : vector<16x128xf32>
    %c2_256 = arith.constant 2 : index
    %c0_257 = arith.constant 0 : index
    %c0_258 = arith.constant 0 : index
    %594 = vector.load %arg11[%c2_256, %c0_257, %c0_258] : memref<4x128x128xf32, #tpu.memory_space<vmem>>, vector<1x128x128xf32>
    %595 = vector.shape_cast %594 : vector<1x128x128xf32> to vector<128x128xf32>
    %cst_259 = arith.constant dense<0.000000e+00> : vector<16x128xf32>
    %596 = tpu.matmul %593, %595, %cst_259 {dimension_numbers = #tpu.dot_dimension_numbers<[1], [0], [0], [1], [0, 0, 1, 1], [], []>} : vector<16x128xf32>, vector<128x128xf32>, vector<16x128xf32> -> vector<16x128xf32>
    %597 = arith.addf %584, %596 : vector<16x128xf32>
    %c2_260 = arith.constant 2 : index
    %c0_261 = arith.constant 0 : index
    %c0_262 = arith.constant 0 : index
    %598 = vector.load %arg12[%c2_260, %c0_261, %c0_262] : memref<4x1x128xf32, #tpu.memory_space<vmem>>, vector<1x1x128xf32>
    %599 = vector.shape_cast %598 : vector<1x1x128xf32> to vector<1x128xf32>
    %600 = vector.broadcast %599 : vector<1x128xf32> to vector<16x128xf32>
    %601 = arith.addf %597, %600 : vector<16x128xf32>
    %cst_263 = arith.constant dense<0.000000e+00> : vector<16xf32>
    %602 = vector.multi_reduction <add>, %601, %cst_263 [1] : vector<16x128xf32> to vector<16xf32>
    %603 = vector.shape_cast %602 : vector<16xf32> to vector<16x1xf32>
    %cst_264 = arith.constant 3.125000e-02 : f32
    %604 = vector.broadcast %cst_264 : f32 to vector<16x1xf32>
    %605 = arith.mulf %603, %604 : vector<16x1xf32>
    %606 = vector.broadcast %605 : vector<16x1xf32> to vector<16x128xf32>
    %607 = arith.subf %601, %606 : vector<16x128xf32>
    %608 = vector.broadcast %4 : vector<1x128xf32> to vector<16x128xf32>
    %609 = arith.mulf %607, %608 : vector<16x128xf32>
    %610 = arith.mulf %609, %609 : vector<16x128xf32>
    %cst_265 = arith.constant dense<0.000000e+00> : vector<16xf32>
    %611 = vector.multi_reduction <add>, %610, %cst_265 [1] : vector<16x128xf32> to vector<16xf32>
    %612 = vector.shape_cast %611 : vector<16xf32> to vector<16x1xf32>
    %cst_266 = arith.constant 3.125000e-02 : f32
    %613 = vector.broadcast %cst_266 : f32 to vector<16x1xf32>
    %614 = arith.mulf %612, %613 : vector<16x1xf32>
    %cst_267 = arith.constant 9.99999974E-6 : f32
    %615 = vector.broadcast %cst_267 : f32 to vector<16x1xf32>
    %616 = arith.addf %614, %615 : vector<16x1xf32>
    %617 = math.rsqrt %616 : vector<16x1xf32>
    %618 = vector.broadcast %617 : vector<16x1xf32> to vector<16x128xf32>
    %619 = arith.mulf %609, %618 : vector<16x128xf32>
    %c6 = arith.constant 6 : index
    %c0_268 = arith.constant 0 : index
    %c0_269 = arith.constant 0 : index
    %620 = vector.load %arg13[%c6, %c0_268, %c0_269] : memref<10x1x128xf32, #tpu.memory_space<vmem>>, vector<1x1x128xf32>
    %621 = vector.shape_cast %620 : vector<1x1x128xf32> to vector<1x128xf32>
    %622 = vector.broadcast %621 : vector<1x128xf32> to vector<16x128xf32>
    %623 = arith.mulf %619, %622 : vector<16x128xf32>
    %c6_270 = arith.constant 6 : index
    %c0_271 = arith.constant 0 : index
    %c0_272 = arith.constant 0 : index
    %624 = vector.load %arg14[%c6_270, %c0_271, %c0_272] : memref<10x1x128xf32, #tpu.memory_space<vmem>>, vector<1x1x128xf32>
    %625 = vector.shape_cast %624 : vector<1x1x128xf32> to vector<1x128xf32>
    %626 = vector.broadcast %625 : vector<1x128xf32> to vector<16x128xf32>
    %627 = arith.addf %623, %626 : vector<16x128xf32>
    %c4_273 = arith.constant 4 : index
    %c0_274 = arith.constant 0 : index
    %c0_275 = arith.constant 0 : index
    %628 = vector.load %arg5[%c4_273, %c0_274, %c0_275] : memref<6x128x96xf32, #tpu.memory_space<vmem>>, vector<1x128x96xf32>
    %629 = vector.shape_cast %628 : vector<1x128x96xf32> to vector<128x96xf32>
    %c4_276 = arith.constant 4 : index
    %c0_277 = arith.constant 0 : index
    %c0_278 = arith.constant 0 : index
    %630 = vector.load %arg6[%c4_276, %c0_277, %c0_278] : memref<6x1x96xf32, #tpu.memory_space<vmem>>, vector<1x1x96xf32>
    %631 = vector.shape_cast %630 : vector<1x1x96xf32> to vector<1x96xf32>
    %cst_279 = arith.constant dense<0.000000e+00> : vector<16x96xf32>
    %632 = tpu.matmul %627, %629, %cst_279 {dimension_numbers = #tpu.dot_dimension_numbers<[1], [0], [0], [1], [0, 0, 1, 1], [], []>} : vector<16x128xf32>, vector<128x96xf32>, vector<16x96xf32> -> vector<16x96xf32>
    %633 = vector.broadcast %631 : vector<1x96xf32> to vector<16x96xf32>
    %634 = arith.addf %632, %633 : vector<16x96xf32>
    %635 = vector.extract_strided_slice %634 {offsets = [0, 0], sizes = [16, 32], strides = [1, 1]} : vector<16x96xf32> to vector<16x32xf32>
    %636 = vector.extract_strided_slice %634 {offsets = [0, 32], sizes = [16, 64], strides = [1, 1]} : vector<16x96xf32> to vector<16x64xf32>
    %c4_280 = arith.constant 4 : index
    %c0_281 = arith.constant 0 : index
    %c0_282 = arith.constant 0 : index
    %637 = vector.load %arg7[%c4_280, %c0_281, %c0_282] : memref<6x32x128xf32, #tpu.memory_space<vmem>>, vector<1x32x128xf32>
    %638 = vector.shape_cast %637 : vector<1x32x128xf32> to vector<32x128xf32>
    %c4_283 = arith.constant 4 : index
    %c0_284 = arith.constant 0 : index
    %c0_285 = arith.constant 0 : index
    %639 = vector.load %arg8[%c4_283, %c0_284, %c0_285] : memref<6x1x128xf32, #tpu.memory_space<vmem>>, vector<1x1x128xf32>
    %640 = vector.shape_cast %639 : vector<1x1x128xf32> to vector<1x128xf32>
    %641 = vector.broadcast %640 : vector<1x128xf32> to vector<16x128xf32>
    %642 = arith.addf %627, %641 : vector<16x128xf32>
    %643 = vector.extract_strided_slice %635 {offsets = [0, 0], sizes = [16, 8], strides = [1, 1]} : vector<16x32xf32> to vector<16x8xf32>
    %644 = vector.extract_strided_slice %636 {offsets = [0, 0], sizes = [16, 8], strides = [1, 1]} : vector<16x64xf32> to vector<16x8xf32>
    %645 = vector.extract_strided_slice %636 {offsets = [0, 32], sizes = [16, 8], strides = [1, 1]} : vector<16x64xf32> to vector<16x8xf32>
    %cst_286 = arith.constant dense<0.000000e+00> : vector<16x16xf32>
    %646 = tpu.matmul %643, %644, %cst_286 {dimension_numbers = #tpu.dot_dimension_numbers<[1], [1], [0], [0], [0, 0, 1, 0], [], []>} : vector<16x8xf32>, vector<16x8xf32>, vector<16x16xf32> -> vector<16x16xf32>
    %cst_287 = arith.constant 0.353553385 : f32
    %647 = vector.broadcast %cst_287 : f32 to vector<16x16xf32>
    %648 = arith.mulf %646, %647 : vector<16x16xf32>
    %649 = arith.addf %648, %6 : vector<16x16xf32>
    %cst_288 = arith.constant dense<0xFF800000> : vector<16xf32>
    %650 = vector.multi_reduction <maximumf>, %649, %cst_288 [1] : vector<16x16xf32> to vector<16xf32>
    %651 = vector.shape_cast %650 : vector<16xf32> to vector<16x1xf32>
    %652 = vector.broadcast %651 : vector<16x1xf32> to vector<16x16xf32>
    %653 = arith.subf %649, %652 : vector<16x16xf32>
    %654 = math.exp %653 : vector<16x16xf32>
    %cst_289 = arith.constant dense<0.000000e+00> : vector<16xf32>
    %655 = vector.multi_reduction <add>, %654, %cst_289 [1] : vector<16x16xf32> to vector<16xf32>
    %656 = vector.shape_cast %655 : vector<16xf32> to vector<16x1xf32>
    %657 = vector.broadcast %656 : vector<16x1xf32> to vector<16x16xf32>
    %658 = arith.divf %654, %657 : vector<16x16xf32>
    %cst_290 = arith.constant dense<0.000000e+00> : vector<16x8xf32>
    %659 = tpu.matmul %658, %645, %cst_290 {dimension_numbers = #tpu.dot_dimension_numbers<[1], [0], [0], [1], [0, 0, 1, 1], [], []>} : vector<16x16xf32>, vector<16x8xf32>, vector<16x8xf32> -> vector<16x8xf32>
    %660 = vector.extract_strided_slice %638 {offsets = [0, 0], sizes = [8, 128], strides = [1, 1]} : vector<32x128xf32> to vector<8x128xf32>
    %cst_291 = arith.constant dense<0.000000e+00> : vector<16x128xf32>
    %661 = tpu.matmul %659, %660, %cst_291 {dimension_numbers = #tpu.dot_dimension_numbers<[1], [0], [0], [1], [0, 0, 1, 1], [], []>} : vector<16x8xf32>, vector<8x128xf32>, vector<16x128xf32> -> vector<16x128xf32>
    %662 = arith.addf %642, %661 : vector<16x128xf32>
    %663 = vector.extract_strided_slice %635 {offsets = [0, 8], sizes = [16, 8], strides = [1, 1]} : vector<16x32xf32> to vector<16x8xf32>
    %664 = vector.extract_strided_slice %636 {offsets = [0, 8], sizes = [16, 8], strides = [1, 1]} : vector<16x64xf32> to vector<16x8xf32>
    %665 = vector.extract_strided_slice %636 {offsets = [0, 40], sizes = [16, 8], strides = [1, 1]} : vector<16x64xf32> to vector<16x8xf32>
    %cst_292 = arith.constant dense<0.000000e+00> : vector<16x16xf32>
    %666 = tpu.matmul %663, %664, %cst_292 {dimension_numbers = #tpu.dot_dimension_numbers<[1], [1], [0], [0], [0, 0, 1, 0], [], []>} : vector<16x8xf32>, vector<16x8xf32>, vector<16x16xf32> -> vector<16x16xf32>
    %cst_293 = arith.constant 0.353553385 : f32
    %667 = vector.broadcast %cst_293 : f32 to vector<16x16xf32>
    %668 = arith.mulf %666, %667 : vector<16x16xf32>
    %669 = arith.addf %668, %6 : vector<16x16xf32>
    %cst_294 = arith.constant dense<0xFF800000> : vector<16xf32>
    %670 = vector.multi_reduction <maximumf>, %669, %cst_294 [1] : vector<16x16xf32> to vector<16xf32>
    %671 = vector.shape_cast %670 : vector<16xf32> to vector<16x1xf32>
    %672 = vector.broadcast %671 : vector<16x1xf32> to vector<16x16xf32>
    %673 = arith.subf %669, %672 : vector<16x16xf32>
    %674 = math.exp %673 : vector<16x16xf32>
    %cst_295 = arith.constant dense<0.000000e+00> : vector<16xf32>
    %675 = vector.multi_reduction <add>, %674, %cst_295 [1] : vector<16x16xf32> to vector<16xf32>
    %676 = vector.shape_cast %675 : vector<16xf32> to vector<16x1xf32>
    %677 = vector.broadcast %676 : vector<16x1xf32> to vector<16x16xf32>
    %678 = arith.divf %674, %677 : vector<16x16xf32>
    %cst_296 = arith.constant dense<0.000000e+00> : vector<16x8xf32>
    %679 = tpu.matmul %678, %665, %cst_296 {dimension_numbers = #tpu.dot_dimension_numbers<[1], [0], [0], [1], [0, 0, 1, 1], [], []>} : vector<16x16xf32>, vector<16x8xf32>, vector<16x8xf32> -> vector<16x8xf32>
    %680 = vector.extract_strided_slice %638 {offsets = [8, 0], sizes = [8, 128], strides = [1, 1]} : vector<32x128xf32> to vector<8x128xf32>
    %cst_297 = arith.constant dense<0.000000e+00> : vector<16x128xf32>
    %681 = tpu.matmul %679, %680, %cst_297 {dimension_numbers = #tpu.dot_dimension_numbers<[1], [0], [0], [1], [0, 0, 1, 1], [], []>} : vector<16x8xf32>, vector<8x128xf32>, vector<16x128xf32> -> vector<16x128xf32>
    %682 = arith.addf %662, %681 : vector<16x128xf32>
    %683 = vector.extract_strided_slice %635 {offsets = [0, 16], sizes = [16, 8], strides = [1, 1]} : vector<16x32xf32> to vector<16x8xf32>
    %684 = vector.extract_strided_slice %636 {offsets = [0, 16], sizes = [16, 8], strides = [1, 1]} : vector<16x64xf32> to vector<16x8xf32>
    %685 = vector.extract_strided_slice %636 {offsets = [0, 48], sizes = [16, 8], strides = [1, 1]} : vector<16x64xf32> to vector<16x8xf32>
    %cst_298 = arith.constant dense<0.000000e+00> : vector<16x16xf32>
    %686 = tpu.matmul %683, %684, %cst_298 {dimension_numbers = #tpu.dot_dimension_numbers<[1], [1], [0], [0], [0, 0, 1, 0], [], []>} : vector<16x8xf32>, vector<16x8xf32>, vector<16x16xf32> -> vector<16x16xf32>
    %cst_299 = arith.constant 0.353553385 : f32
    %687 = vector.broadcast %cst_299 : f32 to vector<16x16xf32>
    %688 = arith.mulf %686, %687 : vector<16x16xf32>
    %689 = arith.addf %688, %6 : vector<16x16xf32>
    %cst_300 = arith.constant dense<0xFF800000> : vector<16xf32>
    %690 = vector.multi_reduction <maximumf>, %689, %cst_300 [1] : vector<16x16xf32> to vector<16xf32>
    %691 = vector.shape_cast %690 : vector<16xf32> to vector<16x1xf32>
    %692 = vector.broadcast %691 : vector<16x1xf32> to vector<16x16xf32>
    %693 = arith.subf %689, %692 : vector<16x16xf32>
    %694 = math.exp %693 : vector<16x16xf32>
    %cst_301 = arith.constant dense<0.000000e+00> : vector<16xf32>
    %695 = vector.multi_reduction <add>, %694, %cst_301 [1] : vector<16x16xf32> to vector<16xf32>
    %696 = vector.shape_cast %695 : vector<16xf32> to vector<16x1xf32>
    %697 = vector.broadcast %696 : vector<16x1xf32> to vector<16x16xf32>
    %698 = arith.divf %694, %697 : vector<16x16xf32>
    %cst_302 = arith.constant dense<0.000000e+00> : vector<16x8xf32>
    %699 = tpu.matmul %698, %685, %cst_302 {dimension_numbers = #tpu.dot_dimension_numbers<[1], [0], [0], [1], [0, 0, 1, 1], [], []>} : vector<16x16xf32>, vector<16x8xf32>, vector<16x8xf32> -> vector<16x8xf32>
    %700 = vector.extract_strided_slice %638 {offsets = [16, 0], sizes = [8, 128], strides = [1, 1]} : vector<32x128xf32> to vector<8x128xf32>
    %cst_303 = arith.constant dense<0.000000e+00> : vector<16x128xf32>
    %701 = tpu.matmul %699, %700, %cst_303 {dimension_numbers = #tpu.dot_dimension_numbers<[1], [0], [0], [1], [0, 0, 1, 1], [], []>} : vector<16x8xf32>, vector<8x128xf32>, vector<16x128xf32> -> vector<16x128xf32>
    %702 = arith.addf %682, %701 : vector<16x128xf32>
    %703 = vector.extract_strided_slice %635 {offsets = [0, 24], sizes = [16, 8], strides = [1, 1]} : vector<16x32xf32> to vector<16x8xf32>
    %704 = vector.extract_strided_slice %636 {offsets = [0, 24], sizes = [16, 8], strides = [1, 1]} : vector<16x64xf32> to vector<16x8xf32>
    %705 = vector.extract_strided_slice %636 {offsets = [0, 56], sizes = [16, 8], strides = [1, 1]} : vector<16x64xf32> to vector<16x8xf32>
    %cst_304 = arith.constant dense<0.000000e+00> : vector<16x16xf32>
    %706 = tpu.matmul %703, %704, %cst_304 {dimension_numbers = #tpu.dot_dimension_numbers<[1], [1], [0], [0], [0, 0, 1, 0], [], []>} : vector<16x8xf32>, vector<16x8xf32>, vector<16x16xf32> -> vector<16x16xf32>
    %cst_305 = arith.constant 0.353553385 : f32
    %707 = vector.broadcast %cst_305 : f32 to vector<16x16xf32>
    %708 = arith.mulf %706, %707 : vector<16x16xf32>
    %709 = arith.addf %708, %6 : vector<16x16xf32>
    %cst_306 = arith.constant dense<0xFF800000> : vector<16xf32>
    %710 = vector.multi_reduction <maximumf>, %709, %cst_306 [1] : vector<16x16xf32> to vector<16xf32>
    %711 = vector.shape_cast %710 : vector<16xf32> to vector<16x1xf32>
    %712 = vector.broadcast %711 : vector<16x1xf32> to vector<16x16xf32>
    %713 = arith.subf %709, %712 : vector<16x16xf32>
    %714 = math.exp %713 : vector<16x16xf32>
    %cst_307 = arith.constant dense<0.000000e+00> : vector<16xf32>
    %715 = vector.multi_reduction <add>, %714, %cst_307 [1] : vector<16x16xf32> to vector<16xf32>
    %716 = vector.shape_cast %715 : vector<16xf32> to vector<16x1xf32>
    %717 = vector.broadcast %716 : vector<16x1xf32> to vector<16x16xf32>
    %718 = arith.divf %714, %717 : vector<16x16xf32>
    %cst_308 = arith.constant dense<0.000000e+00> : vector<16x8xf32>
    %719 = tpu.matmul %718, %705, %cst_308 {dimension_numbers = #tpu.dot_dimension_numbers<[1], [0], [0], [1], [0, 0, 1, 1], [], []>} : vector<16x16xf32>, vector<16x8xf32>, vector<16x8xf32> -> vector<16x8xf32>
    %720 = vector.extract_strided_slice %638 {offsets = [24, 0], sizes = [8, 128], strides = [1, 1]} : vector<32x128xf32> to vector<8x128xf32>
    %cst_309 = arith.constant dense<0.000000e+00> : vector<16x128xf32>
    %721 = tpu.matmul %719, %720, %cst_309 {dimension_numbers = #tpu.dot_dimension_numbers<[1], [0], [0], [1], [0, 0, 1, 1], [], []>} : vector<16x8xf32>, vector<8x128xf32>, vector<16x128xf32> -> vector<16x128xf32>
    %722 = arith.addf %702, %721 : vector<16x128xf32>
    %cst_310 = arith.constant dense<0.000000e+00> : vector<16xf32>
    %723 = vector.multi_reduction <add>, %722, %cst_310 [1] : vector<16x128xf32> to vector<16xf32>
    %724 = vector.shape_cast %723 : vector<16xf32> to vector<16x1xf32>
    %cst_311 = arith.constant 3.125000e-02 : f32
    %725 = vector.broadcast %cst_311 : f32 to vector<16x1xf32>
    %726 = arith.mulf %724, %725 : vector<16x1xf32>
    %727 = vector.broadcast %726 : vector<16x1xf32> to vector<16x128xf32>
    %728 = arith.subf %722, %727 : vector<16x128xf32>
    %729 = vector.broadcast %4 : vector<1x128xf32> to vector<16x128xf32>
    %730 = arith.mulf %728, %729 : vector<16x128xf32>
    %731 = arith.mulf %730, %730 : vector<16x128xf32>
    %cst_312 = arith.constant dense<0.000000e+00> : vector<16xf32>
    %732 = vector.multi_reduction <add>, %731, %cst_312 [1] : vector<16x128xf32> to vector<16xf32>
    %733 = vector.shape_cast %732 : vector<16xf32> to vector<16x1xf32>
    %cst_313 = arith.constant 3.125000e-02 : f32
    %734 = vector.broadcast %cst_313 : f32 to vector<16x1xf32>
    %735 = arith.mulf %733, %734 : vector<16x1xf32>
    %cst_314 = arith.constant 9.99999974E-6 : f32
    %736 = vector.broadcast %cst_314 : f32 to vector<16x1xf32>
    %737 = arith.addf %735, %736 : vector<16x1xf32>
    %738 = math.rsqrt %737 : vector<16x1xf32>
    %739 = vector.broadcast %738 : vector<16x1xf32> to vector<16x128xf32>
    %740 = arith.mulf %730, %739 : vector<16x128xf32>
    %c7 = arith.constant 7 : index
    %c0_315 = arith.constant 0 : index
    %c0_316 = arith.constant 0 : index
    %741 = vector.load %arg13[%c7, %c0_315, %c0_316] : memref<10x1x128xf32, #tpu.memory_space<vmem>>, vector<1x1x128xf32>
    %742 = vector.shape_cast %741 : vector<1x1x128xf32> to vector<1x128xf32>
    %743 = vector.broadcast %742 : vector<1x128xf32> to vector<16x128xf32>
    %744 = arith.mulf %740, %743 : vector<16x128xf32>
    %c7_317 = arith.constant 7 : index
    %c0_318 = arith.constant 0 : index
    %c0_319 = arith.constant 0 : index
    %745 = vector.load %arg14[%c7_317, %c0_318, %c0_319] : memref<10x1x128xf32, #tpu.memory_space<vmem>>, vector<1x1x128xf32>
    %746 = vector.shape_cast %745 : vector<1x1x128xf32> to vector<1x128xf32>
    %747 = vector.broadcast %746 : vector<1x128xf32> to vector<16x128xf32>
    %748 = arith.addf %744, %747 : vector<16x128xf32>
    %c5_320 = arith.constant 5 : index
    %c0_321 = arith.constant 0 : index
    %c0_322 = arith.constant 0 : index
    %749 = vector.load %arg5[%c5_320, %c0_321, %c0_322] : memref<6x128x96xf32, #tpu.memory_space<vmem>>, vector<1x128x96xf32>
    %750 = vector.shape_cast %749 : vector<1x128x96xf32> to vector<128x96xf32>
    %c5_323 = arith.constant 5 : index
    %c0_324 = arith.constant 0 : index
    %c0_325 = arith.constant 0 : index
    %751 = vector.load %arg6[%c5_323, %c0_324, %c0_325] : memref<6x1x96xf32, #tpu.memory_space<vmem>>, vector<1x1x96xf32>
    %752 = vector.shape_cast %751 : vector<1x1x96xf32> to vector<1x96xf32>
    %753 = vector.extract_strided_slice %750 {offsets = [0, 0], sizes = [128, 32], strides = [1, 1]} : vector<128x96xf32> to vector<128x32xf32>
    %cst_326 = arith.constant dense<0.000000e+00> : vector<16x32xf32>
    %754 = tpu.matmul %748, %753, %cst_326 {dimension_numbers = #tpu.dot_dimension_numbers<[1], [0], [0], [1], [0, 0, 1, 1], [], []>} : vector<16x128xf32>, vector<128x32xf32>, vector<16x32xf32> -> vector<16x32xf32>
    %755 = vector.extract_strided_slice %752 {offsets = [0, 0], sizes = [1, 32], strides = [1, 1]} : vector<1x96xf32> to vector<1x32xf32>
    %756 = vector.broadcast %755 : vector<1x32xf32> to vector<16x32xf32>
    %757 = arith.addf %754, %756 : vector<16x32xf32>
    %758 = vector.extract_strided_slice %750 {offsets = [0, 32], sizes = [128, 64], strides = [1, 1]} : vector<128x96xf32> to vector<128x64xf32>
    %cst_327 = arith.constant dense<0.000000e+00> : vector<20x64xf32>
    %759 = tpu.matmul %336, %758, %cst_327 {dimension_numbers = #tpu.dot_dimension_numbers<[1], [0], [0], [1], [0, 0, 1, 1], [], []>} : vector<20x128xf32>, vector<128x64xf32>, vector<20x64xf32> -> vector<20x64xf32>
    %760 = vector.extract_strided_slice %752 {offsets = [0, 32], sizes = [1, 64], strides = [1, 1]} : vector<1x96xf32> to vector<1x64xf32>
    %761 = vector.broadcast %760 : vector<1x64xf32> to vector<20x64xf32>
    %762 = arith.addf %759, %761 : vector<20x64xf32>
    %c5_328 = arith.constant 5 : index
    %c0_329 = arith.constant 0 : index
    %c0_330 = arith.constant 0 : index
    %763 = vector.load %arg7[%c5_328, %c0_329, %c0_330] : memref<6x32x128xf32, #tpu.memory_space<vmem>>, vector<1x32x128xf32>
    %764 = vector.shape_cast %763 : vector<1x32x128xf32> to vector<32x128xf32>
    %c5_331 = arith.constant 5 : index
    %c0_332 = arith.constant 0 : index
    %c0_333 = arith.constant 0 : index
    %765 = vector.load %arg8[%c5_331, %c0_332, %c0_333] : memref<6x1x128xf32, #tpu.memory_space<vmem>>, vector<1x1x128xf32>
    %766 = vector.shape_cast %765 : vector<1x1x128xf32> to vector<1x128xf32>
    %767 = vector.broadcast %766 : vector<1x128xf32> to vector<16x128xf32>
    %768 = arith.addf %748, %767 : vector<16x128xf32>
    %769 = vector.extract_strided_slice %757 {offsets = [0, 0], sizes = [16, 8], strides = [1, 1]} : vector<16x32xf32> to vector<16x8xf32>
    %770 = vector.extract_strided_slice %762 {offsets = [0, 0], sizes = [20, 8], strides = [1, 1]} : vector<20x64xf32> to vector<20x8xf32>
    %771 = vector.extract_strided_slice %762 {offsets = [0, 32], sizes = [20, 8], strides = [1, 1]} : vector<20x64xf32> to vector<20x8xf32>
    %cst_334 = arith.constant dense<0.000000e+00> : vector<16x20xf32>
    %772 = tpu.matmul %769, %770, %cst_334 {dimension_numbers = #tpu.dot_dimension_numbers<[1], [1], [0], [0], [0, 0, 1, 0], [], []>} : vector<16x8xf32>, vector<20x8xf32>, vector<16x20xf32> -> vector<16x20xf32>
    %cst_335 = arith.constant 0.353553385 : f32
    %773 = vector.broadcast %cst_335 : f32 to vector<16x20xf32>
    %774 = arith.mulf %772, %773 : vector<16x20xf32>
    %775 = arith.addf %774, %7 : vector<16x20xf32>
    %cst_336 = arith.constant dense<0xFF800000> : vector<16xf32>
    %776 = vector.multi_reduction <maximumf>, %775, %cst_336 [1] : vector<16x20xf32> to vector<16xf32>
    %777 = vector.shape_cast %776 : vector<16xf32> to vector<16x1xf32>
    %778 = vector.broadcast %777 : vector<16x1xf32> to vector<16x20xf32>
    %779 = arith.subf %775, %778 : vector<16x20xf32>
    %780 = math.exp %779 : vector<16x20xf32>
    %cst_337 = arith.constant dense<0.000000e+00> : vector<16xf32>
    %781 = vector.multi_reduction <add>, %780, %cst_337 [1] : vector<16x20xf32> to vector<16xf32>
    %782 = vector.shape_cast %781 : vector<16xf32> to vector<16x1xf32>
    %783 = vector.broadcast %782 : vector<16x1xf32> to vector<16x20xf32>
    %784 = arith.divf %780, %783 : vector<16x20xf32>
    %cst_338 = arith.constant dense<0.000000e+00> : vector<16x8xf32>
    %785 = tpu.matmul %784, %771, %cst_338 {dimension_numbers = #tpu.dot_dimension_numbers<[1], [0], [0], [1], [0, 0, 1, 1], [], []>} : vector<16x20xf32>, vector<20x8xf32>, vector<16x8xf32> -> vector<16x8xf32>
    %786 = vector.extract_strided_slice %764 {offsets = [0, 0], sizes = [8, 128], strides = [1, 1]} : vector<32x128xf32> to vector<8x128xf32>
    %cst_339 = arith.constant dense<0.000000e+00> : vector<16x128xf32>
    %787 = tpu.matmul %785, %786, %cst_339 {dimension_numbers = #tpu.dot_dimension_numbers<[1], [0], [0], [1], [0, 0, 1, 1], [], []>} : vector<16x8xf32>, vector<8x128xf32>, vector<16x128xf32> -> vector<16x128xf32>
    %788 = arith.addf %768, %787 : vector<16x128xf32>
    %789 = vector.extract_strided_slice %757 {offsets = [0, 8], sizes = [16, 8], strides = [1, 1]} : vector<16x32xf32> to vector<16x8xf32>
    %790 = vector.extract_strided_slice %762 {offsets = [0, 8], sizes = [20, 8], strides = [1, 1]} : vector<20x64xf32> to vector<20x8xf32>
    %791 = vector.extract_strided_slice %762 {offsets = [0, 40], sizes = [20, 8], strides = [1, 1]} : vector<20x64xf32> to vector<20x8xf32>
    %cst_340 = arith.constant dense<0.000000e+00> : vector<16x20xf32>
    %792 = tpu.matmul %789, %790, %cst_340 {dimension_numbers = #tpu.dot_dimension_numbers<[1], [1], [0], [0], [0, 0, 1, 0], [], []>} : vector<16x8xf32>, vector<20x8xf32>, vector<16x20xf32> -> vector<16x20xf32>
    %cst_341 = arith.constant 0.353553385 : f32
    %793 = vector.broadcast %cst_341 : f32 to vector<16x20xf32>
    %794 = arith.mulf %792, %793 : vector<16x20xf32>
    %795 = arith.addf %794, %7 : vector<16x20xf32>
    %cst_342 = arith.constant dense<0xFF800000> : vector<16xf32>
    %796 = vector.multi_reduction <maximumf>, %795, %cst_342 [1] : vector<16x20xf32> to vector<16xf32>
    %797 = vector.shape_cast %796 : vector<16xf32> to vector<16x1xf32>
    %798 = vector.broadcast %797 : vector<16x1xf32> to vector<16x20xf32>
    %799 = arith.subf %795, %798 : vector<16x20xf32>
    %800 = math.exp %799 : vector<16x20xf32>
    %cst_343 = arith.constant dense<0.000000e+00> : vector<16xf32>
    %801 = vector.multi_reduction <add>, %800, %cst_343 [1] : vector<16x20xf32> to vector<16xf32>
    %802 = vector.shape_cast %801 : vector<16xf32> to vector<16x1xf32>
    %803 = vector.broadcast %802 : vector<16x1xf32> to vector<16x20xf32>
    %804 = arith.divf %800, %803 : vector<16x20xf32>
    %cst_344 = arith.constant dense<0.000000e+00> : vector<16x8xf32>
    %805 = tpu.matmul %804, %791, %cst_344 {dimension_numbers = #tpu.dot_dimension_numbers<[1], [0], [0], [1], [0, 0, 1, 1], [], []>} : vector<16x20xf32>, vector<20x8xf32>, vector<16x8xf32> -> vector<16x8xf32>
    %806 = vector.extract_strided_slice %764 {offsets = [8, 0], sizes = [8, 128], strides = [1, 1]} : vector<32x128xf32> to vector<8x128xf32>
    %cst_345 = arith.constant dense<0.000000e+00> : vector<16x128xf32>
    %807 = tpu.matmul %805, %806, %cst_345 {dimension_numbers = #tpu.dot_dimension_numbers<[1], [0], [0], [1], [0, 0, 1, 1], [], []>} : vector<16x8xf32>, vector<8x128xf32>, vector<16x128xf32> -> vector<16x128xf32>
    %808 = arith.addf %788, %807 : vector<16x128xf32>
    %809 = vector.extract_strided_slice %757 {offsets = [0, 16], sizes = [16, 8], strides = [1, 1]} : vector<16x32xf32> to vector<16x8xf32>
    %810 = vector.extract_strided_slice %762 {offsets = [0, 16], sizes = [20, 8], strides = [1, 1]} : vector<20x64xf32> to vector<20x8xf32>
    %811 = vector.extract_strided_slice %762 {offsets = [0, 48], sizes = [20, 8], strides = [1, 1]} : vector<20x64xf32> to vector<20x8xf32>
    %cst_346 = arith.constant dense<0.000000e+00> : vector<16x20xf32>
    %812 = tpu.matmul %809, %810, %cst_346 {dimension_numbers = #tpu.dot_dimension_numbers<[1], [1], [0], [0], [0, 0, 1, 0], [], []>} : vector<16x8xf32>, vector<20x8xf32>, vector<16x20xf32> -> vector<16x20xf32>
    %cst_347 = arith.constant 0.353553385 : f32
    %813 = vector.broadcast %cst_347 : f32 to vector<16x20xf32>
    %814 = arith.mulf %812, %813 : vector<16x20xf32>
    %815 = arith.addf %814, %7 : vector<16x20xf32>
    %cst_348 = arith.constant dense<0xFF800000> : vector<16xf32>
    %816 = vector.multi_reduction <maximumf>, %815, %cst_348 [1] : vector<16x20xf32> to vector<16xf32>
    %817 = vector.shape_cast %816 : vector<16xf32> to vector<16x1xf32>
    %818 = vector.broadcast %817 : vector<16x1xf32> to vector<16x20xf32>
    %819 = arith.subf %815, %818 : vector<16x20xf32>
    %820 = math.exp %819 : vector<16x20xf32>
    %cst_349 = arith.constant dense<0.000000e+00> : vector<16xf32>
    %821 = vector.multi_reduction <add>, %820, %cst_349 [1] : vector<16x20xf32> to vector<16xf32>
    %822 = vector.shape_cast %821 : vector<16xf32> to vector<16x1xf32>
    %823 = vector.broadcast %822 : vector<16x1xf32> to vector<16x20xf32>
    %824 = arith.divf %820, %823 : vector<16x20xf32>
    %cst_350 = arith.constant dense<0.000000e+00> : vector<16x8xf32>
    %825 = tpu.matmul %824, %811, %cst_350 {dimension_numbers = #tpu.dot_dimension_numbers<[1], [0], [0], [1], [0, 0, 1, 1], [], []>} : vector<16x20xf32>, vector<20x8xf32>, vector<16x8xf32> -> vector<16x8xf32>
    %826 = vector.extract_strided_slice %764 {offsets = [16, 0], sizes = [8, 128], strides = [1, 1]} : vector<32x128xf32> to vector<8x128xf32>
    %cst_351 = arith.constant dense<0.000000e+00> : vector<16x128xf32>
    %827 = tpu.matmul %825, %826, %cst_351 {dimension_numbers = #tpu.dot_dimension_numbers<[1], [0], [0], [1], [0, 0, 1, 1], [], []>} : vector<16x8xf32>, vector<8x128xf32>, vector<16x128xf32> -> vector<16x128xf32>
    %828 = arith.addf %808, %827 : vector<16x128xf32>
    %829 = vector.extract_strided_slice %757 {offsets = [0, 24], sizes = [16, 8], strides = [1, 1]} : vector<16x32xf32> to vector<16x8xf32>
    %830 = vector.extract_strided_slice %762 {offsets = [0, 24], sizes = [20, 8], strides = [1, 1]} : vector<20x64xf32> to vector<20x8xf32>
    %831 = vector.extract_strided_slice %762 {offsets = [0, 56], sizes = [20, 8], strides = [1, 1]} : vector<20x64xf32> to vector<20x8xf32>
    %cst_352 = arith.constant dense<0.000000e+00> : vector<16x20xf32>
    %832 = tpu.matmul %829, %830, %cst_352 {dimension_numbers = #tpu.dot_dimension_numbers<[1], [1], [0], [0], [0, 0, 1, 0], [], []>} : vector<16x8xf32>, vector<20x8xf32>, vector<16x20xf32> -> vector<16x20xf32>
    %cst_353 = arith.constant 0.353553385 : f32
    %833 = vector.broadcast %cst_353 : f32 to vector<16x20xf32>
    %834 = arith.mulf %832, %833 : vector<16x20xf32>
    %835 = arith.addf %834, %7 : vector<16x20xf32>
    %cst_354 = arith.constant dense<0xFF800000> : vector<16xf32>
    %836 = vector.multi_reduction <maximumf>, %835, %cst_354 [1] : vector<16x20xf32> to vector<16xf32>
    %837 = vector.shape_cast %836 : vector<16xf32> to vector<16x1xf32>
    %838 = vector.broadcast %837 : vector<16x1xf32> to vector<16x20xf32>
    %839 = arith.subf %835, %838 : vector<16x20xf32>
    %840 = math.exp %839 : vector<16x20xf32>
    %cst_355 = arith.constant dense<0.000000e+00> : vector<16xf32>
    %841 = vector.multi_reduction <add>, %840, %cst_355 [1] : vector<16x20xf32> to vector<16xf32>
    %842 = vector.shape_cast %841 : vector<16xf32> to vector<16x1xf32>
    %843 = vector.broadcast %842 : vector<16x1xf32> to vector<16x20xf32>
    %844 = arith.divf %840, %843 : vector<16x20xf32>
    %cst_356 = arith.constant dense<0.000000e+00> : vector<16x8xf32>
    %845 = tpu.matmul %844, %831, %cst_356 {dimension_numbers = #tpu.dot_dimension_numbers<[1], [0], [0], [1], [0, 0, 1, 1], [], []>} : vector<16x20xf32>, vector<20x8xf32>, vector<16x8xf32> -> vector<16x8xf32>
    %846 = vector.extract_strided_slice %764 {offsets = [24, 0], sizes = [8, 128], strides = [1, 1]} : vector<32x128xf32> to vector<8x128xf32>
    %cst_357 = arith.constant dense<0.000000e+00> : vector<16x128xf32>
    %847 = tpu.matmul %845, %846, %cst_357 {dimension_numbers = #tpu.dot_dimension_numbers<[1], [0], [0], [1], [0, 0, 1, 1], [], []>} : vector<16x8xf32>, vector<8x128xf32>, vector<16x128xf32> -> vector<16x128xf32>
    %848 = arith.addf %828, %847 : vector<16x128xf32>
    %cst_358 = arith.constant dense<0.000000e+00> : vector<16xf32>
    %849 = vector.multi_reduction <add>, %848, %cst_358 [1] : vector<16x128xf32> to vector<16xf32>
    %850 = vector.shape_cast %849 : vector<16xf32> to vector<16x1xf32>
    %cst_359 = arith.constant 3.125000e-02 : f32
    %851 = vector.broadcast %cst_359 : f32 to vector<16x1xf32>
    %852 = arith.mulf %850, %851 : vector<16x1xf32>
    %853 = vector.broadcast %852 : vector<16x1xf32> to vector<16x128xf32>
    %854 = arith.subf %848, %853 : vector<16x128xf32>
    %855 = vector.broadcast %4 : vector<1x128xf32> to vector<16x128xf32>
    %856 = arith.mulf %854, %855 : vector<16x128xf32>
    %857 = arith.mulf %856, %856 : vector<16x128xf32>
    %cst_360 = arith.constant dense<0.000000e+00> : vector<16xf32>
    %858 = vector.multi_reduction <add>, %857, %cst_360 [1] : vector<16x128xf32> to vector<16xf32>
    %859 = vector.shape_cast %858 : vector<16xf32> to vector<16x1xf32>
    %cst_361 = arith.constant 3.125000e-02 : f32
    %860 = vector.broadcast %cst_361 : f32 to vector<16x1xf32>
    %861 = arith.mulf %859, %860 : vector<16x1xf32>
    %cst_362 = arith.constant 9.99999974E-6 : f32
    %862 = vector.broadcast %cst_362 : f32 to vector<16x1xf32>
    %863 = arith.addf %861, %862 : vector<16x1xf32>
    %864 = math.rsqrt %863 : vector<16x1xf32>
    %865 = vector.broadcast %864 : vector<16x1xf32> to vector<16x128xf32>
    %866 = arith.mulf %856, %865 : vector<16x128xf32>
    %c8 = arith.constant 8 : index
    %c0_363 = arith.constant 0 : index
    %c0_364 = arith.constant 0 : index
    %867 = vector.load %arg13[%c8, %c0_363, %c0_364] : memref<10x1x128xf32, #tpu.memory_space<vmem>>, vector<1x1x128xf32>
    %868 = vector.shape_cast %867 : vector<1x1x128xf32> to vector<1x128xf32>
    %869 = vector.broadcast %868 : vector<1x128xf32> to vector<16x128xf32>
    %870 = arith.mulf %866, %869 : vector<16x128xf32>
    %c8_365 = arith.constant 8 : index
    %c0_366 = arith.constant 0 : index
    %c0_367 = arith.constant 0 : index
    %871 = vector.load %arg14[%c8_365, %c0_366, %c0_367] : memref<10x1x128xf32, #tpu.memory_space<vmem>>, vector<1x1x128xf32>
    %872 = vector.shape_cast %871 : vector<1x1x128xf32> to vector<1x128xf32>
    %873 = vector.broadcast %872 : vector<1x128xf32> to vector<16x128xf32>
    %874 = arith.addf %870, %873 : vector<16x128xf32>
    %c3_368 = arith.constant 3 : index
    %c0_369 = arith.constant 0 : index
    %c0_370 = arith.constant 0 : index
    %875 = vector.load %arg9[%c3_368, %c0_369, %c0_370] : memref<4x128x128xf32, #tpu.memory_space<vmem>>, vector<1x128x128xf32>
    %876 = vector.shape_cast %875 : vector<1x128x128xf32> to vector<128x128xf32>
    %cst_371 = arith.constant dense<0.000000e+00> : vector<16x128xf32>
    %877 = tpu.matmul %874, %876, %cst_371 {dimension_numbers = #tpu.dot_dimension_numbers<[1], [0], [0], [1], [0, 0, 1, 1], [], []>} : vector<16x128xf32>, vector<128x128xf32>, vector<16x128xf32> -> vector<16x128xf32>
    %c3_372 = arith.constant 3 : index
    %c0_373 = arith.constant 0 : index
    %c0_374 = arith.constant 0 : index
    %878 = vector.load %arg10[%c3_372, %c0_373, %c0_374] : memref<4x1x128xf32, #tpu.memory_space<vmem>>, vector<1x1x128xf32>
    %879 = vector.shape_cast %878 : vector<1x1x128xf32> to vector<1x128xf32>
    %880 = vector.broadcast %879 : vector<1x128xf32> to vector<16x128xf32>
    %881 = arith.addf %877, %880 : vector<16x128xf32>
    %cst_375 = arith.constant 0.000000e+00 : f32
    %882 = vector.broadcast %cst_375 : f32 to vector<16x128xf32>
    %883 = arith.maximumf %881, %882 : vector<16x128xf32>
    %c3_376 = arith.constant 3 : index
    %c0_377 = arith.constant 0 : index
    %c0_378 = arith.constant 0 : index
    %884 = vector.load %arg11[%c3_376, %c0_377, %c0_378] : memref<4x128x128xf32, #tpu.memory_space<vmem>>, vector<1x128x128xf32>
    %885 = vector.shape_cast %884 : vector<1x128x128xf32> to vector<128x128xf32>
    %cst_379 = arith.constant dense<0.000000e+00> : vector<16x128xf32>
    %886 = tpu.matmul %883, %885, %cst_379 {dimension_numbers = #tpu.dot_dimension_numbers<[1], [0], [0], [1], [0, 0, 1, 1], [], []>} : vector<16x128xf32>, vector<128x128xf32>, vector<16x128xf32> -> vector<16x128xf32>
    %887 = arith.addf %874, %886 : vector<16x128xf32>
    %c3_380 = arith.constant 3 : index
    %c0_381 = arith.constant 0 : index
    %c0_382 = arith.constant 0 : index
    %888 = vector.load %arg12[%c3_380, %c0_381, %c0_382] : memref<4x1x128xf32, #tpu.memory_space<vmem>>, vector<1x1x128xf32>
    %889 = vector.shape_cast %888 : vector<1x1x128xf32> to vector<1x128xf32>
    %890 = vector.broadcast %889 : vector<1x128xf32> to vector<16x128xf32>
    %891 = arith.addf %887, %890 : vector<16x128xf32>
    %cst_383 = arith.constant dense<0.000000e+00> : vector<16xf32>
    %892 = vector.multi_reduction <add>, %891, %cst_383 [1] : vector<16x128xf32> to vector<16xf32>
    %893 = vector.shape_cast %892 : vector<16xf32> to vector<16x1xf32>
    %cst_384 = arith.constant 3.125000e-02 : f32
    %894 = vector.broadcast %cst_384 : f32 to vector<16x1xf32>
    %895 = arith.mulf %893, %894 : vector<16x1xf32>
    %896 = vector.broadcast %895 : vector<16x1xf32> to vector<16x128xf32>
    %897 = arith.subf %891, %896 : vector<16x128xf32>
    %898 = vector.broadcast %4 : vector<1x128xf32> to vector<16x128xf32>
    %899 = arith.mulf %897, %898 : vector<16x128xf32>
    %900 = arith.mulf %899, %899 : vector<16x128xf32>
    %cst_385 = arith.constant dense<0.000000e+00> : vector<16xf32>
    %901 = vector.multi_reduction <add>, %900, %cst_385 [1] : vector<16x128xf32> to vector<16xf32>
    %902 = vector.shape_cast %901 : vector<16xf32> to vector<16x1xf32>
    %cst_386 = arith.constant 3.125000e-02 : f32
    %903 = vector.broadcast %cst_386 : f32 to vector<16x1xf32>
    %904 = arith.mulf %902, %903 : vector<16x1xf32>
    %cst_387 = arith.constant 9.99999974E-6 : f32
    %905 = vector.broadcast %cst_387 : f32 to vector<16x1xf32>
    %906 = arith.addf %904, %905 : vector<16x1xf32>
    %907 = math.rsqrt %906 : vector<16x1xf32>
    %908 = vector.broadcast %907 : vector<16x1xf32> to vector<16x128xf32>
    %909 = arith.mulf %899, %908 : vector<16x128xf32>
    %c9 = arith.constant 9 : index
    %c0_388 = arith.constant 0 : index
    %c0_389 = arith.constant 0 : index
    %910 = vector.load %arg13[%c9, %c0_388, %c0_389] : memref<10x1x128xf32, #tpu.memory_space<vmem>>, vector<1x1x128xf32>
    %911 = vector.shape_cast %910 : vector<1x1x128xf32> to vector<1x128xf32>
    %912 = vector.broadcast %911 : vector<1x128xf32> to vector<16x128xf32>
    %913 = arith.mulf %909, %912 : vector<16x128xf32>
    %c9_390 = arith.constant 9 : index
    %c0_391 = arith.constant 0 : index
    %c0_392 = arith.constant 0 : index
    %914 = vector.load %arg14[%c9_390, %c0_391, %c0_392] : memref<10x1x128xf32, #tpu.memory_space<vmem>>, vector<1x1x128xf32>
    %915 = vector.shape_cast %914 : vector<1x1x128xf32> to vector<1x128xf32>
    %916 = vector.broadcast %915 : vector<1x128xf32> to vector<16x128xf32>
    %917 = arith.addf %913, %916 : vector<16x128xf32>
    %c0_393 = arith.constant 0 : index
    %c0_394 = arith.constant 0 : index
    %918 = vector.load %arg15[%c0_393, %c0_394] : memref<16x128xf32, #tpu.memory_space<vmem>>, vector<16x128xf32>
    tpu.vector_store %arg15[%c0_393, %c0_394], %917 {strides = array<i32>} : memref<16x128xf32, #tpu.memory_space<vmem>>, vector<16x128xf32>,
    return
  }
}

</mosaic_0001>

<bundles_post_ra>
// kernel: transformer_forward.1
= control target key start
LH: loop header
LB: loop body
LE: loop exit
PB: predicated region body
PF: predicated region fallthrough
CT: control target
= control target key end

     0   :  { %v12463_v1 = vmov 0.0   ;;  %vm12464_vm0 = vmmov 0   ;;  %s15089_s0 = inlined_call_operand.vmem [shape: f32[20,128], index: 0, kind: input, shape index: {}]   ;;  %s15090_s1 = inlined_call_operand.vmem [shape: f32[16,128], index: 1, kind: input, shape index: {}]   ;;  %s15091_s2 = inlined_call_operand.vmem [shape: f32[20,20], index: 2, kind: input, shape index: {}]   ;;  %s15092_s3 = inlined_call_operand.vmem [shape: f32[16,16], index: 3, kind: input, shape index: {}]   ;;  %s15093_s4 = inlined_call_operand.vmem [shape: f32[16,20], index: 4, kind: input, shape index: {}]   ;;  %s15094_s5 = inlined_call_operand.vmem [shape: f32[6,128,96], index: 5, kind: input, shape index: {}]   ;;  %s15095_s6 = inlined_call_operand.vmem [shape: f32[6,1,96], index: 6, kind: input, shape index: {}]   ;;  %s15096_s7 = inlined_call_operand.vmem [shape: f32[6,32,128], index: 7, kind: input, shape index: {}]   ;;  %s15097_s8 = inlined_call_operand.vmem [shape: f32[6,1,128], index: 8, kind: input, shape index: {}]   ;;  %s15098_s9 = inlined_call_operand.vmem [shape: f32[4,128,128], index: 9, kind: input, shape index: {}]   ;;  %s15099_s10 = inlined_call_operand.vmem [shape: f32[4,1,128], index: 10, kind: input, shape index: {}]   ;;  %s15100_s11 = inlined_call_operand.vmem [shape: f32[4,128,128], index: 11, kind: input, shape index: {}]   ;;  %s15101_s12 = inlined_call_operand.vmem [shape: f32[4,1,128], index: 12, kind: input, shape index: {}]   ;;  %s15102_s13 = inlined_call_operand.vmem [shape: f32[10,1,128], index: 13, kind: input, shape index: {}]   ;;  %s15103_s14 = inlined_call_operand.vmem [shape: f32[10,1,128], index: 14, kind: input, shape index: {}]   ;;  %s15104_s15 = inlined_call_operand.hbm [shape: f32[16,128], index: 15, kind: output, shape index: {}]  }
   0x1   :  { %v81_v0 = vld [vmem:[%s15094_s5 + $0x78] sm:$0xff]  ;;  %10874 = vmatprep.subr.mxu0 %v12463_v1  ;;  %v80_v2 = vld [vmem:[%s15094_s5 + $0x70] sm:$0xff]  ;;  %10906 = vmatprep.mubr.msk.f32.mxu0 %vm12464_vm0, %v12463_v1  ;;  %v79_v3 = vld [vmem:[%s15094_s5 + $0x68] sm:$0xff] }
   0x2   :  { %10875 = vmatpush3.msra.mxu0 %v81_v0  ;;  %10915 = vmatprep.subr.mxu1 %v12463_v1  ;;  %v78_v4 = vld [vmem:[%s15094_s5 + $0x60] sm:$0xff] }
   0x3   :  { %10876 = vmatprep.subr.mxu0 %v12463_v1  ;;  %10921 = vmatprep.mubr.msk.f32.mxu1 %vm12464_vm0, %v12463_v1 }
   0x4   :  { %10877 = vmatpush3.msra.mxu0 %v80_v2 }
   0x5   :  { %10878 = vmatprep.subr.mxu0 %v12463_v1 }
   0x6   :  { %10879 = vmatpush3.msra.mxu0 %v79_v3 }
   0x7   :  { %20 = vsyncpa [#allocation3], 0  ;;  %10880 = vmatprep.subr.mxu0 %v12463_v1  ;;  %v77_v5 = vld [vmem:[%s15094_s5 + $0x58] sm:$0xff]  ;;  %v76_v6 = vld [vmem:[%s15094_s5 + $0x50] sm:$0xff]  ;;  %s12465_s28 = smov 96   ;;  %s12467_s29 = smov 120  }
   0x8   :  { %10881 = vmatpush3.msra.mxu0 %v78_v4  ;;  %v75_v7 = vld [vmem:[%s15094_s5 + $0x48] sm:$0xff]  ;;  %v74_v8 = vld [vmem:[%s15094_s5 + $0x40] sm:$0xff]  ;;  %v73_v9 = vld [vmem:[%s15094_s5 + $0x38] sm:$0xff]  ;;  %vm192_vm1 = vcmask 64512   ;;  %vm291_vm2 = vcmask 162816   ;;  %vm298_vm3 = vcmask 158720  }
   0x9   :  { %10882 = vmatprep.subr.mxu0 %v12463_v1  ;;  %v72_v10 = vld [vmem:[%s15094_s5 + $0x30] sm:$0xff]  ;;  %v71_v11 = vld [vmem:[%s15094_s5 + $0x28] sm:$0xff]  ;;  %v70_v12 = vld [vmem:[%s15094_s5 + $0x20] sm:$0xff]  ;;  %s12468_s21 = smov 64   ;;  %vm343_vm4 = vcmask 1043456   ;;  %s15115_s22 = smov 56  }
   0xa   :  { %10883 = vmatpush3.msra.mxu0 %v77_v5  ;;  %v69_v13 = vld [vmem:[%s15094_s5 + $0x18] sm:$0xff]  ;;  %v68_v14 = vld [vmem:[%s15094_s5 + $0x10] sm:$0xff]  ;;  %v67_v15 = vld [vmem:[%s15094_s5 + $0x8] sm:$0xff]  ;;  %s12470_s25 = smov 80   ;;  %s15113_s26 = smov 112   ;;  %vm3856_vm6 = vcmask 130048  }
   0xb   :  { %10884 = vmatprep.subr.mxu0 %v12463_v1  ;;  %v66_v16 = vld [vmem:[%s15094_s5] sm:$0xff]  ;;  %v12640_v18 = vld [vmem:[%s15089_s0 + $0x8] sm:$0xff]  ;;  %v12648_v19 = vld [vmem:[%s15089_s0 + $0x10] sm:$0xf]  ;;  %s15111_s16 = smov 48   ;;  %s15109_s19 = smov 72  }
   0xc   :  { %10885 = vmatpush3.msra.mxu0 %v76_v6  ;;  %v12630_v17 = vld [vmem:[%s15089_s0] sm:$0xff]  ;;  %s12466_s0 = smov 88   ;;  %v12722_v46 = vld [vmem:[%s15091_s2 + $0x8] sm:$0xff]  ;;  %v12729_v54 = vld [vmem:[%s15091_s2 + $0x10] sm:$0xf]  ;;  %s15107_s20 = smov 104  }
   0xd   :  { %10886 = vmatprep.subr.mxu0 %v12463_v1  ;;  %v9740_v20 = vld [vmem:[%s15095_s6] ss:$0 sm:$0xff]  ;;  %s15105_s27 = smov 40   ;;  %s15119_s23 = smov 40  }
   0xe   :  { %10887 = vmatpush3.msra.mxu0 %v75_v7  ;;  %v12716_v40 = vld [vmem:[%s15091_s2] sm:$0xff]  ;;  %s15120_s17 = smov 112  }
   0xf   :  { %10888 = vmatprep.subr.mxu0 %v12463_v1 }
  0x10   :  { %10889 = vmatpush3.msra.mxu0 %v74_v8 }
  0x11   :  { %10890 = vmatprep.subr.mxu0 %v12463_v1 }
  0x12   :  { %10891 = vmatpush3.msra.mxu0 %v73_v9 }
  0x13   :  { %10892 = vmatprep.subr.mxu0 %v12463_v1 }
  0x14   :  { %10893 = vmatpush3.msra.mxu0 %v72_v10 }
  0x15   :  { %10894 = vmatprep.subr.mxu0 %v12463_v1 }
  0x16   :  { %10895 = vmatpush3.msra.mxu0 %v71_v11 }
  0x17   :  { %10896 = vmatprep.subr.mxu0 %v12463_v1 }
  0x18   :  { %10897 = vmatpush3.msra.mxu0 %v70_v12 }
  0x19   :  { %10898 = vmatprep.subr.mxu0 %v12463_v1 }
  0x1a   :  { %10899 = vmatpush3.msra.mxu0 %v69_v13 }
  0x1b   :  { %10900 = vmatprep.subr.mxu0 %v12463_v1 }
  0x1c   :  { %10901 = vmatpush3.msra.mxu0 %v68_v14 }
  0x1d   :  { %10902 = vmatprep.subr.mxu0 %v12463_v1 }
  0x1e   :  { %10903 = vmatpush3.msra.mxu0 %v67_v15 }
  0x1f   :  { %10904 = vmatprep.subr.mxu0 %v12463_v1 }
  0x20   :  { %10905 = vmatpush3.msra.mxu0 %v66_v16 }
  0x21   :  { %10907 = vmatmul.mubr.f32.vlgmr.msra.gmra.mxu0 %v12630_v17  ;;  %10956 = vmatprep.subr.mxu0 %v12463_v1 }
  0x22   :  { %10909 = vmatprep.mubr.msk.f32.mxu0 %vm12464_vm0, %v12463_v1 }
  0x25   :  { %10910 = vmatmul.mubr.f32.gmra.mxu0 %v12640_v18 }
  0x26   :  { %10912 = vmatprep.mubr.msk.f32.mxu0 %vm12464_vm0, %v12463_v1 }
  0x29   :  { %10913 = vmatmul.mubr.f32.gmra.mxu0 %v12648_v19 }
  0x2a   :  { %10962 = vmatprep.mubr.msk.f32.mxu0 %vm12464_vm0, %v12463_v1 }
  0xe1   :  { %v155_v21 = vpop.f32.mrf.mxu0 }
  0xe2   :  { %v12656_v22 = vadd.f32 %v9740_v20, %v155_v21 }
  0xe3   :  { %v10908_v23 = vpop.f32.mrf.mxu0 }
  0xe4   :  { %186 = vrot.lane.b32.xlu1 %v12656_v22, %s12465_s28 }
  0xe5   :  { %v160_v24 = vpop.f32.mrf.mxu0 }
  0xe6   :  { %v12666_v29 = vadd.f32 %v9740_v20, %v160_v24 }
  0xe7   :  { %v10911_v25 = vpop.f32.mrf.mxu0 }
  0xe9   :  { %v165_v26 = vpop.f32.mrf.mxu0 }
  0xea   :  { %v12660_v27 = vadd.f32 %v9740_v20, %v165_v26 }
  0xeb   :  { %v10914_v28 = vpop.f32.mrf.mxu0 }
  0xec   :  { %528 = vrot.lane.b32.xlu1 %v12660_v27, %s12466_s0  ;;  %190 = vrot.lane.b32.xlu0 %v12660_v27, %s12465_s28 }
  0xf0   :  { %524 = vrot.lane.b32.xlu1 %v12656_v22, %s12466_s0  ;;  %188 = vrot.lane.b32.xlu0 %v12666_v29, %s12465_s28 }
  0xf4   :  { %520 = vrot.lane.b32.xlu1 %v12666_v29, %s12467_s29  ;;  %526 = vrot.lane.b32.xlu0 %v12666_v29, %s12466_s0 }
  0xf8   :  { %518 = vrot.lane.b32.xlu0 %v12656_v22, %s12467_s29 }
  0xfc   :  { %522 = vrot.lane.b32.xlu0 %v12660_v27, %s12467_s29 }
 0x156   :  { %v187_v30 = vpop.permute.xlu1 %186 }
 0x15e   :  { %v529_v31 = vpop.permute.xlu1 %528  ;;  %v191_v32 = vpop.permute.xlu0 %190 }
 0x15f   :  { %10916 = vmatpush3.xpose.msk.msra.mxu1 %vm192_vm1, %v191_v32  ;;  %10957 = vmatpush3.xpose.msk.msra.mxu0 %vm192_vm1, %v529_v31 }
 0x160   :  { %10917 = vmatprep.subr.mxu1 %v12463_v1  ;;  %10958 = vmatprep.subr.mxu0 %v12463_v1 }
 0x162   :  { %v189_v33 = vpop.permute.xlu0 %188  ;;  %v525_v35 = vpop.permute.xlu1 %524 }
 0x163   :  { %10918 = vmatpush3.xpose.msk.msra.mxu1 %vm192_vm1, %v189_v33 }
 0x164   :  { %10919 = vmatprep.subr.mxu1 %v12463_v1 }
 0x166   :  { %v527_v34 = vpop.permute.xlu0 %526  ;;  %v521_v37 = vpop.permute.xlu1 %520 }
 0x167   :  { %10920 = vmatpush3.xpose.msk.msra.mxu1 %vm192_vm1, %v187_v30  ;;  %10959 = vmatpush3.xpose.msk.msra.mxu0 %vm192_vm1, %v527_v34 }
 0x168   :  { %10960 = vmatprep.subr.mxu0 %v12463_v1  ;;  %10930 = vmatprep.subr.mxu1 %v12463_v1 }
 0x16a   :  { %10922 = vmatmul.mubr.msk.f32.vlgmr.msra.gmra.mxu1 %vm192_vm1, %v12656_v22  ;;  %v519_v36 = vpop.permute.xlu0 %518 }
 0x16b   :  { %10961 = vmatpush3.xpose.msk.msra.mxu0 %vm192_vm1, %v525_v35  ;;  %10924 = vmatprep.mubr.msk.f32.mxu1 %vm12464_vm0, %v12463_v1 }
 0x16c   :  { %10986 = vmatprep.subr.mxu0 %v12463_v1 }
 0x16e   :  { %10925 = vmatmul.mubr.msk.f32.gmra.mxu1 %vm192_vm1, %v12666_v29  ;;  %10963 = vmatmul.mubr.msk.f32.vlgmr.msra.gmra.mxu0 %vm192_vm1, %v519_v36  ;;  %v523_v38 = vpop.permute.xlu0 %522 }
 0x16f   :  { %10927 = vmatprep.mubr.msk.f32.mxu1 %vm12464_vm0, %v12463_v1  ;;  %10965 = vmatprep.mubr.msk.f32.mxu0 %vm12464_vm0, %v12463_v1 }
 0x172   :  { %10928 = vmatmul.mubr.msk.f32.gmra.mxu1 %vm192_vm1, %v12660_v27  ;;  %10966 = vmatmul.mubr.msk.f32.gmra.mxu0 %vm192_vm1, %v521_v37 }
 0x173   :  { %10968 = vmatprep.mubr.msk.f32.mxu0 %vm12464_vm0, %v12463_v1  ;;  %10936 = vmatprep.mubr.msk.f32.mxu1 %vm12464_vm0, %v12463_v1 }
 0x176   :  { %10969 = vmatmul.mubr.msk.f32.gmra.mxu0 %vm192_vm1, %v523_v38 }
 0x177   :  { %10988 = vmatprep.mubr.msk.f32.mxu0 %vm12464_vm0, %v12463_v1 }
 0x22a   :  { %v271_v39 = vpop.f32.mrf.mxu1 }
 0x22b   :  { %v285_v41 = vmul.f32 0.35355338, %v271_v39 }
 0x22c   :  { %v10923_v42 = vpop.f32.mrf.mxu1 }
 0x22d   :  { %v288_v43 = vadd.f32 %v285_v41, %v12716_v40 }
 0x22e   :  { %v276_v44 = vpop.f32.mrf.mxu1  ;;  %v608_v45 = vpop.f32.mrf.mxu0 }
 0x22f   :  { %v286_v47 = vmul.f32 0.35355338, %v276_v44  ;;  %v292_v48 = vsel %vm291_vm2, %v288_v43, -inf  ;;  %v622_v13 = vmul.f32 0.35355338, %v608_v45 }
 0x230   :  { %293 = vmax.xlane.f32.xlu1 %v292_v48  ;;  %v10926_v49 = vpop.f32.mrf.mxu1  ;;  %v10964_v50 = vpop.f32.mrf.mxu0 }
 0x231   :  { %v289_v51 = vadd.f32 %v286_v47, %v12722_v46  ;;  %v625_v20 = vadd.f32 %v622_v13, %v12716_v40 }
 0x232   :  { %v281_v52 = vpop.f32.mrf.mxu1  ;;  %v613_v53 = vpop.f32.mrf.mxu0 }
 0x233   :  { %v287_v55 = vmul.f32 0.35355338, %v281_v52  ;;  %v295_v56 = vsel %vm291_vm2, %v289_v51, -inf  ;;  %v628_v21 = vsel %vm291_vm2, %v625_v20, -inf  ;;  %v623_v25 = vmul.f32 0.35355338, %v613_v53 }
 0x234   :  { %296 = vmax.xlane.f32.xlu0 %v295_v56  ;;  %v10929_v57 = vpop.f32.mrf.mxu1  ;;  %v10967_v58 = vpop.f32.mrf.mxu0  ;;  %v169_v56 = vld [vmem:[%s15096_s7] sm:$0xff] }
 0x235   :  { %v290_v59 = vadd.f32 %v287_v55, %v12729_v54  ;;  %v626_v26 = vadd.f32 %v623_v25, %v12722_v46 }
 0x236   :  { %v618_v60 = vpop.f32.mrf.mxu0 }
 0x237   :  { %v299_v61 = vsel %vm298_vm3, %v290_v59, -inf  ;;  %v624_v15 = vmul.f32 0.35355338, %v618_v60  ;;  %v631_v28 = vsel %vm291_vm2, %v626_v26, -inf }
 0x238   :  { %300 = vmax.xlane.f32.xlu0 %v299_v61  ;;  %v10970_v62 = vpop.f32.mrf.mxu0 }
 0x239   :  { %v627_v23 = vadd.f32 %v624_v15, %v12729_v54 }
 0x23b   :  { %v634_v24 = vsel %vm298_vm3, %v627_v23, -inf }
 0x2b9   :  { %v294_v63 = vpop.xlane.xlu1 %293 }
 0x2ba   :  { %v302_v0 = vsub.f32 %v288_v43, %v294_v63 }
 0x2bc   :  { %v305_v2 = vmul.f32 1.442695, %v302_v0 }
 0x2bd   :  { %v297_v3 = vpop.xlane.xlu0 %296 }
 0x2be   :  { %12162 = vpow2.f32 %v305_v2  ;;  %v303_v4 = vsub.f32 %v289_v51, %v297_v3 }
 0x2c0   :  { %v307_v5 = vmul.f32 1.442695, %v303_v4 }
 0x2c1   :  { %v301_v10 = vpop.xlane.xlu0 %300 }
 0x2c2   :  { %12164 = vpow2.f32 %v307_v5  ;;  %v304_v11 = vsub.f32 %v290_v59, %v301_v10 }
 0x2c4   :  { %v309_v12 = vmul.f32 1.442695, %v304_v11 }
 0x2c6   :  { %12166 = vpow2.f32 %v309_v12 }
 0x2cb   :  { %v12163_v6 = vpop.eup %12162 }
 0x2cc   :  { %v311_v7 = vsel %vm291_vm2, %v12163_v6, 0.0 }
 0x2cd   :  { %312 = vadd.xlane.f32.xlu1 %v311_v7 }
 0x2cf   :  { %v12165_v8 = vpop.eup %12164 }
 0x2d0   :  { %v314_v9 = vsel %vm291_vm2, %v12165_v8, 0.0 }
 0x2d1   :  { %315 = vadd.xlane.f32.xlu0 %v314_v9 }
 0x2d3   :  { %v12167_v14 = vpop.eup %12166 }
 0x2d4   :  { %v317_v16 = vsel %vm298_vm3, %v12167_v14, 0.0 }
 0x2de   :  { %328 = vrot.lane.b32.xlu1 %v12666_v29, %s12468_s21 }
 0x2e7   :  { %330 = vrot.lane.b32.xlu0 %v12660_v27, %s12468_s21 }
 0x302   :  { %318 = vadd.xlane.f32.xlu1 %v317_v16 }
 0x306   :  { %629 = vmax.xlane.f32.xlu0 %v628_v21 }
 0x30a   :  { %635 = vmax.xlane.f32.xlu0 %v634_v24 }
 0x313   :  { %326 = vrot.lane.b32.xlu1 %v12656_v22, %s12468_s21 }
 0x337   :  { %632 = vmax.xlane.f32.xlu1 %v631_v28 }
 0x356   :  { %v313_v30 = vpop.xlane.xlu1 %312 }
 0x357   :  { %12168 = vrcp.f32 %v313_v30 }
 0x35a   :  { %v316_v31 = vpop.xlane.xlu0 %315  ;;  %v329_v33 = vpop.permute.xlu1 %328 }
 0x35b   :  { %12170 = vrcp.f32 %v316_v31 }
 0x35e   :  { %v331_v32 = vpop.permute.xlu0 %330 }
 0x35f   :  { %10931 = vmatpush3.msk.msra.mxu1 %vm343_vm4, %v331_v32 }
 0x360   :  { %10932 = vmatprep.subr.mxu1 %v12463_v1 }
 0x361   :  { %10933 = vmatpush3.msra.mxu1 %v329_v33 }
 0x362   :  { %10934 = vmatprep.subr.mxu1 %v12463_v1 }
 0x364   :  { %v12169_v35 = vpop.eup %12168 }
 0x365   :  { %v321_v36 = vmul.f32 %v12169_v35, %v12163_v6 }
 0x368   :  { %v12171_v39 = vpop.eup %12170 }
 0x369   :  { %v323_v43 = vmul.f32 %v12171_v39, %v12165_v8 }
 0x38b   :  { %v319_v34 = vpop.xlane.xlu1 %318 }
 0x38c   :  { %12172 = vrcp.f32 %v319_v34 }
 0x38f   :  { %v327_v37 = vpop.permute.xlu1 %326  ;;  %v630_v38 = vpop.xlane.xlu0 %629 }
 0x390   :  { %v637_v41 = vsub.f32 %v625_v20, %v630_v38  ;;  %10935 = vmatpush3.msra.mxu1 %v327_v37 }
 0x391   :  { %10937 = vmatmul.mubr.msk.f32.vlgmr.msra.gmra.mxu1 %vm291_vm2, %v321_v36  ;;  %10945 = vmatprep.subr.mxu1 %v12463_v1 }
 0x392   :  { %v640_v42 = vmul.f32 1.442695, %v637_v41  ;;  %10939 = vmatprep.mubr.msk.f32.mxu1 %vm12464_vm0, %v12463_v1  ;;  %10946 = vmatpush3.msra.mxu1 %v169_v56 }
 0x393   :  { %v636_v49 = vpop.xlane.xlu0 %635  ;;  %10971 = vmatprep.subr.mxu1 %v12463_v1 }
 0x394   :  { %12174 = vpow2.f32 %v640_v42  ;;  %v639_v50 = vsub.f32 %v627_v23, %v636_v49 }
 0x395   :  { %10940 = vmatmul.mubr.msk.f32.gmra.mxu1 %vm291_vm2, %v323_v43 }
 0x396   :  { %10942 = vmatprep.mubr.msk.f32.mxu1 %vm12464_vm0, %v12463_v1  ;;  %v644_v53 = vmul.f32 1.442695, %v639_v50 }
 0x399   :  { %v12173_v44 = vpop.eup %12172 }
 0x39a   :  { %v325_v45 = vmul.f32 %v12173_v44, %v12167_v14 }
 0x39c   :  { %10943 = vmatmul.mubr.msk.f32.gmra.mxu1 %vm291_vm2, %v325_v45 }
 0x39d   :  { %10947 = vmatprep.mubr.msk.f32.mxu1 %vm12464_vm0, %v12463_v1 }
 0x3a1   :  { %v12175_v47 = vpop.eup %12174 }
 0x3a2   :  { %v646_v48 = vsel %vm291_vm2, %v12175_v47, 0.0 }
 0x3a3   :  { %647 = vadd.xlane.f32.xlu0 %v646_v48 }
 0x3b9   :  { %663 = vrot.lane.b32.xlu0 %v12666_v29, %s15115_s22 }
 0x3c0   :  { %v633_v51 = vpop.xlane.xlu1 %632 }
 0x3c1   :  { %v638_v52 = vsub.f32 %v626_v26, %v633_v51  ;;  %v170_v26 = vld [vmem:[%s15096_s7 + $0x8] sm:$0xff] }
 0x3c2   :  { %10987 = vmatpush3.msra.mxu0 %v170_v26 }
 0x3c3   :  { %v642_v55 = vmul.f32 1.442695, %v638_v52  ;;  %11012 = vmatprep.subr.mxu0 %v12463_v1 }
 0x3c5   :  { %12176 = vpow2.f32 %v642_v55 }
 0x3c6   :  { %12178 = vpow2.f32 %v644_v53 }
 0x3d2   :  { %v12177_v57 = vpop.eup %12176 }
 0x3d3   :  { %v649_v58 = vsel %vm291_vm2, %v12177_v57, 0.0  ;;  %v12179_v59 = vpop.eup %12178 }
 0x3d4   :  { %650 = vadd.xlane.f32.xlu1 %v649_v58  ;;  %v652_v60 = vsel %vm298_vm3, %v12179_v59, 0.0 }
 0x3d8   :  { %653 = vadd.xlane.f32.xlu0 %v652_v60 }
 0x3e5   :  { %665 = vrot.lane.b32.xlu1 %v12660_v27, %s15115_s22 }
 0x3e9   :  { %661 = vrot.lane.b32.xlu1 %v12656_v22, %s15115_s22 }
 0x3ed   :  { %862 = vrot.lane.b32.xlu1 %v12660_v27, %s12470_s25 }
 0x3ee   :  { %860 = vrot.lane.b32.xlu0 %v12666_v29, %s12470_s25 }
 0x3f1   :  { %858 = vrot.lane.b32.xlu1 %v12656_v22, %s12470_s25 }
 0x3f2   :  { %852 = vrot.lane.b32.xlu0 %v12656_v22, %s15113_s26 }
 0x3f5   :  { %854 = vrot.lane.b32.xlu1 %v12666_v29, %s15113_s26 }
 0x3f6   :  { %856 = vrot.lane.b32.xlu0 %v12660_v27, %s15113_s26 }
 0x42c   :  { %v648_v62 = vpop.xlane.xlu0 %647 }
 0x42d   :  { %12180 = vrcp.f32 %v648_v62 }
 0x430   :  { %v664_v4 = vpop.permute.xlu0 %663 }
 0x43a   :  { %v12181_v9 = vpop.eup %12180 }
 0x43b   :  { %v656_v10 = vmul.f32 %v12181_v9, %v12175_v47 }
 0x451   :  { %v412_v61 = vpop.f32.mrf.mxu1 }
 0x452   :  { %10948 = vmatmul.mubr.msk.f32.vlgmr.msra.gmra.mxu1 %vm192_vm1, %v412_v61 }
 0x453   :  { %v10938_v63 = vpop.f32.mrf.mxu1  ;;  %10950 = vmatprep.mubr.msk.f32.mxu1 %vm12464_vm0, %v12463_v1 }
 0x455   :  { %v417_v0 = vpop.f32.mrf.mxu1 }
 0x456   :  { %10951 = vmatmul.mubr.msk.f32.gmra.mxu1 %vm192_vm1, %v417_v0 }
 0x457   :  { %v10941_v2 = vpop.f32.mrf.mxu1  ;;  %10953 = vmatprep.mubr.msk.f32.mxu1 %vm12464_vm0, %v12463_v1 }
 0x45c   :  { %v422_v3 = vpop.f32.mrf.mxu1 }
 0x45d   :  { %10954 = vmatmul.mubr.msk.f32.gmra.mxu1 %vm192_vm1, %v422_v3  ;;  %v651_v5 = vpop.xlane.xlu1 %650 }
 0x45e   :  { %12182 = vrcp.f32 %v651_v5  ;;  %v10944_v6 = vpop.f32.mrf.mxu1  ;;  %10977 = vmatprep.mubr.msk.f32.mxu1 %vm12464_vm0, %v12463_v1 }
 0x461   :  { %v666_v7 = vpop.permute.xlu1 %665  ;;  %v654_v8 = vpop.xlane.xlu0 %653 }
 0x462   :  { %12184 = vrcp.f32 %v654_v8  ;;  %10972 = vmatpush3.msk.msra.mxu1 %vm343_vm4, %v666_v7 }
 0x463   :  { %10973 = vmatprep.subr.mxu1 %v12463_v1 }
 0x464   :  { %10974 = vmatpush3.msra.mxu1 %v664_v4 }
 0x465   :  { %v662_v11 = vpop.permute.xlu1 %661  ;;  %10975 = vmatprep.subr.mxu1 %v12463_v1  ;;  %v861_v15 = vpop.permute.xlu0 %860 }
 0x466   :  { %10976 = vmatpush3.msra.mxu1 %v662_v11 }
 0x467   :  { %10978 = vmatmul.mubr.msk.f32.vlgmr.msra.gmra.mxu1 %vm291_vm2, %v656_v10  ;;  %10997 = vmatprep.subr.mxu1 %v12463_v1  ;;  %v9741_v10 = vld [vmem:[%s15097_s8] ss:$0 sm:$0xff] }
 0x468   :  { %10980 = vmatprep.mubr.msk.f32.mxu1 %vm12464_vm0, %v12463_v1  ;;  %v180_v11 = vadd.f32 %v9741_v10, %v12630_v17 }
 0x469   :  { %v863_v12 = vpop.permute.xlu1 %862  ;;  %v853_v23 = vpop.permute.xlu0 %852 }
 0x46a   :  { %10998 = vmatpush3.xpose.msk.msra.mxu1 %vm192_vm1, %v863_v12 }
 0x46b   :  { %v12183_v13 = vpop.eup %12182  ;;  %10999 = vmatprep.subr.mxu1 %v12463_v1 }
 0x46c   :  { %v658_v14 = vmul.f32 %v12183_v13, %v12177_v57 }
 0x46d   :  { %v859_v21 = vpop.permute.xlu1 %858  ;;  %v857_v25 = vpop.permute.xlu0 %856 }
 0x46e   :  { %10981 = vmatmul.mubr.msk.f32.gmra.mxu1 %vm291_vm2, %v658_v14 }
 0x46f   :  { %v12185_v16 = vpop.eup %12184  ;;  %11000 = vmatpush3.xpose.msk.msra.mxu1 %vm192_vm1, %v861_v15  ;;  %10983 = vmatprep.mubr.msk.f32.mxu1 %vm12464_vm0, %v12463_v1  ;;  %v181_v15 = vadd.f32 %v9741_v10, %v12640_v18 }
 0x470   :  { %11001 = vmatprep.subr.mxu1 %v12463_v1  ;;  %v660_v20 = vmul.f32 %v12185_v16, %v12179_v59 }
 0x471   :  { %v855_v24 = vpop.permute.xlu1 %854 }
 0x472   :  { %10984 = vmatmul.mubr.msk.f32.gmra.mxu1 %vm291_vm2, %v660_v20 }
 0x473   :  { %11002 = vmatpush3.xpose.msk.msra.mxu1 %vm192_vm1, %v859_v21  ;;  %11003 = vmatprep.mubr.msk.f32.mxu1 %vm12464_vm0, %v12463_v1  ;;  %v182_v21 = vadd.f32 %v9741_v10, %v12648_v19 }
 0x474   :  { %11027 = vmatprep.subr.mxu1 %v12463_v1 }
 0x476   :  { %11004 = vmatmul.mubr.msk.f32.vlgmr.msra.gmra.mxu1 %vm192_vm1, %v853_v23 }
 0x477   :  { %11006 = vmatprep.mubr.msk.f32.mxu1 %vm12464_vm0, %v12463_v1 }
 0x47a   :  { %11007 = vmatmul.mubr.msk.f32.gmra.mxu1 %vm192_vm1, %v855_v24 }
 0x47b   :  { %11009 = vmatprep.mubr.msk.f32.mxu1 %vm12464_vm0, %v12463_v1 }
 0x47e   :  { %11010 = vmatmul.mubr.msk.f32.gmra.mxu1 %vm192_vm1, %v857_v25 }
 0x47f   :  { %11029 = vmatprep.mubr.msk.f32.mxu1 %vm12464_vm0, %v12463_v1 }
 0x512   :  { %v12828_v28 = vpop.f32.mrf.mxu1 }
 0x513   :  { %v515_v12 = vadd.f32 %v12828_v28, %v180_v11 }
 0x514   :  { %v10949_v30 = vpop.f32.mrf.mxu1 }
 0x516   :  { %v12830_v31 = vpop.f32.mrf.mxu1 }
 0x517   :  { %v516_v20 = vadd.f32 %v12830_v31, %v181_v15 }
 0x518   :  { %v10952_v32 = vpop.f32.mrf.mxu1 }
 0x51d   :  { %v12832_v33 = vpop.f32.mrf.mxu1 }
 0x51e   :  { %v517_v25 = vadd.f32 %v12832_v33, %v182_v21 }
 0x51f   :  { %v10955_v34 = vpop.f32.mrf.mxu1 }
 0x527   :  { %v746_v35 = vpop.f32.mrf.mxu1 }
 0x528   :  { %10989 = vmatmul.mubr.msk.f32.vlgmr.msra.gmra.mxu0 %vm192_vm1, %v746_v35 }
 0x529   :  { %v10979_v36 = vpop.f32.mrf.mxu1  ;;  %10991 = vmatprep.mubr.msk.f32.mxu0 %vm12464_vm0, %v12463_v1 }
 0x52e   :  { %v751_v37 = vpop.f32.mrf.mxu1 }
 0x52f   :  { %10992 = vmatmul.mubr.msk.f32.gmra.mxu0 %vm192_vm1, %v751_v37 }
 0x530   :  { %v10982_v38 = vpop.f32.mrf.mxu1  ;;  %10994 = vmatprep.mubr.msk.f32.mxu0 %vm12464_vm0, %v12463_v1 }
 0x532   :  { %v756_v39 = vpop.f32.mrf.mxu1 }
 0x533   :  { %10995 = vmatmul.mubr.msk.f32.gmra.mxu0 %vm192_vm1, %v756_v39 }
 0x534   :  { %v10985_v41 = vpop.f32.mrf.mxu1  ;;  %11018 = vmatprep.mubr.msk.f32.mxu0 %vm12464_vm0, %v12463_v1 }
 0x536   :  { %v942_v42 = vpop.f32.mrf.mxu1 }
 0x537   :  { %v956_v43 = vmul.f32 0.35355338, %v942_v42 }
 0x538   :  { %v11005_v44 = vpop.f32.mrf.mxu1 }
 0x539   :  { %v959_v45 = vadd.f32 %v956_v43, %v12716_v40 }
 0x53a   :  { %v947_v47 = vpop.f32.mrf.mxu1 }
 0x53b   :  { %v957_v48 = vmul.f32 0.35355338, %v947_v47  ;;  %v962_v49 = vsel %vm291_vm2, %v959_v45, -inf }
 0x53c   :  { %963 = vmax.xlane.f32.xlu1 %v962_v49  ;;  %v11008_v50 = vpop.f32.mrf.mxu1 }
 0x53d   :  { %v960_v51 = vadd.f32 %v957_v48, %v12722_v46  ;;  %v171_v50 = vld [vmem:[%s15096_s7 + $0x10] sm:$0xff] }
 0x53e   :  { %v952_v52 = vpop.f32.mrf.mxu1  ;;  %11028 = vmatpush3.msra.mxu1 %v171_v50 }
 0x53f   :  { %v958_v53 = vmul.f32 0.35355338, %v952_v52  ;;  %v965_v55 = vsel %vm291_vm2, %v960_v51, -inf  ;;  %11053 = vmatprep.subr.mxu1 %v12463_v1 }
 0x540   :  { %966 = vmax.xlane.f32.xlu0 %v965_v55  ;;  %v11011_v56 = vpop.f32.mrf.mxu1 }
 0x541   :  { %v961_v57 = vadd.f32 %v958_v53, %v12729_v54 }
 0x543   :  { %v968_v58 = vsel %vm298_vm3, %v961_v57, -inf }
 0x544   :  { %969 = vmax.xlane.f32.xlu0 %v968_v58 }
 0x54d   :  { %997 = vrot.lane.b32.xlu1 %v12666_v29, %s15111_s16 }
 0x551   :  { %995 = vrot.lane.b32.xlu1 %v12656_v22, %s15111_s16 }
 0x55a   :  { %999 = vrot.lane.b32.xlu0 %v12660_v27, %s15111_s16 }
 0x5c5   :  { %v964_v59 = vpop.xlane.xlu1 %963 }
 0x5c6   :  { %v971_v60 = vsub.f32 %v959_v45, %v964_v59 }
 0x5c8   :  { %v974_v61 = vmul.f32 1.442695, %v971_v60 }
 0x5c9   :  { %v967_v62 = vpop.xlane.xlu0 %966  ;;  %v998_v3 = vpop.permute.xlu1 %997 }
 0x5ca   :  { %12186 = vpow2.f32 %v974_v61  ;;  %v972_v63 = vsub.f32 %v960_v51, %v967_v62 }
 0x5cc   :  { %v976_v0 = vmul.f32 1.442695, %v972_v63 }
 0x5cd   :  { %v970_v2 = vpop.xlane.xlu0 %969  ;;  %v996_v5 = vpop.permute.xlu1 %995 }
 0x5ce   :  { %12188 = vpow2.f32 %v976_v0  ;;  %v973_v28 = vsub.f32 %v961_v57, %v970_v2 }
 0x5d0   :  { %v978_v31 = vmul.f32 1.442695, %v973_v28 }
 0x5d1   :  { %v1000_v4 = vpop.permute.xlu0 %999 }
 0x5d2   :  { %11013 = vmatpush3.msk.msra.mxu0 %vm343_vm4, %v1000_v4  ;;  %12190 = vpow2.f32 %v978_v31 }
 0x5d3   :  { %11014 = vmatprep.subr.mxu0 %v12463_v1 }
 0x5d4   :  { %11015 = vmatpush3.msra.mxu0 %v998_v3 }
 0x5d5   :  { %11016 = vmatprep.subr.mxu0 %v12463_v1 }
 0x5d6   :  { %11017 = vmatpush3.msra.mxu0 %v996_v5 }
 0x5d7   :  { %v12187_v6 = vpop.eup %12186  ;;  %11038 = vmatprep.subr.mxu0 %v12463_v1 }
 0x5d8   :  { %v980_v7 = vsel %vm291_vm2, %v12187_v6, 0.0 }
 0x5d9   :  { %981 = vadd.xlane.f32.xlu1 %v980_v7 }
 0x5db   :  { %v12189_v8 = vpop.eup %12188 }
 0x5dc   :  { %v983_v9 = vsel %vm291_vm2, %v12189_v8, 0.0 }
 0x5dd   :  { %984 = vadd.xlane.f32.xlu0 %v983_v9 }
 0x5df   :  { %v12191_v19 = vpop.eup %12190 }
 0x5e0   :  { %v986_v32 = vsel %vm298_vm3, %v12191_v19, 0.0 }
 0x5e8   :  { %v835_v13 = vpop.f32.mrf.mxu0 }
 0x5e9   :  { %v12866_v14 = vadd.f32 %v835_v13, %v515_v12 }
 0x5ea   :  { %1194 = vrot.lane.b32.xlu1 %v12666_v29, %s15109_s19  ;;  %v10990_v16 = vpop.f32.mrf.mxu0 }
 0x5ef   :  { %v840_v23 = vpop.f32.mrf.mxu0 }
 0x5f0   :  { %v12873_v24 = vadd.f32 %v840_v23, %v516_v20 }
 0x5f1   :  { %v10993_v17 = vpop.f32.mrf.mxu0 }
 0x5f3   :  { %1196 = vrot.lane.b32.xlu0 %v12660_v27, %s15109_s19  ;;  %v845_v26 = vpop.f32.mrf.mxu0 }
 0x5f4   :  { %v12878_v18 = vadd.f32 %v845_v26, %v517_v25 }
 0x5f5   :  { %v10996_v30 = vpop.f32.mrf.mxu0 }
 0x5f7   :  { %1192 = vrot.lane.b32.xlu0 %v12656_v22, %s15109_s19 }
 0x5fb   :  { %1188 = vrot.lane.b32.xlu0 %v12666_v29, %s15107_s20 }
 0x60e   :  { %987 = vadd.xlane.f32.xlu1 %v986_v32 }
 0x61f   :  { %1186 = vrot.lane.b32.xlu1 %v12656_v22, %s15107_s20 }
 0x623   :  { %1190 = vrot.lane.b32.xlu1 %v12660_v27, %s15107_s20  ;;  %s15117_s20 = smov 72  }
 0x662   :  { %v982_v33 = vpop.xlane.xlu1 %981 }
 0x663   :  { %12192 = vrcp.f32 %v982_v33 }
 0x666   :  { %v985_v34 = vpop.xlane.xlu0 %984  ;;  %v1195_v41 = vpop.permute.xlu1 %1194 }
 0x667   :  { %12194 = vrcp.f32 %v985_v34 }
 0x66a   :  { %v1197_v37 = vpop.permute.xlu0 %1196 }
 0x66e   :  { %v1193_v42 = vpop.permute.xlu0 %1192 }
 0x670   :  { %v12193_v35 = vpop.eup %12192 }
 0x671   :  { %v990_v36 = vmul.f32 %v12193_v35, %v12187_v6  ;;  %v172_v35 = vld [vmem:[%s15096_s7 + $0x18] sm:$0xff] }
 0x672   :  { %v1189_v48 = vpop.permute.xlu0 %1188 }
 0x673   :  { %11019 = vmatmul.mubr.msk.f32.vlgmr.msra.gmra.mxu0 %vm291_vm2, %v990_v36 }
 0x674   :  { %v12195_v38 = vpop.eup %12194  ;;  %11039 = vmatpush3.xpose.msk.msra.mxu0 %vm192_vm1, %v1197_v37  ;;  %11021 = vmatprep.mubr.msk.f32.mxu0 %vm12464_vm0, %v12463_v1 }
 0x675   :  { %11040 = vmatprep.subr.mxu0 %v12463_v1  ;;  %v992_v39 = vmul.f32 %v12195_v38, %v12189_v8 }
 0x677   :  { %11022 = vmatmul.mubr.msk.f32.gmra.mxu0 %vm291_vm2, %v992_v39 }
 0x678   :  { %11041 = vmatpush3.xpose.msk.msra.mxu0 %vm192_vm1, %v1195_v41  ;;  %11024 = vmatprep.mubr.msk.f32.mxu0 %vm12464_vm0, %v12463_v1 }
 0x679   :  { %11042 = vmatprep.subr.mxu0 %v12463_v1 }
 0x67c   :  { %11043 = vmatpush3.xpose.msk.msra.mxu0 %vm192_vm1, %v1193_v42 }
 0x67d   :  { %11068 = vmatprep.subr.mxu0 %v12463_v1 }
 0x697   :  { %v988_v43 = vpop.xlane.xlu1 %987 }
 0x698   :  { %12196 = vrcp.f32 %v988_v43 }
 0x69b   :  { %v1187_v47 = vpop.permute.xlu1 %1186 }
 0x69f   :  { %v1191_v49 = vpop.permute.xlu1 %1190 }
 0x6a5   :  { %v12197_v44 = vpop.eup %12196 }
 0x6a6   :  { %v994_v45 = vmul.f32 %v12197_v44, %v12191_v19 }
 0x6a8   :  { %11025 = vmatmul.mubr.msk.f32.gmra.mxu0 %vm291_vm2, %v994_v45 }
 0x6a9   :  { %11044 = vmatprep.mubr.msk.f32.mxu0 %vm12464_vm0, %v12463_v1 }
 0x6ac   :  { %11045 = vmatmul.mubr.msk.f32.vlgmr.msra.gmra.mxu0 %vm192_vm1, %v1187_v47 }
 0x6ad   :  { %11047 = vmatprep.mubr.msk.f32.mxu0 %vm12464_vm0, %v12463_v1  ;;  %11069 = vmatpush3.msra.mxu0 %v172_v35  ;;  %v1699_v35 = vld [vmem:[%s15100_s11 + $0x78] sm:$0xff] }
 0x6ae   :  { %11120 = vmatprep.subr.mxu0 %v12463_v1 }
 0x6b0   :  { %11048 = vmatmul.mubr.msk.f32.gmra.mxu0 %vm192_vm1, %v1189_v48 }
 0x6b1   :  { %11050 = vmatprep.mubr.msk.f32.mxu0 %vm12464_vm0, %v12463_v1 }
 0x6b4   :  { %11051 = vmatmul.mubr.msk.f32.gmra.mxu0 %vm192_vm1, %v1191_v49 }
 0x6b5   :  { %11070 = vmatprep.mubr.msk.f32.mxu0 %vm12464_vm0, %v12463_v1 }
 0x733   :  { %v1080_v51 = vpop.f32.mrf.mxu0 }
 0x734   :  { %11030 = vmatmul.mubr.msk.f32.vlgmr.msra.gmra.mxu1 %vm192_vm1, %v1080_v51 }
 0x735   :  { %v11020_v52 = vpop.f32.mrf.mxu0  ;;  %11032 = vmatprep.mubr.msk.f32.mxu1 %vm12464_vm0, %v12463_v1 }
 0x737   :  { %v1085_v53 = vpop.f32.mrf.mxu0 }
 0x738   :  { %11033 = vmatmul.mubr.msk.f32.gmra.mxu1 %vm192_vm1, %v1085_v53 }
 0x739   :  { %v11023_v55 = vpop.f32.mrf.mxu0  ;;  %11035 = vmatprep.mubr.msk.f32.mxu1 %vm12464_vm0, %v12463_v1 }
 0x768   :  { %v1090_v56 = vpop.f32.mrf.mxu0 }
 0x769   :  { %11036 = vmatmul.mubr.msk.f32.gmra.mxu1 %vm192_vm1, %v1090_v56 }
 0x76a   :  { %v11026_v57 = vpop.f32.mrf.mxu0  ;;  %11059 = vmatprep.mubr.msk.f32.mxu1 %vm12464_vm0, %v12463_v1 }
 0x76c   :  { %v1276_v58 = vpop.f32.mrf.mxu0 }
 0x76d   :  { %v1290_v59 = vmul.f32 0.35355338, %v1276_v58 }
 0x76e   :  { %v11046_v60 = vpop.f32.mrf.mxu0 }
 0x76f   :  { %v1293_v61 = vadd.f32 %v1290_v59, %v12716_v40 }
 0x770   :  { %v1281_v62 = vpop.f32.mrf.mxu0 }
 0x771   :  { %v1291_v63 = vmul.f32 0.35355338, %v1281_v62  ;;  %v1296_v0 = vsel %vm291_vm2, %v1293_v61, -inf }
 0x772   :  { %1297 = vmax.xlane.f32.xlu0 %v1296_v0  ;;  %v11049_v2 = vpop.f32.mrf.mxu0  ;;  %v1592_v0 = vld [vmem:[%s15098_s9 + $0x70] sm:$0xff] }
 0x773   :  { %v1294_v3 = vadd.f32 %v1291_v63, %v12722_v46  ;;  %v1593_v63 = vld [vmem:[%s15098_s9 + $0x78] sm:$0xff]  ;;  %v1591_v2 = vld [vmem:[%s15098_s9 + $0x68] sm:$0xff] }
 0x774   :  { %v1286_v4 = vpop.f32.mrf.mxu0 }
 0x775   :  { %v1292_v5 = vmul.f32 0.35355338, %v1286_v4  ;;  %v1299_v6 = vsel %vm291_vm2, %v1294_v3, -inf  ;;  %v51_v4 = vlaneseq }
 0x776   :  { %1300 = vmax.xlane.f32.xlu1 %v1299_v6  ;;  %v11052_v7 = vpop.f32.mrf.mxu0 }
 0x777   :  { %v1295_v8 = vadd.f32 %v1292_v5, %v12729_v54  ;;  %v52_v5 = vand.u32 127, %v51_v4 }
 0x779   :  { %v1302_v9 = vsel %vm298_vm3, %v1295_v8, -inf  ;;  %vm53_vm5 = vcmp.lt.s32.totalorder %v52_v5, 32 }
 0x77a   :  { %1303 = vmax.xlane.f32.xlu0 %v1302_v9 }
 0x787   :  { %1333 = vrot.lane.b32.xlu1 %v12660_v27, %s15105_s27 }
 0x7f4   :  { %v1169_v40 = vpop.f32.mrf.mxu1 }
 0x7f5   :  { %v12935_v10 = vadd.f32 %v1169_v40, %v12866_v14 }
 0x7f6   :  { %v11031_v46 = vpop.f32.mrf.mxu1 }
 0x7f8   :  { %v1174_v11 = vpop.f32.mrf.mxu1 }
 0x7f9   :  { %v12938_v12 = vadd.f32 %v1174_v11, %v12873_v24 }
 0x7fa   :  { %v11034_v13 = vpop.f32.mrf.mxu1 }
 0x7fb   :  { %v1298_v15 = vpop.xlane.xlu0 %1297 }
 0x7fc   :  { %v1305_v16 = vsub.f32 %v1293_v61, %v1298_v15 }
 0x7fe   :  { %v1308_v54 = vmul.f32 1.442695, %v1305_v16 }
 0x7ff   :  { %v1301_v20 = vpop.xlane.xlu1 %1300 }
 0x800   :  { %12198 = vpow2.f32 %v1308_v54  ;;  %v1306_v21 = vsub.f32 %v1294_v3, %v1301_v20  ;;  %v1590_v3 = vld [vmem:[%s15098_s9 + $0x60] sm:$0xff] }
 0x802   :  { %v1310_v23 = vmul.f32 1.442695, %v1306_v21 }
 0x803   :  { %v1334_v17 = vpop.permute.xlu1 %1333  ;;  %v1304_v25 = vpop.xlane.xlu0 %1303 }
 0x804   :  { %12200 = vpow2.f32 %v1310_v23  ;;  %v1307_v27 = vsub.f32 %v1295_v8, %v1304_v25  ;;  %11054 = vmatpush3.msk.msra.mxu1 %vm343_vm4, %v1334_v17  ;;  %v12994_v8 = vsel %vm53_vm5, 1.0, %v12463_v1  ;;  %v1589_v25 = vld [vmem:[%s15098_s9 + $0x58] sm:$0xff] }
 0x805   :  { %11055 = vmatprep.subr.mxu1 %v12463_v1 }
 0x806   :  { %v1312_v14 = vmul.f32 1.442695, %v1307_v27  ;;  %v1588_v27 = vld [vmem:[%s15098_s9 + $0x50] sm:$0xff] }
 0x808   :  { %12202 = vpow2.f32 %v1312_v14  ;;  %v1587_v14 = vld [vmem:[%s15098_s9 + $0x48] sm:$0xff] }
 0x80d   :  { %v12199_v24 = vpop.eup %12198 }
 0x80e   :  { %v1314_v26 = vsel %vm291_vm2, %v12199_v24, 0.0 }
 0x80f   :  { %1315 = vadd.xlane.f32.xlu0 %v1314_v26  ;;  %v1585_v26 = vld [vmem:[%s15098_s9 + $0x38] sm:$0xff] }
 0x811   :  { %v12201_v28 = vpop.eup %12200 }
 0x812   :  { %v1317_v30 = vsel %vm291_vm2, %v12201_v28, 0.0 }
 0x813   :  { %1318 = vadd.xlane.f32.xlu1 %v1317_v30  ;;  %v1583_v30 = vld [vmem:[%s15098_s9 + $0x28] sm:$0xff] }
 0x815   :  { %v12203_v31 = vpop.eup %12202 }
 0x816   :  { %v1320_v19 = vsel %vm298_vm3, %v12203_v31, 0.0 }
 0x817   :  { %1321 = vadd.xlane.f32.xlu0 %v1320_v19  ;;  %v1581_v19 = vld [vmem:[%s15098_s9 + $0x18] sm:$0xff] }
 0x824   :  { %1329 = vrot.lane.b32.xlu1 %v12656_v22, %s15105_s27 }
 0x829   :  { %v1179_v32 = vpop.f32.mrf.mxu1 }
 0x82a   :  { %v1185_v33 = vadd.f32 %v1179_v32, %v12878_v18  ;;  %v1580_v32 = vld [vmem:[%s15098_s9 + $0x10] sm:$0xff] }
 0x82b   :  { %v11037_v34 = vpop.f32.mrf.mxu1 }
 0x82c   :  { %v1578_v34 = vld [vmem:[%s15098_s9] sm:$0xff] }
 0x82d   :  { %1331 = vrot.lane.b32.xlu0 %v12666_v29, %s15105_s27  ;;  %s15118_s27 = smov 104  }
 0x898   :  { %v1316_v36 = vpop.xlane.xlu0 %1315 }
 0x899   :  { %12204 = vrcp.f32 %v1316_v36  ;;  %v1698_v36 = vld [vmem:[%s15100_s11 + $0x70] sm:$0xff] }
 0x89c   :  { %v1319_v37 = vpop.xlane.xlu1 %1318 }
 0x89d   :  { %12206 = vrcp.f32 %v1319_v37  ;;  %v1697_v37 = vld [vmem:[%s15100_s11 + $0x68] sm:$0xff] }
 0x8a0   :  { %v1322_v38 = vpop.xlane.xlu0 %1321  ;;  %v1330_v39 = vpop.permute.xlu1 %1329 }
 0x8a1   :  { %12208 = vrcp.f32 %v1322_v38  ;;  %v1696_v38 = vld [vmem:[%s15100_s11 + $0x60] sm:$0xff] }
 0x8a4   :  { %v1332_v22 = vpop.permute.xlu0 %1331 }
 0x8a5   :  { %11056 = vmatpush3.msra.mxu1 %v1332_v22  ;;  %v1695_v22 = vld [vmem:[%s15100_s11 + $0x58] sm:$0xff] }
 0x8a6   :  { %v12205_v18 = vpop.eup %12204  ;;  %11057 = vmatprep.subr.mxu1 %v12463_v1 }
 0x8a7   :  { %v1324_v29 = vmul.f32 %v12205_v18, %v12199_v24  ;;  %11058 = vmatpush3.msra.mxu1 %v1330_v39  ;;  %v1586_v24 = vld [vmem:[%s15098_s9 + $0x40] sm:$0xff]  ;;  %v1694_v18 = vld [vmem:[%s15100_s11 + $0x50] sm:$0xff]  ;;  %v1693_v39 = vld [vmem:[%s15100_s11 + $0x48] sm:$0xff] }
 0x8a8   :  { %11079 = vmatprep.subr.mxu1 %v12463_v1 }
 0x8a9   :  { %11060 = vmatmul.mubr.msk.f32.vlgmr.msra.gmra.mxu1 %vm291_vm2, %v1324_v29  ;;  %v1692_v29 = vld [vmem:[%s15100_s11 + $0x40] sm:$0xff] }
 0x8aa   :  { %v12207_v41 = vpop.eup %12206  ;;  %11062 = vmatprep.mubr.msk.f32.mxu1 %vm12464_vm0, %v12463_v1  ;;  %11080 = vmatpush3.msra.mxu1 %v1593_v63 }
 0x8ab   :  { %v1326_v42 = vmul.f32 %v12207_v41, %v12201_v28  ;;  %11081 = vmatprep.subr.mxu1 %v12463_v1  ;;  %v1584_v28 = vld [vmem:[%s15098_s9 + $0x30] sm:$0xff]  ;;  %v1691_v41 = vld [vmem:[%s15100_s11 + $0x38] sm:$0xff] }
 0x8ac   :  { %11082 = vmatpush3.msra.mxu1 %v1592_v0 }
 0x8ad   :  { %11063 = vmatmul.mubr.msk.f32.gmra.mxu1 %vm291_vm2, %v1326_v42  ;;  %11083 = vmatprep.subr.mxu1 %v12463_v1  ;;  %v1690_v42 = vld [vmem:[%s15100_s11 + $0x30] sm:$0xff] }
 0x8ae   :  { %v12209_v43 = vpop.eup %12208  ;;  %11065 = vmatprep.mubr.msk.f32.mxu1 %vm12464_vm0, %v12463_v1  ;;  %11084 = vmatpush3.msra.mxu1 %v1591_v2 }
 0x8af   :  { %v1328_v44 = vmul.f32 %v12209_v43, %v12203_v31  ;;  %11085 = vmatprep.subr.mxu1 %v12463_v1  ;;  %v1582_v31 = vld [vmem:[%s15098_s9 + $0x20] sm:$0xff]  ;;  %v1689_v43 = vld [vmem:[%s15100_s11 + $0x28] sm:$0xff] }
 0x8b0   :  { %11086 = vmatpush3.msra.mxu1 %v1590_v3 }
 0x8b1   :  { %11066 = vmatmul.mubr.msk.f32.gmra.mxu1 %vm291_vm2, %v1328_v44  ;;  %11087 = vmatprep.subr.mxu1 %v12463_v1  ;;  %v1688_v44 = vld [vmem:[%s15100_s11 + $0x20] sm:$0xff] }
 0x8b2   :  { %11111 = vmatprep.mubr.msk.f32.mxu1 %vm12464_vm0, %v12463_v1  ;;  %11088 = vmatpush3.msra.mxu1 %v1589_v25 }
 0x8b3   :  { %11089 = vmatprep.subr.mxu1 %v12463_v1 }
 0x8b4   :  { %11090 = vmatpush3.msra.mxu1 %v1588_v27 }
 0x8b5   :  { %11091 = vmatprep.subr.mxu1 %v12463_v1 }
 0x8b6   :  { %11092 = vmatpush3.msra.mxu1 %v1587_v14 }
 0x8b7   :  { %11093 = vmatprep.subr.mxu1 %v12463_v1 }
 0x8b8   :  { %11094 = vmatpush3.msra.mxu1 %v1586_v24  ;;  %v9797_v24 = vld [vmem:[%s15101_s12] ss:$0 sm:$0xff] }
 0x8b9   :  { %11095 = vmatprep.subr.mxu1 %v12463_v1 }
 0x8ba   :  { %11096 = vmatpush3.msra.mxu1 %v1585_v26 }
 0x8bb   :  { %11097 = vmatprep.subr.mxu1 %v12463_v1 }
 0x8bc   :  { %11098 = vmatpush3.msra.mxu1 %v1584_v28 }
 0x8bd   :  { %11099 = vmatprep.subr.mxu1 %v12463_v1 }
 0x8be   :  { %11100 = vmatpush3.msra.mxu1 %v1583_v30 }
 0x8bf   :  { %11101 = vmatprep.subr.mxu1 %v12463_v1 }
 0x8c0   :  { %11102 = vmatpush3.msra.mxu1 %v1582_v31 }
 0x8c1   :  { %11103 = vmatprep.subr.mxu1 %v12463_v1 }
 0x8c2   :  { %11104 = vmatpush3.msra.mxu1 %v1581_v19 }
 0x8c3   :  { %11105 = vmatprep.subr.mxu1 %v12463_v1 }
 0x8c4   :  { %11106 = vmatpush3.msra.mxu1 %v1580_v32 }
 0x8c5   :  { %11107 = vmatprep.subr.mxu1 %v12463_v1 }
 0x969   :  { %v1414_v45 = vpop.f32.mrf.mxu1 }
 0x96a   :  { %11071 = vmatmul.mubr.msk.f32.vlgmr.msra.gmra.mxu0 %vm192_vm1, %v1414_v45  ;;  %v1687_v45 = vld [vmem:[%s15100_s11 + $0x18] sm:$0xff] }
 0x96b   :  { %v11061_v47 = vpop.f32.mrf.mxu1  ;;  %11073 = vmatprep.mubr.msk.f32.mxu0 %vm12464_vm0, %v12463_v1  ;;  %11121 = vmatpush3.msra.mxu0 %v1699_v35 }
 0x96c   :  { %11122 = vmatprep.subr.mxu0 %v12463_v1 }
 0x96d   :  { %v1419_v48 = vpop.f32.mrf.mxu1  ;;  %11123 = vmatpush3.msra.mxu0 %v1698_v36 }
 0x96e   :  { %11074 = vmatmul.mubr.msk.f32.gmra.mxu0 %vm192_vm1, %v1419_v48  ;;  %11124 = vmatprep.subr.mxu0 %v12463_v1 }
 0x96f   :  { %v11064_v49 = vpop.f32.mrf.mxu1  ;;  %11076 = vmatprep.mubr.msk.f32.mxu0 %vm12464_vm0, %v12463_v1  ;;  %11125 = vmatpush3.msra.mxu0 %v1697_v37 }
 0x970   :  { %11126 = vmatprep.subr.mxu0 %v12463_v1 }
 0x971   :  { %v1424_v50 = vpop.f32.mrf.mxu1  ;;  %11127 = vmatpush3.msra.mxu0 %v1696_v38 }
 0x972   :  { %11077 = vmatmul.mubr.msk.f32.gmra.mxu0 %vm192_vm1, %v1424_v50  ;;  %11128 = vmatprep.subr.mxu0 %v12463_v1 }
 0x973   :  { %v11067_v51 = vpop.f32.mrf.mxu1  ;;  %11152 = vmatprep.mubr.msk.f32.mxu0 %vm12464_vm0, %v12463_v1  ;;  %11129 = vmatpush3.msra.mxu0 %v1695_v22  ;;  %v9817_v22 = vld [vmem:[%s15094_s5 + $0xf8] sm:$0xff] }
 0x974   :  { %11130 = vmatprep.subr.mxu0 %v12463_v1 }
 0x975   :  { %11131 = vmatpush3.msra.mxu0 %v1694_v18  ;;  %v9816_v18 = vld [vmem:[%s15094_s5 + $0xf0] sm:$0xff] }
 0x976   :  { %11132 = vmatprep.subr.mxu0 %v12463_v1 }
 0x977   :  { %11133 = vmatpush3.msra.mxu0 %v1693_v39  ;;  %v9815_v39 = vld [vmem:[%s15094_s5 + $0xe8] sm:$0xff] }
 0x978   :  { %11134 = vmatprep.subr.mxu0 %v12463_v1 }
 0x979   :  { %11135 = vmatpush3.msra.mxu0 %v1692_v29  ;;  %v9814_v29 = vld [vmem:[%s15094_s5 + $0xe0] sm:$0xff] }
 0x97a   :  { %11136 = vmatprep.subr.mxu0 %v12463_v1 }
 0x97b   :  { %11137 = vmatpush3.msra.mxu0 %v1691_v41 }
 0x97c   :  { %11138 = vmatprep.subr.mxu0 %v12463_v1 }
 0x97d   :  { %11139 = vmatpush3.msra.mxu0 %v1690_v42 }
 0x97e   :  { %11140 = vmatprep.subr.mxu0 %v12463_v1 }
 0x97f   :  { %11141 = vmatpush3.msra.mxu0 %v1689_v43 }
 0x980   :  { %11142 = vmatprep.subr.mxu0 %v12463_v1 }
 0x981   :  { %11143 = vmatpush3.msra.mxu0 %v1688_v44 }
 0x982   :  { %11144 = vmatprep.subr.mxu0 %v12463_v1 }
 0x983   :  { %11145 = vmatpush3.msra.mxu0 %v1687_v45 }
 0x984   :  { %11146 = vmatprep.subr.mxu0 %v12463_v1 }
 0xa2a   :  { %v1503_v52 = vpop.f32.mrf.mxu0 }
 0xa2b   :  { %v1517_v53 = vadd.f32 %v1503_v52, %v12935_v10 }
 0xa2c   :  { %v11072_v55 = vpop.f32.mrf.mxu0 }
 0xa2d   :  { %1520 = vadd.xlane.f32.xlu1 %v1517_v53 }
 0xa2e   :  { %v1508_v56 = vpop.f32.mrf.mxu0 }
 0xa2f   :  { %v1518_v57 = vadd.f32 %v1508_v56, %v12938_v12 }
 0xa30   :  { %v11075_v58 = vpop.f32.mrf.mxu0 }
 0xa31   :  { %1522 = vadd.xlane.f32.xlu0 %v1518_v57  ;;  %v9794_v58 = vld [vmem:[%s15102_s13] ss:$0 sm:$0xff] }
 0xa32   :  { %v1513_v59 = vpop.f32.mrf.mxu0 }
 0xa33   :  { %v1519_v60 = vadd.f32 %v1513_v59, %v1185_v33  ;;  %v1579_v33 = vld [vmem:[%s15098_s9 + $0x8] sm:$0xff] }
 0xa34   :  { %v11078_v61 = vpop.f32.mrf.mxu0  ;;  %11108 = vmatpush3.msra.mxu1 %v1579_v33 }
 0xa35   :  { %v1524_v62 = vsel %vm343_vm4, %v1519_v60, 0.0  ;;  %11109 = vmatprep.subr.mxu1 %v12463_v1 }
 0xa36   :  { %1525 = vadd.xlane.f32.xlu0 %v1524_v62  ;;  %11110 = vmatpush3.msra.mxu1 %v1578_v34 }
 0xa37   :  { %11161 = vmatprep.subr.mxu1 %v12463_v1 }
 0xab6   :  { %v1521_v6 = vpop.xlane.xlu1 %1520 }
 0xab7   :  { %v1527_v7 = vmul.f32 0.03125, %v1521_v6 }
 0xab9   :  { %v1530_v9 = vsub.f32 %v1517_v53, %v1527_v7 }
 0xaba   :  { %v1523_v40 = vpop.xlane.xlu0 %1522 }
 0xabb   :  { %v1528_v10 = vmul.f32 0.03125, %v1523_v40  ;;  %v12997_v46 = vmul.f32 %v12994_v8, %v1530_v9  ;;  %v1686_v9 = vld [vmem:[%s15100_s11 + $0x10] sm:$0xff]  ;;  %v1685_v40 = vld [vmem:[%s15100_s11 + $0x8] sm:$0xff] }
 0xabc   :  { %11147 = vmatpush3.msra.mxu0 %v1686_v9 }
 0xabd   :  { %v1531_v11 = vsub.f32 %v1518_v57, %v1528_v10  ;;  %v1536_v12 = vmul.f32 %v12997_v46, %v12997_v46  ;;  %11148 = vmatprep.subr.mxu0 %v12463_v1  ;;  %v1684_v10 = vld [vmem:[%s15100_s11] sm:$0xff] }
 0xabe   :  { %11149 = vmatpush3.msra.mxu0 %v1685_v40 }
 0xabf   :  { %v1526_v13 = vpop.xlane.xlu0 %1525  ;;  %1539 = vadd.xlane.f32.xlu1 %v1536_v12  ;;  %v13002_v15 = vmul.f32 %v12994_v8, %v1531_v11  ;;  %11150 = vmatprep.subr.mxu0 %v12463_v1 }
 0xac0   :  { %v1529_v16 = vmul.f32 0.03125, %v1526_v13  ;;  %11151 = vmatpush3.msra.mxu0 %v1684_v10 }
 0xac1   :  { %v1537_v54 = vmul.f32 %v13002_v15, %v13002_v15  ;;  %11202 = vmatprep.subr.mxu0 %v12463_v1 }
 0xac2   :  { %v1532_v20 = vsub.f32 %v1519_v60, %v1529_v16  ;;  %v9795_v60 = vld [vmem:[%s15103_s14] ss:$0 sm:$0xff] }
 0xac3   :  { %1541 = vadd.xlane.f32.xlu0 %v1537_v54 }
 0xac4   :  { %v13007_v21 = vmul.f32 %v12994_v8, %v1532_v20 }
 0xac6   :  { %v1538_v23 = vmul.f32 %v13007_v21, %v13007_v21 }
 0xac8   :  { %v1543_v17 = vsel %vm343_vm4, %v1538_v23, 0.0 }
 0xac9   :  { %1544 = vadd.xlane.f32.xlu1 %v1543_v17 }
 0xb48   :  { %v1540_v47 = vpop.xlane.xlu1 %1539 }
 0xb49   :  { %v1546_v48 = vmul.f32 0.03125, %v1540_v47 }
 0xb4b   :  { %v1549_v49 = vadd.f32 1e-05, %v1546_v48 }
 0xb4c   :  { %v1542_v50 = vpop.xlane.xlu0 %1541 }
 0xb4d   :  { %12210 = vrsqrt.f32 %v1549_v49  ;;  %v1547_v51 = vmul.f32 0.03125, %v1542_v50 }
 0xb4f   :  { %v1550_v52 = vadd.f32 1e-05, %v1547_v51 }
 0xb51   :  { %12212 = vrsqrt.f32 %v1550_v52 }
 0xb52   :  { %v1545_v53 = vpop.xlane.xlu1 %1544 }
 0xb53   :  { %v1548_v55 = vmul.f32 0.03125, %v1545_v53 }
 0xb55   :  { %v1551_v56 = vadd.f32 1e-05, %v1548_v55 }
 0xb57   :  { %12214 = vrsqrt.f32 %v1551_v56 }
 0xb5a   :  { %v12211_v57 = vpop.eup %12210 }
 0xb5b   :  { %v1555_v59 = vmul.f32 %v12211_v57, %v12997_v46  ;;  %v9796_v46 = vld [vmem:[%s15099_s10] ss:$0 sm:$0xff] }
 0xb5d   :  { %v1565_v61 = vmul.f32 %v9794_v58, %v1555_v59  ;;  %v9813_v59 = vld [vmem:[%s15094_s5 + $0xd8] sm:$0xff] }
 0xb5e   :  { %v12213_v62 = vpop.eup %12212 }
 0xb5f   :  { %v1575_v63 = vadd.f32 %v9795_v60, %v1565_v61  ;;  %v1556_v0 = vmul.f32 %v12213_v62, %v13002_v15  ;;  %v9811_v61 = vld [vmem:[%s15094_s5 + $0xc8] sm:$0xff]  ;;  %v9810_v62 = vld [vmem:[%s15094_s5 + $0xc0] sm:$0xff] }
 0xb61   :  { %11112 = vmatmul.mubr.f32.vlgmr.msra.gmra.mxu1 %v1575_v63  ;;  %v1566_v2 = vmul.f32 %v9794_v58, %v1556_v0  ;;  %v9808_v0 = vld [vmem:[%s15094_s5 + $0xb0] sm:$0xff] }
 0xb62   :  { %11114 = vmatprep.mubr.msk.f32.mxu1 %vm12464_vm0, %v12463_v1  ;;  %11162 = vmatpush3.msra.mxu1 %v9817_v22 }
 0xb63   :  { %v1576_v3 = vadd.f32 %v9795_v60, %v1566_v2  ;;  %11163 = vmatprep.subr.mxu1 %v12463_v1  ;;  %v9807_v2 = vld [vmem:[%s15094_s5 + $0xa8] sm:$0xff] }
 0xb64   :  { %v12215_v4 = vpop.eup %12214  ;;  %11164 = vmatpush3.msra.mxu1 %v9816_v18 }
 0xb65   :  { %11115 = vmatmul.mubr.f32.gmra.mxu1 %v1576_v3  ;;  %v1557_v5 = vmul.f32 %v12215_v4, %v13007_v21  ;;  %11165 = vmatprep.subr.mxu1 %v12463_v1  ;;  %v9805_v4 = vld [vmem:[%s15094_s5 + $0x98] sm:$0xff] }
 0xb66   :  { %11117 = vmatprep.mubr.msk.f32.mxu1 %vm12464_vm0, %v12463_v1  ;;  %11166 = vmatpush3.msra.mxu1 %v9815_v39 }
 0xb67   :  { %v1567_v6 = vmul.f32 %v9794_v58, %v1557_v5  ;;  %11167 = vmatprep.subr.mxu1 %v12463_v1  ;;  %v9804_v5 = vld [vmem:[%s15094_s5 + $0x90] sm:$0xff] }
 0xb68   :  { %11168 = vmatpush3.msra.mxu1 %v9814_v29 }
 0xb69   :  { %v1577_v7 = vadd.f32 %v9795_v60, %v1567_v6  ;;  %11169 = vmatprep.subr.mxu1 %v12463_v1  ;;  %v9812_v60 = vld [vmem:[%s15094_s5 + $0xd0] sm:$0xff]  ;;  %v9803_v6 = vld [vmem:[%s15094_s5 + $0x88] sm:$0xff] }
 0xb6a   :  { %11170 = vmatpush3.msra.mxu1 %v9813_v59 }
 0xb6b   :  { %11118 = vmatmul.mubr.f32.gmra.mxu1 %v1577_v7  ;;  %11171 = vmatprep.subr.mxu1 %v12463_v1 }
 0xb6c   :  { %11193 = vmatprep.mubr.msk.f32.mxu1 %vm12464_vm0, %v12463_v1  ;;  %11172 = vmatpush3.msra.mxu1 %v9812_v60 }
 0xb6d   :  { %11173 = vmatprep.subr.mxu1 %v12463_v1 }
 0xb6e   :  { %11174 = vmatpush3.msra.mxu1 %v9811_v61 }
 0xb6f   :  { %11175 = vmatprep.subr.mxu1 %v12463_v1 }
 0xb70   :  { %11176 = vmatpush3.msra.mxu1 %v9810_v62  ;;  %v13326_v62 = vld [vmem:[%s15091_s2 + $0x8] sm:$0xff] }
 0xb71   :  { %11177 = vmatprep.subr.mxu1 %v12463_v1 }
 0xc21   :  { %v1667_v11 = vpop.f32.mrf.mxu1 }
 0xc22   :  { %v1668_v12 = vadd.f32 %v9796_v46, %v1667_v11 }
 0xc23   :  { %v11113_v13 = vpop.f32.mrf.mxu1 }
 0xc24   :  { %v1681_v15 = vmax.f32 %v1668_v12, 0.0 }
 0xc25   :  { %v1672_v16 = vpop.f32.mrf.mxu1 }
 0xc26   :  { %v1673_v54 = vadd.f32 %v9796_v46, %v1672_v16  ;;  %11153 = vmatmul.mubr.f32.vlgmr.msra.gmra.mxu0 %v1681_v15 }
 0xc27   :  { %v11116_v20 = vpop.f32.mrf.mxu1  ;;  %11155 = vmatprep.mubr.msk.f32.mxu0 %vm12464_vm0, %v12463_v1 }
 0xc28   :  { %v1682_v21 = vmax.f32 %v1673_v54, 0.0  ;;  %v9799_v20 = vld [vmem:[%s15102_s13 + $0x1] ss:$0 sm:$0xff] }
 0xc2a   :  { %11156 = vmatmul.mubr.f32.gmra.mxu0 %v1682_v21 }
 0xc2b   :  { %v1677_v23 = vpop.f32.mrf.mxu1  ;;  %11158 = vmatprep.mubr.msk.f32.mxu0 %vm12464_vm0, %v12463_v1 }
 0xc2c   :  { %v1678_v17 = vadd.f32 %v9796_v46, %v1677_v23  ;;  %v9801_v23 = vld [vmem:[%s15103_s14 + $0x1] ss:$0 sm:$0xff] }
 0xc2d   :  { %v11119_v25 = vpop.f32.mrf.mxu1 }
 0xc2e   :  { %v1683_v27 = vmax.f32 %v1678_v17, 0.0 }
 0xc30   :  { %11159 = vmatmul.mubr.f32.gmra.mxu0 %v1683_v27 }
 0xc31   :  { %11208 = vmatprep.mubr.msk.f32.mxu0 %vm12464_vm0, %v12463_v1 }
 0xce6   :  { %v1766_v14 = vpop.f32.mrf.mxu0 }
 0xce7   :  { %v1780_v26 = vadd.f32 %v1766_v14, %v1575_v63  ;;  %v9809_v63 = vld [vmem:[%s15094_s5 + $0xb8] sm:$0xff] }
 0xce8   :  { %v11154_v28 = vpop.f32.mrf.mxu0  ;;  %11178 = vmatpush3.msra.mxu1 %v9809_v63 }
 0xce9   :  { %v1790_v30 = vadd.f32 %v9797_v24, %v1780_v26  ;;  %11179 = vmatprep.subr.mxu1 %v12463_v1 }
 0xcea   :  { %v1771_v31 = vpop.f32.mrf.mxu0  ;;  %11180 = vmatpush3.msra.mxu1 %v9808_v0 }
 0xceb   :  { %v1781_v19 = vadd.f32 %v1771_v31, %v1576_v3  ;;  %1793 = vadd.xlane.f32.xlu0 %v1790_v30  ;;  %11181 = vmatprep.subr.mxu1 %v12463_v1  ;;  %v9806_v3 = vld [vmem:[%s15094_s5 + $0xa0] sm:$0xff] }
 0xcec   :  { %v11157_v32 = vpop.f32.mrf.mxu0  ;;  %11182 = vmatpush3.msra.mxu1 %v9807_v2 }
 0xced   :  { %v1791_v33 = vadd.f32 %v9797_v24, %v1781_v19  ;;  %11183 = vmatprep.subr.mxu1 %v12463_v1 }
 0xcee   :  { %11184 = vmatpush3.msra.mxu1 %v9806_v3 }
 0xcef   :  { %1795 = vadd.xlane.f32.xlu1 %v1791_v33  ;;  %11185 = vmatprep.subr.mxu1 %v12463_v1 }
 0xcf0   :  { %v1776_v34 = vpop.f32.mrf.mxu0  ;;  %11186 = vmatpush3.msra.mxu1 %v9805_v4 }
 0xcf1   :  { %v1782_v35 = vadd.f32 %v1776_v34, %v1577_v7  ;;  %11187 = vmatprep.subr.mxu1 %v12463_v1  ;;  %v9802_v7 = vld [vmem:[%s15094_s5 + $0x80] sm:$0xff] }
 0xcf2   :  { %v11160_v36 = vpop.f32.mrf.mxu0  ;;  %11188 = vmatpush3.msra.mxu1 %v9804_v5  ;;  %v9819_v34 = vld [vmem:[%s15095_s6 + $0x1] ss:$0 sm:$0xff] }
 0xcf3   :  { %v1792_v37 = vadd.f32 %v9797_v24, %v1782_v35  ;;  %11189 = vmatprep.subr.mxu1 %v12463_v1 }
 0xcf4   :  { %11190 = vmatpush3.msra.mxu1 %v9803_v6 }
 0xcf5   :  { %v1797_v38 = vsel %vm343_vm4, %v1792_v37, 0.0  ;;  %11191 = vmatprep.subr.mxu1 %v12463_v1 }
 0xcf6   :  { %1798 = vadd.xlane.f32.xlu0 %v1797_v38  ;;  %11192 = vmatpush3.msra.mxu1 %v9802_v7  ;;  %v13333_v7 = vld [vmem:[%s15091_s2 + $0x10] sm:$0xf] }
 0xcf7   :  { %11243 = vmatprep.subr.mxu1 %v12463_v1 }
 0xd74   :  { %v1794_v41 = vpop.xlane.xlu0 %1793 }
 0xd75   :  { %v1800_v42 = vmul.f32 0.03125, %v1794_v41 }
 0xd77   :  { %v1803_v43 = vsub.f32 %v1790_v30, %v1800_v42 }
 0xd78   :  { %v1796_v44 = vpop.xlane.xlu1 %1795 }
 0xd79   :  { %v1801_v45 = vmul.f32 0.03125, %v1796_v44  ;;  %v13169_v47 = vmul.f32 %v12994_v8, %v1803_v43 }
 0xd7b   :  { %v1804_v48 = vsub.f32 %v1791_v33, %v1801_v45  ;;  %v1809_v49 = vmul.f32 %v13169_v47, %v13169_v47 }
 0xd7d   :  { %1812 = vadd.xlane.f32.xlu1 %v1809_v49  ;;  %v13174_v50 = vmul.f32 %v12994_v8, %v1804_v48 }
 0xd7f   :  { %v1799_v51 = vpop.xlane.xlu0 %1798  ;;  %v1810_v52 = vmul.f32 %v13174_v50, %v13174_v50 }
 0xd80   :  { %v1802_v53 = vmul.f32 0.03125, %v1799_v51 }
 0xd81   :  { %1814 = vadd.xlane.f32.xlu0 %v1810_v52 }
 0xd82   :  { %v1805_v55 = vsub.f32 %v1792_v37, %v1802_v53  ;;  %v13319_v53 = vld [vmem:[%s15091_s2] sm:$0xff]  ;;  %s15121_s2 = smov 48  }
 0xd84   :  { %v13179_v56 = vmul.f32 %v12994_v8, %v1805_v55 }
 0xd86   :  { %v1811_v57 = vmul.f32 %v13179_v56, %v13179_v56 }
 0xd88   :  { %v1816_v58 = vsel %vm343_vm4, %v1811_v57, 0.0 }
 0xd89   :  { %1817 = vadd.xlane.f32.xlu1 %v1816_v58 }
 0xe06   :  { %v1813_v9 = vpop.xlane.xlu1 %1812 }
 0xe07   :  { %v1819_v40 = vmul.f32 0.03125, %v1813_v9 }
 0xe09   :  { %v1822_v10 = vadd.f32 1e-05, %v1819_v40 }
 0xe0a   :  { %v1815_v46 = vpop.xlane.xlu0 %1814 }
 0xe0b   :  { %12216 = vrsqrt.f32 %v1822_v10  ;;  %v1820_v11 = vmul.f32 0.03125, %v1815_v46 }
 0xe0d   :  { %v1823_v12 = vadd.f32 1e-05, %v1820_v11 }
 0xe0f   :  { %12218 = vrsqrt.f32 %v1823_v12 }
 0xe12   :  { %v1818_v13 = vpop.xlane.xlu1 %1817 }
 0xe13   :  { %v1821_v15 = vmul.f32 0.03125, %v1818_v13 }
 0xe15   :  { %v1824_v16 = vadd.f32 1e-05, %v1821_v15 }
 0xe17   :  { %12220 = vrsqrt.f32 %v1824_v16 }
 0xe18   :  { %v12217_v54 = vpop.eup %12216 }
 0xe19   :  { %v1828_v21 = vmul.f32 %v12217_v54, %v13169_v47 }
 0xe1b   :  { %v1839_v17 = vmul.f32 %v9799_v20, %v1828_v21 }
 0xe1c   :  { %v12219_v25 = vpop.eup %12218 }
 0xe1d   :  { %v13239_v27 = vadd.f32 %v9801_v23, %v1839_v17  ;;  %v1829_v14 = vmul.f32 %v12219_v25, %v13174_v50 }
 0xe1f   :  { %11194 = vmatmul.mubr.f32.vlgmr.msra.gmra.mxu1 %v13239_v27  ;;  %v1840_v24 = vmul.f32 %v9799_v20, %v1829_v14 }
 0xe20   :  { %11196 = vmatprep.mubr.msk.f32.mxu1 %vm12464_vm0, %v12463_v1 }
 0xe21   :  { %v13245_v26 = vadd.f32 %v9801_v23, %v1840_v24 }
 0xe23   :  { %11197 = vmatmul.mubr.f32.gmra.mxu1 %v13245_v26 }
 0xe24   :  { %v12221_v28 = vpop.eup %12220  ;;  %11199 = vmatprep.mubr.msk.f32.mxu1 %vm12464_vm0, %v12463_v1 }
 0xe25   :  { %v1830_v30 = vmul.f32 %v12221_v28, %v13179_v56 }
 0xe27   :  { %v1841_v31 = vmul.f32 %v9799_v20, %v1830_v30 }
 0xe29   :  { %v13251_v19 = vadd.f32 %v9801_v23, %v1841_v31 }
 0xe2b   :  { %11200 = vmatmul.mubr.f32.gmra.mxu1 %v13251_v19 }
 0xe2c   :  { %11249 = vmatprep.mubr.msk.f32.mxu1 %vm12464_vm0, %v12463_v1 }
 0xedf   :  { %v1944_v32 = vpop.f32.mrf.mxu1 }
 0xee0   :  { %v13263_v38 = vadd.f32 %v9819_v34, %v1944_v32 }
 0xee1   :  { %v11195_v33 = vpop.f32.mrf.mxu1 }
 0xee3   :  { %v1949_v35 = vpop.f32.mrf.mxu1 }
 0xee4   :  { %v13259_v36 = vadd.f32 %v9819_v34, %v1949_v35 }
 0xee5   :  { %v11198_v37 = vpop.f32.mrf.mxu1 }
 0xee6   :  { %1979 = vrot.lane.b32.xlu1 %v13259_v36, %s12465_s28 }
 0xeea   :  { %1977 = vrot.lane.b32.xlu1 %v13263_v38, %s12465_s28 }
 0xeeb   :  { %v1954_v22 = vpop.f32.mrf.mxu1 }
 0xeec   :  { %v13267_v18 = vadd.f32 %v9819_v34, %v1954_v22 }
 0xeed   :  { %v11201_v39 = vpop.f32.mrf.mxu1 }
 0xeee   :  { %2313 = vrot.lane.b32.xlu1 %v13259_v36, %s12466_s0  ;;  %1981 = vrot.lane.b32.xlu0 %v13267_v18, %s12465_s28 }
 0xef2   :  { %2305 = vrot.lane.b32.xlu1 %v13263_v38, %s12467_s29  ;;  %2315 = vrot.lane.b32.xlu0 %v13267_v18, %s12466_s0 }
 0xef6   :  { %2309 = vrot.lane.b32.xlu1 %v13267_v18, %s12467_s29  ;;  %2311 = vrot.lane.b32.xlu0 %v13263_v38, %s12466_s0 }
 0xefa   :  { %2307 = vrot.lane.b32.xlu0 %v13259_v36, %s12467_s29 }
 0xf58   :  { %v1980_v29 = vpop.permute.xlu1 %1979 }
 0xf5c   :  { %v1978_v42 = vpop.permute.xlu1 %1977 }
 0xf60   :  { %v1982_v41 = vpop.permute.xlu0 %1981  ;;  %v2314_v44 = vpop.permute.xlu1 %2313 }
 0xf61   :  { %11203 = vmatpush3.xpose.msk.msra.mxu0 %vm192_vm1, %v1982_v41 }
 0xf62   :  { %11204 = vmatprep.subr.mxu0 %v12463_v1 }
 0xf64   :  { %v2316_v43 = vpop.permute.xlu0 %2315  ;;  %v2306_v47 = vpop.permute.xlu1 %2305 }
 0xf65   :  { %11205 = vmatpush3.xpose.msk.msra.mxu0 %vm192_vm1, %v1980_v29  ;;  %11244 = vmatpush3.xpose.msk.msra.mxu1 %vm192_vm1, %v2316_v43 }
 0xf66   :  { %11245 = vmatprep.subr.mxu1 %v12463_v1  ;;  %11206 = vmatprep.subr.mxu0 %v12463_v1 }
 0xf68   :  { %v2312_v45 = vpop.permute.xlu0 %2311  ;;  %v2310_v49 = vpop.permute.xlu1 %2309 }
 0xf69   :  { %11207 = vmatpush3.xpose.msk.msra.mxu0 %vm192_vm1, %v1978_v42  ;;  %11246 = vmatpush3.xpose.msk.msra.mxu1 %vm192_vm1, %v2314_v44 }
 0xf6a   :  { %11247 = vmatprep.subr.mxu1 %v12463_v1  ;;  %11217 = vmatprep.subr.mxu0 %v12463_v1 }
 0xf6c   :  { %11209 = vmatmul.mubr.msk.f32.vlgmr.msra.gmra.mxu0 %vm192_vm1, %v13263_v38  ;;  %v2308_v48 = vpop.permute.xlu0 %2307 }
 0xf6d   :  { %11248 = vmatpush3.xpose.msk.msra.mxu1 %vm192_vm1, %v2312_v45  ;;  %11211 = vmatprep.mubr.msk.f32.mxu0 %vm12464_vm0, %v12463_v1 }
 0xf6e   :  { %11273 = vmatprep.subr.mxu1 %v12463_v1 }
 0xf70   :  { %11212 = vmatmul.mubr.msk.f32.gmra.mxu0 %vm192_vm1, %v13259_v36  ;;  %11250 = vmatmul.mubr.msk.f32.vlgmr.msra.gmra.mxu1 %vm192_vm1, %v2306_v47 }
 0xf71   :  { %11214 = vmatprep.mubr.msk.f32.mxu0 %vm12464_vm0, %v12463_v1  ;;  %11252 = vmatprep.mubr.msk.f32.mxu1 %vm12464_vm0, %v12463_v1 }
 0xf74   :  { %11215 = vmatmul.mubr.msk.f32.gmra.mxu0 %vm192_vm1, %v13267_v18  ;;  %11253 = vmatmul.mubr.msk.f32.gmra.mxu1 %vm192_vm1, %v2308_v48 }
 0xf75   :  { %11255 = vmatprep.mubr.msk.f32.mxu1 %vm12464_vm0, %v12463_v1  ;;  %11223 = vmatprep.mubr.msk.f32.mxu0 %vm12464_vm0, %v12463_v1 }
 0xf78   :  { %11256 = vmatmul.mubr.msk.f32.gmra.mxu1 %vm192_vm1, %v2310_v49 }
 0xf79   :  { %11275 = vmatprep.mubr.msk.f32.mxu1 %vm12464_vm0, %v12463_v1 }
0x102c   :  { %v2061_v50 = vpop.f32.mrf.mxu0 }
0x102d   :  { %v2075_v51 = vmul.f32 0.35355338, %v2061_v50 }
0x102e   :  { %v11210_v52 = vpop.f32.mrf.mxu0 }
0x102f   :  { %v2078_v55 = vadd.f32 %v13319_v53, %v2075_v51 }
0x1030   :  { %v2066_v56 = vpop.f32.mrf.mxu0  ;;  %v2395_v57 = vpop.f32.mrf.mxu1 }
0x1031   :  { %v2076_v58 = vmul.f32 0.35355338, %v2066_v56  ;;  %v2081_v59 = vsel %vm291_vm2, %v2078_v55, -inf  ;;  %v2409_v32 = vmul.f32 0.35355338, %v2395_v57 }
0x1032   :  { %2082 = vmax.xlane.f32.xlu0 %v2081_v59  ;;  %v11213_v60 = vpop.f32.mrf.mxu0  ;;  %v11251_v61 = vpop.f32.mrf.mxu1 }
0x1033   :  { %v2079_v63 = vadd.f32 %v13326_v62, %v2076_v58  ;;  %v2412_v34 = vadd.f32 %v13319_v53, %v2409_v32 }
0x1034   :  { %v2071_v0 = vpop.f32.mrf.mxu0  ;;  %v2400_v2 = vpop.f32.mrf.mxu1 }
0x1035   :  { %v2077_v3 = vmul.f32 0.35355338, %v2071_v0  ;;  %v2084_v4 = vsel %vm291_vm2, %v2079_v63, -inf  ;;  %v2410_v33 = vmul.f32 0.35355338, %v2400_v2  ;;  %v2415_v37 = vsel %vm291_vm2, %v2412_v34, -inf }
0x1036   :  { %2085 = vmax.xlane.f32.xlu1 %v2084_v4  ;;  %v11216_v5 = vpop.f32.mrf.mxu0  ;;  %v11254_v6 = vpop.f32.mrf.mxu1  ;;  %v9820_v4 = vld [vmem:[%s15096_s7 + $0x20] sm:$0xff] }
0x1037   :  { %v2080_v9 = vadd.f32 %v13333_v7, %v2077_v3  ;;  %v2413_v22 = vadd.f32 %v13326_v62, %v2410_v33 }
0x1038   :  { %v2405_v40 = vpop.f32.mrf.mxu1 }
0x1039   :  { %v2087_v10 = vsel %vm298_vm3, %v2080_v9, -inf  ;;  %v2411_v35 = vmul.f32 0.35355338, %v2405_v40  ;;  %v2418_v39 = vsel %vm291_vm2, %v2413_v22, -inf }
0x103a   :  { %2088 = vmax.xlane.f32.xlu0 %v2087_v10  ;;  %v11257_v46 = vpop.f32.mrf.mxu1 }
0x103b   :  { %v2414_v29 = vadd.f32 %v13333_v7, %v2411_v35 }
0x103d   :  { %v2421_v41 = vsel %vm298_vm3, %v2414_v29, -inf }
0x1047   :  { %2118 = vrot.lane.b32.xlu1 %v13267_v18, %s12468_s21 }
0x10bb   :  { %v2083_v11 = vpop.xlane.xlu0 %2082 }
0x10bc   :  { %v2090_v12 = vsub.f32 %v2078_v55, %v2083_v11 }
0x10be   :  { %v2093_v13 = vmul.f32 1.442695, %v2090_v12 }
0x10bf   :  { %v2086_v15 = vpop.xlane.xlu1 %2085 }
0x10c0   :  { %12222 = vpow2.f32 %v2093_v13  ;;  %v2091_v16 = vsub.f32 %v2079_v63, %v2086_v15 }
0x10c2   :  { %v2095_v54 = vmul.f32 1.442695, %v2091_v16 }
0x10c3   :  { %v2089_v20 = vpop.xlane.xlu0 %2088  ;;  %v2119_v21 = vpop.permute.xlu1 %2118 }
0x10c4   :  { %12224 = vpow2.f32 %v2095_v54  ;;  %v2092_v23 = vsub.f32 %v2080_v9, %v2089_v20  ;;  %11218 = vmatpush3.msk.msra.mxu0 %vm343_vm4, %v2119_v21 }
0x10c5   :  { %11219 = vmatprep.subr.mxu0 %v12463_v1 }
0x10c6   :  { %v2097_v17 = vmul.f32 1.442695, %v2092_v23 }
0x10c8   :  { %12226 = vpow2.f32 %v2097_v17 }
0x10cd   :  { %v12223_v25 = vpop.eup %12222 }
0x10ce   :  { %v2099_v14 = vsel %vm291_vm2, %v12223_v25, 0.0 }
0x10cf   :  { %2100 = vadd.xlane.f32.xlu0 %v2099_v14 }
0x10d1   :  { %v12225_v24 = vpop.eup %12224 }
0x10d2   :  { %v2102_v28 = vsel %vm291_vm2, %v12225_v24, 0.0 }
0x10d3   :  { %2103 = vadd.xlane.f32.xlu1 %v2102_v28 }
0x10d5   :  { %v12227_v30 = vpop.eup %12226 }
0x10d6   :  { %v2105_v31 = vsel %vm298_vm3, %v12227_v30, 0.0 }
0x10d7   :  { %2106 = vadd.xlane.f32.xlu0 %v2105_v31 }
0x10e4   :  { %2114 = vrot.lane.b32.xlu1 %v13263_v38, %s12468_s21 }
0x10ed   :  { %2116 = vrot.lane.b32.xlu0 %v13259_v36, %s12468_s21 }
0x1108   :  { %2416 = vmax.xlane.f32.xlu1 %v2415_v37 }
0x110c   :  { %2419 = vmax.xlane.f32.xlu0 %v2418_v39 }
0x1110   :  { %2422 = vmax.xlane.f32.xlu0 %v2421_v41  ;;  %v9825_v41 = vld [vmem:[%s15097_s8 + $0x1] ss:$0 sm:$0xff] }
0x1158   :  { %v2101_v42 = vpop.xlane.xlu0 %2100 }
0x1159   :  { %12228 = vrcp.f32 %v2101_v42  ;;  %v1971_v42 = vadd.f32 %v9825_v41, %v13239_v27 }
0x115c   :  { %v2104_v43 = vpop.xlane.xlu1 %2103 }
0x115d   :  { %12230 = vrcp.f32 %v2104_v43 }
0x1160   :  { %v2107_v44 = vpop.xlane.xlu0 %2106  ;;  %v2115_v48 = vpop.permute.xlu1 %2114 }
0x1161   :  { %12232 = vrcp.f32 %v2107_v44 }
0x1164   :  { %v2117_v45 = vpop.permute.xlu0 %2116 }
0x1165   :  { %11220 = vmatpush3.msra.mxu0 %v2117_v45 }
0x1166   :  { %v12229_v47 = vpop.eup %12228  ;;  %11221 = vmatprep.subr.mxu0 %v12463_v1 }
0x1167   :  { %v2109_v49 = vmul.f32 %v12229_v47, %v12223_v25  ;;  %11222 = vmatpush3.msra.mxu0 %v2115_v48  ;;  %v1972_v47 = vadd.f32 %v9825_v41, %v13245_v26 }
0x1168   :  { %11232 = vmatprep.subr.mxu0 %v12463_v1 }
0x1169   :  { %11224 = vmatmul.mubr.msk.f32.vlgmr.msra.gmra.mxu0 %vm291_vm2, %v2109_v49 }
0x116a   :  { %v12231_v50 = vpop.eup %12230  ;;  %11226 = vmatprep.mubr.msk.f32.mxu0 %vm12464_vm0, %v12463_v1  ;;  %11233 = vmatpush3.msra.mxu0 %v9820_v4 }
0x116b   :  { %v2111_v51 = vmul.f32 %v12231_v50, %v12225_v24  ;;  %11258 = vmatprep.subr.mxu0 %v12463_v1 }
0x116d   :  { %11227 = vmatmul.mubr.msk.f32.gmra.mxu0 %vm291_vm2, %v2111_v51  ;;  %v1973_v51 = vadd.f32 %v9825_v41, %v13251_v19 }
0x116e   :  { %v12233_v52 = vpop.eup %12232  ;;  %11229 = vmatprep.mubr.msk.f32.mxu0 %vm12464_vm0, %v12463_v1 }
0x116f   :  { %v2113_v55 = vmul.f32 %v12233_v52, %v12227_v30 }
0x1171   :  { %11230 = vmatmul.mubr.msk.f32.gmra.mxu0 %vm291_vm2, %v2113_v55 }
0x1172   :  { %11234 = vmatprep.mubr.msk.f32.mxu0 %vm12464_vm0, %v12463_v1 }
0x1191   :  { %v2417_v56 = vpop.xlane.xlu1 %2416 }
0x1192   :  { %v2424_v57 = vsub.f32 %v2412_v34, %v2417_v56 }
0x1194   :  { %v2427_v58 = vmul.f32 1.442695, %v2424_v57 }
0x1195   :  { %v2420_v59 = vpop.xlane.xlu0 %2419 }
0x1196   :  { %12234 = vpow2.f32 %v2427_v58  ;;  %v2425_v60 = vsub.f32 %v2413_v22, %v2420_v59  ;;  %v9821_v22 = vld [vmem:[%s15096_s7 + $0x28] sm:$0xff] }
0x1197   :  { %11274 = vmatpush3.msra.mxu1 %v9821_v22 }
0x1198   :  { %v2429_v61 = vmul.f32 1.442695, %v2425_v60  ;;  %11299 = vmatprep.subr.mxu1 %v12463_v1 }
0x1199   :  { %v2423_v5 = vpop.xlane.xlu0 %2422 }
0x119a   :  { %12236 = vpow2.f32 %v2429_v61  ;;  %v2426_v6 = vsub.f32 %v2414_v29, %v2423_v5 }
0x119c   :  { %v2431_v9 = vmul.f32 1.442695, %v2426_v6 }
0x119e   :  { %12238 = vpow2.f32 %v2431_v9 }
0x11a3   :  { %v12235_v63 = vpop.eup %12234 }
0x11a4   :  { %v2433_v0 = vsel %vm291_vm2, %v12235_v63, 0.0 }
0x11a5   :  { %2434 = vadd.xlane.f32.xlu1 %v2433_v0 }
0x11a7   :  { %v12237_v2 = vpop.eup %12236 }
0x11a8   :  { %v2436_v3 = vsel %vm291_vm2, %v12237_v2, 0.0 }
0x11a9   :  { %2437 = vadd.xlane.f32.xlu0 %v2436_v3 }
0x11ab   :  { %v12239_v40 = vpop.eup %12238 }
0x11ac   :  { %v2439_v10 = vsel %vm298_vm3, %v12239_v40, 0.0 }
0x11b6   :  { %2450 = vrot.lane.b32.xlu1 %v13259_v36, %s15115_s22 }
0x11ba   :  { %2448 = vrot.lane.b32.xlu1 %v13263_v38, %s15115_s22 }
0x11be   :  { %2647 = vrot.lane.b32.xlu1 %v13259_v36, %s12470_s25 }
0x11bf   :  { %2452 = vrot.lane.b32.xlu0 %v13267_v18, %s15115_s22 }
0x11c3   :  { %2649 = vrot.lane.b32.xlu0 %v13267_v18, %s12470_s25 }
0x11c7   :  { %2645 = vrot.lane.b32.xlu0 %v13263_v38, %s12470_s25 }
0x11cb   :  { %2641 = vrot.lane.b32.xlu0 %v13259_v36, %s15113_s26 }
0x11e2   :  { %2440 = vadd.xlane.f32.xlu1 %v2439_v10 }
0x11f3   :  { %2639 = vrot.lane.b32.xlu1 %v13263_v38, %s15113_s26 }
0x11f7   :  { %2643 = vrot.lane.b32.xlu1 %v13267_v18, %s15113_s26  ;;  %s12476_s26 = smov [#allocation2]  }
0x1229   :  { %v2199_v46 = vpop.f32.mrf.mxu0 }
0x122a   :  { %11235 = vmatmul.mubr.msk.f32.vlgmr.msra.gmra.mxu0 %vm192_vm1, %v2199_v46 }
0x122b   :  { %v11225_v11 = vpop.f32.mrf.mxu0  ;;  %11237 = vmatprep.mubr.msk.f32.mxu0 %vm12464_vm0, %v12463_v1 }
0x122d   :  { %v2204_v12 = vpop.f32.mrf.mxu0 }
0x122e   :  { %11238 = vmatmul.mubr.msk.f32.gmra.mxu0 %vm192_vm1, %v2204_v12  ;;  %v2435_v13 = vpop.xlane.xlu1 %2434 }
0x122f   :  { %12240 = vrcp.f32 %v2435_v13  ;;  %v11228_v15 = vpop.f32.mrf.mxu0  ;;  %11240 = vmatprep.mubr.msk.f32.mxu0 %vm12464_vm0, %v12463_v1 }
0x1231   :  { %v2209_v16 = vpop.f32.mrf.mxu0 }
0x1232   :  { %v2438_v54 = vpop.xlane.xlu0 %2437  ;;  %11241 = vmatmul.mubr.msk.f32.gmra.mxu0 %vm192_vm1, %v2209_v16  ;;  %v2451_v21 = vpop.permute.xlu1 %2450 }
0x1233   :  { %12242 = vrcp.f32 %v2438_v54  ;;  %v11231_v20 = vpop.f32.mrf.mxu0  ;;  %11264 = vmatprep.mubr.msk.f32.mxu0 %vm12464_vm0, %v12463_v1 }
0x1236   :  { %v2453_v23 = vpop.permute.xlu0 %2452  ;;  %v2449_v17 = vpop.permute.xlu1 %2448 }
0x1237   :  { %11259 = vmatpush3.msk.msra.mxu0 %vm343_vm4, %v2453_v23 }
0x1238   :  { %11260 = vmatprep.subr.mxu0 %v12463_v1 }
0x1239   :  { %11261 = vmatpush3.msra.mxu0 %v2451_v21 }
0x123a   :  { %11262 = vmatprep.subr.mxu0 %v12463_v1  ;;  %v2650_v24 = vpop.permute.xlu0 %2649  ;;  %v2648_v31 = vpop.permute.xlu1 %2647 }
0x123b   :  { %11263 = vmatpush3.msra.mxu0 %v2449_v17 }
0x123c   :  { %v12241_v25 = vpop.eup %12240  ;;  %11284 = vmatprep.subr.mxu0 %v12463_v1 }
0x123d   :  { %v2443_v14 = vmul.f32 %v12241_v25, %v12235_v63 }
0x123e   :  { %v2646_v32 = vpop.permute.xlu0 %2645 }
0x123f   :  { %11265 = vmatmul.mubr.msk.f32.vlgmr.msra.gmra.mxu0 %vm291_vm2, %v2443_v14 }
0x1240   :  { %v12243_v28 = vpop.eup %12242  ;;  %11285 = vmatpush3.xpose.msk.msra.mxu0 %vm192_vm1, %v2650_v24  ;;  %11267 = vmatprep.mubr.msk.f32.mxu0 %vm12464_vm0, %v12463_v1 }
0x1241   :  { %11286 = vmatprep.subr.mxu0 %v12463_v1  ;;  %v2445_v30 = vmul.f32 %v12243_v28, %v12237_v2 }
0x1242   :  { %v2642_v39 = vpop.permute.xlu0 %2641 }
0x1243   :  { %11268 = vmatmul.mubr.msk.f32.gmra.mxu0 %vm291_vm2, %v2445_v30 }
0x1244   :  { %11287 = vmatpush3.xpose.msk.msra.mxu0 %vm192_vm1, %v2648_v31  ;;  %11270 = vmatprep.mubr.msk.f32.mxu0 %vm12464_vm0, %v12463_v1 }
0x1245   :  { %11288 = vmatprep.subr.mxu0 %v12463_v1 }
0x1248   :  { %11289 = vmatpush3.xpose.msk.msra.mxu0 %vm192_vm1, %v2646_v32 }
0x1249   :  { %11314 = vmatprep.subr.mxu0 %v12463_v1 }
0x126b   :  { %v2441_v33 = vpop.xlane.xlu1 %2440 }
0x126c   :  { %12244 = vrcp.f32 %v2441_v33 }
0x126f   :  { %v2640_v37 = vpop.permute.xlu1 %2639 }
0x1273   :  { %v2644_v29 = vpop.permute.xlu1 %2643 }
0x1279   :  { %v12245_v34 = vpop.eup %12244 }
0x127a   :  { %v2447_v35 = vmul.f32 %v12245_v34, %v12239_v40 }
0x127c   :  { %11271 = vmatmul.mubr.msk.f32.gmra.mxu0 %vm291_vm2, %v2447_v35 }
0x127d   :  { %11290 = vmatprep.mubr.msk.f32.mxu0 %vm12464_vm0, %v12463_v1 }
0x1280   :  { %11291 = vmatmul.mubr.msk.f32.vlgmr.msra.gmra.mxu0 %vm192_vm1, %v2640_v37 }
0x1281   :  { %11293 = vmatprep.mubr.msk.f32.mxu0 %vm12464_vm0, %v12463_v1 }
0x1284   :  { %11294 = vmatmul.mubr.msk.f32.gmra.mxu0 %vm192_vm1, %v2642_v39 }
0x1285   :  { %11296 = vmatprep.mubr.msk.f32.mxu0 %vm12464_vm0, %v12463_v1 }
0x1288   :  { %11297 = vmatmul.mubr.msk.f32.gmra.mxu0 %vm192_vm1, %v2644_v29 }
0x1289   :  { %11316 = vmatprep.mubr.msk.f32.mxu0 %vm12464_vm0, %v12463_v1 }
0x12ea   :  { %v2288_v43 = vpop.f32.mrf.mxu0 }
0x12eb   :  { %v2302_v44 = vadd.f32 %v2288_v43, %v1971_v42 }
0x12ec   :  { %v11236_v45 = vpop.f32.mrf.mxu0 }
0x12ee   :  { %v2293_v48 = vpop.f32.mrf.mxu0 }
0x12ef   :  { %v2303_v49 = vadd.f32 %v2293_v48, %v1972_v47 }
0x12f0   :  { %v11239_v50 = vpop.f32.mrf.mxu0 }
0x12f2   :  { %v2298_v52 = vpop.f32.mrf.mxu0 }
0x12f3   :  { %v13437_v55 = vadd.f32 %v2298_v52, %v1973_v51 }
0x12f4   :  { %v11242_v56 = vpop.f32.mrf.mxu0 }
0x12ff   :  { %v2533_v57 = vpop.f32.mrf.mxu0 }
0x1300   :  { %11276 = vmatmul.mubr.msk.f32.vlgmr.msra.gmra.mxu1 %vm192_vm1, %v2533_v57 }
0x1301   :  { %v11266_v58 = vpop.f32.mrf.mxu0  ;;  %11278 = vmatprep.mubr.msk.f32.mxu1 %vm12464_vm0, %v12463_v1 }
0x1303   :  { %v2538_v27 = vpop.f32.mrf.mxu0 }
0x1304   :  { %11279 = vmatmul.mubr.msk.f32.gmra.mxu1 %vm192_vm1, %v2538_v27 }
0x1305   :  { %v11269_v26 = vpop.f32.mrf.mxu0  ;;  %11281 = vmatprep.mubr.msk.f32.mxu1 %vm12464_vm0, %v12463_v1 }
0x133c   :  { %v2543_v59 = vpop.f32.mrf.mxu0 }
0x133d   :  { %11282 = vmatmul.mubr.msk.f32.gmra.mxu1 %vm192_vm1, %v2543_v59 }
0x133e   :  { %v11272_v19 = vpop.f32.mrf.mxu0  ;;  %11305 = vmatprep.mubr.msk.f32.mxu1 %vm12464_vm0, %v12463_v1 }
0x1340   :  { %v2729_v60 = vpop.f32.mrf.mxu0 }
0x1341   :  { %v2743_v61 = vmul.f32 0.35355338, %v2729_v60 }
0x1342   :  { %v11292_v63 = vpop.f32.mrf.mxu0 }
0x1343   :  { %v2746_v0 = vadd.f32 %v13319_v53, %v2743_v61  ;;  %v9822_v61 = vld [vmem:[%s15096_s7 + $0x30] sm:$0xff] }
0x1344   :  { %v2734_v2 = vpop.f32.mrf.mxu0  ;;  %11315 = vmatpush3.msra.mxu0 %v9822_v61 }
0x1345   :  { %v2744_v3 = vmul.f32 0.35355338, %v2734_v2  ;;  %v2749_v4 = vsel %vm291_vm2, %v2746_v0, -inf  ;;  %11340 = vmatprep.subr.mxu0 %v12463_v1 }
0x1346   :  { %2750 = vmax.xlane.f32.xlu0 %v2749_v4  ;;  %v11295_v5 = vpop.f32.mrf.mxu0 }
0x1347   :  { %v2747_v6 = vadd.f32 %v13326_v62, %v2744_v3 }
0x1348   :  { %v2739_v9 = vpop.f32.mrf.mxu0 }
0x1349   :  { %v2745_v40 = vmul.f32 0.35355338, %v2739_v9  ;;  %v2752_v10 = vsel %vm291_vm2, %v2747_v6, -inf }
0x134a   :  { %2753 = vmax.xlane.f32.xlu1 %v2752_v10  ;;  %v11298_v46 = vpop.f32.mrf.mxu0 }
0x134b   :  { %v2748_v11 = vadd.f32 %v13333_v7, %v2745_v40 }
0x134d   :  { %v2755_v12 = vsel %vm298_vm3, %v2748_v11, -inf }
0x134e   :  { %2756 = vmax.xlane.f32.xlu0 %v2755_v12 }
0x135b   :  { %2786 = vrot.lane.b32.xlu1 %v13267_v18, %s15111_s16 }
0x135f   :  { %2782 = vrot.lane.b32.xlu1 %v13263_v38, %s15111_s16 }
0x1363   :  { %2983 = vrot.lane.b32.xlu1 %v13267_v18, %s15117_s20 }
0x1364   :  { %2784 = vrot.lane.b32.xlu0 %v13259_v36, %s15111_s16  ;;  %s15122_s16 = smov 56  }
0x13c0   :  { %v2622_v13 = vpop.f32.mrf.mxu1 }
0x13c1   :  { %v13462_v15 = vadd.f32 %v2622_v13, %v2302_v44 }
0x13c2   :  { %v11277_v16 = vpop.f32.mrf.mxu1 }
0x13c4   :  { %v2627_v54 = vpop.f32.mrf.mxu1 }
0x13c5   :  { %v13464_v20 = vadd.f32 %v2627_v54, %v2303_v49 }
0x13c6   :  { %v11280_v21 = vpop.f32.mrf.mxu1 }
0x13cf   :  { %v2751_v23 = vpop.xlane.xlu0 %2750 }
0x13d0   :  { %v2758_v17 = vsub.f32 %v2746_v0, %v2751_v23 }
0x13d2   :  { %v2761_v25 = vmul.f32 1.442695, %v2758_v17 }
0x13d3   :  { %v2754_v14 = vpop.xlane.xlu1 %2753 }
0x13d4   :  { %12246 = vpow2.f32 %v2761_v25  ;;  %v2759_v24 = vsub.f32 %v2747_v6, %v2754_v14 }
0x13d6   :  { %v2763_v28 = vmul.f32 1.442695, %v2759_v24 }
0x13d7   :  { %v2757_v30 = vpop.xlane.xlu0 %2756  ;;  %v2787_v31 = vpop.permute.xlu1 %2786 }
0x13d8   :  { %12248 = vpow2.f32 %v2763_v28  ;;  %v2760_v32 = vsub.f32 %v2748_v11, %v2757_v30  ;;  %11300 = vmatpush3.msk.msra.mxu1 %vm343_vm4, %v2787_v31 }
0x13d9   :  { %11301 = vmatprep.subr.mxu1 %v12463_v1 }
0x13da   :  { %v2765_v33 = vmul.f32 1.442695, %v2760_v32 }
0x13db   :  { %v2785_v34 = vpop.permute.xlu0 %2784  ;;  %v2783_v35 = vpop.permute.xlu1 %2782 }
0x13dc   :  { %12250 = vpow2.f32 %v2765_v33  ;;  %11302 = vmatpush3.msra.mxu1 %v2785_v34 }
0x13dd   :  { %11303 = vmatprep.subr.mxu1 %v12463_v1 }
0x13de   :  { %11304 = vmatpush3.msra.mxu1 %v2783_v35 }
0x13df   :  { %11325 = vmatprep.subr.mxu1 %v12463_v1  ;;  %v2984_v47 = vpop.permute.xlu1 %2983 }
0x13e1   :  { %v12247_v37 = vpop.eup %12246 }
0x13e2   :  { %v2767_v22 = vsel %vm291_vm2, %v12247_v37, 0.0 }
0x13e3   :  { %2768 = vadd.xlane.f32.xlu0 %v2767_v22 }
0x13e5   :  { %v12249_v39 = vpop.eup %12248 }
0x13e6   :  { %v2770_v29 = vsel %vm291_vm2, %v12249_v39, 0.0 }
0x13e7   :  { %2771 = vadd.xlane.f32.xlu1 %v2770_v29 }
0x13e9   :  { %v12251_v41 = vpop.eup %12250 }
0x13ea   :  { %v2773_v42 = vsel %vm298_vm3, %v12251_v41, 0.0 }
0x13eb   :  { %2774 = vadd.xlane.f32.xlu0 %v2773_v42 }
0x13f8   :  { %2979 = vrot.lane.b32.xlu1 %v13263_v38, %s15117_s20 }
0x13fc   :  { %2975 = vrot.lane.b32.xlu1 %v13259_v36, %s15118_s27 }
0x13fd   :  { %v2632_v43 = vpop.f32.mrf.mxu1 }
0x13fe   :  { %v13478_v44 = vadd.f32 %v2632_v43, %v13437_v55 }
0x13ff   :  { %v11283_v45 = vpop.f32.mrf.mxu1 }
0x1401   :  { %2981 = vrot.lane.b32.xlu0 %v13259_v36, %s15117_s20 }
0x1405   :  { %2973 = vrot.lane.b32.xlu0 %v13263_v38, %s15118_s27 }
0x1409   :  { %2977 = vrot.lane.b32.xlu0 %v13267_v18, %s15118_s27 }
0x146c   :  { %v2769_v48 = vpop.xlane.xlu0 %2768 }
0x146d   :  { %12252 = vrcp.f32 %v2769_v48 }
0x1470   :  { %v2772_v49 = vpop.xlane.xlu1 %2771 }
0x1471   :  { %12254 = vrcp.f32 %v2772_v49 }
0x1474   :  { %v2775_v50 = vpop.xlane.xlu0 %2774  ;;  %v2980_v26 = vpop.permute.xlu1 %2979 }
0x1475   :  { %12256 = vrcp.f32 %v2775_v50 }
0x1478   :  { %v2982_v57 = vpop.permute.xlu0 %2981  ;;  %v2976_v19 = vpop.permute.xlu1 %2975 }
0x147a   :  { %v12253_v51 = vpop.eup %12252 }
0x147b   :  { %v2777_v52 = vmul.f32 %v12253_v51, %v12247_v37 }
0x147c   :  { %v2974_v59 = vpop.permute.xlu0 %2973 }
0x147d   :  { %11306 = vmatmul.mubr.msk.f32.vlgmr.msra.gmra.mxu1 %vm291_vm2, %v2777_v52  ;;  %v9823_v52 = vld [vmem:[%s15096_s7 + $0x38] sm:$0xff] }
0x147e   :  { %v12255_v55 = vpop.eup %12254  ;;  %11326 = vmatpush3.xpose.msk.msra.mxu1 %vm192_vm1, %v2984_v47  ;;  %11308 = vmatprep.mubr.msk.f32.mxu1 %vm12464_vm0, %v12463_v1 }
0x147f   :  { %11327 = vmatprep.subr.mxu1 %v12463_v1  ;;  %v2779_v56 = vmul.f32 %v12255_v55, %v12249_v39 }
0x1480   :  { %v2978_v60 = vpop.permute.xlu0 %2977 }
0x1481   :  { %11309 = vmatmul.mubr.msk.f32.gmra.mxu1 %vm291_vm2, %v2779_v56 }
0x1482   :  { %v12257_v58 = vpop.eup %12256  ;;  %11328 = vmatpush3.xpose.msk.msra.mxu1 %vm192_vm1, %v2982_v57  ;;  %11311 = vmatprep.mubr.msk.f32.mxu1 %vm12464_vm0, %v12463_v1 }
0x1483   :  { %11329 = vmatprep.subr.mxu1 %v12463_v1  ;;  %v2781_v27 = vmul.f32 %v12257_v58, %v12251_v41 }
0x1485   :  { %11312 = vmatmul.mubr.msk.f32.gmra.mxu1 %vm291_vm2, %v2781_v27 }
0x1486   :  { %11330 = vmatpush3.xpose.msk.msra.mxu1 %vm192_vm1, %v2980_v26  ;;  %11331 = vmatprep.mubr.msk.f32.mxu1 %vm12464_vm0, %v12463_v1 }
0x1487   :  { %11355 = vmatprep.subr.mxu1 %v12463_v1 }
0x1489   :  { %11332 = vmatmul.mubr.msk.f32.vlgmr.msra.gmra.mxu1 %vm192_vm1, %v2974_v59 }
0x148a   :  { %11334 = vmatprep.mubr.msk.f32.mxu1 %vm12464_vm0, %v12463_v1  ;;  %11356 = vmatpush3.msra.mxu1 %v9823_v52  ;;  %v9914_v52 = vld [vmem:[%s15100_s11 + $0xf0] sm:$0xff] }
0x148b   :  { %11407 = vmatprep.subr.mxu1 %v12463_v1 }
0x148d   :  { %11335 = vmatmul.mubr.msk.f32.gmra.mxu1 %vm192_vm1, %v2976_v19 }
0x148e   :  { %11337 = vmatprep.mubr.msk.f32.mxu1 %vm12464_vm0, %v12463_v1 }
0x1491   :  { %11338 = vmatmul.mubr.msk.f32.gmra.mxu1 %vm192_vm1, %v2978_v60 }
0x1492   :  { %11357 = vmatprep.mubr.msk.f32.mxu1 %vm12464_vm0, %v12463_v1 }
0x153d   :  { %v2867_v63 = vpop.f32.mrf.mxu1 }
0x153e   :  { %11317 = vmatmul.mubr.msk.f32.vlgmr.msra.gmra.mxu0 %vm192_vm1, %v2867_v63 }
0x153f   :  { %v11307_v0 = vpop.f32.mrf.mxu1  ;;  %11319 = vmatprep.mubr.msk.f32.mxu0 %vm12464_vm0, %v12463_v1 }
0x1541   :  { %v2872_v2 = vpop.f32.mrf.mxu1 }
0x1542   :  { %11320 = vmatmul.mubr.msk.f32.gmra.mxu0 %vm192_vm1, %v2872_v2 }
0x1543   :  { %v11310_v3 = vpop.f32.mrf.mxu1  ;;  %11322 = vmatprep.mubr.msk.f32.mxu0 %vm12464_vm0, %v12463_v1 }
0x1545   :  { %v2877_v4 = vpop.f32.mrf.mxu1 }
0x1546   :  { %11323 = vmatmul.mubr.msk.f32.gmra.mxu0 %vm192_vm1, %v2877_v4 }
0x1547   :  { %v11313_v5 = vpop.f32.mrf.mxu1  ;;  %11346 = vmatprep.mubr.msk.f32.mxu0 %vm12464_vm0, %v12463_v1 }
0x1549   :  { %v3063_v6 = vpop.f32.mrf.mxu1 }
0x154a   :  { %v3077_v9 = vmul.f32 0.35355338, %v3063_v6 }
0x154b   :  { %v11333_v40 = vpop.f32.mrf.mxu1 }
0x154c   :  { %v3080_v10 = vadd.f32 %v13319_v53, %v3077_v9 }
0x154d   :  { %v3068_v46 = vpop.f32.mrf.mxu1 }
0x154e   :  { %v3078_v11 = vmul.f32 0.35355338, %v3068_v46  ;;  %v3083_v12 = vsel %vm291_vm2, %v3080_v10, -inf }
0x154f   :  { %3084 = vmax.xlane.f32.xlu1 %v3083_v12  ;;  %v11336_v13 = vpop.f32.mrf.mxu1  ;;  %v9897_v12 = vld [vmem:[%s15098_s9 + $0xf8] sm:$0xff] }
0x1550   :  { %v3081_v16 = vadd.f32 %v13326_v62, %v3078_v11  ;;  %v9896_v13 = vld [vmem:[%s15098_s9 + $0xf0] sm:$0xff] }
0x1551   :  { %v3073_v54 = vpop.f32.mrf.mxu1 }
0x1552   :  { %v3079_v21 = vmul.f32 0.35355338, %v3073_v54  ;;  %v3086_v23 = vsel %vm291_vm2, %v3081_v16, -inf  ;;  %v9894_v54 = vld [vmem:[%s15098_s9 + $0xe0] sm:$0xff] }
0x1553   :  { %3087 = vmax.xlane.f32.xlu0 %v3086_v23  ;;  %v11339_v17 = vpop.f32.mrf.mxu1 }
0x1554   :  { %v3082_v25 = vadd.f32 %v13333_v7, %v3079_v21 }
0x1556   :  { %v3089_v14 = vsel %vm298_vm3, %v3082_v25, -inf }
0x1557   :  { %3090 = vmax.xlane.f32.xlu0 %v3089_v14 }
0x1560   :  { %3120 = vrot.lane.b32.xlu1 %v13267_v18, %s15119_s23 }
0x15d8   :  { %v3085_v53 = vpop.xlane.xlu1 %3084 }
0x15d9   :  { %v3092_v24 = vsub.f32 %v3080_v10, %v3085_v53 }
0x15db   :  { %v3095_v28 = vmul.f32 1.442695, %v3092_v24 }
0x15dc   :  { %v3088_v30 = vpop.xlane.xlu0 %3087  ;;  %v3121_v31 = vpop.permute.xlu1 %3120 }
0x15dd   :  { %12258 = vpow2.f32 %v3095_v28  ;;  %v3093_v62 = vsub.f32 %v3081_v16, %v3088_v30  ;;  %11341 = vmatpush3.msk.msra.mxu0 %vm343_vm4, %v3121_v31  ;;  %v9895_v16 = vld [vmem:[%s15098_s9 + $0xe8] sm:$0xff] }
0x15de   :  { %11342 = vmatprep.subr.mxu0 %v12463_v1 }
0x15df   :  { %v3097_v32 = vmul.f32 1.442695, %v3093_v62 }
0x15e0   :  { %v3091_v33 = vpop.xlane.xlu0 %3090 }
0x15e1   :  { %12260 = vpow2.f32 %v3097_v32  ;;  %v3094_v7 = vsub.f32 %v3082_v25, %v3091_v33 }
0x15e3   :  { %v3099_v34 = vmul.f32 1.442695, %v3094_v7 }
0x15e5   :  { %12262 = vpow2.f32 %v3099_v34 }
0x15ea   :  { %v12259_v35 = vpop.eup %12258 }
0x15eb   :  { %v3101_v18 = vsel %vm291_vm2, %v12259_v35, 0.0 }
0x15ec   :  { %3102 = vadd.xlane.f32.xlu1 %v3101_v18  ;;  %v9893_v18 = vld [vmem:[%s15098_s9 + $0xd8] sm:$0xff] }
0x15ee   :  { %v12261_v37 = vpop.eup %12260 }
0x15ef   :  { %v3104_v22 = vsel %vm291_vm2, %v12261_v37, 0.0 }
0x15f0   :  { %3105 = vadd.xlane.f32.xlu0 %v3104_v22  ;;  %v9891_v22 = vld [vmem:[%s15098_s9 + $0xc8] sm:$0xff] }
0x15f2   :  { %v12263_v39 = vpop.eup %12262 }
0x15f3   :  { %v3107_v29 = vsel %vm298_vm3, %v12263_v39, 0.0 }
0x15f4   :  { %3108 = vadd.xlane.f32.xlu0 %v3107_v29  ;;  %v9889_v29 = vld [vmem:[%s15098_s9 + $0xb8] sm:$0xff] }
0x15fd   :  { %3116 = vrot.lane.b32.xlu1 %v13263_v38, %s15119_s23 }
0x15fe   :  { %v2956_v41 = vpop.f32.mrf.mxu0 }
0x15ff   :  { %v2970_v42 = vadd.f32 %v2956_v41, %v13462_v15  ;;  %v9888_v41 = vld [vmem:[%s15098_s9 + $0xb0] sm:$0xff] }
0x1600   :  { %v11318_v43 = vpop.f32.mrf.mxu0 }
0x1601   :  { %v9886_v43 = vld [vmem:[%s15098_s9 + $0xa0] sm:$0xff] }
0x1602   :  { %v2961_v45 = vpop.f32.mrf.mxu0 }
0x1603   :  { %v2971_v47 = vadd.f32 %v2961_v45, %v13464_v20  ;;  %v9885_v45 = vld [vmem:[%s15098_s9 + $0x98] sm:$0xff] }
0x1604   :  { %v11321_v48 = vpop.f32.mrf.mxu0 }
0x1605   :  { %v9883_v48 = vld [vmem:[%s15098_s9 + $0x88] sm:$0xff] }
0x1606   :  { %v2966_v49 = vpop.f32.mrf.mxu0 }
0x1607   :  { %v2972_v50 = vadd.f32 %v2966_v49, %v13478_v44  ;;  %v9882_v49 = vld [vmem:[%s15098_s9 + $0x80] sm:$0xff] }
0x1608   :  { %v11324_v51 = vpop.f32.mrf.mxu0 }
0x1609   :  { %v9915_v51 = vld [vmem:[%s15100_s11 + $0xf8] sm:$0xff] }
0x160a   :  { %3118 = vrot.lane.b32.xlu0 %v13259_v36, %s15119_s23 }
0x1675   :  { %v3103_v38 = vpop.xlane.xlu1 %3102 }
0x1676   :  { %12264 = vrcp.f32 %v3103_v38  ;;  %v9913_v38 = vld [vmem:[%s15100_s11 + $0xe8] sm:$0xff] }
0x1679   :  { %v3106_v15 = vpop.xlane.xlu0 %3105  ;;  %v3117_v56 = vpop.permute.xlu1 %3116 }
0x167a   :  { %12266 = vrcp.f32 %v3106_v15  ;;  %v9912_v15 = vld [vmem:[%s15100_s11 + $0xe0] sm:$0xff] }
0x167d   :  { %v3109_v20 = vpop.xlane.xlu0 %3108 }
0x167e   :  { %12268 = vrcp.f32 %v3109_v20  ;;  %v9911_v20 = vld [vmem:[%s15100_s11 + $0xd8] sm:$0xff] }
0x1681   :  { %v3119_v55 = vpop.permute.xlu0 %3118 }
0x1682   :  { %11343 = vmatpush3.msra.mxu0 %v3119_v55  ;;  %v9910_v55 = vld [vmem:[%s15100_s11 + $0xd0] sm:$0xff] }
0x1683   :  { %v12265_v44 = vpop.eup %12264  ;;  %11344 = vmatprep.subr.mxu0 %v12463_v1 }
0x1684   :  { %v3111_v36 = vmul.f32 %v12265_v44, %v12259_v35  ;;  %11345 = vmatpush3.msra.mxu0 %v3117_v56  ;;  %v9909_v44 = vld [vmem:[%s15100_s11 + $0xc8] sm:$0xff]  ;;  %v9908_v56 = vld [vmem:[%s15100_s11 + $0xc0] sm:$0xff] }
0x1685   :  { %11366 = vmatprep.subr.mxu0 %v12463_v1 }
0x1686   :  { %11347 = vmatmul.mubr.msk.f32.vlgmr.msra.gmra.mxu0 %vm291_vm2, %v3111_v36  ;;  %v9907_v36 = vld [vmem:[%s15100_s11 + $0xb8] sm:$0xff] }
0x1687   :  { %v12267_v57 = vpop.eup %12266  ;;  %11349 = vmatprep.mubr.msk.f32.mxu0 %vm12464_vm0, %v12463_v1  ;;  %11367 = vmatpush3.msra.mxu0 %v9897_v12 }
0x1688   :  { %v3113_v58 = vmul.f32 %v12267_v57, %v12261_v37  ;;  %11368 = vmatprep.subr.mxu0 %v12463_v1  ;;  %v9892_v37 = vld [vmem:[%s15098_s9 + $0xd0] sm:$0xff] }
0x1689   :  { %11369 = vmatpush3.msra.mxu0 %v9896_v13  ;;  %v9906_v57 = vld [vmem:[%s15100_s11 + $0xb0] sm:$0xff] }
0x168a   :  { %11350 = vmatmul.mubr.msk.f32.gmra.mxu0 %vm291_vm2, %v3113_v58  ;;  %11370 = vmatprep.subr.mxu0 %v12463_v1  ;;  %v9905_v58 = vld [vmem:[%s15100_s11 + $0xa8] sm:$0xff]  ;;  %v9936_v13 = vld [vmem:[%s15094_s5 + $0x170] sm:$0xff] }
0x168b   :  { %v12269_v27 = vpop.eup %12268  ;;  %11352 = vmatprep.mubr.msk.f32.mxu0 %vm12464_vm0, %v12463_v1  ;;  %11371 = vmatpush3.msra.mxu0 %v9895_v16 }
0x168c   :  { %v3115_v26 = vmul.f32 %v12269_v27, %v12263_v39  ;;  %11372 = vmatprep.subr.mxu0 %v12463_v1  ;;  %v9890_v39 = vld [vmem:[%s15098_s9 + $0xc0] sm:$0xff] }
0x168d   :  { %11373 = vmatpush3.msra.mxu0 %v9894_v54  ;;  %v9904_v27 = vld [vmem:[%s15100_s11 + $0xa0] sm:$0xff]  ;;  %v9935_v54 = vld [vmem:[%s15094_s5 + $0x168] sm:$0xff] }
0x168e   :  { %11353 = vmatmul.mubr.msk.f32.gmra.mxu0 %vm291_vm2, %v3115_v26  ;;  %11374 = vmatprep.subr.mxu0 %v12463_v1  ;;  %v9903_v26 = vld [vmem:[%s15100_s11 + $0x98] sm:$0xff] }
0x168f   :  { %11398 = vmatprep.mubr.msk.f32.mxu0 %vm12464_vm0, %v12463_v1  ;;  %11375 = vmatpush3.msra.mxu0 %v9893_v18  ;;  %v9924_v18 = vld [vmem:[%s15094_s5 + $0x110] sm:$0xff] }
0x1690   :  { %11376 = vmatprep.subr.mxu0 %v12463_v1 }
0x1691   :  { %11377 = vmatpush3.msra.mxu0 %v9892_v37  ;;  %v9923_v37 = vld [vmem:[%s15094_s5 + $0x108] sm:$0xff] }
0x1692   :  { %11378 = vmatprep.subr.mxu0 %v12463_v1 }
0x1693   :  { %11379 = vmatpush3.msra.mxu0 %v9891_v22  ;;  %v9922_v22 = vld [vmem:[%s15094_s5 + $0x100] sm:$0xff] }
0x1694   :  { %11380 = vmatprep.subr.mxu0 %v12463_v1 }
0x1695   :  { %11381 = vmatpush3.msra.mxu0 %v9890_v39  ;;  %v13782_v39 = vld [vmem:[%s15090_s1 + $0x8] sm:$0xff] }
0x1696   :  { %11382 = vmatprep.subr.mxu0 %v12463_v1 }
0x1697   :  { %11383 = vmatpush3.msra.mxu0 %v9889_v29  ;;  %v9902_v29 = vld [vmem:[%s15100_s11 + $0x90] sm:$0xff] }
0x1698   :  { %11384 = vmatprep.subr.mxu0 %v12463_v1 }
0x1699   :  { %11385 = vmatpush3.msra.mxu0 %v9888_v41  ;;  %v9901_v41 = vld [vmem:[%s15100_s11 + $0x88] sm:$0xff] }
0x169a   :  { %11386 = vmatprep.subr.mxu0 %v12463_v1 }
0x1746   :  { %v3201_v59 = vpop.f32.mrf.mxu0 }
0x1747   :  { %11358 = vmatmul.mubr.msk.f32.vlgmr.msra.gmra.mxu1 %vm192_vm1, %v3201_v59 }
0x1748   :  { %v11348_v19 = vpop.f32.mrf.mxu0  ;;  %11360 = vmatprep.mubr.msk.f32.mxu1 %vm12464_vm0, %v12463_v1  ;;  %11408 = vmatpush3.msra.mxu1 %v9915_v51 }
0x1749   :  { %11409 = vmatprep.subr.mxu1 %v12463_v1 }
0x174a   :  { %v3206_v60 = vpop.f32.mrf.mxu0  ;;  %11410 = vmatpush3.msra.mxu1 %v9914_v52 }
0x174b   :  { %11361 = vmatmul.mubr.msk.f32.gmra.mxu1 %vm192_vm1, %v3206_v60  ;;  %11411 = vmatprep.subr.mxu1 %v12463_v1 }
0x174c   :  { %v11351_v61 = vpop.f32.mrf.mxu0  ;;  %11363 = vmatprep.mubr.msk.f32.mxu1 %vm12464_vm0, %v12463_v1  ;;  %11412 = vmatpush3.msra.mxu1 %v9913_v38 }
0x174d   :  { %11413 = vmatprep.subr.mxu1 %v12463_v1 }
0x174e   :  { %v3211_v63 = vpop.f32.mrf.mxu0  ;;  %11414 = vmatpush3.msra.mxu1 %v9912_v15 }
0x174f   :  { %11364 = vmatmul.mubr.msk.f32.gmra.mxu1 %vm192_vm1, %v3211_v63  ;;  %11415 = vmatprep.subr.mxu1 %v12463_v1 }
0x1750   :  { %v11354_v0 = vpop.f32.mrf.mxu0  ;;  %11439 = vmatprep.mubr.msk.f32.mxu1 %vm12464_vm0, %v12463_v1  ;;  %11416 = vmatpush3.msra.mxu1 %v9911_v20 }
0x1751   :  { %11417 = vmatprep.subr.mxu1 %v12463_v1 }
0x1752   :  { %11418 = vmatpush3.msra.mxu1 %v9910_v55 }
0x1753   :  { %11419 = vmatprep.subr.mxu1 %v12463_v1 }
0x1754   :  { %11420 = vmatpush3.msra.mxu1 %v9909_v44 }
0x1755   :  { %11421 = vmatprep.subr.mxu1 %v12463_v1 }
0x1756   :  { %11422 = vmatpush3.msra.mxu1 %v9908_v56  ;;  %v9939_v56 = vld [vmem:[%s15095_s6 + $0x2] ss:$0 sm:$0xff] }
0x1757   :  { %11423 = vmatprep.subr.mxu1 %v12463_v1 }
0x1758   :  { %11424 = vmatpush3.msra.mxu1 %v9907_v36 }
0x1759   :  { %11425 = vmatprep.subr.mxu1 %v12463_v1 }
0x175a   :  { %11426 = vmatpush3.msra.mxu1 %v9906_v57 }
0x175b   :  { %11427 = vmatprep.subr.mxu1 %v12463_v1 }
0x175c   :  { %11428 = vmatpush3.msra.mxu1 %v9905_v58 }
0x175d   :  { %11429 = vmatprep.subr.mxu1 %v12463_v1 }
0x175e   :  { %11430 = vmatpush3.msra.mxu1 %v9904_v27 }
0x175f   :  { %11431 = vmatprep.subr.mxu1 %v12463_v1 }
0x1760   :  { %11432 = vmatpush3.msra.mxu1 %v9903_v26 }
0x1761   :  { %11433 = vmatprep.subr.mxu1 %v12463_v1 }
0x1762   :  { %11434 = vmatpush3.msra.mxu1 %v9902_v29 }
0x1763   :  { %11435 = vmatprep.subr.mxu1 %v12463_v1 }
0x1764   :  { %11436 = vmatpush3.msra.mxu1 %v9901_v41 }
0x1765   :  { %11437 = vmatprep.subr.mxu1 %v12463_v1 }
0x1807   :  { %v3290_v2 = vpop.f32.mrf.mxu1 }
0x1808   :  { %v3304_v3 = vadd.f32 %v3290_v2, %v2970_v42  ;;  %v9887_v42 = vld [vmem:[%s15098_s9 + $0xa8] sm:$0xff] }
0x1809   :  { %v11359_v4 = vpop.f32.mrf.mxu1  ;;  %11387 = vmatpush3.msra.mxu0 %v9887_v42  ;;  %v9900_v42 = vld [vmem:[%s15100_s11 + $0x80] sm:$0xff] }
0x180a   :  { %3307 = vadd.xlane.f32.xlu1 %v3304_v3  ;;  %11388 = vmatprep.subr.mxu0 %v12463_v1 }
0x180b   :  { %v3295_v5 = vpop.f32.mrf.mxu1  ;;  %11389 = vmatpush3.msra.mxu0 %v9886_v43  ;;  %11438 = vmatpush3.msra.mxu1 %v9900_v42  ;;  %v9899_v43 = vld [vmem:[%s15099_s10 + $0x1] ss:$0 sm:$0xff] }
0x180c   :  { %v3305_v6 = vadd.f32 %v3295_v5, %v2971_v47  ;;  %11390 = vmatprep.subr.mxu0 %v12463_v1  ;;  %v9884_v47 = vld [vmem:[%s15098_s9 + $0x90] sm:$0xff] }
0x180d   :  { %v11362_v9 = vpop.f32.mrf.mxu1  ;;  %11391 = vmatpush3.msra.mxu0 %v9885_v45 }
0x180e   :  { %3309 = vadd.xlane.f32.xlu0 %v3305_v6  ;;  %11392 = vmatprep.subr.mxu0 %v12463_v1 }
0x180f   :  { %v3300_v40 = vpop.f32.mrf.mxu1  ;;  %11393 = vmatpush3.msra.mxu0 %v9884_v47 }
0x1810   :  { %v3306_v10 = vadd.f32 %v3300_v40, %v2972_v50  ;;  %11394 = vmatprep.subr.mxu0 %v12463_v1  ;;  %v13649_v50 = vld [vmem:[%s15094_s5 + $0x178] sm:$0xff]  ;;  %v9881_v40 = vld [vmem:[%s15103_s14 + $0x2] ss:$0 sm:$0xff] }
0x1811   :  { %v11365_v46 = vpop.f32.mrf.mxu1  ;;  %11395 = vmatpush3.msra.mxu0 %v9883_v48 }
0x1812   :  { %v3311_v11 = vsel %vm343_vm4, %v3306_v10, 0.0  ;;  %11396 = vmatprep.subr.mxu0 %v12463_v1 }
0x1813   :  { %3312 = vadd.xlane.f32.xlu1 %v3311_v11  ;;  %11397 = vmatpush3.msra.mxu0 %v9882_v49 }
0x1814   :  { %11448 = vmatprep.subr.mxu0 %v13649_v50 }
0x1893   :  { %v3308_v21 = vpop.xlane.xlu1 %3307 }
0x1894   :  { %v3314_v23 = vmul.f32 0.03125, %v3308_v21 }
0x1896   :  { %v3317_v17 = vsub.f32 %v3304_v3, %v3314_v23 }
0x1897   :  { %v3310_v25 = vpop.xlane.xlu0 %3309 }
0x1898   :  { %v13585_v14 = vmul.f32 %v12994_v8, %v3317_v17  ;;  %v3315_v53 = vmul.f32 0.03125, %v3310_v25  ;;  %v9934_v17 = vld [vmem:[%s15094_s5 + $0x160] sm:$0xff] }
0x189a   :  { %v3318_v24 = vsub.f32 %v3305_v6, %v3315_v53  ;;  %v3323_v28 = vmul.f32 %v13585_v14, %v13585_v14  ;;  %v9879_v6 = vld [vmem:[%s15102_s13 + $0x2] ss:$0 sm:$0xff] }
0x189c   :  { %v13590_v30 = vmul.f32 %v12994_v8, %v3318_v24  ;;  %3326 = vadd.xlane.f32.xlu0 %v3323_v28  ;;  %v3313_v31 = vpop.xlane.xlu1 %3312  ;;  %v9932_v24 = vld [vmem:[%s15094_s5 + $0x150] sm:$0xff] }
0x189d   :  { %v3316_v62 = vmul.f32 0.03125, %v3313_v31  ;;  %v9931_v31 = vld [vmem:[%s15094_s5 + $0x148] sm:$0xff] }
0x189e   :  { %v3324_v32 = vmul.f32 %v13590_v30, %v13590_v30 }
0x189f   :  { %v3319_v33 = vsub.f32 %v3306_v10, %v3316_v62  ;;  %v9930_v62 = vld [vmem:[%s15094_s5 + $0x140] sm:$0xff] }
0x18a0   :  { %3328 = vadd.xlane.f32.xlu1 %v3324_v32  ;;  %v9929_v32 = vld [vmem:[%s15094_s5 + $0x138] sm:$0xff] }
0x18a1   :  { %v13595_v7 = vmul.f32 %v12994_v8, %v3319_v33  ;;  %v9928_v33 = vld [vmem:[%s15094_s5 + $0x130] sm:$0xff] }
0x18a3   :  { %v3325_v34 = vmul.f32 %v13595_v7, %v13595_v7 }
0x18a5   :  { %v3330_v35 = vsel %vm343_vm4, %v3325_v34, 0.0  ;;  %v9926_v34 = vld [vmem:[%s15094_s5 + $0x120] sm:$0xff] }
0x18a6   :  { %3331 = vadd.xlane.f32.xlu0 %v3330_v35  ;;  %v9925_v35 = vld [vmem:[%s15094_s5 + $0x118] sm:$0xff] }
0x1925   :  { %v3327_v59 = vpop.xlane.xlu0 %3326 }
0x1926   :  { %v3333_v19 = vmul.f32 0.03125, %v3327_v59 }
0x1928   :  { %v3336_v60 = vadd.f32 1e-05, %v3333_v19 }
0x1929   :  { %v3329_v61 = vpop.xlane.xlu1 %3328 }
0x192a   :  { %12270 = vrsqrt.f32 %v3336_v60  ;;  %v3334_v63 = vmul.f32 0.03125, %v3329_v61 }
0x192c   :  { %v3337_v0 = vadd.f32 1e-05, %v3334_v63 }
0x192e   :  { %12272 = vrsqrt.f32 %v3337_v0  ;;  %v13828_v0 = vld [vmem:[%s15101_s12 + $0x1] ss:$0 sm:$0xff] }
0x192f   :  { %v3332_v2 = vpop.xlane.xlu0 %3331 }
0x1930   :  { %v3335_v3 = vmul.f32 0.03125, %v3332_v2 }
0x1932   :  { %v3338_v4 = vadd.f32 1e-05, %v3335_v3 }
0x1934   :  { %12274 = vrsqrt.f32 %v3338_v4 }
0x1937   :  { %v12271_v5 = vpop.eup %12270 }
0x1938   :  { %v3342_v9 = vmul.f32 %v12271_v5, %v13585_v14  ;;  %v9933_v14 = vld [vmem:[%s15094_s5 + $0x158] sm:$0xff] }
0x193a   :  { %v3353_v10 = vmul.f32 %v9879_v6, %v3342_v9 }
0x193b   :  { %v12273_v46 = vpop.eup %12272 }
0x193c   :  { %v13712_v11 = vadd.f32 %v9881_v40, %v3353_v10  ;;  %v3343_v12 = vmul.f32 %v12273_v46, %v13590_v30  ;;  %v13745_v30 = vld [vmem:[%s15090_s1] sm:$0xff] }
0x193d   :  { %v13843_v10 = vld [vmem:[%s15092_s3] sm:$0xff] }
0x193e   :  { %11399 = vmatmul.mubr.f32.vlgmr.msra.gmra.mxu0 %v13712_v11  ;;  %v3354_v16 = vmul.f32 %v9879_v6, %v3343_v12 }
0x193f   :  { %11449 = vmatpush3.msra.mxu0 %v13649_v50  ;;  %11401 = vmatprep.mubr.msk.f32.mxu0 %vm12464_vm0, %v12463_v1 }
0x1940   :  { %11450 = vmatprep.subr.mxu0 %v9936_v13  ;;  %v13725_v21 = vadd.f32 %v9881_v40, %v3354_v16 }
0x1941   :  { %v12275_v23 = vpop.eup %12274  ;;  %11451 = vmatpush3.msra.mxu0 %v9936_v13 }
0x1942   :  { %11452 = vmatprep.subr.mxu0 %v9935_v54  ;;  %11402 = vmatmul.mubr.f32.gmra.mxu0 %v13725_v21  ;;  %v3344_v25 = vmul.f32 %v12275_v23, %v13595_v7  ;;  %v9927_v7 = vld [vmem:[%s15094_s5 + $0x128] sm:$0xff] }
0x1943   :  { %11453 = vmatpush3.msra.mxu0 %v9935_v54  ;;  %11404 = vmatprep.mubr.msk.f32.mxu0 %vm12464_vm0, %v12463_v1 }
0x1944   :  { %11454 = vmatprep.subr.mxu0 %v9934_v17  ;;  %v3355_v53 = vmul.f32 %v9879_v6, %v3344_v25  ;;  %v13838_v6 = vld [vmem:[%s15092_s3 + $0x8] sm:$0xff] }
0x1945   :  { %11455 = vmatpush3.msra.mxu0 %v9934_v17 }
0x1946   :  { %11456 = vmatprep.subr.mxu0 %v9933_v14  ;;  %v13740_v28 = vadd.f32 %v9881_v40, %v3355_v53 }
0x1947   :  { %11457 = vmatpush3.msra.mxu0 %v9933_v14 }
0x1948   :  { %11458 = vmatprep.subr.mxu0 %v9932_v24  ;;  %11405 = vmatmul.mubr.f32.gmra.mxu0 %v13740_v28 }
0x1949   :  { %11459 = vmatpush3.msra.mxu0 %v9932_v24  ;;  %11480 = vmatprep.mubr.f32.mxu0 %v13745_v30 }
0x194a   :  { %11460 = vmatprep.subr.mxu0 %v9931_v31 }
0x194b   :  { %11461 = vmatpush3.msra.mxu0 %v9931_v31 }
0x194c   :  { %11462 = vmatprep.subr.mxu0 %v9930_v62 }
0x194d   :  { %11463 = vmatpush3.msra.mxu0 %v9930_v62 }
0x194e   :  { %11464 = vmatprep.subr.mxu0 %v9929_v32 }
0x194f   :  { %11465 = vmatpush3.msra.mxu0 %v9929_v32 }
0x1950   :  { %11466 = vmatprep.subr.mxu0 %v9928_v33 }
0x1951   :  { %11467 = vmatpush3.msra.mxu0 %v9928_v33 }
0x1952   :  { %11468 = vmatprep.subr.mxu0 %v9927_v7 }
0x1953   :  { %11469 = vmatpush3.msra.mxu0 %v9927_v7 }
0x1954   :  { %11470 = vmatprep.subr.mxu0 %v9926_v34 }
0x1955   :  { %11471 = vmatpush3.msra.mxu0 %v9926_v34 }
0x1956   :  { %11472 = vmatprep.subr.mxu0 %v9925_v35 }
0x1957   :  { %11473 = vmatpush3.msra.mxu0 %v9925_v35 }
0x1958   :  { %11474 = vmatprep.subr.mxu0 %v9924_v18 }
0x1959   :  { %11475 = vmatpush3.msra.mxu0 %v9924_v18 }
0x195a   :  { %11476 = vmatprep.subr.mxu0 %v9923_v37 }
0x195b   :  { %11477 = vmatpush3.msra.mxu0 %v9923_v37  ;;  %v9940_v37 = vld [vmem:[%s15096_s7 + $0x40] sm:$0xff] }
0x195c   :  { %11478 = vmatprep.subr.mxu0 %v9922_v22 }
0x195d   :  { %11479 = vmatpush3.msra.mxu0 %v9922_v22 }
0x195e   :  { %11481 = vmatmul.mubr.f32.vlgmr.msra.gmra.mxu0 %v13782_v39 }
0x19fe   :  { %v3458_v45 = vpop.f32.mrf.mxu0 }
0x19ff   :  { %v3459_v47 = vadd.f32 %v9899_v43, %v3458_v45 }
0x1a00   :  { %v11400_v48 = vpop.f32.mrf.mxu0 }
0x1a01   :  { %v3472_v49 = vmax.f32 %v3459_v47, 0.0 }
0x1a02   :  { %v3463_v50 = vpop.f32.mrf.mxu0 }
0x1a03   :  { %v3464_v51 = vadd.f32 %v9899_v43, %v3463_v50  ;;  %11440 = vmatmul.mubr.f32.vlgmr.msra.gmra.mxu1 %v3472_v49 }
0x1a04   :  { %v11403_v52 = vpop.f32.mrf.mxu0  ;;  %11442 = vmatprep.mubr.msk.f32.mxu1 %vm12464_vm0, %v12463_v1 }
0x1a05   :  { %v3473_v38 = vmax.f32 %v3464_v51, 0.0 }
0x1a07   :  { %11443 = vmatmul.mubr.f32.gmra.mxu1 %v3473_v38 }
0x1a08   :  { %v3468_v15 = vpop.f32.mrf.mxu0  ;;  %11445 = vmatprep.mubr.msk.f32.mxu1 %vm12464_vm0, %v12463_v1 }
0x1a09   :  { %v3469_v20 = vadd.f32 %v9899_v43, %v3468_v15 }
0x1a0a   :  { %v11406_v55 = vpop.f32.mrf.mxu0 }
0x1a0b   :  { %v3474_v44 = vmax.f32 %v3469_v20, 0.0 }
0x1a0d   :  { %11446 = vmatmul.mubr.f32.gmra.mxu1 %v3474_v44 }
0x1a1e   :  { %v11482_v36 = vpop.f32.mrf.mxu0 }
0x1a1f   :  { %v13806_v57 = vadd.f32 %v11482_v36, %v9939_v56 }
0x1a20   :  { %v3739_v58 = vpop.f32.mrf.mxu0 }
0x1a21   :  { %v13808_v27 = vadd.f32 %v9939_v56, %v3739_v58  ;;  %3767 = vrot.lane.b32.xlu1 %v13806_v57, %s12465_s28 }
0x1a23   :  { %3765 = vrot.lane.b32.xlu0 %v13808_v27, %s12465_s28  ;;  %11487 = vmatprep.mubr.msk.f32.mxu1 %vm192_vm1, %v13808_v27 }
0x1a93   :  { %v3768_v26 = vpop.permute.xlu1 %3767 }
0x1a94   :  { %11483 = vmatprep.subr.msk.mxu1 %vm192_vm1, %v3768_v26 }
0x1a95   :  { %11484 = vmatpush3.xpose.msk.msra.mxu1 %vm192_vm1, %v3768_v26  ;;  %v3766_v59 = vpop.permute.xlu0 %3765 }
0x1a96   :  { %11485 = vmatprep.subr.msk.mxu1 %vm192_vm1, %v3766_v59 }
0x1a99   :  { %11486 = vmatpush3.xpose.msk.msra.mxu1 %vm192_vm1, %v3766_v59 }
0x1a9c   :  { %11488 = vmatmul.mubr.msk.f32.vlgmr.msra.gmra.mxu1 %vm192_vm1, %v13806_v57 }
0x1ac3   :  { %v13822_v19 = vpop.f32.mrf.mxu1 }
0x1ac5   :  { %v11441_v60 = vpop.f32.mrf.mxu1 }
0x1ac7   :  { %v3563_v61 = vpop.f32.mrf.mxu1 }
0x1ac8   :  { %v3573_v63 = vadd.f32 %v3563_v61, %v13725_v21 }
0x1ac9   :  { %v11444_v2 = vpop.f32.mrf.mxu1 }
0x1aca   :  { %v13831_v3 = vadd.f32 %v13828_v0, %v3573_v63 }
0x1acd   :  { %v13833_v4 = vpop.f32.mrf.mxu1 }
0x1acf   :  { %v11447_v5 = vpop.f32.mrf.mxu1 }
0x1b5c   :  { %v11489_v9 = vpop.f32.mrf.mxu1 }
0x1b5d   :  { %v3853_v40 = vmul.f32 0.35355338, %v11489_v9 }
0x1b5e   :  { %v3843_v46 = vpop.f32.mrf.mxu1 }
0x1b5f   :  { %v3855_v12 = vadd.f32 %v3853_v40, %v13838_v6  ;;  %v3852_v13 = vmul.f32 0.35355338, %v3843_v46 }
0x1b61   :  { %v3854_v16 = vadd.f32 %v3852_v13, %v13843_v10  ;;  %v3860_v54 = vsel %vm3856_vm6, %v3855_v12, -inf }
0x1b62   :  { %3861 = vmax.xlane.f32.xlu0 %v3860_v54 }
0x1b63   :  { %v3857_v21 = vsel %vm3856_vm6, %v3854_v16, -inf }
0x1b64   :  { %3858 = vmax.xlane.f32.xlu1 %v3857_v21 }
0x1beb   :  { %v3862_v23 = vpop.xlane.xlu0 %3861 }
0x1bec   :  { %v3864_v17 = vsub.f32 %v3855_v12, %v3862_v23 }
0x1bed   :  { %v3859_v25 = vpop.xlane.xlu1 %3858 }
0x1bee   :  { %v3867_v14 = vmul.f32 1.442695, %v3864_v17  ;;  %v3863_v53 = vsub.f32 %v3854_v16, %v3859_v25 }
0x1bf0   :  { %12276 = vpow2.f32 %v3867_v14  ;;  %v3865_v24 = vmul.f32 1.442695, %v3863_v53 }
0x1bf2   :  { %12278 = vpow2.f32 %v3865_v24 }
0x1bfd   :  { %v12277_v31 = vpop.eup %12276 }
0x1bfe   :  { %v3872_v62 = vsel %vm3856_vm6, %v12277_v31, 0.0 }
0x1bff   :  { %v12279_v32 = vpop.eup %12278  ;;  %3873 = vadd.xlane.f32.xlu0 %v3872_v62 }
0x1c00   :  { %v3869_v33 = vsel %vm3856_vm6, %v12279_v32, 0.0 }
0x1c01   :  { %3870 = vadd.xlane.f32.xlu1 %v3869_v33 }
0x1c12   :  { %3881 = vrot.lane.b32.xlu1 %v13806_v57, %s12468_s21 }
0x1c15   :  { %3879 = vrot.lane.b32.xlu0 %v13808_v27, %s12468_s21 }
0x1c16   :  { %4055 = vrot.lane.b32.xlu1 %v13806_v57, %s12466_s0 }
0x1c19   :  { %4049 = vrot.lane.b32.xlu0 %v13808_v27, %s12467_s29 }
0x1c1a   :  { %4053 = vrot.lane.b32.xlu1 %v13808_v27, %s12466_s0 }
0x1c1e   :  { %4051 = vrot.lane.b32.xlu1 %v13806_v57, %s12467_s29 }
0x1c88   :  { %v3874_v7 = vpop.xlane.xlu0 %3873 }
0x1c89   :  { %12280 = vrcp.f32 %v3874_v7 }
0x1c8a   :  { %v3871_v34 = vpop.xlane.xlu1 %3870 }
0x1c8b   :  { %12282 = vrcp.f32 %v3871_v34  ;;  %v9941_v34 = vld [vmem:[%s15096_s7 + $0x48] sm:$0xff] }
0x1c8c   :  { %v3880_v18 = vpop.permute.xlu0 %3879  ;;  %11516 = vmatprep.subr.mxu0 %v9941_v34 }
0x1c8d   :  { %11517 = vmatpush3.msra.mxu0 %v9941_v34 }
0x1c8e   :  { %v3882_v35 = vpop.permute.xlu1 %3881 }
0x1c8f   :  { %11490 = vmatprep.subr.mxu1 %v3882_v35 }
0x1c90   :  { %11491 = vmatpush3.msra.mxu1 %v3882_v35  ;;  %v4050_v48 = vpop.permute.xlu0 %4049 }
0x1c91   :  { %11492 = vmatprep.subr.mxu1 %v3880_v18 }
0x1c92   :  { %11493 = vmatpush3.msra.mxu1 %v3880_v18  ;;  %v4056_v43 = vpop.permute.xlu1 %4055 }
0x1c93   :  { %11497 = vmatprep.subr.mxu1 %v9940_v37 }
0x1c96   :  { %v12281_v22 = vpop.eup %12280  ;;  %v4054_v49 = vpop.permute.xlu1 %4053 }
0x1c97   :  { %v3878_v42 = vmul.f32 %v12281_v22, %v12277_v31 }
0x1c98   :  { %v12283_v29 = vpop.eup %12282 }
0x1c99   :  { %v3876_v41 = vmul.f32 %v12283_v29, %v12279_v32 }
0x1c9a   :  { %v4052_v50 = vpop.permute.xlu1 %4051 }
0x1c9b   :  { %11494 = vmatprep.mubr.msk.f32.mxu1 %vm3856_vm6, %v3876_v41 }
0x1c9c   :  { %11495 = vmatmul.mubr.msk.f32.vlgmr.msra.gmra.mxu1 %vm3856_vm6, %v3878_v42 }
0x1c9d   :  { %11498 = vmatpush3.msra.mxu1 %v9940_v37 }
0x1c9e   :  { %11502 = vmatprep.subr.msk.mxu1 %vm192_vm1, %v4056_v43 }
0x1d5c   :  { %v11496_v45 = vpop.f32.mrf.mxu1 }
0x1d5e   :  { %v3957_v47 = vpop.f32.mrf.mxu1 }
0x1d5f   :  { %11499 = vmatprep.mubr.msk.f32.mxu1 %vm192_vm1, %v3957_v47 }
0x1d60   :  { %11500 = vmatmul.mubr.msk.f32.vlgmr.msra.gmra.mxu1 %vm192_vm1, %v11496_v45 }
0x1d61   :  { %11503 = vmatpush3.xpose.msk.msra.mxu1 %vm192_vm1, %v4056_v43  ;;  %11506 = vmatprep.mubr.msk.f32.mxu1 %vm192_vm1, %v4050_v48 }
0x1d62   :  { %11504 = vmatprep.subr.msk.mxu1 %vm192_vm1, %v4054_v49 }
0x1d65   :  { %11505 = vmatpush3.xpose.msk.msra.mxu1 %vm192_vm1, %v4054_v49 }
0x1d68   :  { %11507 = vmatmul.mubr.msk.f32.vlgmr.msra.gmra.mxu1 %vm192_vm1, %v4052_v50 }
0x1e20   :  { %v13876_v51 = vpop.f32.mrf.mxu1 }
0x1e22   :  { %v13878_v52 = vpop.f32.mrf.mxu1 }
0x1e28   :  { %v11508_v38 = vpop.f32.mrf.mxu1 }
0x1e29   :  { %v4141_v15 = vmul.f32 0.35355338, %v11508_v38 }
0x1e2a   :  { %v4131_v20 = vpop.f32.mrf.mxu1 }
0x1e2b   :  { %v4143_v55 = vadd.f32 %v4141_v15, %v13838_v6  ;;  %v4140_v44 = vmul.f32 0.35355338, %v4131_v20 }
0x1e2d   :  { %v4142_v56 = vadd.f32 %v4140_v44, %v13843_v10  ;;  %v4147_v36 = vsel %vm3856_vm6, %v4143_v55, -inf }
0x1e2e   :  { %4148 = vmax.xlane.f32.xlu1 %v4147_v36 }
0x1e2f   :  { %v4144_v58 = vsel %vm3856_vm6, %v4142_v56, -inf }
0x1e30   :  { %4145 = vmax.xlane.f32.xlu0 %v4144_v58 }
0x1e3f   :  { %4168 = vrot.lane.b32.xlu1 %v13806_v57, %s15115_s22 }
0x1e43   :  { %4342 = vrot.lane.b32.xlu1 %v13806_v57, %s12470_s25 }
0x1e47   :  { %4340 = vrot.lane.b32.xlu1 %v13808_v27, %s12470_s25 }
0x1e4b   :  { %4338 = vrot.lane.b32.xlu1 %v13806_v57, %s15120_s17 }
0x1e4f   :  { %4627 = vrot.lane.b32.xlu1 %v13808_v27, %s15117_s20 }
0x1e53   :  { %4625 = vrot.lane.b32.xlu1 %v13806_v57, %s15118_s27 }
0x1eb7   :  { %v4149_v26 = vpop.xlane.xlu1 %4148 }
0x1eb8   :  { %v4151_v59 = vsub.f32 %v4143_v55, %v4149_v26 }
0x1eb9   :  { %v4146_v60 = vpop.xlane.xlu0 %4145 }
0x1eba   :  { %v4154_v61 = vmul.f32 1.442695, %v4151_v59  ;;  %v4150_v63 = vsub.f32 %v4142_v56, %v4146_v60 }
0x1ebb   :  { %v4169_v2 = vpop.permute.xlu1 %4168 }
0x1ebc   :  { %12284 = vpow2.f32 %v4154_v61  ;;  %v4152_v5 = vmul.f32 1.442695, %v4150_v63  ;;  %11509 = vmatprep.subr.mxu1 %v4169_v2  ;;  %v13938_v63 = vld [vmem:[%s15097_s8 + $0x2] ss:$0 sm:$0xff] }
0x1ebd   :  { %11510 = vmatpush3.msra.mxu1 %v4169_v2  ;;  %v3762_v2 = vadd.f32 %v13938_v63, %v13782_v39 }
0x1ebe   :  { %12286 = vpow2.f32 %v4152_v5 }
0x1ebf   :  { %v4343_v21 = vpop.permute.xlu1 %4342  ;;  %v4048_v5 = vadd.f32 %v13876_v51, %v3762_v2  ;;  %v3572_v51 = vadd.f32 %v13822_v19, %v13712_v11  ;;  %v9942_v11 = vld [vmem:[%s15096_s7 + $0x50] sm:$0xff]  ;;  %v9997_v2 = vld [vmem:[%s15094_s5 + $0x1f8] sm:$0xff] }
0x1ec3   :  { %v4341_v14 = vpop.permute.xlu1 %4340 }
0x1ec7   :  { %v4339_v62 = vpop.permute.xlu1 %4338 }
0x1ec9   :  { %v12285_v9 = vpop.eup %12284 }
0x1eca   :  { %v4159_v40 = vsel %vm3856_vm6, %v12285_v9, 0.0 }
0x1ecb   :  { %v12287_v46 = vpop.eup %12286  ;;  %4160 = vadd.xlane.f32.xlu0 %v4159_v40  ;;  %v4628_v33 = vpop.permute.xlu1 %4627 }
0x1ecc   :  { %v4156_v12 = vsel %vm3856_vm6, %v12287_v46, 0.0 }
0x1ecf   :  { %4157 = vadd.xlane.f32.xlu0 %v4156_v12  ;;  %v4626_v7 = vpop.permute.xlu1 %4625 }
0x1ee5   :  { %4166 = vrot.lane.b32.xlu0 %v13808_v27, %s15115_s22 }
0x1ee9   :  { %4336 = vrot.lane.b32.xlu0 %v13808_v27, %s15120_s17 }
0x1eed   :  { %4629 = vrot.lane.b32.xlu0 %v13806_v57, %s15117_s20 }
0x1ef1   :  { %4623 = vrot.lane.b32.xlu0 %v13808_v27, %s15118_s27 }
0x1f54   :  { %v4161_v13 = vpop.xlane.xlu0 %4160 }
0x1f55   :  { %12288 = vrcp.f32 %v4161_v13 }
0x1f58   :  { %v4158_v16 = vpop.xlane.xlu0 %4157 }
0x1f59   :  { %12290 = vrcp.f32 %v4158_v16 }
0x1f5c   :  { %v4167_v54 = vpop.permute.xlu0 %4166 }
0x1f5d   :  { %11511 = vmatprep.subr.mxu1 %v4167_v54 }
0x1f5e   :  { %11512 = vmatpush3.msra.mxu1 %v4167_v54 }
0x1f5f   :  { %11521 = vmatprep.subr.msk.mxu1 %vm192_vm1, %v4343_v21 }
0x1f60   :  { %v4337_v25 = vpop.permute.xlu0 %4336 }
0x1f62   :  { %v12289_v23 = vpop.eup %12288 }
0x1f63   :  { %v4165_v24 = vmul.f32 %v12289_v23, %v12285_v9 }
0x1f64   :  { %v4630_v31 = vpop.permute.xlu0 %4629 }
0x1f66   :  { %v12291_v17 = vpop.eup %12290 }
0x1f67   :  { %v4163_v53 = vmul.f32 %v12291_v17, %v12287_v46  ;;  %v3574_v17 = vadd.f32 %v13833_v4, %v13740_v28 }
0x1f68   :  { %v4624_v32 = vpop.permute.xlu0 %4623 }
0x1f69   :  { %11513 = vmatprep.mubr.msk.f32.mxu1 %vm3856_vm6, %v4163_v53 }
0x1f6a   :  { %11514 = vmatmul.mubr.msk.f32.vlgmr.msra.gmra.mxu1 %vm3856_vm6, %v4165_v24 }
0x1f6b   :  { %11522 = vmatpush3.xpose.msk.msra.mxu1 %vm192_vm1, %v4343_v21  ;;  %11525 = vmatprep.mubr.msk.f32.mxu1 %vm192_vm1, %v4337_v25  ;;  %v3583_v25 = vadd.f32 %v13828_v0, %v3572_v51 }
0x1f6c   :  { %11523 = vmatprep.subr.msk.mxu1 %vm192_vm1, %v4341_v14 }
0x1f6f   :  { %11524 = vmatpush3.xpose.msk.msra.mxu1 %vm192_vm1, %v4341_v14  ;;  %v13958_v14 = vadd.f32 %v13828_v0, %v3574_v17 }
0x1f70   :  { %11540 = vmatprep.subr.msk.mxu1 %vm192_vm1, %v4630_v31 }
0x1f72   :  { %11526 = vmatmul.mubr.msk.f32.vlgmr.msra.gmra.mxu1 %vm192_vm1, %v4339_v62 }
0x1f73   :  { %11541 = vmatpush3.xpose.msk.msra.mxu1 %vm192_vm1, %v4630_v31  ;;  %11544 = vmatprep.mubr.msk.f32.mxu1 %vm192_vm1, %v4624_v32 }
0x1f74   :  { %11542 = vmatprep.subr.msk.mxu1 %vm192_vm1, %v4628_v33 }
0x1f77   :  { %11543 = vmatpush3.xpose.msk.msra.mxu1 %vm192_vm1, %v4628_v33 }
0x1f78   :  { %11559 = vmatprep.subr.mxu1 %v9997_v2 }
0x1f7a   :  { %11545 = vmatmul.mubr.msk.f32.vlgmr.msra.gmra.mxu1 %vm192_vm1, %v4626_v7 }
0x1f7b   :  { %11560 = vmatpush3.msra.mxu1 %v9997_v2 }
0x202a   :  { %v11515_v35 = vpop.f32.mrf.mxu1 }
0x202c   :  { %v4244_v18 = vpop.f32.mrf.mxu1 }
0x202d   :  { %11518 = vmatprep.mubr.msk.f32.mxu0 %vm192_vm1, %v4244_v18 }
0x202e   :  { %11519 = vmatmul.mubr.msk.f32.vlgmr.msra.gmra.mxu0 %vm192_vm1, %v11515_v35 }
0x2032   :  { %v11527_v37 = vpop.f32.mrf.mxu1 }
0x2033   :  { %v4428_v22 = vmul.f32 0.35355338, %v11527_v37 }
0x2034   :  { %v4418_v29 = vpop.f32.mrf.mxu1 }
0x2035   :  { %v4430_v41 = vadd.f32 %v4428_v22, %v13838_v6  ;;  %v4427_v42 = vmul.f32 0.35355338, %v4418_v29 }
0x2037   :  { %v4429_v43 = vadd.f32 %v4427_v42, %v13843_v10  ;;  %v4434_v45 = vsel %vm3856_vm6, %v4430_v41, -inf }
0x2038   :  { %4435 = vmax.xlane.f32.xlu1 %v4434_v45 }
0x2039   :  { %v4431_v47 = vsel %vm3856_vm6, %v4429_v43, -inf }
0x203a   :  { %4432 = vmax.xlane.f32.xlu0 %v4431_v47  ;;  %v11546_v48 = vpop.f32.mrf.mxu1 }
0x203b   :  { %v4715_v16 = vmul.f32 0.35355338, %v11546_v48 }
0x203c   :  { %v4705_v49 = vpop.f32.mrf.mxu1 }
0x203d   :  { %v4714_v50 = vmul.f32 0.35355338, %v4705_v49  ;;  %v4717_v21 = vadd.f32 %v4715_v16, %v13838_v6  ;;  %v3590_v6 = vsel %vm343_vm4, %v13958_v14, 0.0 }
0x203f   :  { %v4716_v38 = vadd.f32 %v4714_v50, %v13843_v10  ;;  %v4721_v39 = vsel %vm3856_vm6, %v4717_v21, -inf }
0x2041   :  { %v4718_v15 = vsel %vm3856_vm6, %v4716_v38, -inf }
0x2049   :  { %4455 = vrot.lane.b32.xlu1 %v13806_v57, %s15121_s2 }
0x206d   :  { %4719 = vmax.xlane.f32.xlu1 %v4718_v15 }
0x20c1   :  { %v4436_v20 = vpop.xlane.xlu1 %4435 }
0x20c2   :  { %v4438_v55 = vsub.f32 %v4430_v41, %v4436_v20 }
0x20c3   :  { %v4433_v44 = vpop.xlane.xlu0 %4432 }
0x20c4   :  { %v4441_v56 = vmul.f32 1.442695, %v4438_v55  ;;  %v4437_v36 = vsub.f32 %v4429_v43, %v4433_v44 }
0x20c5   :  { %v4456_v58 = vpop.permute.xlu1 %4455 }
0x20c6   :  { %12292 = vpow2.f32 %v4441_v56  ;;  %v4439_v26 = vmul.f32 1.442695, %v4437_v36  ;;  %11528 = vmatprep.subr.mxu0 %v4456_v58  ;;  %v9996_v36 = vld [vmem:[%s15094_s5 + $0x1f0] sm:$0xff] }
0x20c7   :  { %11529 = vmatpush3.msra.mxu0 %v4456_v58  ;;  %v9943_v58 = vld [vmem:[%s15096_s7 + $0x58] sm:$0xff]  ;;  %11561 = vmatprep.subr.mxu1 %v9996_v36 }
0x20c8   :  { %12294 = vpow2.f32 %v4439_v26  ;;  %11562 = vmatpush3.msra.mxu1 %v9996_v36 }
0x20d3   :  { %v12293_v59 = vpop.eup %12292 }
0x20d4   :  { %v4446_v60 = vsel %vm3856_vm6, %v12293_v59, 0.0 }
0x20d5   :  { %v12295_v61 = vpop.eup %12294  ;;  %4447 = vadd.xlane.f32.xlu0 %v4446_v60 }
0x20d6   :  { %v4443_v10 = vsel %vm3856_vm6, %v12295_v61, 0.0 }
0x20d9   :  { %4444 = vadd.xlane.f32.xlu0 %v4443_v10 }
0x20ee   :  { %v11520_v9 = vpop.f32.mrf.mxu0 }
0x20ef   :  { %v13943_v40 = vadd.f32 %v11520_v9, %v4048_v5  ;;  %4453 = vrot.lane.b32.xlu0 %v13808_v27, %s15121_s2  ;;  %v9995_v5 = vld [vmem:[%s15094_s5 + $0x1e8] sm:$0xff]  ;;  %v9994_v9 = vld [vmem:[%s15094_s5 + $0x1e0] sm:$0xff] }
0x20f0   :  { %v4325_v42 = vpop.f32.mrf.mxu0  ;;  %11563 = vmatprep.subr.mxu1 %v9995_v5 }
0x20f1   :  { %11564 = vmatpush3.msra.mxu1 %v9995_v5 }
0x20f2   :  { %11565 = vmatprep.subr.mxu1 %v9994_v9 }
0x20f3   :  { %11566 = vmatpush3.msra.mxu1 %v9994_v9 }
0x20f6   :  { %v4720_v46 = vpop.xlane.xlu1 %4719 }
0x20f7   :  { %v4724_v12 = vsub.f32 %v4716_v38, %v4720_v46  ;;  %v3761_v46 = vadd.f32 %v13938_v63, %v13745_v30 }
0x20f9   :  { %v4726_v13 = vmul.f32 1.442695, %v4724_v12  ;;  %v4047_v12 = vadd.f32 %v13878_v52, %v3761_v46 }
0x20fb   :  { %12296 = vpow2.f32 %v4726_v13  ;;  %v4334_v16 = vadd.f32 %v4325_v42, %v4047_v12 }
0x2108   :  { %v12297_v54 = vpop.eup %12296 }
0x2109   :  { %v4730_v23 = vsel %vm3856_vm6, %v12297_v54, 0.0 }
0x210a   :  { %4731 = vadd.xlane.f32.xlu1 %v4730_v23 }
0x210e   :  { %4722 = vmax.xlane.f32.xlu0 %v4721_v39 }
0x211b   :  { %4742 = vrot.lane.b32.xlu1 %v13806_v57, %s15119_s23 }
0x213f   :  { %3586 = vadd.xlane.f32.xlu1 %v3583_v25 }
0x2143   :  { %3591 = vadd.xlane.f32.xlu1 %v3590_v6  ;;  %v9992_v6 = vld [vmem:[%s15094_s5 + $0x1d0] sm:$0xff] }
0x215e   :  { %v4448_v53 = vpop.xlane.xlu0 %4447 }
0x215f   :  { %12298 = vrcp.f32 %v4448_v53  ;;  %v9991_v53 = vld [vmem:[%s15094_s5 + $0x1c8] sm:$0xff] }
0x2162   :  { %v4445_v24 = vpop.xlane.xlu0 %4444 }
0x2163   :  { %12300 = vrcp.f32 %v4445_v24  ;;  %v9990_v24 = vld [vmem:[%s15094_s5 + $0x1c0] sm:$0xff] }
0x2166   :  { %v4454_v57 = vpop.permute.xlu0 %4453 }
0x2167   :  { %11530 = vmatprep.subr.mxu0 %v4454_v57 }
0x2168   :  { %11531 = vmatpush3.msra.mxu0 %v4454_v57  ;;  %v9989_v57 = vld [vmem:[%s15094_s5 + $0x1b8] sm:$0xff] }
0x2169   :  { %11535 = vmatprep.subr.mxu0 %v9942_v11 }
0x216c   :  { %v12299_v28 = vpop.eup %12298 }
0x216d   :  { %v4452_v4 = vmul.f32 %v12299_v28, %v12293_v59  ;;  %v9987_v28 = vld [vmem:[%s15094_s5 + $0x1a8] sm:$0xff] }
0x2170   :  { %v12301_v19 = vpop.eup %12300 }
0x2171   :  { %v4450_v0 = vmul.f32 %v12301_v19, %v12295_v61  ;;  %v9986_v19 = vld [vmem:[%s15094_s5 + $0x1a0] sm:$0xff] }
0x2173   :  { %11532 = vmatprep.mubr.msk.f32.mxu0 %vm3856_vm6, %v4450_v0  ;;  %v9985_v0 = vld [vmem:[%s15094_s5 + $0x198] sm:$0xff] }
0x2174   :  { %11533 = vmatmul.mubr.msk.f32.vlgmr.msra.gmra.mxu0 %vm3856_vm6, %v4452_v4  ;;  %v9984_v4 = vld [vmem:[%s15094_s5 + $0x190] sm:$0xff] }
0x2175   :  { %11536 = vmatpush3.msra.mxu0 %v9942_v11  ;;  %v9988_v11 = vld [vmem:[%s15094_s5 + $0x1b0] sm:$0xff] }
0x2193   :  { %v4732_v31 = vpop.xlane.xlu1 %4731 }
0x2197   :  { %v4743_v62 = vpop.permute.xlu1 %4742  ;;  %v4723_v32 = vpop.xlane.xlu0 %4722 }
0x2198   :  { %v4725_v33 = vsub.f32 %v4717_v21, %v4723_v32  ;;  %11547 = vmatprep.subr.mxu0 %v4743_v62 }
0x219a   :  { %v4728_v7 = vmul.f32 1.442695, %v4725_v33 }
0x219c   :  { %12302 = vpow2.f32 %v4728_v7  ;;  %v9983_v7 = vld [vmem:[%s15094_s5 + $0x188] sm:$0xff] }
0x219d   :  { %12304 = vrcp.f32 %v4732_v31 }
0x21a9   :  { %v12303_v34 = vpop.eup %12302 }
0x21aa   :  { %v4733_v35 = vsel %vm3856_vm6, %v12303_v34, 0.0  ;;  %v12305_v43 = vpop.eup %12304 }
0x21ab   :  { %4734 = vadd.xlane.f32.xlu0 %v4733_v35 }
0x21c1   :  { %4740 = vrot.lane.b32.xlu0 %v13808_v27, %s15119_s23  ;;  %v4737_v27 = vmul.f32 %v12305_v43, %v12297_v54 }
0x21c8   :  { %v3587_v18 = vpop.xlane.xlu1 %3586 }
0x21c9   :  { %v3593_v37 = vmul.f32 0.03125, %v3587_v18 }
0x21cb   :  { %v3596_v22 = vsub.f32 %v3583_v25, %v3593_v37 }
0x21cd   :  { %v13971_v29 = vmul.f32 %v12994_v8, %v3596_v22 }
0x21cf   :  { %v3602_v41 = vmul.f32 %v13971_v29, %v13971_v29 }
0x21e0   :  { %3588 = vadd.xlane.f32.xlu0 %v13831_v3 }
0x21e4   :  { %3605 = vadd.xlane.f32.xlu0 %v3602_v41 }
0x21fa   :  { %5100 = vrot.lane.b32.xlu0 %v9997_v2, %s12465_s28 }
0x21fe   :  { %5096 = vrot.lane.b32.xlu0 %v9995_v5, %s12465_s28 }
0x2202   :  { %5094 = vrot.lane.b32.xlu0 %v9994_v9, %s12465_s28 }
0x2234   :  { %v11534_v45 = vpop.f32.mrf.mxu0  ;;  %v4735_v47 = vpop.xlane.xlu0 %4734 }
0x2235   :  { %12306 = vrcp.f32 %v4735_v47 }
0x2236   :  { %v4531_v48 = vpop.f32.mrf.mxu0 }
0x2237   :  { %11537 = vmatprep.mubr.msk.f32.mxu0 %vm192_vm1, %v4531_v48 }
0x2238   :  { %11538 = vmatmul.mubr.msk.f32.vlgmr.msra.gmra.mxu0 %vm192_vm1, %v11534_v45  ;;  %v4741_v49 = vpop.permute.xlu0 %4740 }
0x2239   :  { %11548 = vmatpush3.msra.mxu0 %v4743_v62  ;;  %11551 = vmatprep.mubr.msk.f32.mxu0 %vm3856_vm6, %v4737_v27 }
0x223a   :  { %11549 = vmatprep.subr.mxu0 %v4741_v49 }
0x223b   :  { %11550 = vmatpush3.msra.mxu0 %v4741_v49 }
0x223c   :  { %11554 = vmatprep.subr.mxu0 %v9943_v58 }
0x2242   :  { %v12307_v50 = vpop.eup %12306 }
0x2243   :  { %v4739_v38 = vmul.f32 %v12307_v50, %v12303_v34  ;;  %v9982_v34 = vld [vmem:[%s15094_s5 + $0x180] sm:$0xff] }
0x2245   :  { %11552 = vmatmul.mubr.msk.f32.vlgmr.msra.gmra.mxu0 %vm3856_vm6, %v4739_v38 }
0x2246   :  { %11555 = vmatpush3.msra.mxu0 %v9943_v58 }
0x2247   :  { %11594 = vmatprep.subr.mxu0 %v12463_v1 }
0x2269   :  { %v3589_v15 = vpop.xlane.xlu0 %3588 }
0x226a   :  { %v3594_v20 = vmul.f32 0.03125, %v3589_v15 }
0x226c   :  { %v3597_v55 = vsub.f32 %v13831_v3, %v3594_v20  ;;  %v3592_v3 = vpop.xlane.xlu1 %3591 }
0x226d   :  { %v3595_v26 = vmul.f32 0.03125, %v3592_v3  ;;  %v14021_v17 = vpop.xlane.xlu0 %3605 }
0x226e   :  { %v13982_v44 = vmul.f32 %v12994_v8, %v3597_v55 }
0x226f   :  { %v3598_v59 = vsub.f32 %v13958_v14, %v3595_v26  ;;  %v9993_v14 = vld [vmem:[%s15094_s5 + $0x1d8] sm:$0xff]  ;;  %v14100_v26 = vld [vmem:[%s15095_s6 + $0x3] ss:$0 sm:$0xff] }
0x2270   :  { %v3603_v56 = vmul.f32 %v13982_v44, %v13982_v44  ;;  %11567 = vmatprep.subr.mxu1 %v9993_v14 }
0x2271   :  { %v13996_v60 = vmul.f32 %v12994_v8, %v3598_v59  ;;  %v5101_v52 = vpop.permute.xlu0 %5100  ;;  %11568 = vmatpush3.msra.mxu1 %v9993_v14  ;;  %v3612_v59 = vmul.f32 0.03125, %v14021_v17 }
0x2272   :  { %3607 = vadd.xlane.f32.xlu1 %v3603_v56  ;;  %11569 = vmatprep.subr.mxu1 %v9992_v6 }
0x2273   :  { %v3604_v61 = vmul.f32 %v13996_v60, %v13996_v60  ;;  %11570 = vmatpush3.msra.mxu1 %v9992_v6 }
0x2274   :  { %11571 = vmatprep.subr.mxu1 %v9991_v53 }
0x2275   :  { %v3609_v10 = vsel %vm343_vm4, %v3604_v61, 0.0  ;;  %11572 = vmatpush3.msra.mxu1 %v9991_v53  ;;  %v3615_v61 = vadd.f32 1e-05, %v3612_v59 }
0x2276   :  { %11573 = vmatprep.subr.mxu1 %v9990_v24 }
0x2277   :  { %11574 = vmatpush3.msra.mxu1 %v9990_v24  ;;  %12308 = vrsqrt.f32 %v3615_v61 }
0x2278   :  { %11575 = vmatprep.subr.mxu1 %v9989_v57 }
0x2279   :  { %11576 = vmatpush3.msra.mxu1 %v9989_v57 }
0x227a   :  { %11577 = vmatprep.subr.mxu1 %v9988_v11 }
0x227b   :  { %11578 = vmatpush3.msra.mxu1 %v9988_v11 }
0x227c   :  { %11579 = vmatprep.subr.mxu1 %v9987_v28 }
0x227d   :  { %11580 = vmatpush3.msra.mxu1 %v9987_v28 }
0x227e   :  { %11581 = vmatprep.subr.mxu1 %v9986_v19 }
0x227f   :  { %11582 = vmatpush3.msra.mxu1 %v9986_v19 }
0x2280   :  { %11583 = vmatprep.subr.mxu1 %v9985_v0 }
0x2281   :  { %11584 = vmatpush3.msra.mxu1 %v9985_v0 }
0x2282   :  { %11585 = vmatprep.subr.mxu1 %v9984_v4 }
0x2283   :  { %5098 = vrot.lane.b32.xlu1 %v9996_v36, %s12465_s28  ;;  %11586 = vmatpush3.msra.mxu1 %v9984_v4 }
0x2284   :  { %11587 = vmatprep.subr.mxu1 %v9983_v7  ;;  %v12309_v46 = vpop.eup %12308 }
0x2285   :  { %11588 = vmatpush3.msra.mxu1 %v9983_v7 }
0x2286   :  { %11589 = vmatprep.subr.mxu1 %v9982_v34 }
0x2287   :  { %11590 = vmatpush3.msra.mxu1 %v9982_v34 }
0x22a7   :  { %3610 = vadd.xlane.f32.xlu1 %v3609_v10 }
0x22f8   :  { %v11539_v13 = vpop.f32.mrf.mxu0 }
0x22f9   :  { %v4622_v54 = vadd.f32 %v11539_v13, %v13943_v40  ;;  %v5097_v40 = vpop.permute.xlu0 %5096  ;;  %v3621_v13 = vmul.f32 %v12309_v46, %v13971_v29 }
0x22fa   :  { %v4612_v21 = vpop.f32.mrf.mxu0 }
0x22fb   :  { %v4621_v23 = vadd.f32 %v4612_v21, %v4334_v16  ;;  %v14023_v30 = vpop.xlane.xlu1 %3607  ;;  %v9919_v21 = vld [vmem:[%s15102_s13 + $0x3] ss:$0 sm:$0xff] }
0x22fc   :  { %v3613_v10 = vmul.f32 0.03125, %v14023_v30  ;;  %v3632_v17 = vmul.f32 %v9919_v21, %v3621_v13 }
0x22fd   :  { %v5095_v25 = vpop.permute.xlu0 %5094 }
0x22fe   :  { %v3616_v2 = vadd.f32 1e-05, %v3613_v10 }
0x22ff   :  { %v5099_v63 = vpop.permute.xlu1 %5098 }
0x2300   :  { %12310 = vrsqrt.f32 %v3616_v2 }
0x2305   :  { %v11553_v39 = vpop.f32.mrf.mxu0 }
0x2307   :  { %v4818_v51 = vpop.f32.mrf.mxu0 }
0x2308   :  { %11556 = vmatprep.mubr.msk.f32.mxu0 %vm192_vm1, %v4818_v51 }
0x2309   :  { %11557 = vmatmul.mubr.msk.f32.vlgmr.msra.gmra.mxu0 %vm192_vm1, %v11553_v39 }
0x230a   :  { %11626 = vmatprep.mubr.msk.f32.mxu0 %vm12464_vm0, %v12463_v1  ;;  %11595 = vmatpush3.msra.mxu0 %v5101_v52 }
0x230b   :  { %11596 = vmatprep.subr.mxu0 %v12463_v1 }
0x230c   :  { %11597 = vmatpush3.msra.mxu0 %v5099_v63 }
0x230d   :  { %11598 = vmatprep.subr.mxu0 %v12463_v1  ;;  %v12311_v16 = vpop.eup %12310 }
0x230e   :  { %11599 = vmatpush3.msra.mxu0 %v5097_v40  ;;  %v3622_v30 = vmul.f32 %v12311_v16, %v13982_v44  ;;  %v9921_v40 = vld [vmem:[%s15103_s14 + $0x3] ss:$0 sm:$0xff] }
0x230f   :  { %11600 = vmatprep.subr.mxu0 %v12463_v1 }
0x2310   :  { %11601 = vmatpush3.msra.mxu0 %v5095_v25 }
0x2311   :  { %11602 = vmatprep.subr.mxu0 %v12463_v1 }
0x2330   :  { %v3611_v35 = vpop.xlane.xlu1 %3610 }
0x2331   :  { %v3614_v5 = vmul.f32 0.03125, %v3611_v35 }
0x2333   :  { %v3617_v9 = vadd.f32 1e-05, %v3614_v5 }
0x2335   :  { %12312 = vrsqrt.f32 %v3617_v9 }
0x2342   :  { %v12313_v52 = vpop.eup %12312 }
0x23c9   :  { %v11558_v31 = vpop.f32.mrf.mxu0 }
0x23ca   :  { %v4909_v62 = vadd.f32 %v11558_v31, %v4622_v54 }
0x23cb   :  { %v4899_v32 = vpop.f32.mrf.mxu0 }
0x23cc   :  { %v4908_v33 = vadd.f32 %v4899_v32, %v4621_v23  ;;  %4912 = vadd.xlane.f32.xlu1 %v4909_v62 }
0x23ce   :  { %4910 = vadd.xlane.f32.xlu0 %v4908_v33 }
0x23dd   :  { %5088 = vrot.lane.b32.xlu1 %v9991_v53, %s12465_s28  ;;  %v3623_v53 = vmul.f32 %v12313_v52, %v13996_v60 }
0x23e1   :  { %5084 = vrot.lane.b32.xlu1 %v9989_v57, %s12465_s28 }
0x23e4   :  { %5092 = vrot.lane.b32.xlu0 %v9993_v14, %s12465_s28  ;;  %v14115_v14 = vadd.f32 %v9921_v40, %v3632_v17 }
0x23e5   :  { %5082 = vrot.lane.b32.xlu1 %v9988_v11, %s12465_s28 }
0x23e8   :  { %5090 = vrot.lane.b32.xlu0 %v9992_v6, %s12465_s28  ;;  %v3633_v6 = vmul.f32 %v9919_v21, %v3622_v30 }
0x23e9   :  { %5080 = vrot.lane.b32.xlu1 %v9987_v28, %s12465_s28  ;;  %v9979_v28 = vld [vmem:[%s15102_s13 + $0x4] ss:$0 sm:$0xff] }
0x23ea   :  { %v14121_v44 = vadd.f32 %v9921_v40, %v3633_v6 }
0x23ec   :  { %5086 = vrot.lane.b32.xlu0 %v9990_v24, %s12465_s28  ;;  %v3634_v24 = vmul.f32 %v9919_v21, %v3623_v53 }
0x23ed   :  { %5078 = vrot.lane.b32.xlu1 %v9986_v19, %s12465_s28 }
0x23ee   :  { %v14126_v57 = vadd.f32 %v9921_v40, %v3634_v24  ;;  %v10000_v24 = vld [vmem:[%s15096_s7 + $0x60] sm:$0xff] }
0x23f0   :  { %5076 = vrot.lane.b32.xlu0 %v9985_v0, %s12465_s28 }
0x23f1   :  { %5074 = vrot.lane.b32.xlu1 %v9984_v4, %s12465_s28 }
0x2455   :  { %v4913_v18 = vpop.xlane.xlu1 %4912 }
0x2456   :  { %v4915_v37 = vmul.f32 0.03125, %v4913_v18 }
0x2457   :  { %v4911_v22 = vpop.xlane.xlu0 %4910 }
0x2458   :  { %v4917_v41 = vsub.f32 %v4909_v62, %v4915_v37  ;;  %v4914_v42 = vmul.f32 0.03125, %v4911_v22  ;;  %v9981_v62 = vld [vmem:[%s15103_s14 + $0x4] ss:$0 sm:$0xff] }
0x2459   :  { %v5089_v43 = vpop.permute.xlu1 %5088 }
0x245a   :  { %v14076_v45 = vmul.f32 %v12994_v8, %v4917_v41  ;;  %v4916_v47 = vsub.f32 %v4908_v33, %v4914_v42 }
0x245b   :  { %v5093_v48 = vpop.permute.xlu0 %5092 }
0x245c   :  { %v14079_v27 = vmul.f32 %v12994_v8, %v4916_v47  ;;  %v4921_v49 = vmul.f32 %v14076_v45, %v14076_v45  ;;  %11603 = vmatpush3.msra.mxu0 %v5093_v48 }
0x245d   :  { %11604 = vmatprep.subr.mxu0 %v12463_v1  ;;  %v5085_v50 = vpop.permute.xlu1 %5084 }
0x245e   :  { %4924 = vadd.xlane.f32.xlu1 %v4921_v49  ;;  %v4920_v38 = vmul.f32 %v14079_v27, %v14079_v27 }
0x245f   :  { %v5091_v15 = vpop.permute.xlu0 %5090 }
0x2460   :  { %4922 = vadd.xlane.f32.xlu0 %v4920_v38  ;;  %11605 = vmatpush3.msra.mxu0 %v5091_v15 }
0x2461   :  { %11606 = vmatprep.subr.mxu0 %v12463_v1  ;;  %v5083_v20 = vpop.permute.xlu1 %5082 }
0x2462   :  { %11607 = vmatpush3.msra.mxu0 %v5089_v43 }
0x2463   :  { %11608 = vmatprep.subr.mxu0 %v12463_v1  ;;  %v5087_v55 = vpop.permute.xlu0 %5086 }
0x2464   :  { %11609 = vmatpush3.msra.mxu0 %v5087_v55 }
0x2465   :  { %11610 = vmatprep.subr.mxu0 %v12463_v1  ;;  %v5081_v56 = vpop.permute.xlu1 %5080 }
0x2466   :  { %11611 = vmatpush3.msra.mxu0 %v5085_v50  ;;  %v14174_v50 = vld [vmem:[%s15093_s4 + $0x8] sm:$0xff] }
0x2467   :  { %11612 = vmatprep.subr.mxu0 %v12463_v1  ;;  %v5077_v58 = vpop.permute.xlu0 %5076 }
0x2468   :  { %11613 = vmatpush3.msra.mxu0 %v5083_v20  ;;  %v14179_v20 = vld [vmem:[%s15093_s4] sm:$0xff] }
0x2469   :  { %11614 = vmatprep.subr.mxu0 %v12463_v1  ;;  %v5079_v36 = vpop.permute.xlu1 %5078 }
0x246a   :  { %11615 = vmatpush3.msra.mxu0 %v5081_v56 }
0x246b   :  { %11616 = vmatprep.subr.mxu0 %v12463_v1 }
0x246c   :  { %11617 = vmatpush3.msra.mxu0 %v5079_v36 }
0x246d   :  { %11618 = vmatprep.subr.mxu0 %v12463_v1  ;;  %v5075_v3 = vpop.permute.xlu1 %5074 }
0x246e   :  { %11619 = vmatpush3.msra.mxu0 %v5077_v58 }
0x246f   :  { %5070 = vrot.lane.b32.xlu1 %v9982_v34, %s12465_s28  ;;  %11620 = vmatprep.subr.mxu0 %v12463_v1 }
0x2470   :  { %11621 = vmatpush3.msra.mxu0 %v5075_v3 }
0x2471   :  { %11622 = vmatprep.subr.mxu0 %v12463_v1 }
0x2476   :  { %5072 = vrot.lane.b32.xlu0 %v9983_v7, %s12465_s28 }
0x247a   :  { %5118 = vrot.lane.b32.xlu0 %v14100_v26, %s12465_s28 }
0x24e7   :  { %v4925_v12 = vpop.xlane.xlu1 %4924 }
0x24e8   :  { %v4927_v54 = vmul.f32 0.03125, %v4925_v12 }
0x24e9   :  { %v4923_v23 = vpop.xlane.xlu0 %4922 }
0x24ea   :  { %v4929_v39 = vadd.f32 1e-05, %v4927_v54  ;;  %v4926_v51 = vmul.f32 0.03125, %v4923_v23 }
0x24eb   :  { %v5071_v25 = vpop.permute.xlu1 %5070 }
0x24ec   :  { %12314 = vrsqrt.f32 %v4929_v39  ;;  %v4928_v63 = vadd.f32 1e-05, %v4926_v51 }
0x24ed   :  { %v5073_v29 = vpop.permute.xlu0 %5072 }
0x24ee   :  { %12316 = vrsqrt.f32 %v4928_v63  ;;  %11623 = vmatpush3.msra.mxu0 %v5073_v29 }
0x24ef   :  { %11624 = vmatprep.subr.mxu0 %v12463_v1 }
0x24f0   :  { %11625 = vmatpush3.msra.mxu0 %v5071_v25 }
0x24f1   :  { %11627 = vmatmul.mubr.f32.vlgmr.msra.gmra.mxu0 %v14115_v14  ;;  %v5119_v37 = vpop.permute.xlu0 %5118 }
0x24f2   :  { %11629 = vmatprep.mubr.msk.f32.mxu0 %vm12464_vm0, %v12463_v1 }
0x24f5   :  { %11630 = vmatmul.mubr.f32.gmra.mxu0 %v14121_v44 }
0x24f6   :  { %11632 = vmatprep.mubr.msk.f32.mxu0 %vm12464_vm0, %v12463_v1 }
0x24f9   :  { %v12315_v11 = vpop.eup %12314  ;;  %11633 = vmatmul.mubr.f32.gmra.mxu0 %v14126_v57 }
0x24fa   :  { %v4933_v60 = vmul.f32 %v12315_v11, %v14076_v45 }
0x24fb   :  { %v12317_v19 = vpop.eup %12316 }
0x24fc   :  { %v4932_v0 = vmul.f32 %v12317_v19, %v14079_v27  ;;  %v4943_v4 = vmul.f32 %v9979_v28, %v4933_v60 }
0x24fe   :  { %v4942_v31 = vmul.f32 %v9979_v28, %v4932_v0  ;;  %v14139_v33 = vadd.f32 %v9981_v62, %v4943_v4 }
0x2500   :  { %v14137_v32 = vadd.f32 %v9981_v62, %v4942_v31 }
0x2502   :  { %11591 = vmatprep.mubr.f32.mxu1 %v14137_v32 }
0x2503   :  { %11592 = vmatmul.mubr.f32.vlgmr.msra.gmra.mxu1 %v14139_v33 }
0x25b1   :  { %v5187_v7 = vpop.f32.mrf.mxu0 }
0x25b2   :  { %v14153_v45 = vadd.f32 %v5187_v7, %v5119_v37 }
0x25b3   :  { %v11628_v34 = vpop.f32.mrf.mxu0 }
0x25b5   :  { %v5192_v35 = vpop.f32.mrf.mxu0 }
0x25b6   :  { %v14145_v43 = vadd.f32 %v5192_v35, %v5119_v37 }
0x25b7   :  { %v11631_v18 = vpop.f32.mrf.mxu0 }
0x25b9   :  { %v5197_v22 = vpop.f32.mrf.mxu0 }
0x25ba   :  { %v14143_v41 = vadd.f32 %v5197_v22, %v5119_v37 }
0x25bb   :  { %v11634_v42 = vpop.f32.mrf.mxu0 }
0x25bc   :  { %11635 = vmatprep.subr.msk.mxu1 %vm192_vm1, %v14143_v41 }
0x25bd   :  { %11636 = vmatpush3.xpose.msk.msra.mxu1 %vm192_vm1, %v14143_v41 }
0x25be   :  { %11637 = vmatprep.subr.msk.mxu1 %vm192_vm1, %v14145_v43 }
0x25c1   :  { %11638 = vmatpush3.xpose.msk.msra.mxu1 %vm192_vm1, %v14145_v43 }
0x25c2   :  { %11639 = vmatprep.subr.msk.mxu1 %vm192_vm1, %v14153_v45 }
0x25c3   :  { %v11593_v47 = vpop.f32.mrf.mxu1 }
0x25c4   :  { %v14165_v49 = vadd.f32 %v11593_v47, %v14100_v26 }
0x25c5   :  { %v5045_v48 = vpop.f32.mrf.mxu1  ;;  %11640 = vmatpush3.xpose.msk.msra.mxu1 %vm192_vm1, %v14153_v45 }
0x25c6   :  { %v14162_v27 = vadd.f32 %v14100_v26, %v5045_v48  ;;  %11653 = vmatprep.subr.mxu1 %v10000_v24 }
0x25c8   :  { %11641 = vmatprep.mubr.msk.f32.mxu1 %vm192_vm1, %v14162_v27 }
0x25c9   :  { %11642 = vmatmul.mubr.msk.f32.vlgmr.msra.gmra.mxu1 %vm192_vm1, %v14165_v49 }
0x25ca   :  { %11654 = vmatpush3.msra.mxu1 %v10000_v24 }
0x2689   :  { %v11643_v38 = vpop.f32.mrf.mxu1 }
0x268a   :  { %v5307_v15 = vmul.f32 0.35355338, %v11643_v38 }
0x268b   :  { %v5297_v55 = vpop.f32.mrf.mxu1 }
0x268c   :  { %v5309_v56 = vadd.f32 %v5307_v15, %v14174_v50  ;;  %v5306_v36 = vmul.f32 0.35355338, %v5297_v55 }
0x268e   :  { %v5308_v58 = vadd.f32 %v5306_v36, %v14179_v20  ;;  %v5313_v3 = vsel %vm291_vm2, %v5309_v56, -inf }
0x268f   :  { %5314 = vmax.xlane.f32.xlu0 %v5313_v3 }
0x2690   :  { %v5310_v26 = vsel %vm291_vm2, %v5308_v58, -inf }
0x2691   :  { %5311 = vmax.xlane.f32.xlu1 %v5310_v26 }
0x26a2   :  { %5334 = vrot.lane.b32.xlu1 %v14145_v43, %s12465_s28 }
0x26a5   :  { %5336 = vrot.lane.b32.xlu0 %v14143_v41, %s12465_s28 }
0x26a6   :  { %5332 = vrot.lane.b32.xlu1 %v14153_v45, %s12465_s28 }
0x2718   :  { %v5315_v59 = vpop.xlane.xlu0 %5314 }
0x2719   :  { %v5317_v61 = vsub.f32 %v5309_v56, %v5315_v59  ;;  %v10005_v56 = vld [vmem:[%s15097_s8 + $0x3] ss:$0 sm:$0xff] }
0x271a   :  { %v5312_v10 = vpop.xlane.xlu1 %5311  ;;  %v5215_v36 = vadd.f32 %v10005_v56, %v14139_v33 }
0x271b   :  { %v5320_v2 = vmul.f32 1.442695, %v5317_v61  ;;  %v5316_v5 = vsub.f32 %v5308_v58, %v5312_v10 }
0x271c   :  { %v5337_v9 = vpop.permute.xlu0 %5336 }
0x271d   :  { %12318 = vpow2.f32 %v5320_v2  ;;  %v5318_v46 = vmul.f32 1.442695, %v5316_v5  ;;  %11644 = vmatprep.subr.msk.mxu0 %vm343_vm4, %v5337_v9  ;;  %v10001_v2 = vld [vmem:[%s15096_s7 + $0x68] sm:$0xff] }
0x271e   :  { %11645 = vmatpush3.msk.msra.mxu0 %vm343_vm4, %v5337_v9  ;;  %v5335_v12 = vpop.permute.xlu1 %5334 }
0x271f   :  { %12320 = vpow2.f32 %v5318_v46  ;;  %11646 = vmatprep.subr.mxu0 %v5335_v12 }
0x2720   :  { %11647 = vmatpush3.msra.mxu0 %v5335_v12 }
0x2722   :  { %v5333_v13 = vpop.permute.xlu1 %5332 }
0x2723   :  { %11648 = vmatprep.subr.mxu0 %v5333_v13 }
0x2724   :  { %11649 = vmatpush3.msra.mxu0 %v5333_v13 }
0x272a   :  { %v12319_v16 = vpop.eup %12318 }
0x272b   :  { %v5325_v54 = vsel %vm291_vm2, %v12319_v16, 0.0 }
0x272c   :  { %v12321_v21 = vpop.eup %12320  ;;  %5326 = vadd.xlane.f32.xlu1 %v5325_v54 }
0x272d   :  { %v5322_v23 = vsel %vm291_vm2, %v12321_v21, 0.0 }
0x272e   :  { %5323 = vadd.xlane.f32.xlu0 %v5322_v23 }
0x273d   :  { %5512 = vrot.lane.b32.xlu1 %v14145_v43, %s12467_s29 }
0x2741   :  { %5506 = vrot.lane.b32.xlu1 %v14162_v27, %s12467_s29 }
0x2744   :  { %5514 = vrot.lane.b32.xlu0 %v14143_v41, %s12467_s29 }
0x2748   :  { %5510 = vrot.lane.b32.xlu0 %v14153_v45, %s12467_s29 }
0x274c   :  { %5508 = vrot.lane.b32.xlu0 %v14165_v49, %s12467_s29 }
0x27b5   :  { %v5327_v39 = vpop.xlane.xlu1 %5326 }
0x27b6   :  { %12322 = vrcp.f32 %v5327_v39 }
0x27b7   :  { %v5324_v51 = vpop.xlane.xlu0 %5323 }
0x27b8   :  { %12324 = vrcp.f32 %v5324_v51 }
0x27b9   :  { %v5513_v30 = vpop.permute.xlu1 %5512 }
0x27bb   :  { %v5515_v17 = vpop.permute.xlu0 %5514 }
0x27bc   :  { %11658 = vmatprep.subr.msk.mxu0 %vm192_vm1, %v5515_v17 }
0x27bd   :  { %v5507_v25 = vpop.permute.xlu1 %5506 }
0x27bf   :  { %v5511_v6 = vpop.permute.xlu0 %5510 }
0x27c3   :  { %v12323_v52 = vpop.eup %12322  ;;  %v5509_v53 = vpop.permute.xlu0 %5508 }
0x27c4   :  { %v5331_v29 = vmul.f32 %v12323_v52, %v12319_v16 }
0x27c5   :  { %v12325_v63 = vpop.eup %12324 }
0x27c6   :  { %v5329_v40 = vmul.f32 %v12325_v63, %v12321_v21 }
0x27c8   :  { %11650 = vmatprep.mubr.msk.f32.mxu0 %vm291_vm2, %v5329_v40 }
0x27c9   :  { %11651 = vmatmul.mubr.msk.f32.vlgmr.msra.gmra.mxu0 %vm291_vm2, %v5331_v29 }
0x27ca   :  { %11659 = vmatpush3.xpose.msk.msra.mxu0 %vm192_vm1, %v5515_v17  ;;  %11664 = vmatprep.mubr.msk.f32.mxu0 %vm192_vm1, %v5507_v25 }
0x27cb   :  { %11660 = vmatprep.subr.msk.mxu0 %vm192_vm1, %v5513_v30 }
0x27ce   :  { %11661 = vmatpush3.xpose.msk.msra.mxu0 %vm192_vm1, %v5513_v30  ;;  %v5214_v30 = vadd.f32 %v10005_v56, %v14137_v32 }
0x27cf   :  { %11662 = vmatprep.subr.msk.mxu0 %vm192_vm1, %v5511_v6 }
0x27d2   :  { %11663 = vmatpush3.xpose.msk.msra.mxu0 %vm192_vm1, %v5511_v6 }
0x27d5   :  { %11665 = vmatmul.mubr.msk.f32.vlgmr.msra.gmra.mxu0 %vm192_vm1, %v5509_v53 }
0x2889   :  { %v11652_v11 = vpop.f32.mrf.mxu0 }
0x288b   :  { %v5414_v60 = vpop.f32.mrf.mxu0 }
0x288c   :  { %11655 = vmatprep.mubr.msk.f32.mxu1 %vm192_vm1, %v5414_v60 }
0x288d   :  { %11656 = vmatmul.mubr.msk.f32.vlgmr.msra.gmra.mxu1 %vm192_vm1, %v11652_v11 }
0x2895   :  { %v11666_v28 = vpop.f32.mrf.mxu0 }
0x2896   :  { %v5602_v19 = vmul.f32 0.35355338, %v11666_v28 }
0x2897   :  { %v5592_v0 = vpop.f32.mrf.mxu0 }
0x2898   :  { %v5604_v4 = vadd.f32 %v5602_v19, %v14174_v50  ;;  %v5601_v31 = vmul.f32 0.35355338, %v5592_v0 }
0x289a   :  { %v5603_v62 = vadd.f32 %v5601_v31, %v14179_v20  ;;  %v5608_v7 = vsel %vm291_vm2, %v5604_v4, -inf }
0x289b   :  { %5609 = vmax.xlane.f32.xlu0 %v5608_v7 }
0x289c   :  { %v5605_v34 = vsel %vm291_vm2, %v5603_v62, -inf }
0x289d   :  { %5606 = vmax.xlane.f32.xlu1 %v5605_v34 }
0x2924   :  { %v5610_v35 = vpop.xlane.xlu0 %5609 }
0x2925   :  { %v5612_v18 = vsub.f32 %v5604_v4, %v5610_v35 }
0x2926   :  { %v5607_v37 = vpop.xlane.xlu1 %5606 }
0x2927   :  { %v5615_v22 = vmul.f32 1.442695, %v5612_v18  ;;  %v5611_v42 = vsub.f32 %v5603_v62, %v5607_v37 }
0x2929   :  { %12326 = vpow2.f32 %v5615_v22  ;;  %v5613_v47 = vmul.f32 1.442695, %v5611_v42 }
0x292b   :  { %12328 = vpow2.f32 %v5613_v47 }
0x2936   :  { %v12327_v48 = vpop.eup %12326 }
0x2937   :  { %v5620_v38 = vsel %vm291_vm2, %v12327_v48, 0.0 }
0x2938   :  { %v12329_v15 = vpop.eup %12328  ;;  %5621 = vadd.xlane.f32.xlu1 %v5620_v38 }
0x2939   :  { %v5617_v55 = vsel %vm291_vm2, %v12329_v15, 0.0 }
0x293a   :  { %5618 = vadd.xlane.f32.xlu0 %v5617_v55 }
0x2949   :  { %5629 = vrot.lane.b32.xlu1 %v14145_v43, %s12466_s0 }
0x294d   :  { %5627 = vrot.lane.b32.xlu1 %v14153_v45, %s12466_s0  ;;  %v11657_v58 = vpop.f32.mrf.mxu1 }
0x294e   :  { %v5505_v3 = vadd.f32 %v11657_v58, %v5215_v36 }
0x294f   :  { %v5495_v16 = vpop.f32.mrf.mxu1 }
0x2950   :  { %5631 = vrot.lane.b32.xlu0 %v14143_v41, %s12466_s0  ;;  %v5504_v63 = vadd.f32 %v5495_v16, %v5214_v30 }
0x2951   :  { %5807 = vrot.lane.b32.xlu1 %v14145_v43, %s15120_s17 }
0x2954   :  { %5809 = vrot.lane.b32.xlu0 %v14143_v41, %s15120_s17 }
0x2955   :  { %5801 = vrot.lane.b32.xlu1 %v14162_v27, %s15120_s17 }
0x2958   :  { %5805 = vrot.lane.b32.xlu0 %v14153_v45, %s15120_s17 }
0x295c   :  { %5803 = vrot.lane.b32.xlu0 %v14165_v49, %s15120_s17 }
0x29c1   :  { %v5622_v33 = vpop.xlane.xlu1 %5621 }
0x29c2   :  { %12330 = vrcp.f32 %v5622_v33 }
0x29c3   :  { %v5619_v26 = vpop.xlane.xlu0 %5618 }
0x29c4   :  { %12332 = vrcp.f32 %v5619_v26 }
0x29c5   :  { %v5630_v59 = vpop.permute.xlu1 %5629 }
0x29c7   :  { %v5632_v61 = vpop.permute.xlu0 %5631 }
0x29c8   :  { %11667 = vmatprep.subr.msk.mxu1 %vm343_vm4, %v5632_v61 }
0x29c9   :  { %11668 = vmatpush3.msk.msra.mxu1 %vm343_vm4, %v5632_v61  ;;  %v5628_v10 = vpop.permute.xlu1 %5627 }
0x29ca   :  { %11669 = vmatprep.subr.mxu1 %v5630_v59 }
0x29cb   :  { %11670 = vmatpush3.msra.mxu1 %v5630_v59  ;;  %v5810_v13 = vpop.permute.xlu0 %5809 }
0x29cc   :  { %11671 = vmatprep.subr.mxu1 %v5628_v10 }
0x29cd   :  { %11672 = vmatpush3.msra.mxu1 %v5628_v10  ;;  %v5808_v54 = vpop.permute.xlu1 %5807 }
0x29ce   :  { %11676 = vmatprep.subr.mxu1 %v10001_v2 }
0x29cf   :  { %v12331_v5 = vpop.eup %12330  ;;  %v5806_v51 = vpop.permute.xlu0 %5805 }
0x29d0   :  { %v5626_v12 = vmul.f32 %v12331_v5, %v12327_v48 }
0x29d1   :  { %v12333_v9 = vpop.eup %12332  ;;  %v5802_v39 = vpop.permute.xlu1 %5801 }
0x29d2   :  { %v5624_v46 = vmul.f32 %v12333_v9, %v12329_v15 }
0x29d3   :  { %v5804_v17 = vpop.permute.xlu0 %5803 }
0x29d4   :  { %11673 = vmatprep.mubr.msk.f32.mxu1 %vm291_vm2, %v5624_v46 }
0x29d5   :  { %11674 = vmatmul.mubr.msk.f32.vlgmr.msra.gmra.mxu1 %vm291_vm2, %v5626_v12 }
0x29d6   :  { %11677 = vmatpush3.msra.mxu1 %v10001_v2 }
0x29d7   :  { %11681 = vmatprep.subr.msk.mxu1 %vm192_vm1, %v5810_v13 }
0x2a95   :  { %v11675_v21 = vpop.f32.mrf.mxu1 }
0x2a97   :  { %v5709_v23 = vpop.f32.mrf.mxu1 }
0x2a98   :  { %11678 = vmatprep.mubr.msk.f32.mxu1 %vm192_vm1, %v5709_v23 }
0x2a99   :  { %11679 = vmatmul.mubr.msk.f32.vlgmr.msra.gmra.mxu1 %vm192_vm1, %v11675_v21 }
0x2a9a   :  { %11682 = vmatpush3.xpose.msk.msra.mxu1 %vm192_vm1, %v5810_v13  ;;  %11687 = vmatprep.mubr.msk.f32.mxu1 %vm192_vm1, %v5802_v39 }
0x2a9b   :  { %11683 = vmatprep.subr.msk.mxu1 %vm192_vm1, %v5808_v54 }
0x2a9e   :  { %11684 = vmatpush3.xpose.msk.msra.mxu1 %vm192_vm1, %v5808_v54 }
0x2a9f   :  { %11685 = vmatprep.subr.msk.mxu1 %vm192_vm1, %v5806_v51 }
0x2aa2   :  { %11686 = vmatpush3.xpose.msk.msra.mxu1 %vm192_vm1, %v5806_v51 }
0x2aa5   :  { %11688 = vmatmul.mubr.msk.f32.vlgmr.msra.gmra.mxu1 %vm192_vm1, %v5804_v17 }
0x2b59   :  { %v11680_v52 = vpop.f32.mrf.mxu1 }
0x2b5a   :  { %v14264_v40 = vadd.f32 %v11680_v52, %v5505_v3 }
0x2b5b   :  { %v5790_v29 = vpop.f32.mrf.mxu1 }
0x2b5c   :  { %v14266_v25 = vadd.f32 %v5790_v29, %v5504_v63 }
0x2b65   :  { %v11689_v6 = vpop.f32.mrf.mxu1 }
0x2b66   :  { %v5897_v53 = vmul.f32 0.35355338, %v11689_v6 }
0x2b67   :  { %v5887_v24 = vpop.f32.mrf.mxu1 }
0x2b68   :  { %v5899_v11 = vadd.f32 %v5897_v53, %v14174_v50  ;;  %v5896_v60 = vmul.f32 0.35355338, %v5887_v24 }
0x2b6a   :  { %v5898_v28 = vadd.f32 %v5896_v60, %v14179_v20  ;;  %v5903_v19 = vsel %vm291_vm2, %v5899_v11, -inf }
0x2b6b   :  { %5904 = vmax.xlane.f32.xlu0 %v5903_v19 }
0x2b6c   :  { %v5900_v32 = vsel %vm291_vm2, %v5898_v28, -inf }
0x2b6d   :  { %5901 = vmax.xlane.f32.xlu1 %v5900_v32 }
0x2bf4   :  { %v5905_v0 = vpop.xlane.xlu0 %5904 }
0x2bf5   :  { %v5907_v4 = vsub.f32 %v5899_v11, %v5905_v0 }
0x2bf6   :  { %v5902_v31 = vpop.xlane.xlu1 %5901 }
0x2bf7   :  { %v5910_v62 = vmul.f32 1.442695, %v5907_v4  ;;  %v5906_v7 = vsub.f32 %v5898_v28, %v5902_v31 }
0x2bf9   :  { %12334 = vpow2.f32 %v5910_v62  ;;  %v5908_v34 = vmul.f32 1.442695, %v5906_v7 }
0x2bfb   :  { %12336 = vpow2.f32 %v5908_v34 }
0x2c06   :  { %v12335_v35 = vpop.eup %12334 }
0x2c07   :  { %v5915_v18 = vsel %vm291_vm2, %v12335_v35, 0.0 }
0x2c08   :  { %v12337_v37 = vpop.eup %12336  ;;  %5916 = vadd.xlane.f32.xlu1 %v5915_v18  ;;  %v10064_v18 = vld [vmem:[%s15098_s9 + $0x170] sm:$0xff] }
0x2c09   :  { %v5912_v22 = vsel %vm291_vm2, %v12337_v37, 0.0 }
0x2c0a   :  { %5913 = vadd.xlane.f32.xlu0 %v5912_v22 }
0x2c19   :  { %5924 = vrot.lane.b32.xlu1 %v14145_v43, %s12470_s25 }
0x2c1d   :  { %5922 = vrot.lane.b32.xlu1 %v14153_v45, %s12470_s25 }
0x2c20   :  { %5926 = vrot.lane.b32.xlu0 %v14143_v41, %s12470_s25 }
0x2c21   :  { %6102 = vrot.lane.b32.xlu1 %v14145_v43, %s15118_s27 }
0x2c24   :  { %6104 = vrot.lane.b32.xlu0 %v14143_v41, %s15118_s27 }
0x2c25   :  { %6096 = vrot.lane.b32.xlu1 %v14162_v27, %s15118_s27  ;;  %v10002_v27 = vld [vmem:[%s15096_s7 + $0x70] sm:$0xff] }
0x2c28   :  { %6100 = vrot.lane.b32.xlu0 %v14153_v45, %s15118_s27 }
0x2c2c   :  { %6098 = vrot.lane.b32.xlu0 %v14165_v49, %s15118_s27 }
0x2c91   :  { %v5917_v42 = vpop.xlane.xlu1 %5916 }
0x2c92   :  { %12338 = vrcp.f32 %v5917_v42 }
0x2c93   :  { %v5914_v47 = vpop.xlane.xlu0 %5913 }
0x2c94   :  { %12340 = vrcp.f32 %v5914_v47 }
0x2c95   :  { %v5925_v48 = vpop.permute.xlu1 %5924 }
0x2c97   :  { %v5927_v38 = vpop.permute.xlu0 %5926 }
0x2c98   :  { %11690 = vmatprep.subr.msk.mxu0 %vm343_vm4, %v5927_v38 }
0x2c99   :  { %11691 = vmatpush3.msk.msra.mxu0 %vm343_vm4, %v5927_v38  ;;  %v5923_v15 = vpop.permute.xlu1 %5922 }
0x2c9a   :  { %11692 = vmatprep.subr.mxu0 %v5925_v48 }
0x2c9b   :  { %11693 = vmatpush3.msra.mxu0 %v5925_v48  ;;  %v6105_v58 = vpop.permute.xlu0 %6104 }
0x2c9c   :  { %11694 = vmatprep.subr.mxu0 %v5923_v15 }
0x2c9d   :  { %11695 = vmatpush3.msra.mxu0 %v5923_v15  ;;  %v6103_v3 = vpop.permute.xlu1 %6102 }
0x2c9e   :  { %11699 = vmatprep.subr.mxu0 %v10002_v27 }
0x2c9f   :  { %v12339_v49 = vpop.eup %12338  ;;  %v6101_v61 = vpop.permute.xlu0 %6100 }
0x2ca0   :  { %v5921_v36 = vmul.f32 %v12339_v49, %v12335_v35  ;;  %v10065_v35 = vld [vmem:[%s15098_s9 + $0x178] sm:$0xff] }
0x2ca1   :  { %v12341_v55 = vpop.eup %12340  ;;  %v6097_v59 = vpop.permute.xlu1 %6096 }
0x2ca2   :  { %v5919_v56 = vmul.f32 %v12341_v55, %v12337_v37 }
0x2ca3   :  { %v6099_v10 = vpop.permute.xlu0 %6098 }
0x2ca4   :  { %11696 = vmatprep.mubr.msk.f32.mxu0 %vm291_vm2, %v5919_v56  ;;  %v10063_v56 = vld [vmem:[%s15098_s9 + $0x168] sm:$0xff] }
0x2ca5   :  { %11697 = vmatmul.mubr.msk.f32.vlgmr.msra.gmra.mxu0 %vm291_vm2, %v5921_v36  ;;  %v10062_v36 = vld [vmem:[%s15098_s9 + $0x160] sm:$0xff] }
0x2ca6   :  { %11700 = vmatpush3.msra.mxu0 %v10002_v27 }
0x2ca7   :  { %11704 = vmatprep.subr.msk.mxu0 %vm192_vm1, %v6105_v58 }
0x2d65   :  { %v11698_v33 = vpop.f32.mrf.mxu0 }
0x2d67   :  { %v6004_v26 = vpop.f32.mrf.mxu0 }
0x2d68   :  { %11701 = vmatprep.mubr.msk.f32.mxu0 %vm192_vm1, %v6004_v26  ;;  %v10058_v26 = vld [vmem:[%s15098_s9 + $0x140] sm:$0xff] }
0x2d69   :  { %11702 = vmatmul.mubr.msk.f32.vlgmr.msra.gmra.mxu0 %vm192_vm1, %v11698_v33  ;;  %v10059_v33 = vld [vmem:[%s15098_s9 + $0x148] sm:$0xff] }
0x2d6a   :  { %11705 = vmatpush3.xpose.msk.msra.mxu0 %vm192_vm1, %v6105_v58  ;;  %11710 = vmatprep.mubr.msk.f32.mxu0 %vm192_vm1, %v6097_v59  ;;  %v10061_v58 = vld [vmem:[%s15098_s9 + $0x158] sm:$0xff] }
0x2d6b   :  { %11706 = vmatprep.subr.msk.mxu0 %vm192_vm1, %v6103_v3  ;;  %v10057_v59 = vld [vmem:[%s15098_s9 + $0x138] sm:$0xff] }
0x2d6e   :  { %11707 = vmatpush3.xpose.msk.msra.mxu0 %vm192_vm1, %v6103_v3  ;;  %v10060_v3 = vld [vmem:[%s15098_s9 + $0x150] sm:$0xff] }
0x2d6f   :  { %11708 = vmatprep.subr.msk.mxu0 %vm192_vm1, %v6101_v61 }
0x2d72   :  { %11709 = vmatpush3.xpose.msk.msra.mxu0 %vm192_vm1, %v6101_v61  ;;  %v10056_v61 = vld [vmem:[%s15098_s9 + $0x130] sm:$0xff] }
0x2d75   :  { %11711 = vmatmul.mubr.msk.f32.vlgmr.msra.gmra.mxu0 %vm192_vm1, %v6099_v10  ;;  %v10055_v10 = vld [vmem:[%s15098_s9 + $0x128] sm:$0xff] }
0x2e29   :  { %v11703_v2 = vpop.f32.mrf.mxu0 }
0x2e2a   :  { %v6095_v5 = vadd.f32 %v11703_v2, %v14264_v40  ;;  %v10054_v2 = vld [vmem:[%s15098_s9 + $0x120] sm:$0xff] }
0x2e2b   :  { %v6085_v9 = vpop.f32.mrf.mxu0 }
0x2e2c   :  { %v6094_v46 = vadd.f32 %v6085_v9, %v14266_v25  ;;  %v10052_v9 = vld [vmem:[%s15098_s9 + $0x110] sm:$0xff] }
0x2e35   :  { %v11712_v12 = vpop.f32.mrf.mxu0 }
0x2e36   :  { %v6192_v13 = vmul.f32 0.35355338, %v11712_v12  ;;  %v10050_v12 = vld [vmem:[%s15098_s9 + $0x100] sm:$0xff] }
0x2e37   :  { %v6182_v16 = vpop.f32.mrf.mxu0 }
0x2e38   :  { %v6194_v54 = vadd.f32 %v6192_v13, %v14174_v50  ;;  %v6191_v21 = vmul.f32 0.35355338, %v6182_v16  ;;  %v10083_v13 = vld [vmem:[%s15100_s11 + $0x178] sm:$0xff]  ;;  %v10082_v16 = vld [vmem:[%s15100_s11 + $0x170] sm:$0xff] }
0x2e39   :  { %11762 = vmatprep.subr.mxu0 %v10083_v13 }
0x2e3a   :  { %v6193_v23 = vadd.f32 %v6191_v21, %v14179_v20  ;;  %v6198_v39 = vsel %vm291_vm2, %v6194_v54, -inf  ;;  %11763 = vmatpush3.msra.mxu0 %v10083_v13  ;;  %v10080_v21 = vld [vmem:[%s15100_s11 + $0x160] sm:$0xff] }
0x2e3b   :  { %6199 = vmax.xlane.f32.xlu0 %v6198_v39  ;;  %11764 = vmatprep.subr.mxu0 %v10082_v16  ;;  %v10078_v39 = vld [vmem:[%s15100_s11 + $0x150] sm:$0xff]  ;;  %v10102_v13 = vld [vmem:[%s15094_s5 + $0x260] sm:$0xff] }
0x2e3c   :  { %v6195_v51 = vsel %vm291_vm2, %v6193_v23, -inf  ;;  %11765 = vmatpush3.msra.mxu0 %v10082_v16  ;;  %v10101_v16 = vld [vmem:[%s15094_s5 + $0x258] sm:$0xff] }
0x2e3d   :  { %6196 = vmax.xlane.f32.xlu1 %v6195_v51  ;;  %v10077_v51 = vld [vmem:[%s15100_s11 + $0x148] sm:$0xff] }
0x2ec4   :  { %v6200_v17 = vpop.xlane.xlu0 %6199 }
0x2ec5   :  { %v6202_v30 = vsub.f32 %v6194_v54, %v6200_v17  ;;  %v10081_v54 = vld [vmem:[%s15100_s11 + $0x168] sm:$0xff]  ;;  %v10076_v17 = vld [vmem:[%s15100_s11 + $0x140] sm:$0xff] }
0x2ec6   :  { %v6197_v52 = vpop.xlane.xlu1 %6196  ;;  %11766 = vmatprep.subr.mxu0 %v10081_v54 }
0x2ec7   :  { %v6205_v63 = vmul.f32 1.442695, %v6202_v30  ;;  %v6201_v40 = vsub.f32 %v6193_v23, %v6197_v52  ;;  %11767 = vmatpush3.msra.mxu0 %v10081_v54  ;;  %v10079_v23 = vld [vmem:[%s15100_s11 + $0x158] sm:$0xff]  ;;  %v10074_v52 = vld [vmem:[%s15100_s11 + $0x130] sm:$0xff] }
0x2ec8   :  { %11768 = vmatprep.subr.mxu0 %v10080_v21  ;;  %v10075_v30 = vld [vmem:[%s15100_s11 + $0x138] sm:$0xff]  ;;  %v10100_v54 = vld [vmem:[%s15094_s5 + $0x250] sm:$0xff] }
0x2ec9   :  { %12342 = vpow2.f32 %v6205_v63  ;;  %v6203_v29 = vmul.f32 1.442695, %v6201_v40  ;;  %11769 = vmatpush3.msra.mxu0 %v10080_v21  ;;  %v10073_v63 = vld [vmem:[%s15100_s11 + $0x128] sm:$0xff]  ;;  %v10072_v40 = vld [vmem:[%s15100_s11 + $0x120] sm:$0xff] }
0x2eca   :  { %11770 = vmatprep.subr.mxu0 %v10079_v23  ;;  %v10099_v21 = vld [vmem:[%s15094_s5 + $0x248] sm:$0xff] }
0x2ecb   :  { %12344 = vpow2.f32 %v6203_v29  ;;  %11771 = vmatpush3.msra.mxu0 %v10079_v23  ;;  %v10098_v23 = vld [vmem:[%s15094_s5 + $0x240] sm:$0xff] }
0x2ecc   :  { %11772 = vmatprep.subr.mxu0 %v10078_v39 }
0x2ecd   :  { %11773 = vmatpush3.msra.mxu0 %v10078_v39  ;;  %v10097_v39 = vld [vmem:[%s15094_s5 + $0x238] sm:$0xff] }
0x2ece   :  { %11774 = vmatprep.subr.mxu0 %v10077_v51 }
0x2ecf   :  { %11775 = vmatpush3.msra.mxu0 %v10077_v51  ;;  %v10096_v51 = vld [vmem:[%s15094_s5 + $0x230] sm:$0xff] }
0x2ed0   :  { %11776 = vmatprep.subr.mxu0 %v10076_v17 }
0x2ed1   :  { %11777 = vmatpush3.msra.mxu0 %v10076_v17  ;;  %v10095_v17 = vld [vmem:[%s15094_s5 + $0x228] sm:$0xff] }
0x2ed2   :  { %11778 = vmatprep.subr.mxu0 %v10075_v30 }
0x2ed3   :  { %11779 = vmatpush3.msra.mxu0 %v10075_v30  ;;  %v10094_v30 = vld [vmem:[%s15094_s5 + $0x220] sm:$0xff] }
0x2ed4   :  { %11780 = vmatprep.subr.mxu0 %v10074_v52 }
0x2ed5   :  { %11781 = vmatpush3.msra.mxu0 %v10074_v52  ;;  %v10093_v52 = vld [vmem:[%s15094_s5 + $0x218] sm:$0xff] }
0x2ed6   :  { %v12343_v25 = vpop.eup %12342  ;;  %11782 = vmatprep.subr.mxu0 %v10073_v63 }
0x2ed7   :  { %v6210_v50 = vsel %vm291_vm2, %v12343_v25, 0.0  ;;  %11783 = vmatpush3.msra.mxu0 %v10073_v63  ;;  %v10092_v63 = vld [vmem:[%s15094_s5 + $0x210] sm:$0xff] }
0x2ed8   :  { %v12345_v6 = vpop.eup %12344  ;;  %6211 = vadd.xlane.f32.xlu1 %v6210_v50  ;;  %11784 = vmatprep.subr.mxu0 %v10072_v40 }
0x2ed9   :  { %v6207_v20 = vsel %vm291_vm2, %v12345_v6, 0.0  ;;  %11785 = vmatpush3.msra.mxu0 %v10072_v40  ;;  %v10091_v40 = vld [vmem:[%s15094_s5 + $0x208] sm:$0xff] }
0x2eda   :  { %6208 = vadd.xlane.f32.xlu0 %v6207_v20 }
0x2ee9   :  { %6219 = vrot.lane.b32.xlu1 %v14145_v43, %s15117_s20 }
0x2eed   :  { %6217 = vrot.lane.b32.xlu1 %v14153_v45, %s15117_s20 }
0x2ef0   :  { %6221 = vrot.lane.b32.xlu0 %v14143_v41, %s15117_s20  ;;  %v10003_v41 = vld [vmem:[%s15096_s7 + $0x78] sm:$0xff] }
0x2f61   :  { %v6212_v53 = vpop.xlane.xlu1 %6211 }
0x2f62   :  { %12346 = vrcp.f32 %v6212_v53 }
0x2f63   :  { %v6209_v24 = vpop.xlane.xlu0 %6208 }
0x2f64   :  { %12348 = vrcp.f32 %v6209_v24 }
0x2f65   :  { %v6220_v11 = vpop.permute.xlu1 %6219 }
0x2f67   :  { %v6222_v60 = vpop.permute.xlu0 %6221 }
0x2f68   :  { %11713 = vmatprep.subr.msk.mxu1 %vm343_vm4, %v6222_v60 }
0x2f69   :  { %11714 = vmatpush3.msk.msra.mxu1 %vm343_vm4, %v6222_v60  ;;  %v6218_v28 = vpop.permute.xlu1 %6217 }
0x2f6a   :  { %11715 = vmatprep.subr.mxu1 %v6220_v11 }
0x2f6b   :  { %11716 = vmatpush3.msra.mxu1 %v6220_v11  ;;  %v10047_v11 = vld [vmem:[%s15102_s13 + $0x5] ss:$0 sm:$0xff] }
0x2f6c   :  { %11717 = vmatprep.subr.mxu1 %v6218_v28 }
0x2f6d   :  { %11718 = vmatpush3.msra.mxu1 %v6218_v28  ;;  %v10049_v28 = vld [vmem:[%s15103_s14 + $0x5] ss:$0 sm:$0xff] }
0x2f6e   :  { %11722 = vmatprep.subr.mxu1 %v10003_v41 }
0x2f6f   :  { %v12347_v43 = vpop.eup %12346 }
0x2f70   :  { %v6216_v32 = vmul.f32 %v12347_v43, %v12343_v25 }
0x2f71   :  { %v12349_v45 = vpop.eup %12348 }
0x2f72   :  { %v6214_v19 = vmul.f32 %v12349_v45, %v12345_v6 }
0x2f74   :  { %11719 = vmatprep.mubr.msk.f32.mxu1 %vm291_vm2, %v6214_v19 }
0x2f75   :  { %11720 = vmatmul.mubr.msk.f32.vlgmr.msra.gmra.mxu1 %vm291_vm2, %v6216_v32 }
0x2f76   :  { %11723 = vmatpush3.msra.mxu1 %v10003_v41 }
0x2f77   :  { %11727 = vmatprep.subr.mxu1 %v10065_v35 }
0x3035   :  { %v11721_v0 = vpop.f32.mrf.mxu1 }
0x3037   :  { %v6299_v4 = vpop.f32.mrf.mxu1 }
0x3038   :  { %11724 = vmatprep.mubr.msk.f32.mxu1 %vm192_vm1, %v6299_v4  ;;  %v10071_v4 = vld [vmem:[%s15100_s11 + $0x118] sm:$0xff] }
0x3039   :  { %11725 = vmatmul.mubr.msk.f32.vlgmr.msra.gmra.mxu1 %vm192_vm1, %v11721_v0  ;;  %11786 = vmatprep.subr.mxu0 %v10071_v4 }
0x303a   :  { %11728 = vmatpush3.msra.mxu1 %v10065_v35  ;;  %11787 = vmatpush3.msra.mxu0 %v10071_v4 }
0x303b   :  { %11729 = vmatprep.subr.mxu1 %v10064_v18 }
0x303c   :  { %11730 = vmatpush3.msra.mxu1 %v10064_v18 }
0x303d   :  { %11731 = vmatprep.subr.mxu1 %v10063_v56 }
0x303e   :  { %11732 = vmatpush3.msra.mxu1 %v10063_v56 }
0x303f   :  { %11733 = vmatprep.subr.mxu1 %v10062_v36 }
0x3040   :  { %11734 = vmatpush3.msra.mxu1 %v10062_v36  ;;  %v10105_v36 = vld [vmem:[%s15094_s5 + $0x278] sm:$0xff] }
0x3041   :  { %11735 = vmatprep.subr.mxu1 %v10061_v58 }
0x3042   :  { %11736 = vmatpush3.msra.mxu1 %v10061_v58  ;;  %v10104_v58 = vld [vmem:[%s15094_s5 + $0x270] sm:$0xff] }
0x3043   :  { %11737 = vmatprep.subr.mxu1 %v10060_v3 }
0x3044   :  { %11738 = vmatpush3.msra.mxu1 %v10060_v3  ;;  %v10103_v3 = vld [vmem:[%s15094_s5 + $0x268] sm:$0xff] }
0x3045   :  { %11739 = vmatprep.subr.mxu1 %v10059_v33 }
0x3046   :  { %11740 = vmatpush3.msra.mxu1 %v10059_v33 }
0x3047   :  { %11741 = vmatprep.subr.mxu1 %v10058_v26 }
0x3048   :  { %11742 = vmatpush3.msra.mxu1 %v10058_v26 }
0x3049   :  { %11743 = vmatprep.subr.mxu1 %v10057_v59 }
0x304a   :  { %11744 = vmatpush3.msra.mxu1 %v10057_v59 }
0x304b   :  { %11745 = vmatprep.subr.mxu1 %v10056_v61 }
0x304c   :  { %11746 = vmatpush3.msra.mxu1 %v10056_v61 }
0x304d   :  { %11747 = vmatprep.subr.mxu1 %v10055_v10 }
0x304e   :  { %11748 = vmatpush3.msra.mxu1 %v10055_v10 }
0x304f   :  { %11749 = vmatprep.subr.mxu1 %v10054_v2 }
0x3050   :  { %11750 = vmatpush3.msra.mxu1 %v10054_v2 }
0x30f9   :  { %v11726_v31 = vpop.f32.mrf.mxu1 }
0x30fa   :  { %v6390_v62 = vadd.f32 %v11726_v31, %v6095_v5  ;;  %v10053_v5 = vld [vmem:[%s15098_s9 + $0x118] sm:$0xff]  ;;  %v10070_v31 = vld [vmem:[%s15100_s11 + $0x110] sm:$0xff] }
0x30fb   :  { %v6380_v7 = vpop.f32.mrf.mxu1  ;;  %11751 = vmatprep.subr.mxu1 %v10053_v5  ;;  %11788 = vmatprep.subr.mxu0 %v10070_v31 }
0x30fc   :  { %v6389_v34 = vadd.f32 %v6380_v7, %v6094_v46  ;;  %6393 = vadd.xlane.f32.xlu1 %v6390_v62  ;;  %11752 = vmatpush3.msra.mxu1 %v10053_v5  ;;  %v10051_v46 = vld [vmem:[%s15098_s9 + $0x108] sm:$0xff]  ;;  %v10068_v7 = vld [vmem:[%s15100_s11 + $0x100] sm:$0xff] }
0x30fd   :  { %11753 = vmatprep.subr.mxu1 %v10052_v9  ;;  %11789 = vmatpush3.msra.mxu0 %v10070_v31  ;;  %v10107_v31 = vld [vmem:[%s15095_s6 + $0x4] ss:$0 sm:$0xff] }
0x30fe   :  { %6391 = vadd.xlane.f32.xlu0 %v6389_v34  ;;  %11754 = vmatpush3.msra.mxu1 %v10052_v9 }
0x30ff   :  { %11755 = vmatprep.subr.mxu1 %v10051_v46 }
0x3100   :  { %11756 = vmatpush3.msra.mxu1 %v10051_v46 }
0x3101   :  { %11757 = vmatprep.subr.mxu1 %v10050_v12 }
0x3102   :  { %11758 = vmatpush3.msra.mxu1 %v10050_v12 }
0x3103   :  { %11797 = vmatprep.subr.mxu1 %v10105_v36 }
0x3185   :  { %v6394_v37 = vpop.xlane.xlu1 %6393 }
0x3186   :  { %v6396_v22 = vmul.f32 0.03125, %v6394_v37 }
0x3187   :  { %v6392_v42 = vpop.xlane.xlu0 %6391 }
0x3188   :  { %v6395_v47 = vmul.f32 0.03125, %v6392_v42  ;;  %v6398_v48 = vsub.f32 %v6390_v62, %v6396_v22  ;;  %v10069_v62 = vld [vmem:[%s15100_s11 + $0x108] sm:$0xff] }
0x3189   :  { %11790 = vmatprep.subr.mxu0 %v10069_v62 }
0x318a   :  { %v6397_v38 = vsub.f32 %v6389_v34, %v6395_v47  ;;  %v14340_v27 = vmul.f32 %v12994_v8, %v6398_v48  ;;  %11791 = vmatpush3.msra.mxu0 %v10069_v62  ;;  %v10067_v34 = vld [vmem:[%s15099_s10 + $0x2] ss:$0 sm:$0xff] }
0x318b   :  { %11792 = vmatprep.subr.mxu0 %v10068_v7 }
0x318c   :  { %v14337_v15 = vmul.f32 %v12994_v8, %v6397_v38  ;;  %v6402_v55 = vmul.f32 %v14340_v27, %v14340_v27  ;;  %11793 = vmatpush3.msra.mxu0 %v10068_v7  ;;  %v10085_v38 = vld [vmem:[%s15101_s12 + $0x2] ss:$0 sm:$0xff] }
0x318e   :  { %v6401_v49 = vmul.f32 %v14337_v15, %v14337_v15 }
0x3190   :  { %6403 = vadd.xlane.f32.xlu0 %v6401_v49 }
0x3194   :  { %6405 = vadd.xlane.f32.xlu0 %v6402_v55 }
0x3219   :  { %v6404_v29 = vpop.xlane.xlu0 %6403 }
0x321a   :  { %v6407_v25 = vmul.f32 0.03125, %v6404_v29  ;;  %v10090_v29 = vld [vmem:[%s15094_s5 + $0x200] sm:$0xff] }
0x321c   :  { %v6409_v50 = vadd.f32 1e-05, %v6407_v25 }
0x321d   :  { %v6406_v6 = vpop.xlane.xlu0 %6405 }
0x321e   :  { %12350 = vrsqrt.f32 %v6409_v50  ;;  %v6408_v20 = vmul.f32 0.03125, %v6406_v6 }
0x3220   :  { %v6410_v53 = vadd.f32 1e-05, %v6408_v20 }
0x3222   :  { %12352 = vrsqrt.f32 %v6410_v53 }
0x322b   :  { %v12351_v24 = vpop.eup %12350 }
0x322c   :  { %v6413_v60 = vmul.f32 %v12351_v24, %v14337_v15 }
0x322e   :  { %v6423_v43 = vmul.f32 %v10047_v11, %v6413_v60 }
0x322f   :  { %v12353_v45 = vpop.eup %12352 }
0x3230   :  { %v6414_v19 = vmul.f32 %v12353_v45, %v14340_v27  ;;  %v6433_v32 = vadd.f32 %v10049_v28, %v6423_v43 }
0x3232   :  { %v6424_v41 = vmul.f32 %v10047_v11, %v6414_v19  ;;  %11759 = vmatprep.mubr.f32.mxu1 %v6433_v32 }
0x3234   :  { %v6434_v0 = vadd.f32 %v10049_v28, %v6424_v41  ;;  %v10087_v28 = vld [vmem:[%s15102_s13 + $0x6] ss:$0 sm:$0xff] }
0x3235   :  { %v10089_v41 = vld [vmem:[%s15103_s14 + $0x6] ss:$0 sm:$0xff] }
0x3236   :  { %11760 = vmatmul.mubr.f32.vlgmr.msra.gmra.mxu1 %v6434_v0 }
0x3237   :  { %11798 = vmatpush3.msra.mxu1 %v10105_v36 }
0x3238   :  { %11799 = vmatprep.subr.mxu1 %v10104_v58 }
0x3239   :  { %11800 = vmatpush3.msra.mxu1 %v10104_v58 }
0x323a   :  { %11801 = vmatprep.subr.mxu1 %v10103_v3 }
0x323b   :  { %11802 = vmatpush3.msra.mxu1 %v10103_v3 }
0x323c   :  { %11803 = vmatprep.subr.mxu1 %v10102_v13 }
0x323d   :  { %11804 = vmatpush3.msra.mxu1 %v10102_v13 }
0x323e   :  { %11805 = vmatprep.subr.mxu1 %v10101_v16 }
0x323f   :  { %11806 = vmatpush3.msra.mxu1 %v10101_v16 }
0x3240   :  { %11807 = vmatprep.subr.mxu1 %v10100_v54 }
0x3241   :  { %11808 = vmatpush3.msra.mxu1 %v10100_v54  ;;  %v10108_v54 = vld [vmem:[%s15096_s7 + $0x80] sm:$0xff] }
0x3242   :  { %11809 = vmatprep.subr.mxu1 %v10099_v21 }
0x3243   :  { %11810 = vmatpush3.msra.mxu1 %v10099_v21 }
0x3244   :  { %11811 = vmatprep.subr.mxu1 %v10098_v23 }
0x3245   :  { %11812 = vmatpush3.msra.mxu1 %v10098_v23 }
0x3246   :  { %11813 = vmatprep.subr.mxu1 %v10097_v39 }
0x3247   :  { %11814 = vmatpush3.msra.mxu1 %v10097_v39 }
0x3248   :  { %11815 = vmatprep.subr.mxu1 %v10096_v51 }
0x3249   :  { %11816 = vmatpush3.msra.mxu1 %v10096_v51 }
0x324a   :  { %11817 = vmatprep.subr.mxu1 %v10095_v17 }
0x324b   :  { %11818 = vmatpush3.msra.mxu1 %v10095_v17 }
0x324c   :  { %11819 = vmatprep.subr.mxu1 %v10094_v30 }
0x324d   :  { %11820 = vmatpush3.msra.mxu1 %v10094_v30 }
0x324e   :  { %11821 = vmatprep.subr.mxu1 %v10093_v52 }
0x324f   :  { %11822 = vmatpush3.msra.mxu1 %v10093_v52 }
0x3250   :  { %11823 = vmatprep.subr.mxu1 %v10092_v63 }
0x3251   :  { %11824 = vmatpush3.msra.mxu1 %v10092_v63 }
0x3252   :  { %11825 = vmatprep.subr.mxu1 %v10091_v40 }
0x3253   :  { %11826 = vmatpush3.msra.mxu1 %v10091_v40 }
0x3254   :  { %11827 = vmatprep.subr.mxu1 %v10090_v29 }
0x3255   :  { %11828 = vmatpush3.msra.mxu1 %v10090_v29 }
0x32f6   :  { %v11761_v35 = vpop.f32.mrf.mxu1 }
0x32f7   :  { %v6532_v18 = vadd.f32 %v11761_v35, %v10067_v34 }
0x32f8   :  { %v6526_v37 = vpop.f32.mrf.mxu1 }
0x32f9   :  { %v6527_v22 = vadd.f32 %v10067_v34, %v6526_v37  ;;  %v6536_v47 = vmax.f32 %v6532_v18, 0.0 }
0x32fb   :  { %v6535_v42 = vmax.f32 %v6527_v22, 0.0 }
0x32fd   :  { %11794 = vmatprep.mubr.f32.mxu0 %v6535_v42 }
0x32fe   :  { %11795 = vmatmul.mubr.f32.vlgmr.msra.gmra.mxu0 %v6536_v47 }
0x33be   :  { %v11796_v48 = vpop.f32.mrf.mxu0 }
0x33bf   :  { %v6630_v15 = vadd.f32 %v11796_v48, %v6434_v0  ;;  %v14534_v48 = vld [vmem:[%s15092_s3 + $0x8] sm:$0xff] }
0x33c0   :  { %v6620_v27 = vpop.f32.mrf.mxu0 }
0x33c1   :  { %v6640_v49 = vadd.f32 %v10085_v38, %v6630_v15  ;;  %v6629_v55 = vadd.f32 %v6620_v27, %v6433_v32  ;;  %v14540_v27 = vld [vmem:[%s15092_s3] sm:$0xff] }
0x33c3   :  { %v6639_v56 = vadd.f32 %v10085_v38, %v6629_v55  ;;  %6643 = vadd.xlane.f32.xlu0 %v6640_v49 }
0x33c5   :  { %6641 = vadd.xlane.f32.xlu1 %v6639_v56 }
0x344c   :  { %v6644_v33 = vpop.xlane.xlu0 %6643 }
0x344d   :  { %v6646_v26 = vmul.f32 0.03125, %v6644_v33 }
0x344e   :  { %v6642_v59 = vpop.xlane.xlu1 %6641 }
0x344f   :  { %v6648_v61 = vsub.f32 %v6640_v49, %v6646_v26  ;;  %v6645_v10 = vmul.f32 0.03125, %v6642_v59 }
0x3451   :  { %v6650_v2 = vmul.f32 %v12994_v8, %v6648_v61  ;;  %v6647_v5 = vsub.f32 %v6639_v56, %v6645_v10 }
0x3453   :  { %v6649_v9 = vmul.f32 %v12994_v8, %v6647_v5  ;;  %v6652_v46 = vmul.f32 %v6650_v2, %v6650_v2 }
0x3455   :  { %6655 = vadd.xlane.f32.xlu0 %v6652_v46  ;;  %v6651_v12 = vmul.f32 %v6649_v9, %v6649_v9 }
0x3457   :  { %6653 = vadd.xlane.f32.xlu1 %v6651_v12 }
0x34de   :  { %v6656_v25 = vpop.xlane.xlu0 %6655 }
0x34df   :  { %v6658_v50 = vmul.f32 0.03125, %v6656_v25 }
0x34e0   :  { %v6654_v6 = vpop.xlane.xlu1 %6653 }
0x34e1   :  { %v6660_v20 = vadd.f32 1e-05, %v6658_v50  ;;  %v6657_v53 = vmul.f32 0.03125, %v6654_v6 }
0x34e3   :  { %12354 = vrsqrt.f32 %v6660_v20  ;;  %v6659_v24 = vadd.f32 1e-05, %v6657_v53  ;;  %v10113_v20 = vld [vmem:[%s15097_s8 + $0x4] ss:$0 sm:$0xff] }
0x34e5   :  { %12356 = vrsqrt.f32 %v6659_v24 }
0x34f0   :  { %v12355_v11 = vpop.eup %12354 }
0x34f1   :  { %v6664_v60 = vmul.f32 %v12355_v11, %v6650_v2 }
0x34f2   :  { %v12357_v43 = vpop.eup %12356 }
0x34f3   :  { %v6663_v45 = vmul.f32 %v12357_v43, %v6649_v9  ;;  %v6674_v19 = vmul.f32 %v10087_v28, %v6664_v60 }
0x34f5   :  { %v6673_v32 = vmul.f32 %v10087_v28, %v6663_v45  ;;  %v14508_v4 = vadd.f32 %v10089_v41, %v6674_v19 }
0x34f7   :  { %v14506_v0 = vadd.f32 %v10089_v41, %v6673_v32  ;;  %v6799_v53 = vadd.f32 %v10113_v20, %v14508_v4 }
0x34f9   :  { %11829 = vmatprep.mubr.f32.mxu1 %v14506_v0  ;;  %v6798_v60 = vadd.f32 %v10113_v20, %v14506_v0 }
0x34fa   :  { %11830 = vmatmul.mubr.f32.vlgmr.msra.gmra.mxu1 %v14508_v4 }
0x35ba   :  { %v11831_v62 = vpop.f32.mrf.mxu1 }
0x35bb   :  { %v14515_v7 = vadd.f32 %v11831_v62, %v10107_v31 }
0x35bc   :  { %v6776_v34 = vpop.f32.mrf.mxu1 }
0x35bd   :  { %v14517_v35 = vadd.f32 %v10107_v31, %v6776_v34  ;;  %6804 = vrot.lane.b32.xlu1 %v14515_v7, %s12465_s28 }
0x35bf   :  { %6802 = vrot.lane.b32.xlu0 %v14517_v35, %s12465_s28  ;;  %11836 = vmatprep.mubr.msk.f32.mxu0 %vm192_vm1, %v14517_v35 }
0x362f   :  { %v6805_v18 = vpop.permute.xlu1 %6804 }
0x3630   :  { %11832 = vmatprep.subr.msk.mxu0 %vm192_vm1, %v6805_v18 }
0x3631   :  { %11833 = vmatpush3.xpose.msk.msra.mxu0 %vm192_vm1, %v6805_v18  ;;  %v6803_v37 = vpop.permute.xlu0 %6802 }
0x3632   :  { %11834 = vmatprep.subr.msk.mxu0 %vm192_vm1, %v6803_v37 }
0x3635   :  { %11835 = vmatpush3.xpose.msk.msra.mxu0 %vm192_vm1, %v6803_v37 }
0x3638   :  { %11837 = vmatmul.mubr.msk.f32.vlgmr.msra.gmra.mxu0 %vm192_vm1, %v14515_v7 }
0x36f8   :  { %v11838_v22 = vpop.f32.mrf.mxu0 }
0x36f9   :  { %v6890_v42 = vmul.f32 0.35355338, %v11838_v22 }
0x36fa   :  { %v6880_v47 = vpop.f32.mrf.mxu0 }
0x36fb   :  { %v6892_v38 = vadd.f32 %v14534_v48, %v6890_v42  ;;  %v6889_v15 = vmul.f32 0.35355338, %v6880_v47 }
0x36fd   :  { %v6891_v49 = vadd.f32 %v14540_v27, %v6889_v15  ;;  %v6896_v55 = vsel %vm3856_vm6, %v6892_v38, -inf }
0x36fe   :  { %6897 = vmax.xlane.f32.xlu0 %v6896_v55 }
0x36ff   :  { %v6893_v56 = vsel %vm3856_vm6, %v6891_v49, -inf }
0x3700   :  { %6894 = vmax.xlane.f32.xlu1 %v6893_v56 }
0x3787   :  { %v6898_v36 = vpop.xlane.xlu0 %6897 }
0x3788   :  { %v6900_v58 = vsub.f32 %v6892_v38, %v6898_v36 }
0x3789   :  { %v6895_v3 = vpop.xlane.xlu1 %6894 }
0x378a   :  { %v6903_v33 = vmul.f32 1.442695, %v6900_v58  ;;  %v6899_v26 = vsub.f32 %v6891_v49, %v6895_v3 }
0x378c   :  { %12358 = vpow2.f32 %v6903_v33  ;;  %v6901_v59 = vmul.f32 1.442695, %v6899_v26 }
0x378e   :  { %12360 = vpow2.f32 %v6901_v59 }
0x3799   :  { %v12359_v61 = vpop.eup %12358 }
0x379a   :  { %v6908_v10 = vsel %vm3856_vm6, %v12359_v61, 0.0 }
0x379b   :  { %v12361_v2 = vpop.eup %12360  ;;  %6909 = vadd.xlane.f32.xlu0 %v6908_v10 }
0x379c   :  { %v6905_v5 = vsel %vm3856_vm6, %v12361_v2, 0.0 }
0x379d   :  { %6906 = vadd.xlane.f32.xlu1 %v6905_v5 }
0x37ae   :  { %6917 = vrot.lane.b32.xlu1 %v14515_v7, %s12468_s21 }
0x37b1   :  { %6915 = vrot.lane.b32.xlu0 %v14517_v35, %s12468_s21 }
0x37b2   :  { %7091 = vrot.lane.b32.xlu1 %v14515_v7, %s12466_s0 }
0x37b5   :  { %7085 = vrot.lane.b32.xlu0 %v14517_v35, %s12467_s29 }
0x37b6   :  { %7089 = vrot.lane.b32.xlu1 %v14517_v35, %s12466_s0 }
0x37b9   :  { %7378 = vrot.lane.b32.xlu0 %v14515_v7, %s12470_s25 }
0x37ba   :  { %7087 = vrot.lane.b32.xlu1 %v14515_v7, %s12467_s29 }
0x37bd   :  { %7372 = vrot.lane.b32.xlu0 %v14517_v35, %s15120_s17 }
0x37be   :  { %7376 = vrot.lane.b32.xlu1 %v14517_v35, %s12470_s25 }
0x37c2   :  { %7374 = vrot.lane.b32.xlu1 %v14515_v7, %s15120_s17 }
0x3824   :  { %v6910_v9 = vpop.xlane.xlu0 %6909 }
0x3825   :  { %12362 = vrcp.f32 %v6910_v9 }
0x3826   :  { %v6907_v46 = vpop.xlane.xlu1 %6906 }
0x3827   :  { %12364 = vrcp.f32 %v6907_v46 }
0x3828   :  { %v6916_v12 = vpop.permute.xlu0 %6915 }
0x382a   :  { %v6918_v13 = vpop.permute.xlu1 %6917 }
0x382b   :  { %11839 = vmatprep.subr.mxu0 %v6918_v13 }
0x382c   :  { %v7086_v16 = vpop.permute.xlu0 %7085  ;;  %11840 = vmatpush3.msra.mxu0 %v6918_v13  ;;  %v10109_v13 = vld [vmem:[%s15096_s7 + $0x88] sm:$0xff] }
0x382d   :  { %11841 = vmatprep.subr.mxu0 %v6916_v12 }
0x382e   :  { %11842 = vmatpush3.msra.mxu0 %v6916_v12  ;;  %v7092_v21 = vpop.permute.xlu1 %7091 }
0x382f   :  { %11846 = vmatprep.subr.mxu0 %v10108_v54 }
0x3830   :  { %v7379_v23 = vpop.permute.xlu0 %7378 }
0x3831   :  { %11870 = vmatprep.subr.msk.mxu1 %vm192_vm1, %v7379_v23 }
0x3832   :  { %11871 = vmatpush3.xpose.msk.msra.mxu1 %vm192_vm1, %v7379_v23  ;;  %v7090_v39 = vpop.permute.xlu1 %7089  ;;  %v12363_v51 = vpop.eup %12362 }
0x3833   :  { %v6914_v63 = vmul.f32 %v12363_v51, %v12359_v61 }
0x3834   :  { %v12365_v17 = vpop.eup %12364  ;;  %v7373_v30 = vpop.permute.xlu0 %7372 }
0x3835   :  { %11874 = vmatprep.mubr.msk.f32.mxu1 %vm192_vm1, %v7373_v30  ;;  %v6912_v52 = vmul.f32 %v12365_v17, %v12361_v2 }
0x3836   :  { %v7088_v40 = vpop.permute.xlu1 %7087 }
0x3837   :  { %11843 = vmatprep.mubr.msk.f32.mxu0 %vm3856_vm6, %v6912_v52 }
0x3838   :  { %11844 = vmatmul.mubr.msk.f32.vlgmr.msra.gmra.mxu0 %vm3856_vm6, %v6914_v63 }
0x3839   :  { %11847 = vmatpush3.msra.mxu0 %v10108_v54 }
0x383a   :  { %11851 = vmatprep.subr.msk.mxu0 %vm192_vm1, %v7092_v21  ;;  %v7377_v29 = vpop.permute.xlu1 %7376 }
0x383b   :  { %11872 = vmatprep.subr.msk.mxu1 %vm192_vm1, %v7377_v29 }
0x383c   :  { %11873 = vmatpush3.xpose.msk.msra.mxu1 %vm192_vm1, %v7377_v29 }
0x383e   :  { %v7375_v25 = vpop.permute.xlu1 %7374 }
0x383f   :  { %11875 = vmatmul.mubr.msk.f32.vlgmr.msra.gmra.mxu1 %vm192_vm1, %v7375_v25 }
0x38f8   :  { %v11845_v50 = vpop.f32.mrf.mxu0 }
0x38fa   :  { %v6993_v6 = vpop.f32.mrf.mxu0 }
0x38fb   :  { %11848 = vmatprep.mubr.msk.f32.mxu0 %vm192_vm1, %v6993_v6 }
0x38fc   :  { %11849 = vmatmul.mubr.msk.f32.vlgmr.msra.gmra.mxu0 %vm192_vm1, %v11845_v50 }
0x38fd   :  { %11852 = vmatpush3.xpose.msk.msra.mxu0 %vm192_vm1, %v7092_v21  ;;  %11855 = vmatprep.mubr.msk.f32.mxu0 %vm192_vm1, %v7086_v16 }
0x38fe   :  { %11853 = vmatprep.subr.msk.mxu0 %vm192_vm1, %v7090_v39 }
0x38ff   :  { %v11876_v0 = vpop.f32.mrf.mxu1 }
0x3900   :  { %v7464_v18 = vmul.f32 0.35355338, %v11876_v0 }
0x3901   :  { %11854 = vmatpush3.xpose.msk.msra.mxu0 %vm192_vm1, %v7090_v39  ;;  %v7454_v61 = vpop.f32.mrf.mxu1 }
0x3902   :  { %v7466_v37 = vadd.f32 %v14534_v48, %v7464_v18  ;;  %v7463_v10 = vmul.f32 0.35355338, %v7454_v61 }
0x3904   :  { %11856 = vmatmul.mubr.msk.f32.vlgmr.msra.gmra.mxu0 %vm192_vm1, %v7088_v40  ;;  %v7470_v22 = vsel %vm3856_vm6, %v7466_v37, -inf  ;;  %v7465_v2 = vadd.f32 %v14540_v27, %v7463_v10 }
0x3906   :  { %v7467_v5 = vsel %vm3856_vm6, %v7465_v2, -inf }
0x39bc   :  { %v11850_v24 = vpop.f32.mrf.mxu0 }
0x39bd   :  { %v14590_v11 = vadd.f32 %v11850_v24, %v6799_v53 }
0x39be   :  { %v7074_v28 = vpop.f32.mrf.mxu0 }
0x39bf   :  { %v14593_v43 = vadd.f32 %v7074_v28, %v6798_v60 }
0x39c4   :  { %v11857_v45 = vpop.f32.mrf.mxu0 }
0x39c5   :  { %v7177_v19 = vmul.f32 0.35355338, %v11857_v45 }
0x39c6   :  { %v7167_v32 = vpop.f32.mrf.mxu0 }
0x39c7   :  { %v7179_v41 = vadd.f32 %v14534_v48, %v7177_v19  ;;  %v7176_v31 = vmul.f32 0.35355338, %v7167_v32 }
0x39c9   :  { %v7178_v62 = vadd.f32 %v14540_v27, %v7176_v31  ;;  %v7183_v34 = vsel %vm3856_vm6, %v7179_v41, -inf }
0x39ca   :  { %7184 = vmax.xlane.f32.xlu1 %v7183_v34 }
0x39cb   :  { %v7180_v4 = vsel %vm3856_vm6, %v7178_v62, -inf }
0x39cc   :  { %7181 = vmax.xlane.f32.xlu0 %v7180_v4 }
0x39db   :  { %7204 = vrot.lane.b32.xlu1 %v14515_v7, %s15122_s16 }
0x39df   :  { %7665 = vrot.lane.b32.xlu1 %v14515_v7, %s15117_s20 }
0x39e3   :  { %7663 = vrot.lane.b32.xlu1 %v14517_v35, %s15117_s20 }
0x39e7   :  { %7661 = vrot.lane.b32.xlu1 %v14515_v7, %s15118_s27 }
0x3a0b   :  { %7471 = vmax.xlane.f32.xlu1 %v7470_v22 }
0x3a1c   :  { %7491 = vrot.lane.b32.xlu1 %v14515_v7, %s15121_s2 }
0x3a53   :  { %v7185_v42 = vpop.xlane.xlu1 %7184 }
0x3a54   :  { %v7187_v47 = vsub.f32 %v7179_v41, %v7185_v42  ;;  %v10110_v42 = vld [vmem:[%s15096_s7 + $0x90] sm:$0xff] }
0x3a55   :  { %v7182_v38 = vpop.xlane.xlu0 %7181 }
0x3a56   :  { %v7190_v15 = vmul.f32 1.442695, %v7187_v47  ;;  %v7186_v49 = vsub.f32 %v7178_v62, %v7182_v38 }
0x3a57   :  { %v7205_v55 = vpop.permute.xlu1 %7204 }
0x3a58   :  { %12366 = vpow2.f32 %v7190_v15  ;;  %v7188_v56 = vmul.f32 1.442695, %v7186_v49  ;;  %11858 = vmatprep.subr.mxu0 %v7205_v55 }
0x3a59   :  { %11859 = vmatpush3.msra.mxu0 %v7205_v55 }
0x3a5a   :  { %12368 = vpow2.f32 %v7188_v56 }
0x3a5b   :  { %v7666_v36 = vpop.permute.xlu1 %7665 }
0x3a5c   :  { %11889 = vmatprep.subr.msk.mxu1 %vm192_vm1, %v7666_v36 }
0x3a5d   :  { %11890 = vmatpush3.xpose.msk.msra.mxu1 %vm192_vm1, %v7666_v36 }
0x3a5f   :  { %v7664_v58 = vpop.permute.xlu1 %7663 }
0x3a60   :  { %11891 = vmatprep.subr.msk.mxu1 %vm192_vm1, %v7664_v58 }
0x3a61   :  { %11892 = vmatpush3.xpose.msk.msra.mxu1 %vm192_vm1, %v7664_v58 }
0x3a63   :  { %v7662_v54 = vpop.permute.xlu1 %7661 }
0x3a65   :  { %v12367_v3 = vpop.eup %12366 }
0x3a66   :  { %v7195_v33 = vsel %vm3856_vm6, %v12367_v3, 0.0 }
0x3a67   :  { %v12369_v26 = vpop.eup %12368  ;;  %7196 = vadd.xlane.f32.xlu0 %v7195_v33 }
0x3a68   :  { %v7192_v59 = vsel %vm3856_vm6, %v12369_v26, 0.0 }
0x3a6b   :  { %7193 = vadd.xlane.f32.xlu0 %v7192_v59 }
0x3a81   :  { %7202 = vrot.lane.b32.xlu0 %v14517_v35, %s15122_s16  ;;  %s9728_s16 = sshll.u32 %s12476_s26, 4  ;;  %s9729_s16 = int_to_ptr.vmem [resolvable:$true] %s9728_s16 }
0x3a82   :  { %s12441_s19 = scalar_lea.vmem %s9729_s16, 256  ;;  %p12446_p1 = scmp.lt.s32.totalorder %s9729_s16, %s9729_s16 }
0x3a83   :  { %p12442_p0 = scmp.ne.s32.totalorder %s9729_s16, %s12441_s19  ;;  %p12447_p2 = scmp.lt.s32.totalorder %s12441_s19, %s12441_s19 }
0x3a85   :  { %7659 = vrot.lane.b32.xlu0 %v14517_v35, %s15118_s27  ;;  %p12448_p3 = por %p12447_p2, %p12446_p1 }
0x3a87   :  { %p12449_p4 = pnand %p12448_p3, %p12442_p0 }
0x3a94   :  { %v7472_v23 = vpop.xlane.xlu1 %7471 }
0x3a95   :  { %v7474_v52 = vsub.f32 %v7466_v37, %v7472_v23  ;;  %v10163_v23 = vld [vmem:[%s15094_s5 + $0x2e8] sm:$0xff] }
0x3a97   :  { %v7477_v29 = vmul.f32 1.442695, %v7474_v52 }
0x3a98   :  { %v7492_v30 = vpop.permute.xlu1 %7491 }
0x3aa4   :  { %7468 = vmax.xlane.f32.xlu0 %v7467_v5 }
0x3af0   :  { %v7197_v9 = vpop.xlane.xlu0 %7196 }
0x3af1   :  { %12370 = vrcp.f32 %v7197_v9 }
0x3af4   :  { %v7194_v46 = vpop.xlane.xlu0 %7193 }
0x3af5   :  { %12372 = vrcp.f32 %v7194_v46 }
0x3af8   :  { %v7203_v12 = vpop.permute.xlu0 %7202 }
0x3af9   :  { %11860 = vmatprep.subr.mxu0 %v7203_v12 }
0x3afa   :  { %11861 = vmatpush3.msra.mxu0 %v7203_v12 }
0x3afb   :  { %11865 = vmatprep.subr.mxu0 %v10109_v13 }
0x3afc   :  { %v7660_v16 = vpop.permute.xlu0 %7659 }
0x3afd   :  { %11893 = vmatprep.mubr.msk.f32.mxu1 %vm192_vm1, %v7660_v16  ;;  %v10111_v16 = vld [vmem:[%s15096_s7 + $0x98] sm:$0xff] }
0x3afe   :  { %11894 = vmatmul.mubr.msk.f32.vlgmr.msra.gmra.mxu1 %vm192_vm1, %v7662_v54  ;;  %v12371_v21 = vpop.eup %12370  ;;  %v10165_v54 = vld [vmem:[%s15094_s5 + $0x2f8] sm:$0xff] }
0x3aff   :  { %v7201_v17 = vmul.f32 %v12371_v21, %v12367_v3  ;;  %v10164_v21 = vld [vmem:[%s15094_s5 + $0x2f0] sm:$0xff]  ;;  %11908 = vmatprep.subr.mxu1 %v10165_v54 }
0x3b00   :  { %11909 = vmatpush3.msra.mxu1 %v10165_v54 }
0x3b01   :  { %11910 = vmatprep.subr.mxu1 %v10164_v21 }
0x3b02   :  { %v12373_v39 = vpop.eup %12372  ;;  %11911 = vmatpush3.msra.mxu1 %v10164_v21 }
0x3b03   :  { %v7199_v51 = vmul.f32 %v12373_v39, %v12369_v26  ;;  %v10161_v39 = vld [vmem:[%s15094_s5 + $0x2d8] sm:$0xff]  ;;  %11912 = vmatprep.subr.mxu1 %v10163_v23 }
0x3b04   :  { %11913 = vmatpush3.msra.mxu1 %v10163_v23 }
0x3b05   :  { %11862 = vmatprep.mubr.msk.f32.mxu0 %vm3856_vm6, %v7199_v51  ;;  %v10162_v51 = vld [vmem:[%s15094_s5 + $0x2e0] sm:$0xff] }
0x3b06   :  { %11863 = vmatmul.mubr.msk.f32.vlgmr.msra.gmra.mxu0 %vm3856_vm6, %v7201_v17  ;;  %11914 = vmatprep.subr.mxu1 %v10162_v51  ;;  %v10160_v17 = vld [vmem:[%s15094_s5 + $0x2d0] sm:$0xff] }
0x3b07   :  { %11866 = vmatpush3.msra.mxu0 %v10109_v13  ;;  %11915 = vmatpush3.msra.mxu1 %v10162_v51 }
0x3b08   :  { %11877 = vmatprep.subr.mxu0 %v7492_v30  ;;  %11916 = vmatprep.subr.mxu1 %v10161_v39 }
0x3b09   :  { %11917 = vmatpush3.msra.mxu1 %v10161_v39 }
0x3b0a   :  { %11918 = vmatprep.subr.mxu1 %v10160_v17 }
0x3b0b   :  { %11919 = vmatpush3.msra.mxu1 %v10160_v17 }
0x3b2d   :  { %v7469_v63 = vpop.xlane.xlu0 %7468 }
0x3b2e   :  { %v7473_v40 = vsub.f32 %v7465_v2, %v7469_v63 }
0x3b30   :  { %v7475_v25 = vmul.f32 1.442695, %v7473_v40 }
0x3b32   :  { %12374 = vpow2.f32 %v7475_v25 }
0x3b33   :  { %12376 = vpow2.f32 %v7477_v29 }
0x3b3f   :  { %v12375_v50 = vpop.eup %12374 }
0x3b40   :  { %v7479_v6 = vsel %vm3856_vm6, %v12375_v50, 0.0  ;;  %v12377_v20 = vpop.eup %12376 }
0x3b41   :  { %7480 = vadd.xlane.f32.xlu0 %v7479_v6  ;;  %v7482_v53 = vsel %vm3856_vm6, %v12377_v20, 0.0 }
0x3b45   :  { %7483 = vadd.xlane.f32.xlu0 %v7482_v53  ;;  %v10157_v53 = vld [vmem:[%s15094_s5 + $0x2b8] sm:$0xff] }
0x3b5b   :  { %7489 = vrot.lane.b32.xlu0 %v14517_v35, %s15121_s2 }
0x3bbe   :  { %v11895_v24 = vpop.f32.mrf.mxu1 }
0x3bbf   :  { %v7751_v60 = vmul.f32 0.35355338, %v11895_v24  ;;  %v10156_v24 = vld [vmem:[%s15094_s5 + $0x2b0] sm:$0xff] }
0x3bc0   :  { %v7741_v28 = vpop.f32.mrf.mxu1 }
0x3bc1   :  { %v7753_v45 = vadd.f32 %v14534_v48, %v7751_v60  ;;  %v7750_v19 = vmul.f32 0.35355338, %v7741_v28  ;;  %v10155_v28 = vld [vmem:[%s15094_s5 + $0x2a8] sm:$0xff] }
0x3bc3   :  { %v7752_v32 = vadd.f32 %v14540_v27, %v7750_v19  ;;  %v7757_v41 = vsel %vm3856_vm6, %v7753_v45, -inf }
0x3bc4   :  { %7758 = vmax.xlane.f32.xlu0 %v7757_v41  ;;  %v10153_v41 = vld [vmem:[%s15094_s5 + $0x298] sm:$0xff] }
0x3bc5   :  { %v7754_v31 = vsel %vm3856_vm6, %v7752_v32, -inf }
0x3bc6   :  { %v11864_v62 = vpop.f32.mrf.mxu0  ;;  %7755 = vmax.xlane.f32.xlu1 %v7754_v31  ;;  %v10152_v31 = vld [vmem:[%s15094_s5 + $0x290] sm:$0xff] }
0x3bc8   :  { %v7280_v34 = vpop.f32.mrf.mxu0 }
0x3bc9   :  { %11867 = vmatprep.mubr.msk.f32.mxu0 %vm192_vm1, %v7280_v34 }
0x3bca   :  { %v7481_v4 = vpop.xlane.xlu0 %7480  ;;  %11868 = vmatmul.mubr.msk.f32.vlgmr.msra.gmra.mxu0 %vm192_vm1, %v11864_v62 }
0x3bcb   :  { %12378 = vrcp.f32 %v7481_v4  ;;  %11878 = vmatpush3.msra.mxu0 %v7492_v30  ;;  %v10158_v30 = vld [vmem:[%s15094_s5 + $0x2c0] sm:$0xff] }
0x3bce   :  { %v7484_v0 = vpop.xlane.xlu0 %7483 }
0x3bcf   :  { %12380 = vrcp.f32 %v7484_v0 }
0x3bd2   :  { %v7490_v48 = vpop.permute.xlu0 %7489 }
0x3bd3   :  { %11879 = vmatprep.subr.mxu0 %v7490_v48 }
0x3bd4   :  { %11880 = vmatpush3.msra.mxu0 %v7490_v48 }
0x3bd5   :  { %11884 = vmatprep.subr.mxu0 %v10110_v42 }
0x3bd8   :  { %v12379_v27 = vpop.eup %12378 }
0x3bd9   :  { %v7486_v18 = vmul.f32 %v12379_v27, %v12375_v50  ;;  %v10159_v50 = vld [vmem:[%s15094_s5 + $0x2c8] sm:$0xff] }
0x3bda   :  { %11920 = vmatprep.subr.mxu1 %v10159_v50 }
0x3bdb   :  { %11881 = vmatprep.mubr.msk.f32.mxu0 %vm3856_vm6, %v7486_v18  ;;  %11921 = vmatpush3.msra.mxu1 %v10159_v50  ;;  %v10151_v18 = vld [vmem:[%s15094_s5 + $0x288] sm:$0xff] }
0x3bdc   :  { %v12381_v37 = vpop.eup %12380  ;;  %11922 = vmatprep.subr.mxu1 %v10158_v30 }
0x3bdd   :  { %v7488_v22 = vmul.f32 %v12381_v37, %v12377_v20  ;;  %11923 = vmatpush3.msra.mxu1 %v10158_v30  ;;  %v10150_v37 = vld [vmem:[%s15094_s5 + $0x280] sm:$0xff] }
0x3bde   :  { %11924 = vmatprep.subr.mxu1 %v10157_v53 }
0x3bdf   :  { %11882 = vmatmul.mubr.msk.f32.vlgmr.msra.gmra.mxu0 %vm3856_vm6, %v7488_v22  ;;  %11925 = vmatpush3.msra.mxu1 %v10157_v53 }
0x3be0   :  { %11885 = vmatpush3.msra.mxu0 %v10110_v42  ;;  %11926 = vmatprep.subr.mxu1 %v10156_v24 }
0x3be1   :  { %11927 = vmatpush3.msra.mxu1 %v10156_v24 }
0x3be2   :  { %11928 = vmatprep.subr.mxu1 %v10155_v28 }
0x3be3   :  { %11929 = vmatpush3.msra.mxu1 %v10155_v28 }
0x3c4d   :  { %v7759_v47 = vpop.xlane.xlu0 %7758 }
0x3c4e   :  { %v7761_v38 = vsub.f32 %v7753_v45, %v7759_v47  ;;  %v10154_v45 = vld [vmem:[%s15094_s5 + $0x2a0] sm:$0xff] }
0x3c4f   :  { %v7756_v15 = vpop.xlane.xlu1 %7755  ;;  %11930 = vmatprep.subr.mxu1 %v10154_v45 }
0x3c50   :  { %v7764_v49 = vmul.f32 1.442695, %v7761_v38  ;;  %v7760_v55 = vsub.f32 %v7752_v32, %v7756_v15  ;;  %11931 = vmatpush3.msra.mxu1 %v10154_v45 }
0x3c51   :  { %11932 = vmatprep.subr.mxu1 %v10153_v41 }
0x3c52   :  { %12382 = vpow2.f32 %v7764_v49  ;;  %v7762_v56 = vmul.f32 1.442695, %v7760_v55  ;;  %11933 = vmatpush3.msra.mxu1 %v10153_v41 }
0x3c53   :  { %11934 = vmatprep.subr.mxu1 %v10152_v31 }
0x3c54   :  { %12384 = vpow2.f32 %v7762_v56  ;;  %11935 = vmatpush3.msra.mxu1 %v10152_v31 }
0x3c55   :  { %11936 = vmatprep.subr.mxu1 %v10151_v18 }
0x3c56   :  { %11937 = vmatpush3.msra.mxu1 %v10151_v18 }
0x3c57   :  { %11938 = vmatprep.subr.mxu1 %v10150_v37 }
0x3c58   :  { %11939 = vmatpush3.msra.mxu1 %v10150_v37 }
0x3c5f   :  { %v12383_v36 = vpop.eup %12382 }
0x3c60   :  { %v7769_v58 = vsel %vm3856_vm6, %v12383_v36, 0.0 }
0x3c61   :  { %v12385_v3 = vpop.eup %12384  ;;  %7770 = vadd.xlane.f32.xlu0 %v7769_v58 }
0x3c62   :  { %v7766_v33 = vsel %vm3856_vm6, %v12385_v3, 0.0 }
0x3c63   :  { %7767 = vadd.xlane.f32.xlu1 %v7766_v33 }
0x3c74   :  { %7778 = vrot.lane.b32.xlu1 %v14515_v7, %s15119_s23 }
0x3c77   :  { %7776 = vrot.lane.b32.xlu0 %v14517_v35, %s15119_s23 }
0x3c78   :  { %8136 = vrot.lane.b32.xlu1 %v10165_v54, %s12465_s28 }
0x3c7b   :  { %8134 = vrot.lane.b32.xlu0 %v10164_v21, %s12465_s28 }
0x3c7c   :  { %8132 = vrot.lane.b32.xlu1 %v10163_v23, %s12465_s28  ;;  %v10147_v23 = vld [vmem:[%s15102_s13 + $0x7] ss:$0 sm:$0xff] }
0x3c7f   :  { %8128 = vrot.lane.b32.xlu0 %v10161_v39, %s12465_s28 }
0x3c80   :  { %8130 = vrot.lane.b32.xlu1 %v10162_v51, %s12465_s28 }
0x3c84   :  { %8126 = vrot.lane.b32.xlu1 %v10160_v17, %s12465_s28 }
0x3c88   :  { %8122 = vrot.lane.b32.xlu1 %v10158_v30, %s12465_s28  ;;  %v10149_v30 = vld [vmem:[%s15103_s14 + $0x7] ss:$0 sm:$0xff] }
0x3c8a   :  { %v11869_v26 = vpop.f32.mrf.mxu0 }
0x3c8b   :  { %v7371_v59 = vadd.f32 %v11869_v26, %v14590_v11 }
0x3c8c   :  { %v7361_v61 = vpop.f32.mrf.mxu0 }
0x3c8d   :  { %v14653_v10 = vadd.f32 %v7361_v61, %v14593_v43 }
0x3c9f   :  { %v11883_v2 = vpop.f32.mrf.mxu0 }
0x3ca1   :  { %v7567_v5 = vpop.f32.mrf.mxu0 }
0x3ca2   :  { %11886 = vmatprep.mubr.msk.f32.mxu0 %vm192_vm1, %v7567_v5 }
0x3ca3   :  { %11887 = vmatmul.mubr.msk.f32.vlgmr.msra.gmra.mxu0 %vm192_vm1, %v11883_v2 }
0x3cea   :  { %v7771_v9 = vpop.xlane.xlu0 %7770 }
0x3ceb   :  { %12386 = vrcp.f32 %v7771_v9  ;;  %v10167_v9 = vld [vmem:[%s15095_s6 + $0x5] ss:$0 sm:$0xff] }
0x3cec   :  { %v7768_v46 = vpop.xlane.xlu1 %7767 }
0x3ced   :  { %12388 = vrcp.f32 %v7768_v46 }
0x3cee   :  { %v7777_v35 = vpop.permute.xlu0 %7776 }
0x3cf0   :  { %v7779_v7 = vpop.permute.xlu1 %7778 }
0x3cf1   :  { %11896 = vmatprep.subr.mxu0 %v7779_v7 }
0x3cf2   :  { %11897 = vmatpush3.msra.mxu0 %v7779_v7  ;;  %v8135_v20 = vpop.permute.xlu0 %8134 }
0x3cf3   :  { %11898 = vmatprep.subr.mxu0 %v7777_v35 }
0x3cf4   :  { %11899 = vmatpush3.msra.mxu0 %v7777_v35  ;;  %v8137_v6 = vpop.permute.xlu1 %8136 }
0x3cf5   :  { %11903 = vmatprep.subr.mxu0 %v10111_v16 }
0x3cf6   :  { %v8129_v32 = vpop.permute.xlu0 %8128 }
0x3cf8   :  { %v12387_v11 = vpop.eup %12386  ;;  %v8133_v60 = vpop.permute.xlu1 %8132 }
0x3cf9   :  { %v7775_v13 = vmul.f32 %v12387_v11, %v12383_v36 }
0x3cfa   :  { %v12389_v12 = vpop.eup %12388 }
0x3cfb   :  { %v7773_v43 = vmul.f32 %v12389_v12, %v12385_v3 }
0x3cfc   :  { %v8131_v19 = vpop.permute.xlu1 %8130 }
0x3cfd   :  { %11900 = vmatprep.mubr.msk.f32.mxu0 %vm3856_vm6, %v7773_v43 }
0x3cfe   :  { %11901 = vmatmul.mubr.msk.f32.vlgmr.msra.gmra.mxu0 %vm3856_vm6, %v7775_v13 }
0x3cff   :  { %11904 = vmatpush3.msra.mxu0 %v10111_v16 }
0x3d00   :  { %11943 = vmatprep.subr.mxu0 %v12463_v1  ;;  %v8127_v62 = vpop.permute.xlu1 %8126 }
0x3d04   :  { %v8123_v22 = vpop.permute.xlu1 %8122 }
0x3d63   :  { %v11888_v52 = vpop.f32.mrf.mxu0 }
0x3d64   :  { %v7658_v63 = vadd.f32 %v11888_v52, %v7371_v59 }
0x3d65   :  { %v7648_v40 = vpop.f32.mrf.mxu0 }
0x3d66   :  { %v7657_v4 = vadd.f32 %v7648_v40, %v14653_v10 }
0x3dbe   :  { %v11902_v29 = vpop.f32.mrf.mxu0 }
0x3dc0   :  { %v7854_v25 = vpop.f32.mrf.mxu0 }
0x3dc1   :  { %11905 = vmatprep.mubr.msk.f32.mxu0 %vm192_vm1, %v7854_v25 }
0x3dc2   :  { %11906 = vmatmul.mubr.msk.f32.vlgmr.msra.gmra.mxu0 %vm192_vm1, %v11902_v29 }
0x3dc3   :  { %11975 = vmatprep.mubr.msk.f32.mxu0 %vm12464_vm0, %v12463_v1  ;;  %11944 = vmatpush3.msra.mxu0 %v8137_v6 }
0x3dc4   :  { %11945 = vmatprep.subr.mxu0 %v12463_v1 }
0x3dc5   :  { %11946 = vmatpush3.msra.mxu0 %v8135_v20 }
0x3dc6   :  { %11947 = vmatprep.subr.mxu0 %v12463_v1 }
0x3dc7   :  { %11948 = vmatpush3.msra.mxu0 %v8133_v60 }
0x3dc8   :  { %11949 = vmatprep.subr.mxu0 %v12463_v1 }
0x3dc9   :  { %11950 = vmatpush3.msra.mxu0 %v8131_v19 }
0x3dca   :  { %11951 = vmatprep.subr.mxu0 %v12463_v1 }
0x3dcb   :  { %11952 = vmatpush3.msra.mxu0 %v8129_v32 }
0x3dcc   :  { %11953 = vmatprep.subr.mxu0 %v12463_v1 }
0x3dcd   :  { %11954 = vmatpush3.msra.mxu0 %v8127_v62 }
0x3dce   :  { %11955 = vmatprep.subr.mxu0 %v12463_v1 }
0x3e82   :  { %v11907_v34 = vpop.f32.mrf.mxu0 }
0x3e83   :  { %v7945_v0 = vadd.f32 %v11907_v34, %v7658_v63 }
0x3e84   :  { %v7935_v48 = vpop.f32.mrf.mxu0 }
0x3e85   :  { %v7944_v27 = vadd.f32 %v7935_v48, %v7657_v4  ;;  %7948 = vadd.xlane.f32.xlu0 %v7945_v0  ;;  %v14807_v4 = vld [vmem:[%s15093_s4] sm:$0xff] }
0x3e87   :  { %7946 = vadd.xlane.f32.xlu1 %v7944_v27 }
0x3e98   :  { %8118 = vrot.lane.b32.xlu1 %v10156_v24, %s12465_s28 }
0x3e9b   :  { %8124 = vrot.lane.b32.xlu0 %v10159_v50, %s12465_s28 }
0x3e9c   :  { %8114 = vrot.lane.b32.xlu1 %v10154_v45, %s12465_s28 }
0x3e9f   :  { %8120 = vrot.lane.b32.xlu0 %v10157_v53, %s12465_s28 }
0x3ea0   :  { %8110 = vrot.lane.b32.xlu1 %v10152_v31, %s12465_s28  ;;  %v14801_v31 = vld [vmem:[%s15093_s4 + $0x8] sm:$0xff] }
0x3ea3   :  { %8116 = vrot.lane.b32.xlu0 %v10155_v28, %s12465_s28 }
0x3ea7   :  { %8112 = vrot.lane.b32.xlu0 %v10153_v41, %s12465_s28 }
0x3f0e   :  { %v7949_v42 = vpop.xlane.xlu0 %7948 }
0x3f0f   :  { %v7951_v47 = vmul.f32 0.03125, %v7949_v42 }
0x3f10   :  { %v7947_v38 = vpop.xlane.xlu1 %7946 }
0x3f11   :  { %v7953_v15 = vsub.f32 %v7945_v0, %v7951_v47  ;;  %v7950_v49 = vmul.f32 0.03125, %v7947_v38 }
0x3f12   :  { %v8125_v55 = vpop.permute.xlu0 %8124 }
0x3f13   :  { %v7955_v56 = vmul.f32 %v12994_v8, %v7953_v15  ;;  %v7952_v36 = vsub.f32 %v7944_v27, %v7950_v49  ;;  %11956 = vmatpush3.msra.mxu0 %v8125_v55 }
0x3f14   :  { %11957 = vmatprep.subr.mxu0 %v12463_v1  ;;  %v8119_v58 = vpop.permute.xlu1 %8118 }
0x3f15   :  { %v7954_v3 = vmul.f32 %v12994_v8, %v7952_v36  ;;  %11958 = vmatpush3.msra.mxu0 %v8123_v22  ;;  %v7957_v33 = vmul.f32 %v7955_v56, %v7955_v56 }
0x3f16   :  { %v8121_v26 = vpop.permute.xlu0 %8120  ;;  %11959 = vmatprep.subr.mxu0 %v12463_v1 }
0x3f17   :  { %7960 = vadd.xlane.f32.xlu1 %v7957_v33  ;;  %v7956_v59 = vmul.f32 %v7954_v3, %v7954_v3  ;;  %11960 = vmatpush3.msra.mxu0 %v8121_v26 }
0x3f18   :  { %11961 = vmatprep.subr.mxu0 %v12463_v1  ;;  %v8115_v61 = vpop.permute.xlu1 %8114 }
0x3f19   :  { %7958 = vadd.xlane.f32.xlu0 %v7956_v59  ;;  %11962 = vmatpush3.msra.mxu0 %v8119_v58 }
0x3f1a   :  { %v8117_v10 = vpop.permute.xlu0 %8116  ;;  %11963 = vmatprep.subr.mxu0 %v12463_v1 }
0x3f1b   :  { %11964 = vmatpush3.msra.mxu0 %v8117_v10 }
0x3f1c   :  { %11965 = vmatprep.subr.mxu0 %v12463_v1  ;;  %v8111_v5 = vpop.permute.xlu1 %8110 }
0x3f1d   :  { %11966 = vmatpush3.msra.mxu0 %v8115_v61 }
0x3f1e   :  { %v8113_v2 = vpop.permute.xlu0 %8112  ;;  %11967 = vmatprep.subr.mxu0 %v12463_v1 }
0x3f1f   :  { %11968 = vmatpush3.msra.mxu0 %v8113_v2 }
0x3f20   :  { %11969 = vmatprep.subr.mxu0 %v12463_v1 }
0x3f21   :  { %11970 = vmatpush3.msra.mxu0 %v8111_v5 }
0x3f22   :  { %11971 = vmatprep.subr.mxu0 %v12463_v1 }
0x3f28   :  { %8106 = vrot.lane.b32.xlu1 %v10150_v37, %s12465_s28 }
0x3f2f   :  { %8108 = vrot.lane.b32.xlu0 %v10151_v18, %s12465_s28 }
0x3f33   :  { %8154 = vrot.lane.b32.xlu0 %v10167_v9, %s12465_s28 }
0x3fa0   :  { %v7961_v46 = vpop.xlane.xlu1 %7960 }
0x3fa1   :  { %v7963_v7 = vmul.f32 0.03125, %v7961_v46 }
0x3fa2   :  { %v7959_v35 = vpop.xlane.xlu0 %7958 }
0x3fa3   :  { %v7965_v11 = vadd.f32 1e-05, %v7963_v7  ;;  %v7962_v12 = vmul.f32 0.03125, %v7959_v35 }
0x3fa4   :  { %v8107_v16 = vpop.permute.xlu1 %8106 }
0x3fa5   :  { %12390 = vrsqrt.f32 %v7965_v11  ;;  %v7964_v43 = vadd.f32 1e-05, %v7962_v12 }
0x3fa6   :  { %v8109_v13 = vpop.permute.xlu0 %8108 }
0x3fa7   :  { %12392 = vrsqrt.f32 %v7964_v43  ;;  %11972 = vmatpush3.msra.mxu0 %v8109_v13 }
0x3fa8   :  { %11973 = vmatprep.subr.mxu0 %v12463_v1 }
0x3fa9   :  { %11974 = vmatpush3.msra.mxu0 %v8107_v16 }
0x3faa   :  { %11976 = vmatmul.mubr.f32.vlgmr.msra.gmra.mxu0 %v14115_v14  ;;  %v8155_v29 = vpop.permute.xlu0 %8154 }
0x3fab   :  { %11978 = vmatprep.mubr.msk.f32.mxu0 %vm12464_vm0, %v12463_v1 }
0x3fae   :  { %11979 = vmatmul.mubr.f32.gmra.mxu0 %v14121_v44 }
0x3faf   :  { %11981 = vmatprep.mubr.msk.f32.mxu0 %vm12464_vm0, %v12463_v1 }
0x3fb2   :  { %v12391_v54 = vpop.eup %12390  ;;  %11982 = vmatmul.mubr.f32.gmra.mxu0 %v14126_v57 }
0x3fb3   :  { %v7969_v21 = vmul.f32 %v12391_v54, %v7955_v56  ;;  %v10168_v54 = vld [vmem:[%s15096_s7 + $0xa0] sm:$0xff] }
0x3fb4   :  { %v12393_v39 = vpop.eup %12392 }
0x3fb5   :  { %v7968_v51 = vmul.f32 %v12393_v39, %v7954_v3  ;;  %v7979_v17 = vmul.f32 %v10147_v23, %v7969_v21 }
0x3fb7   :  { %v7978_v14 = vmul.f32 %v10147_v23, %v7968_v51  ;;  %v14768_v52 = vadd.f32 %v10149_v30, %v7979_v17 }
0x3fb9   :  { %v14766_v44 = vadd.f32 %v10149_v30, %v7978_v14 }
0x3fbb   :  { %11940 = vmatprep.mubr.f32.mxu1 %v14766_v44 }
0x3fbc   :  { %11941 = vmatmul.mubr.f32.vlgmr.msra.gmra.mxu1 %v14768_v52 }
0x406a   :  { %v8223_v1 = vpop.f32.mrf.mxu0 }
0x406b   :  { %v14782_v53 = vadd.f32 %v8223_v1, %v8155_v29 }
0x406c   :  { %v11977_v57 = vpop.f32.mrf.mxu0 }
0x406e   :  { %v8228_v63 = vpop.f32.mrf.mxu0 }
0x406f   :  { %v14774_v20 = vadd.f32 %v8228_v63, %v8155_v29 }
0x4070   :  { %v11980_v40 = vpop.f32.mrf.mxu0 }
0x4072   :  { %v8233_v25 = vpop.f32.mrf.mxu0 }
0x4073   :  { %v14772_v50 = vadd.f32 %v8233_v25, %v8155_v29 }
0x4074   :  { %v11983_v6 = vpop.f32.mrf.mxu0 }
0x4075   :  { %11984 = vmatprep.subr.msk.mxu1 %vm192_vm1, %v14772_v50 }
0x4076   :  { %11985 = vmatpush3.xpose.msk.msra.mxu1 %vm192_vm1, %v14772_v50 }
0x4077   :  { %11986 = vmatprep.subr.msk.mxu1 %vm192_vm1, %v14774_v20 }
0x407a   :  { %11987 = vmatpush3.xpose.msk.msra.mxu1 %vm192_vm1, %v14774_v20 }
0x407b   :  { %11988 = vmatprep.subr.msk.mxu1 %vm192_vm1, %v14782_v53 }
0x407c   :  { %v11942_v24 = vpop.f32.mrf.mxu1 }
0x407d   :  { %v14792_v45 = vadd.f32 %v11942_v24, %v10167_v9 }
0x407e   :  { %v8081_v60 = vpop.f32.mrf.mxu1  ;;  %11989 = vmatpush3.xpose.msk.msra.mxu1 %vm192_vm1, %v14782_v53 }
0x407f   :  { %v14790_v28 = vadd.f32 %v10167_v9, %v8081_v60  ;;  %12002 = vmatprep.subr.mxu1 %v10168_v54 }
0x4081   :  { %11990 = vmatprep.mubr.msk.f32.mxu1 %vm192_vm1, %v14790_v28 }
0x4082   :  { %11991 = vmatmul.mubr.msk.f32.vlgmr.msra.gmra.mxu1 %vm192_vm1, %v14792_v45 }
0x4083   :  { %12003 = vmatpush3.msra.mxu1 %v10168_v54 }
0x4142   :  { %v11992_v19 = vpop.f32.mrf.mxu1 }
0x4143   :  { %v8343_v32 = vmul.f32 0.35355338, %v11992_v19 }
0x4144   :  { %v8333_v41 = vpop.f32.mrf.mxu1 }
0x4145   :  { %v8345_v62 = vadd.f32 %v14801_v31, %v8343_v32  ;;  %v8342_v34 = vmul.f32 0.35355338, %v8333_v41 }
0x4147   :  { %v8344_v0 = vadd.f32 %v14807_v4, %v8342_v34  ;;  %v8349_v48 = vsel %vm291_vm2, %v8345_v62, -inf }
0x4148   :  { %8350 = vmax.xlane.f32.xlu0 %v8349_v48 }
0x4149   :  { %v8346_v27 = vsel %vm291_vm2, %v8344_v0, -inf }
0x414a   :  { %8347 = vmax.xlane.f32.xlu1 %v8346_v27 }
0x415b   :  { %8370 = vrot.lane.b32.xlu1 %v14774_v20, %s12465_s28 }
0x415e   :  { %8372 = vrot.lane.b32.xlu0 %v14772_v50, %s12465_s28 }
0x415f   :  { %8368 = vrot.lane.b32.xlu1 %v14782_v53, %s12465_s28 }
0x41d1   :  { %v8351_v18 = vpop.xlane.xlu0 %8350 }
0x41d2   :  { %v8353_v37 = vsub.f32 %v8345_v62, %v8351_v18 }
0x41d3   :  { %v8348_v22 = vpop.xlane.xlu1 %8347 }
0x41d4   :  { %v8356_v42 = vmul.f32 1.442695, %v8353_v37  ;;  %v8352_v47 = vsub.f32 %v8344_v0, %v8348_v22  ;;  %v14882_v22 = vld [vmem:[%s15097_s8 + $0x5] ss:$0 sm:$0xff] }
0x41d5   :  { %v8373_v38 = vpop.permute.xlu0 %8372 }
0x41d6   :  { %12394 = vpow2.f32 %v8356_v42  ;;  %v8354_v15 = vmul.f32 1.442695, %v8352_v47  ;;  %11993 = vmatprep.subr.msk.mxu0 %vm343_vm4, %v8373_v38  ;;  %v8251_v42 = vadd.f32 %v14882_v22, %v14768_v52 }
0x41d7   :  { %11994 = vmatpush3.msk.msra.mxu0 %vm343_vm4, %v8373_v38  ;;  %v8371_v49 = vpop.permute.xlu1 %8370 }
0x41d8   :  { %12396 = vpow2.f32 %v8354_v15  ;;  %11995 = vmatprep.subr.mxu0 %v8371_v49 }
0x41d9   :  { %11996 = vmatpush3.msra.mxu0 %v8371_v49 }
0x41db   :  { %v8369_v55 = vpop.permute.xlu1 %8368 }
0x41dc   :  { %11997 = vmatprep.subr.mxu0 %v8369_v55 }
0x41dd   :  { %11998 = vmatpush3.msra.mxu0 %v8369_v55 }
0x41e3   :  { %v12395_v56 = vpop.eup %12394 }
0x41e4   :  { %v8361_v36 = vsel %vm291_vm2, %v12395_v56, 0.0 }
0x41e5   :  { %v12397_v58 = vpop.eup %12396  ;;  %8362 = vadd.xlane.f32.xlu1 %v8361_v36 }
0x41e6   :  { %v8358_v3 = vsel %vm291_vm2, %v12397_v58, 0.0 }
0x41e7   :  { %8359 = vadd.xlane.f32.xlu0 %v8358_v3 }
0x41f6   :  { %8548 = vrot.lane.b32.xlu1 %v14774_v20, %s12467_s29 }
0x41fa   :  { %8542 = vrot.lane.b32.xlu1 %v14790_v28, %s12467_s29 }
0x41fd   :  { %8550 = vrot.lane.b32.xlu0 %v14772_v50, %s12467_s29 }
0x41fe   :  { %8845 = vrot.lane.b32.xlu1 %v14772_v50, %s15120_s17 }
0x4201   :  { %8546 = vrot.lane.b32.xlu0 %v14782_v53, %s12467_s29 }
0x4202   :  { %8841 = vrot.lane.b32.xlu1 %v14782_v53, %s15120_s17 }
0x4205   :  { %8544 = vrot.lane.b32.xlu0 %v14792_v45, %s12467_s29 }
0x4206   :  { %8839 = vrot.lane.b32.xlu1 %v14792_v45, %s15120_s17 }
0x4209   :  { %8843 = vrot.lane.b32.xlu0 %v14774_v20, %s15120_s17 }
0x420d   :  { %8837 = vrot.lane.b32.xlu0 %v14790_v28, %s15120_s17 }
0x426e   :  { %v8363_v33 = vpop.xlane.xlu1 %8362 }
0x426f   :  { %12398 = vrcp.f32 %v8363_v33 }
0x4270   :  { %v8360_v26 = vpop.xlane.xlu0 %8359 }
0x4271   :  { %12400 = vrcp.f32 %v8360_v26 }
0x4272   :  { %v8549_v61 = vpop.permute.xlu1 %8548 }
0x4274   :  { %v8551_v59 = vpop.permute.xlu0 %8550 }
0x4275   :  { %12007 = vmatprep.subr.msk.mxu0 %vm192_vm1, %v8551_v59 }
0x4276   :  { %v8543_v7 = vpop.permute.xlu1 %8542 }
0x4278   :  { %v8547_v10 = vpop.permute.xlu0 %8546 }
0x427a   :  { %v8846_v12 = vpop.permute.xlu1 %8845 }
0x427c   :  { %v12399_v2 = vpop.eup %12398  ;;  %v8545_v35 = vpop.permute.xlu0 %8544 }
0x427d   :  { %v8367_v46 = vmul.f32 %v12399_v2, %v12395_v56 }
0x427e   :  { %v12401_v5 = vpop.eup %12400  ;;  %v8842_v13 = vpop.permute.xlu1 %8841 }
0x427f   :  { %v8365_v9 = vmul.f32 %v12401_v5, %v12397_v58 }
0x4280   :  { %v8844_v11 = vpop.permute.xlu0 %8843 }
0x4281   :  { %11999 = vmatprep.mubr.msk.f32.mxu0 %vm291_vm2, %v8365_v9 }
0x4282   :  { %12000 = vmatmul.mubr.msk.f32.vlgmr.msra.gmra.mxu0 %vm291_vm2, %v8367_v46  ;;  %v8840_v16 = vpop.permute.xlu1 %8839 }
0x4283   :  { %12008 = vmatpush3.xpose.msk.msra.mxu0 %vm192_vm1, %v8551_v59  ;;  %12013 = vmatprep.mubr.msk.f32.mxu0 %vm192_vm1, %v8543_v7 }
0x4284   :  { %12009 = vmatprep.subr.msk.mxu0 %vm192_vm1, %v8549_v61  ;;  %v8838_v43 = vpop.permute.xlu0 %8837 }
0x4287   :  { %12010 = vmatpush3.xpose.msk.msra.mxu0 %vm192_vm1, %v8549_v61 }
0x4288   :  { %12011 = vmatprep.subr.msk.mxu0 %vm192_vm1, %v8547_v10 }
0x428b   :  { %12012 = vmatpush3.xpose.msk.msra.mxu0 %vm192_vm1, %v8547_v10  ;;  %v10169_v10 = vld [vmem:[%s15096_s7 + $0xa8] sm:$0xff] }
0x428c   :  { %12030 = vmatprep.subr.msk.mxu0 %vm192_vm1, %v8846_v12 }
0x428e   :  { %12014 = vmatmul.mubr.msk.f32.vlgmr.msra.gmra.mxu0 %vm192_vm1, %v8545_v35 }
0x428f   :  { %12031 = vmatpush3.xpose.msk.msra.mxu0 %vm192_vm1, %v8846_v12  ;;  %12036 = vmatprep.mubr.msk.f32.mxu0 %vm192_vm1, %v8838_v43 }
0x4290   :  { %12032 = vmatprep.subr.msk.mxu0 %vm192_vm1, %v8844_v11 }
0x4293   :  { %12033 = vmatpush3.xpose.msk.msra.mxu0 %vm192_vm1, %v8844_v11 }
0x4294   :  { %12034 = vmatprep.subr.msk.mxu0 %vm192_vm1, %v8842_v13 }
0x4297   :  { %12035 = vmatpush3.xpose.msk.msra.mxu0 %vm192_vm1, %v8842_v13 }
0x429a   :  { %12037 = vmatmul.mubr.msk.f32.vlgmr.msra.gmra.mxu0 %vm192_vm1, %v8840_v16 }
0x4342   :  { %v12001_v21 = vpop.f32.mrf.mxu0 }
0x4344   :  { %v8450_v23 = vpop.f32.mrf.mxu0 }
0x4345   :  { %12004 = vmatprep.mubr.msk.f32.mxu1 %vm192_vm1, %v8450_v23 }
0x4346   :  { %12005 = vmatmul.mubr.msk.f32.vlgmr.msra.gmra.mxu1 %vm192_vm1, %v12001_v21 }
0x434e   :  { %v12015_v39 = vpop.f32.mrf.mxu0 }
0x434f   :  { %v8638_v51 = vmul.f32 0.35355338, %v12015_v39 }
0x4350   :  { %v8628_v17 = vpop.f32.mrf.mxu0 }
0x4351   :  { %v8640_v14 = vadd.f32 %v14801_v31, %v8638_v51  ;;  %v8637_v30 = vmul.f32 0.35355338, %v8628_v17 }
0x4353   :  { %v8639_v1 = vadd.f32 %v14807_v4, %v8637_v30  ;;  %v8644_v57 = vsel %vm291_vm2, %v8640_v14, -inf }
0x4354   :  { %8645 = vmax.xlane.f32.xlu1 %v8644_v57 }
0x4355   :  { %v8641_v63 = vsel %vm291_vm2, %v8639_v1, -inf }
0x4356   :  { %8642 = vmax.xlane.f32.xlu0 %v8641_v63  ;;  %v8250_v63 = vadd.f32 %v14882_v22, %v14766_v44 }
0x435a   :  { %v12038_v40 = vpop.f32.mrf.mxu0 }
0x435b   :  { %v8933_v36 = vmul.f32 0.35355338, %v12038_v40 }
0x435c   :  { %v8923_v29 = vpop.f32.mrf.mxu0 }
0x435d   :  { %v8932_v25 = vmul.f32 0.35355338, %v8923_v29  ;;  %v8935_v58 = vadd.f32 %v14801_v31, %v8933_v36 }
0x435f   :  { %v8934_v6 = vadd.f32 %v14807_v4, %v8932_v25  ;;  %v8939_v3 = vsel %vm291_vm2, %v8935_v58, -inf }
0x4361   :  { %v8936_v24 = vsel %vm291_vm2, %v8934_v6, -inf }
0x4365   :  { %8667 = vrot.lane.b32.xlu1 %v14772_v50, %s12466_s0 }
0x4369   :  { %8663 = vrot.lane.b32.xlu1 %v14782_v53, %s12466_s0 }
0x438d   :  { %8937 = vmax.xlane.f32.xlu1 %v8936_v24 }
0x43dd   :  { %v8646_v60 = vpop.xlane.xlu1 %8645 }
0x43de   :  { %v8648_v19 = vsub.f32 %v8640_v14, %v8646_v60  ;;  %v10170_v14 = vld [vmem:[%s15096_s7 + $0xb0] sm:$0xff] }
0x43df   :  { %v8643_v32 = vpop.xlane.xlu0 %8642 }
0x43e0   :  { %v8651_v41 = vmul.f32 1.442695, %v8648_v19  ;;  %v8647_v62 = vsub.f32 %v8639_v1, %v8643_v32 }
0x43e1   :  { %v8668_v34 = vpop.permute.xlu1 %8667 }
0x43e2   :  { %12402 = vpow2.f32 %v8651_v41  ;;  %v8649_v0 = vmul.f32 1.442695, %v8647_v62  ;;  %12016 = vmatprep.subr.msk.mxu1 %vm343_vm4, %v8668_v34 }
0x43e3   :  { %12017 = vmatpush3.msk.msra.mxu1 %vm343_vm4, %v8668_v34 }
0x43e4   :  { %12404 = vpow2.f32 %v8649_v0 }
0x43e5   :  { %v8664_v15 = vpop.permute.xlu1 %8663 }
0x43ef   :  { %v12403_v48 = vpop.eup %12402 }
0x43f0   :  { %v8656_v27 = vsel %vm291_vm2, %v12403_v48, 0.0 }
0x43f1   :  { %v12405_v18 = vpop.eup %12404  ;;  %8657 = vadd.xlane.f32.xlu0 %v8656_v27 }
0x43f2   :  { %v8653_v37 = vsel %vm291_vm2, %v12405_v18, 0.0 }
0x43f5   :  { %8654 = vadd.xlane.f32.xlu0 %v8653_v37 }
0x4406   :  { %v12006_v47 = vpop.f32.mrf.mxu1 }
0x4407   :  { %v14886_v38 = vadd.f32 %v12006_v47, %v8251_v42 }
0x4408   :  { %v8531_v16 = vpop.f32.mrf.mxu1 }
0x4409   :  { %v8540_v29 = vadd.f32 %v8531_v16, %v8250_v63  ;;  %v10232_v16 = vld [vmem:[%s15098_s9 + $0x1f0] sm:$0xff]  ;;  %v10230_v63 = vld [vmem:[%s15098_s9 + $0x1e0] sm:$0xff] }
0x440b   :  { %8665 = vrot.lane.b32.xlu0 %v14774_v20, %s12466_s0 }
0x4416   :  { %v8938_v49 = vpop.xlane.xlu1 %8937 }
0x4417   :  { %v8942_v55 = vsub.f32 %v8934_v6, %v8938_v49 }
0x4419   :  { %v8944_v56 = vmul.f32 1.442695, %v8942_v55 }
0x441b   :  { %12406 = vpow2.f32 %v8944_v56 }
0x4428   :  { %v12407_v33 = vpop.eup %12406 }
0x4429   :  { %v8948_v52 = vsel %vm291_vm2, %v12407_v33, 0.0 }
0x442a   :  { %8940 = vmax.xlane.f32.xlu0 %v8939_v3 }
0x442e   :  { %8949 = vadd.xlane.f32.xlu0 %v8948_v52 }
0x4444   :  { %8962 = vrot.lane.b32.xlu0 %v14772_v50, %s12470_s25 }
0x4448   :  { %9140 = vrot.lane.b32.xlu0 %v14772_v50, %s15118_s27 }
0x444c   :  { %9136 = vrot.lane.b32.xlu0 %v14782_v53, %s15118_s27 }
0x4450   :  { %9134 = vrot.lane.b32.xlu0 %v14792_v45, %s15118_s27 }
0x447a   :  { %v8658_v26 = vpop.xlane.xlu0 %8657 }
0x447b   :  { %12408 = vrcp.f32 %v8658_v26 }
0x447e   :  { %v8655_v59 = vpop.xlane.xlu0 %8654 }
0x447f   :  { %12410 = vrcp.f32 %v8655_v59 }
0x4482   :  { %v8666_v61 = vpop.permute.xlu0 %8665 }
0x4483   :  { %12018 = vmatprep.subr.mxu1 %v8666_v61 }
0x4484   :  { %12019 = vmatpush3.msra.mxu1 %v8666_v61 }
0x4485   :  { %12020 = vmatprep.subr.mxu1 %v8664_v15 }
0x4486   :  { %12021 = vmatpush3.msra.mxu1 %v8664_v15 }
0x4487   :  { %12025 = vmatprep.subr.mxu1 %v10169_v10 }
0x4488   :  { %v12409_v2 = vpop.eup %12408 }
0x4489   :  { %v8662_v46 = vmul.f32 %v12409_v2, %v12403_v48 }
0x448c   :  { %v12411_v5 = vpop.eup %12410 }
0x448d   :  { %v8660_v9 = vmul.f32 %v12411_v5, %v12405_v18 }
0x448f   :  { %12022 = vmatprep.mubr.msk.f32.mxu1 %vm291_vm2, %v8660_v9 }
0x4490   :  { %12023 = vmatmul.mubr.msk.f32.vlgmr.msra.gmra.mxu1 %vm291_vm2, %v8662_v46 }
0x4491   :  { %12026 = vmatpush3.msra.mxu1 %v10169_v10 }
0x44b3   :  { %v8941_v45 = vpop.xlane.xlu0 %8940 }
0x44b4   :  { %v8943_v7 = vsub.f32 %v8935_v58, %v8941_v45 }
0x44b6   :  { %v8946_v35 = vmul.f32 1.442695, %v8943_v7 }
0x44b7   :  { %v8950_v11 = vpop.xlane.xlu0 %8949 }
0x44b8   :  { %12412 = vpow2.f32 %v8946_v35 }
0x44b9   :  { %12414 = vrcp.f32 %v8950_v11 }
0x44bb   :  { %v8963_v12 = vpop.permute.xlu0 %8962 }
0x44bc   :  { %12039 = vmatprep.subr.msk.mxu1 %vm343_vm4, %v8963_v12 }
0x44bf   :  { %v9141_v57 = vpop.permute.xlu0 %9140 }
0x44c3   :  { %v9137_v44 = vpop.permute.xlu0 %9136 }
0x44c5   :  { %v12413_v43 = vpop.eup %12412 }
0x44c6   :  { %v8951_v13 = vsel %vm291_vm2, %v12413_v43, 0.0  ;;  %v12415_v54 = vpop.eup %12414 }
0x44c7   :  { %8952 = vadd.xlane.f32.xlu1 %v8951_v13  ;;  %v8955_v51 = vmul.f32 %v12415_v54, %v12407_v33  ;;  %v9135_v62 = vpop.permute.xlu0 %9134  ;;  %v10233_v13 = vld [vmem:[%s15098_s9 + $0x1f8] sm:$0xff] }
0x44d8   :  { %8960 = vrot.lane.b32.xlu1 %v14774_v20, %s12470_s25 }
0x44dc   :  { %8958 = vrot.lane.b32.xlu1 %v14782_v53, %s12470_s25 }
0x44e0   :  { %9138 = vrot.lane.b32.xlu1 %v14774_v20, %s15118_s27 }
0x44e4   :  { %9132 = vrot.lane.b32.xlu1 %v14790_v28, %s15118_s27 }
0x4550   :  { %v8953_v21 = vpop.xlane.xlu1 %8952  ;;  %v12024_v23 = vpop.f32.mrf.mxu1 }
0x4551   :  { %12416 = vrcp.f32 %v8953_v21 }
0x4552   :  { %v8745_v39 = vpop.f32.mrf.mxu1 }
0x4553   :  { %12027 = vmatprep.mubr.msk.f32.mxu1 %vm192_vm1, %v8745_v39 }
0x4554   :  { %v8961_v17 = vpop.permute.xlu1 %8960  ;;  %12028 = vmatmul.mubr.msk.f32.vlgmr.msra.gmra.mxu1 %vm192_vm1, %v12024_v23 }
0x4555   :  { %12040 = vmatpush3.msk.msra.mxu1 %vm343_vm4, %v8963_v12  ;;  %12045 = vmatprep.mubr.msk.f32.mxu1 %vm291_vm2, %v8955_v51 }
0x4556   :  { %12041 = vmatprep.subr.mxu1 %v8961_v17 }
0x4557   :  { %12042 = vmatpush3.msra.mxu1 %v8961_v17 }
0x4558   :  { %v8959_v28 = vpop.permute.xlu1 %8958 }
0x4559   :  { %12043 = vmatprep.subr.mxu1 %v8959_v28 }
0x455a   :  { %12044 = vmatpush3.msra.mxu1 %v8959_v28 }
0x455b   :  { %12048 = vmatprep.subr.mxu1 %v10170_v14 }
0x455c   :  { %v9139_v60 = vpop.permute.xlu1 %9138 }
0x455e   :  { %v12417_v30 = vpop.eup %12416 }
0x455f   :  { %v8957_v1 = vmul.f32 %v12417_v30, %v12413_v43 }
0x4560   :  { %v9133_v41 = vpop.permute.xlu1 %9132 }
0x4561   :  { %12046 = vmatmul.mubr.msk.f32.vlgmr.msra.gmra.mxu1 %vm291_vm2, %v8957_v1 }
0x4562   :  { %12049 = vmatpush3.msra.mxu1 %v10170_v14 }
0x4563   :  { %12053 = vmatprep.subr.msk.mxu1 %vm192_vm1, %v9141_v57 }
0x4614   :  { %v12029_v40 = vpop.f32.mrf.mxu1 }
0x4615   :  { %v8836_v25 = vadd.f32 %v12029_v40, %v14886_v38  ;;  %v10229_v40 = vld [vmem:[%s15098_s9 + $0x1d8] sm:$0xff] }
0x4616   :  { %v8826_v6 = vpop.f32.mrf.mxu1 }
0x4617   :  { %v8835_v24 = vadd.f32 %v8826_v6, %v8540_v29  ;;  %v10228_v29 = vld [vmem:[%s15098_s9 + $0x1d0] sm:$0xff]  ;;  %v10226_v6 = vld [vmem:[%s15098_s9 + $0x1c0] sm:$0xff] }
0x4621   :  { %v12047_v19 = vpop.f32.mrf.mxu1 }
0x4623   :  { %v9040_v32 = vpop.f32.mrf.mxu1 }
0x4624   :  { %12050 = vmatprep.mubr.msk.f32.mxu1 %vm192_vm1, %v9040_v32  ;;  %v10222_v32 = vld [vmem:[%s15098_s9 + $0x1a0] sm:$0xff] }
0x4625   :  { %12051 = vmatmul.mubr.msk.f32.vlgmr.msra.gmra.mxu1 %vm192_vm1, %v12047_v19  ;;  %v10223_v19 = vld [vmem:[%s15098_s9 + $0x1a8] sm:$0xff] }
0x4626   :  { %12054 = vmatpush3.xpose.msk.msra.mxu1 %vm192_vm1, %v9141_v57  ;;  %12059 = vmatprep.mubr.msk.f32.mxu1 %vm192_vm1, %v9133_v41  ;;  %v10231_v57 = vld [vmem:[%s15098_s9 + $0x1e8] sm:$0xff]  ;;  %v10221_v41 = vld [vmem:[%s15098_s9 + $0x198] sm:$0xff] }
0x4627   :  { %12055 = vmatprep.subr.msk.mxu1 %vm192_vm1, %v9139_v60 }
0x462a   :  { %12056 = vmatpush3.xpose.msk.msra.mxu1 %vm192_vm1, %v9139_v60  ;;  %v10224_v60 = vld [vmem:[%s15098_s9 + $0x1b0] sm:$0xff] }
0x462b   :  { %12057 = vmatprep.subr.msk.mxu1 %vm192_vm1, %v9137_v44 }
0x462e   :  { %12058 = vmatpush3.xpose.msk.msra.mxu1 %vm192_vm1, %v9137_v44  ;;  %v10220_v44 = vld [vmem:[%s15098_s9 + $0x190] sm:$0xff] }
0x4631   :  { %12060 = vmatmul.mubr.msk.f32.vlgmr.msra.gmra.mxu1 %vm192_vm1, %v9135_v62  ;;  %v10219_v62 = vld [vmem:[%s15098_s9 + $0x188] sm:$0xff] }
0x46e5   :  { %v12052_v34 = vpop.f32.mrf.mxu1 }
0x46e6   :  { %v9131_v0 = vadd.f32 %v12052_v34, %v8836_v25  ;;  %v10227_v25 = vld [vmem:[%s15098_s9 + $0x1c8] sm:$0xff]  ;;  %v10218_v34 = vld [vmem:[%s15098_s9 + $0x180] sm:$0xff] }
0x46e7   :  { %v9121_v48 = vpop.f32.mrf.mxu1 }
0x46e8   :  { %v9130_v27 = vadd.f32 %v9121_v48, %v8835_v24  ;;  %v10225_v24 = vld [vmem:[%s15098_s9 + $0x1b8] sm:$0xff]  ;;  %v10250_v48 = vld [vmem:[%s15100_s11 + $0x1f0] sm:$0xff] }
0x46f1   :  { %v12061_v18 = vpop.f32.mrf.mxu1 }
0x46f2   :  { %v9228_v37 = vmul.f32 0.35355338, %v12061_v18  ;;  %v10248_v18 = vld [vmem:[%s15100_s11 + $0x1e0] sm:$0xff] }
0x46f3   :  { %v9218_v22 = vpop.f32.mrf.mxu1 }
0x46f4   :  { %v9230_v42 = vadd.f32 %v14801_v31, %v9228_v37  ;;  %v9227_v47 = vmul.f32 0.35355338, %v9218_v22  ;;  %v10247_v37 = vld [vmem:[%s15100_s11 + $0x1d8] sm:$0xff]  ;;  %v10246_v22 = vld [vmem:[%s15100_s11 + $0x1d0] sm:$0xff] }
0x46f6   :  { %v9229_v38 = vadd.f32 %v14807_v4, %v9227_v47  ;;  %v9234_v15 = vsel %vm291_vm2, %v9230_v42, -inf  ;;  %v10244_v47 = vld [vmem:[%s15100_s11 + $0x1c0] sm:$0xff] }
0x46f7   :  { %9235 = vmax.xlane.f32.xlu0 %v9234_v15  ;;  %v10242_v15 = vld [vmem:[%s15100_s11 + $0x1b0] sm:$0xff] }
0x46f8   :  { %v9231_v49 = vsel %vm291_vm2, %v9229_v38, -inf }
0x46f9   :  { %9232 = vmax.xlane.f32.xlu1 %v9231_v49  ;;  %v10241_v49 = vld [vmem:[%s15100_s11 + $0x1a8] sm:$0xff] }
0x4780   :  { %v9236_v55 = vpop.xlane.xlu0 %9235 }
0x4781   :  { %v9238_v56 = vsub.f32 %v9230_v42, %v9236_v55  ;;  %v10245_v42 = vld [vmem:[%s15100_s11 + $0x1c8] sm:$0xff]  ;;  %v10240_v55 = vld [vmem:[%s15100_s11 + $0x1a0] sm:$0xff] }
0x4782   :  { %v9233_v36 = vpop.xlane.xlu1 %9232 }
0x4783   :  { %v9241_v58 = vmul.f32 1.442695, %v9238_v56  ;;  %v9237_v3 = vsub.f32 %v9229_v38, %v9233_v36  ;;  %v10243_v38 = vld [vmem:[%s15100_s11 + $0x1b8] sm:$0xff] }
0x4785   :  { %12418 = vpow2.f32 %v9241_v58  ;;  %v9239_v33 = vmul.f32 1.442695, %v9237_v3 }
0x4787   :  { %12420 = vpow2.f32 %v9239_v33 }
0x4792   :  { %v12419_v52 = vpop.eup %12418 }
0x4793   :  { %v9246_v31 = vsel %vm291_vm2, %v12419_v52, 0.0 }
0x4794   :  { %v12421_v26 = vpop.eup %12420  ;;  %9247 = vadd.xlane.f32.xlu1 %v9246_v31 }
0x4795   :  { %v9243_v4 = vsel %vm291_vm2, %v12421_v26, 0.0 }
0x4796   :  { %9244 = vadd.xlane.f32.xlu0 %v9243_v4 }
0x47a5   :  { %9255 = vrot.lane.b32.xlu1 %v14774_v20, %s15117_s20 }
0x47a9   :  { %9253 = vrot.lane.b32.xlu1 %v14782_v53, %s15117_s20 }
0x47ac   :  { %9257 = vrot.lane.b32.xlu0 %v14772_v50, %s15117_s20  ;;  %v10171_v50 = vld [vmem:[%s15096_s7 + $0xb8] sm:$0xff] }
0x481d   :  { %v9248_v59 = vpop.xlane.xlu1 %9247 }
0x481e   :  { %12422 = vrcp.f32 %v9248_v59  ;;  %v10217_v59 = vld [vmem:[%s15103_s14 + $0x8] ss:$0 sm:$0xff] }
0x481f   :  { %v9245_v61 = vpop.xlane.xlu0 %9244 }
0x4820   :  { %12424 = vrcp.f32 %v9245_v61 }
0x4821   :  { %v9256_v10 = vpop.permute.xlu1 %9255 }
0x4823   :  { %v9258_v2 = vpop.permute.xlu0 %9257 }
0x4824   :  { %12062 = vmatprep.subr.msk.mxu0 %vm343_vm4, %v9258_v2 }
0x4825   :  { %12063 = vmatpush3.msk.msra.mxu0 %vm343_vm4, %v9258_v2  ;;  %v9254_v5 = vpop.permute.xlu1 %9253 }
0x4826   :  { %12064 = vmatprep.subr.mxu0 %v9256_v10 }
0x4827   :  { %12065 = vmatpush3.msra.mxu0 %v9256_v10 }
0x4828   :  { %12066 = vmatprep.subr.mxu0 %v9254_v5 }
0x4829   :  { %12067 = vmatpush3.msra.mxu0 %v9254_v5 }
0x482a   :  { %12071 = vmatprep.subr.mxu0 %v10171_v50 }
0x482b   :  { %v12423_v20 = vpop.eup %12422 }
0x482c   :  { %v9252_v46 = vmul.f32 %v12423_v20, %v12419_v52 }
0x482d   :  { %v12425_v53 = vpop.eup %12424 }
0x482e   :  { %v9250_v9 = vmul.f32 %v12425_v53, %v12421_v26  ;;  %v10215_v26 = vld [vmem:[%s15102_s13 + $0x8] ss:$0 sm:$0xff] }
0x4830   :  { %12068 = vmatprep.mubr.msk.f32.mxu0 %vm291_vm2, %v9250_v9  ;;  %v10239_v9 = vld [vmem:[%s15100_s11 + $0x198] sm:$0xff] }
0x4831   :  { %12069 = vmatmul.mubr.msk.f32.vlgmr.msra.gmra.mxu0 %vm291_vm2, %v9252_v46  ;;  %v10238_v46 = vld [vmem:[%s15100_s11 + $0x190] sm:$0xff] }
0x4832   :  { %12072 = vmatpush3.msra.mxu0 %v10171_v50  ;;  %v10237_v50 = vld [vmem:[%s15100_s11 + $0x188] sm:$0xff] }
0x4833   :  { %12076 = vmatprep.subr.mxu0 %v10233_v13 }
0x48f1   :  { %v12070_v45 = vpop.f32.mrf.mxu0 }
0x48f3   :  { %v9335_v7 = vpop.f32.mrf.mxu0 }
0x48f4   :  { %12073 = vmatprep.mubr.msk.f32.mxu0 %vm192_vm1, %v9335_v7  ;;  %v10235_v7 = vld [vmem:[%s15099_s10 + $0x3] ss:$0 sm:$0xff] }
0x48f5   :  { %12074 = vmatmul.mubr.msk.f32.vlgmr.msra.gmra.mxu0 %vm192_vm1, %v12070_v45  ;;  %v10236_v45 = vld [vmem:[%s15100_s11 + $0x180] sm:$0xff] }
0x48f6   :  { %12077 = vmatpush3.msra.mxu0 %v10233_v13 }
0x48f7   :  { %12078 = vmatprep.subr.mxu0 %v10232_v16 }
0x48f8   :  { %12079 = vmatpush3.msra.mxu0 %v10232_v16 }
0x48f9   :  { %12080 = vmatprep.subr.mxu0 %v10231_v57 }
0x48fa   :  { %12081 = vmatpush3.msra.mxu0 %v10231_v57 }
0x48fb   :  { %12082 = vmatprep.subr.mxu0 %v10230_v63 }
0x48fc   :  { %12083 = vmatpush3.msra.mxu0 %v10230_v63 }
0x48fd   :  { %12084 = vmatprep.subr.mxu0 %v10229_v40 }
0x48fe   :  { %12085 = vmatpush3.msra.mxu0 %v10229_v40 }
0x48ff   :  { %12086 = vmatprep.subr.mxu0 %v10228_v29 }
0x4900   :  { %12087 = vmatpush3.msra.mxu0 %v10228_v29 }
0x4901   :  { %12088 = vmatprep.subr.mxu0 %v10227_v25 }
0x4902   :  { %12089 = vmatpush3.msra.mxu0 %v10227_v25 }
0x4903   :  { %12090 = vmatprep.subr.mxu0 %v10226_v6 }
0x4904   :  { %12091 = vmatpush3.msra.mxu0 %v10226_v6 }
0x4905   :  { %12092 = vmatprep.subr.mxu0 %v10225_v24 }
0x4906   :  { %12093 = vmatpush3.msra.mxu0 %v10225_v24 }
0x4907   :  { %12094 = vmatprep.subr.mxu0 %v10224_v60 }
0x4908   :  { %12095 = vmatpush3.msra.mxu0 %v10224_v60 }
0x4909   :  { %12096 = vmatprep.subr.mxu0 %v10223_v19 }
0x490a   :  { %12097 = vmatpush3.msra.mxu0 %v10223_v19 }
0x490b   :  { %12098 = vmatprep.subr.mxu0 %v10222_v32 }
0x490c   :  { %12099 = vmatpush3.msra.mxu0 %v10222_v32 }
0x490d   :  { %12100 = vmatprep.subr.mxu0 %v10221_v41 }
0x490e   :  { %12101 = vmatpush3.msra.mxu0 %v10221_v41 }
0x490f   :  { %12102 = vmatprep.subr.mxu0 %v10220_v44 }
0x4910   :  { %12103 = vmatpush3.msra.mxu0 %v10220_v44 }
0x4911   :  { %12104 = vmatprep.subr.mxu0 %v10219_v62 }
0x4912   :  { %12105 = vmatpush3.msra.mxu0 %v10219_v62 }
0x4913   :  { %12106 = vmatprep.subr.mxu0 %v10218_v34 }
0x4914   :  { %12107 = vmatpush3.msra.mxu0 %v10218_v34 }
0x49b5   :  { %v12075_v35 = vpop.f32.mrf.mxu0 }
0x49b6   :  { %v9426_v11 = vadd.f32 %v12075_v35, %v9131_v0  ;;  %v10251_v0 = vld [vmem:[%s15100_s11 + $0x1f8] sm:$0xff] }
0x49b7   :  { %v9416_v12 = vpop.f32.mrf.mxu0  ;;  %12111 = vmatprep.subr.mxu1 %v10251_v0 }
0x49b8   :  { %v9425_v43 = vadd.f32 %v9416_v12, %v9130_v27  ;;  %9429 = vadd.xlane.f32.xlu1 %v9426_v11  ;;  %12112 = vmatpush3.msra.mxu1 %v10251_v0  ;;  %v10249_v27 = vld [vmem:[%s15100_s11 + $0x1e8] sm:$0xff] }
0x49b9   :  { %12113 = vmatprep.subr.mxu1 %v10250_v48  ;;  %v10255_v0 = vld [vmem:[%s15102_s13 + $0x9] ss:$0 sm:$0xff] }
0x49ba   :  { %9427 = vadd.xlane.f32.xlu0 %v9425_v43  ;;  %12114 = vmatpush3.msra.mxu1 %v10250_v48 }
0x49bb   :  { %12115 = vmatprep.subr.mxu1 %v10249_v27 }
0x49bc   :  { %12116 = vmatpush3.msra.mxu1 %v10249_v27 }
0x49bd   :  { %12117 = vmatprep.subr.mxu1 %v10248_v18 }
0x49be   :  { %12118 = vmatpush3.msra.mxu1 %v10248_v18 }
0x49bf   :  { %12119 = vmatprep.subr.mxu1 %v10247_v37 }
0x49c0   :  { %12120 = vmatpush3.msra.mxu1 %v10247_v37 }
0x49c1   :  { %12121 = vmatprep.subr.mxu1 %v10246_v22 }
0x49c2   :  { %12122 = vmatpush3.msra.mxu1 %v10246_v22 }
0x49c3   :  { %12123 = vmatprep.subr.mxu1 %v10245_v42 }
0x49c4   :  { %12124 = vmatpush3.msra.mxu1 %v10245_v42 }
0x49c5   :  { %12125 = vmatprep.subr.mxu1 %v10244_v47 }
0x49c6   :  { %12126 = vmatpush3.msra.mxu1 %v10244_v47 }
0x49c7   :  { %12127 = vmatprep.subr.mxu1 %v10243_v38 }
0x49c8   :  { %12128 = vmatpush3.msra.mxu1 %v10243_v38 }
0x49c9   :  { %12129 = vmatprep.subr.mxu1 %v10242_v15 }
0x49ca   :  { %12130 = vmatpush3.msra.mxu1 %v10242_v15 }
0x49cb   :  { %12131 = vmatprep.subr.mxu1 %v10241_v49 }
0x49cc   :  { %12132 = vmatpush3.msra.mxu1 %v10241_v49 }
0x49cd   :  { %12133 = vmatprep.subr.mxu1 %v10240_v55 }
0x49ce   :  { %12134 = vmatpush3.msra.mxu1 %v10240_v55 }
0x49cf   :  { %12135 = vmatprep.subr.mxu1 %v10239_v9 }
0x49d0   :  { %12136 = vmatpush3.msra.mxu1 %v10239_v9 }
0x49d1   :  { %12137 = vmatprep.subr.mxu1 %v10238_v46 }
0x49d2   :  { %12138 = vmatpush3.msra.mxu1 %v10238_v46 }
0x49d3   :  { %12139 = vmatprep.subr.mxu1 %v10237_v50 }
0x49d4   :  { %12140 = vmatpush3.msra.mxu1 %v10237_v50 }
0x49d5   :  { %12141 = vmatprep.subr.mxu1 %v10236_v45 }
0x49d6   :  { %12142 = vmatpush3.msra.mxu1 %v10236_v45 }
0x4a41   :  { %v9430_v54 = vpop.xlane.xlu1 %9429 }
0x4a42   :  { %v9432_v21 = vmul.f32 0.03125, %v9430_v54 }
0x4a43   :  { %v9428_v23 = vpop.xlane.xlu0 %9427 }
0x4a44   :  { %v9431_v39 = vmul.f32 0.03125, %v9428_v23  ;;  %v9434_v51 = vsub.f32 %v9426_v11, %v9432_v21  ;;  %v10253_v21 = vld [vmem:[%s15101_s12 + $0x3] ss:$0 sm:$0xff] }
0x4a46   :  { %v9433_v17 = vsub.f32 %v9425_v43, %v9431_v39  ;;  %v14968_v14 = vmul.f32 %v12994_v8, %v9434_v51 }
0x4a48   :  { %v14965_v28 = vmul.f32 %v12994_v8, %v9433_v17  ;;  %v9438_v1 = vmul.f32 %v14968_v14, %v14968_v14 }
0x4a4a   :  { %v9437_v30 = vmul.f32 %v14965_v28, %v14965_v28 }
0x4a4c   :  { %9439 = vadd.xlane.f32.xlu0 %v9437_v30 }
0x4a50   :  { %9441 = vadd.xlane.f32.xlu0 %v9438_v1 }
0x4ad5   :  { %v9440_v56 = vpop.xlane.xlu0 %9439 }
0x4ad6   :  { %v9443_v36 = vmul.f32 0.03125, %v9440_v56 }
0x4ad8   :  { %v9445_v58 = vadd.f32 1e-05, %v9443_v36 }
0x4ad9   :  { %v9442_v3 = vpop.xlane.xlu0 %9441 }
0x4ada   :  { %12426 = vrsqrt.f32 %v9445_v58  ;;  %v9444_v33 = vmul.f32 0.03125, %v9442_v3 }
0x4adc   :  { %v9446_v52 = vadd.f32 1e-05, %v9444_v33 }
0x4ade   :  { %12428 = vrsqrt.f32 %v9446_v52 }
0x4ae7   :  { %v12427_v31 = vpop.eup %12426 }
0x4ae8   :  { %v9449_v4 = vmul.f32 %v12427_v31, %v14965_v28 }
0x4aea   :  { %v9459_v61 = vmul.f32 %v10215_v26, %v9449_v4 }
0x4aeb   :  { %v12429_v10 = vpop.eup %12428 }
0x4aec   :  { %v9450_v2 = vmul.f32 %v12429_v10, %v14968_v14  ;;  %v9469_v5 = vadd.f32 %v10217_v59, %v9459_v61 }
0x4aee   :  { %v9460_v20 = vmul.f32 %v10215_v26, %v9450_v2  ;;  %12108 = vmatprep.mubr.f32.mxu0 %v9469_v5 }
0x4af0   :  { %v9470_v53 = vadd.f32 %v10217_v59, %v9460_v20 }
0x4af2   :  { %12109 = vmatmul.mubr.f32.vlgmr.msra.gmra.mxu0 %v9470_v53 }
0x4bb2   :  { %v12110_v35 = vpop.f32.mrf.mxu0 }
0x4bb3   :  { %v9568_v11 = vadd.f32 %v12110_v35, %v10235_v7 }
0x4bb4   :  { %v9562_v12 = vpop.f32.mrf.mxu0 }
0x4bb5   :  { %v9563_v43 = vadd.f32 %v10235_v7, %v9562_v12  ;;  %v9572_v16 = vmax.f32 %v9568_v11, 0.0 }
0x4bb7   :  { %v9571_v13 = vmax.f32 %v9563_v43, 0.0 }
0x4bb9   :  { %12143 = vmatprep.mubr.f32.mxu1 %v9571_v13 }
0x4bba   :  { %12144 = vmatmul.mubr.f32.vlgmr.msra.gmra.mxu1 %v9572_v16 }
0x4c7a   :  { %v12145_v54 = vpop.f32.mrf.mxu1 }
0x4c7b   :  { %v9666_v23 = vadd.f32 %v12145_v54, %v9470_v53 }
0x4c7c   :  { %v9656_v39 = vpop.f32.mrf.mxu1 }
0x4c7d   :  { %v9676_v51 = vadd.f32 %v10253_v21, %v9666_v23  ;;  %v9665_v17 = vadd.f32 %v9656_v39, %v9469_v5 }
0x4c7f   :  { %v9675_v28 = vadd.f32 %v10253_v21, %v9665_v17  ;;  %9679 = vadd.xlane.f32.xlu0 %v9676_v51 }
0x4c81   :  { %9677 = vadd.xlane.f32.xlu1 %v9675_v28 }
0x4d08   :  { %v9680_v14 = vpop.xlane.xlu0 %9679 }
0x4d09   :  { %v9682_v30 = vmul.f32 0.03125, %v9680_v14 }
0x4d0a   :  { %v9678_v1 = vpop.xlane.xlu1 %9677 }
0x4d0b   :  { %v9684_v57 = vsub.f32 %v9676_v51, %v9682_v30  ;;  %v9681_v63 = vmul.f32 0.03125, %v9678_v1 }
0x4d0d   :  { %v9686_v40 = vmul.f32 %v12994_v8, %v9684_v57  ;;  %v9683_v29 = vsub.f32 %v9675_v28, %v9681_v63 }
0x4d0f   :  { %v9685_v25 = vmul.f32 %v12994_v8, %v9683_v29  ;;  %v9688_v6 = vmul.f32 %v9686_v40, %v9686_v40  ;;  %v10257_v8 = vld [vmem:[%s15103_s14 + $0x9] ss:$0 sm:$0xff] }
0x4d11   :  { %9691 = vadd.xlane.f32.xlu0 %v9688_v6  ;;  %v9687_v24 = vmul.f32 %v9685_v25, %v9685_v25 }
0x4d13   :  { %9689 = vadd.xlane.f32.xlu1 %v9687_v24 }
0x4d9a   :  { %v9692_v60 = vpop.xlane.xlu0 %9691 }
0x4d9b   :  { %v9694_v19 = vmul.f32 0.03125, %v9692_v60 }
0x4d9c   :  { %v9690_v32 = vpop.xlane.xlu1 %9689 }
0x4d9d   :  { %v9696_v41 = vadd.f32 1e-05, %v9694_v19  ;;  %v9693_v44 = vmul.f32 0.03125, %v9690_v32 }
0x4d9f   :  { %12430 = vrsqrt.f32 %v9696_v41  ;;  %v9695_v62 = vadd.f32 1e-05, %v9693_v44 }
0x4da1   :  { %12432 = vrsqrt.f32 %v9695_v62 }
0x4dac   :  { %v12431_v34 = vpop.eup %12430 }
0x4dad   :  { %v9700_v48 = vmul.f32 %v12431_v34, %v9686_v40 }
0x4dae   :  { %v12433_v27 = vpop.eup %12432 }
0x4daf   :  { %v9699_v18 = vmul.f32 %v12433_v27, %v9685_v25  ;;  %v9710_v37 = vmul.f32 %v10255_v0, %v9700_v48 }
0x4db1   :  { %v9709_v22 = vmul.f32 %v10255_v0, %v9699_v18  ;;  %v9720_v42 = vadd.f32 %v10257_v8, %v9710_v37 }
0x4db3   :  { %v9719_v47 = vadd.f32 %v10257_v8, %v9709_v22  ;;  %9722 = vst [vmem:[#allocation2 + $0x8] sm:$0xff] %v9720_v42 }
0x4db5   :  { %9721 = vst [vmem:[#allocation2] sm:$0xff] %v9719_v47 }
0x4db6   :  { %12452 = shalt.err (!%p12449_p4)
}
0x4db7   :  { %s12477_s13 = smov 128   ;;  %s12478_s22 = smov 8  }
0x4db8   :  { %9734 = dma.vmem_to_hbm [thread:$0]  %s9729_s16, 256, %s15104_s15, [#allocation3], %s12477_s13, %s12477_s13, %s12478_s22  }
0x4db9   :  { %12461 = dma.done.wait [#allocation3], 256  }
0x4dba   :  { %12462 = vsyncadd [#allocation3], 4294967040 }
0x4dbb   :  { %9738 = vsyncpa [#allocation3], 1 }

</bundles_post_ra>
